<compile_context>
chip_gen: v7x
topology: tpu7x:2x2x1
jax: 0.10.0
libtpu: 0.0.40
codegen_flags: <defaults>
</compile_context>

<pallas_src>
import functools

import jax
import jax.numpy as jnp
from jax.experimental import pallas as pl
from jax.experimental.pallas import tpu as pltpu


# ---------------------------------------------------------------------------
# Fused decoder kernel: all ConvBNReLU layers + mean pool + linear head.
# ---------------------------------------------------------------------------
def fused_decoder_kernel(xpad_ref, mask_ref, w0_ref, s0_ref, b0_ref,
                         wz_ref, sz_ref, bz_ref, lw_ref, lb_ref,
                         o_ref, pad_ref, *, H, W, num_blocks):
    # xpad_ref : (1, (H+2)*(W+2)+2, Cin)  flattened zero-padded input image
    # mask_ref : (H*(W+2), 1)             1.0 for valid window-start rows
    # w0_ref   : (9*Cin, Z)               layer-0 im2col weight
    # s0/b0    : (1, Z)                   folded BN scale / bias
    # wz_ref   : (num_blocks, 9*Z, Z)     stacked Z->Z im2col weights
    # sz/bz    : (num_blocks, 1, Z)
    # lw_ref   : (Z, num_bits+1), lb_ref : (1, num_bits+1)
    # o_ref    : (1, 1, num_bits+1)
    # pad_ref  : VMEM scratch ((H+2)*(W+2)+2, Z) — padded activation slab
    Wp = W + 2
    M = H * Wp                      # window-start rows (incl. 2 garbage cols/row)
    mask = mask_ref[...]            # (M, 1)

    # Zero the padded-activation scratch every step: border rows/cols must read
    # as 0, and scratch state cannot be assumed across "parallel" grid steps
    # (they may run on different TensorCores on v7x).
    pad_ref[...] = jnp.zeros_like(pad_ref)

    def conv_bn_relu(read_tap, w2d, scale, bias):
        # im2col: each 3x3 tap is a contiguous sublane-offset slice of the flat
        # padded slab; concat along lanes -> one MXU push with K = 9*C.
        taps = [read_tap(dy * Wp + dx) for dy in range(3) for dx in range(3)]
        patch = jnp.concatenate(taps, axis=-1)                  # (M, 9*C)
        y = jnp.dot(patch, w2d, preferred_element_type=jnp.float32)
        y = jnp.maximum(y * scale + bias, 0.0)                  # folded BN + ReLU
        return y * mask                                         # zero garbage rows

    # Layer 0: taps read straight from the pre-padded, flattened input block.
    y = conv_bn_relu(lambda off: xpad_ref[0, off:off + M, :],
                     w0_ref[...], s0_ref[...], b0_ref[...])

    # Layers 1..num_blocks: store the activation (interior + zeroed garbage,
    # which lands exactly on the left/right pad columns) into the padded
    # scratch at offset W+3, then conv again. Activations stay in VMEM.
    for i in range(num_blocks):
        pad_ref[Wp + 1:Wp + 1 + M, :] = y
        y = conv_bn_relu(lambda off: pad_ref[off:off + M, :],
                         wz_ref[i], sz_ref[i], bz_ref[i])

    # Global average pool over the H*W valid pixels (garbage rows are zero),
    # then the linear head.
    pooled = jnp.sum(y, axis=0, keepdims=True) * (1.0 / (H * W))  # (1, Z)
    out = jnp.dot(pooled, lw_ref[...], preferred_element_type=jnp.float32)
    out = out + lb_ref[...]
    o_ref[...] = out.reshape(1, 1, -1).astype(o_ref.dtype)


def hidden_decoder_forward(x_nhwc, params):
    """x_nhwc: (B, H, W, Cin) float32 -> (B, num_bits + 1) float32."""
    B, H, W, Cin = x_nhwc.shape
    Z = params["blocks"][0]["w"].shape[-1]
    num_blocks = len(params["blocks"]) - 1
    nout = params["lin_w"].shape[-1]
    Wp = W + 2
    Np = (H + 2) * Wp
    M = H * Wp

    # One-time flat zero padding of the network input (tiny). All per-layer
    # padding happens inside the kernel's VMEM scratch. The 2 extra zero rows
    # keep the dy=2,dx=2 tap of the garbage window-starts in bounds.
    xflat = jnp.pad(x_nhwc, ((0, 0), (1, 1), (1, 1), (0, 0))).reshape(B, Np, Cin)
    xflat = jnp.pad(xflat, ((0, 0), (0, 2), (0, 0)))

    # Validity mask over window-start rows: x_p in [0, W) valid, {W, W+1} garbage.
    col = jnp.tile(jnp.arange(Wp, dtype=jnp.int32), H)
    mask = (col < W).astype(jnp.float32)[:, None]               # (M, 1)

    # Weight packing: (9, Cin, Cout) -> (9*Cin, Cout) matching im2col tap order.
    w0 = params["blocks"][0]["w"].reshape(9 * Cin, Z)
    s0 = params["blocks"][0]["scale"]
    b0 = params["blocks"][0]["bias"]
    if num_blocks > 0:
        wz = jnp.stack([blk["w"].reshape(9 * Z, Z)
                        for blk in params["blocks"][1:]])       # (nb, 9Z, Z)
        sz = jnp.stack([blk["scale"] for blk in params["blocks"][1:]])
        bz = jnp.stack([blk["bias"] for blk in params["blocks"][1:]])
    else:  # dummies (never read inside the kernel)
        wz = jnp.zeros((1, 9 * Z, Z), jnp.float32)
        sz = jnp.zeros((1, 1, Z), jnp.float32)
        bz = jnp.zeros((1, 1, Z), jnp.float32)

    kernel = functools.partial(fused_decoder_kernel, H=H, W=W,
                               num_blocks=num_blocks)
    out3 = pl.pallas_call(
        kernel,
        out_shape=jax.ShapeDtypeStruct((B, 1, nout), jnp.float32),
        grid_spec=pltpu.PrefetchScalarGridSpec(
            num_scalar_prefetch=0,
            grid=(B,),
            in_specs=[
                pl.BlockSpec((1, Np + 2, Cin), lambda b: (b, 0, 0)),
                pl.BlockSpec((M, 1), lambda b: (0, 0)),
                pl.BlockSpec((9 * Cin, Z), lambda b: (0, 0)),
                pl.BlockSpec((1, Z), lambda b: (0, 0)),
                pl.BlockSpec((1, Z), lambda b: (0, 0)),
                pl.BlockSpec(wz.shape, lambda b: (0, 0, 0)),
                pl.BlockSpec(sz.shape, lambda b: (0, 0, 0)),
                pl.BlockSpec(bz.shape, lambda b: (0, 0, 0)),
                pl.BlockSpec((Z, nout), lambda b: (0, 0)),
                pl.BlockSpec((1, nout), lambda b: (0, 0)),
            ],
            out_specs=pl.BlockSpec((1, 1, nout), lambda b: (b, 0, 0)),
            scratch_shapes=[pltpu.VMEM((Np + 2, Z), jnp.float32)],
        ),
        compiler_params=pltpu.CompilerParams(
            dimension_semantics=("parallel",)),
    )(xflat, mask, w0, s0, b0, wz, sz, bz, params["lin_w"], params["lin_b"])
    return out3.reshape(B, nout)


# ---------------------------------------------------------------------------
# Parameter construction (deterministic, synthetic) with folded BN.
# ---------------------------------------------------------------------------
def make_params(key, num_blocks, num_bits, in_channels, z_channels):
    params = {"blocks": []}
    cin = in_channels
    for _ in range(num_blocks + 1):
        key, k1, k2, k3, k4, k5, k6 = jax.random.split(key, 7)
        w = jax.random.normal(k1, (9, cin, z_channels), jnp.float32) * 0.1
        conv_b = jax.random.normal(k2, (z_channels,), jnp.float32) * 0.05
        gamma = 1.0 + 0.1 * jax.random.normal(k3, (z_channels,), jnp.float32)
        beta = 0.1 * jax.random.normal(k4, (z_channels,), jnp.float32)
        rmean = 0.05 * jax.random.normal(k5, (z_channels,), jnp.float32)
        rvar = 1.0 + 0.1 * jnp.abs(jax.random.normal(k6, (z_channels,),
                                                     jnp.float32))
        eps = 1e-5
        eff_scale = gamma / jnp.sqrt(rvar + eps)                 # fold BN
        eff_bias = beta + eff_scale * (conv_b - rmean)           # fold conv bias
        params["blocks"].append(
            dict(w=w, scale=eff_scale[None, :], bias=eff_bias[None, :]))
        cin = z_channels
    key, k1, k2 = jax.random.split(key, 3)
    params["lin_w"] = jax.random.normal(
        k1, (z_channels, num_bits + 1), jnp.float32) * 0.1
    params["lin_b"] = (jax.random.normal(
        k2, (num_bits + 1,), jnp.float32) * 0.05)[None, :]
    return params


# ---------------------------------------------------------------------------
# Pure-JAX reference (for correctness check).
# ---------------------------------------------------------------------------
def reference_forward(x_nhwc, params):
    h = x_nhwc
    for blk in params["blocks"]:
        w_hwio = blk["w"].reshape(3, 3, blk["w"].shape[1], blk["w"].shape[2])
        conv = jax.lax.conv_general_dilated(
            h, w_hwio, window_strides=(1, 1), padding="SAME",
            dimension_numbers=("NHWC", "HWIO", "NHWC"))
        h = jnp.maximum(conv * blk["scale"][0] + blk["bias"][0], 0.0)
    pooled = jnp.mean(h, axis=(1, 2))
    return pooled @ params["lin_w"] + params["lin_b"][0]


if __name__ == "__main__":
    # Small config: HiddenDecoder(num_blocks=2, num_bits=8, in_channels=4,
    #                             z_channels=32, pixelwise=False)
    B, C_IN, H, W = 2, 4, 16, 16
    NUM_BLOCKS, NUM_BITS, Z = 2, 8, 32

    key = jax.random.PRNGKey(0)
    key, kx = jax.random.split(key)
    x_nhwc = jax.random.normal(kx, (B, H, W, C_IN), jnp.float32)
    params = make_params(key, NUM_BLOCKS, NUM_BITS, C_IN, Z)

    out = jax.block_until_ready(hidden_decoder_forward(x_nhwc, params))
    assert out.shape == (B, NUM_BITS + 1), out.shape

    ref = jax.block_until_ready(reference_forward(x_nhwc, params))
    assert jnp.allclose(out, ref, atol=1e-3, rtol=1e-3), (
        "mismatch vs pure-JAX reference")

    print("KERNEL_OK")
</pallas_src>

<mosaic_0001>
module attributes {stable_mosaic.version = 11 : i64} {
  func.func @fused_decoder_kernel(%arg0: i32, %arg1: memref<1x326x4xf32, #tpu.memory_space<vmem>>, %arg2: memref<288x1xf32, #tpu.memory_space<vmem>>, %arg3: memref<36x32xf32, #tpu.memory_space<vmem>>, %arg4: memref<1x32xf32, #tpu.memory_space<vmem>>, %arg5: memref<1x32xf32, #tpu.memory_space<vmem>>, %arg6: memref<2x288x32xf32, #tpu.memory_space<vmem>>, %arg7: memref<2x1x32xf32, #tpu.memory_space<vmem>>, %arg8: memref<2x1x32xf32, #tpu.memory_space<vmem>>, %arg9: memref<32x9xf32, #tpu.memory_space<vmem>>, %arg10: memref<1x9xf32, #tpu.memory_space<vmem>>, %arg11: memref<1x1x9xf32, #tpu.memory_space<vmem>>, %arg12: memref<326x32xf32, #tpu.memory_space<vmem>>) attributes {dimension_semantics = [#tpu.dimension_semantics<parallel>], iteration_bounds = array<i64: 2>, scalar_prefetch = 0 : i64, scratch_operands = 1 : i64, tpu.core_type = #tpu.core_type<tc>, window_params = [{transform_indices = @transform_0, window_bounds = array<i64: 1, 326, 4>}, {pipeline_mode = #tpu.pipeline_mode<synchronous>, transform_indices = @transform_1, window_bounds = array<i64: 288, 1>}, {pipeline_mode = #tpu.pipeline_mode<synchronous>, transform_indices = @transform_2, window_bounds = array<i64: 36, 32>}, {pipeline_mode = #tpu.pipeline_mode<synchronous>, transform_indices = @transform_3, window_bounds = array<i64: 1, 32>}, {pipeline_mode = #tpu.pipeline_mode<synchronous>, transform_indices = @transform_4, window_bounds = array<i64: 1, 32>}, {pipeline_mode = #tpu.pipeline_mode<synchronous>, transform_indices = @transform_5, window_bounds = array<i64: 2, 288, 32>}, {pipeline_mode = #tpu.pipeline_mode<synchronous>, transform_indices = @transform_6, window_bounds = array<i64: 2, 1, 32>}, {pipeline_mode = #tpu.pipeline_mode<synchronous>, transform_indices = @transform_7, window_bounds = array<i64: 2, 1, 32>}, {pipeline_mode = #tpu.pipeline_mode<synchronous>, transform_indices = @transform_8, window_bounds = array<i64: 32, 9>}, {pipeline_mode = #tpu.pipeline_mode<synchronous>, transform_indices = @transform_9, window_bounds = array<i64: 1, 9>}, {transform_indices = @transform_10, window_bounds = array<i64: 1, 1, 9>}]} {
    %c0 = arith.constant 0 : index
    %c0_0 = arith.constant 0 : index
    %0 = vector.load %arg2[%c0, %c0_0] : memref<288x1xf32, #tpu.memory_space<vmem>>, vector<288x1xf32>
    %cst = arith.constant 0.000000e+00 : f32
    %1 = vector.broadcast %cst : f32 to vector<326x32xf32>
    %c0_1 = arith.constant 0 : index
    %c0_2 = arith.constant 0 : index
    %2 = vector.load %arg12[%c0_1, %c0_2] : memref<326x32xf32, #tpu.memory_space<vmem>>, vector<326x32xf32>
    tpu.vector_store %arg12[%c0_1, %c0_2], %1 {strides = array<i32>} : memref<326x32xf32, #tpu.memory_space<vmem>>, vector<326x32xf32>,
    %c0_3 = arith.constant 0 : index
    %c0_4 = arith.constant 0 : index
    %3 = vector.load %arg3[%c0_3, %c0_4] : memref<36x32xf32, #tpu.memory_space<vmem>>, vector<36x32xf32>
    %c0_5 = arith.constant 0 : index
    %c0_6 = arith.constant 0 : index
    %4 = vector.load %arg4[%c0_5, %c0_6] : memref<1x32xf32, #tpu.memory_space<vmem>>, vector<1x32xf32>
    %c0_7 = arith.constant 0 : index
    %c0_8 = arith.constant 0 : index
    %5 = vector.load %arg5[%c0_7, %c0_8] : memref<1x32xf32, #tpu.memory_space<vmem>>, vector<1x32xf32>
    %c0_9 = arith.constant 0 : index
    %c0_10 = arith.constant 0 : index
    %c0_11 = arith.constant 0 : index
    %6 = vector.load %arg1[%c0_9, %c0_10, %c0_11] : memref<1x326x4xf32, #tpu.memory_space<vmem>>, vector<1x288x4xf32>
    %7 = vector.shape_cast %6 : vector<1x288x4xf32> to vector<288x4xf32>
    %c0_12 = arith.constant 0 : index
    %c1 = arith.constant 1 : index
    %c0_13 = arith.constant 0 : index
    %8 = vector.load %arg1[%c0_12, %c1, %c0_13] : memref<1x326x4xf32, #tpu.memory_space<vmem>>, vector<1x288x4xf32>
    %9 = vector.shape_cast %8 : vector<1x288x4xf32> to vector<288x4xf32>
    %c0_14 = arith.constant 0 : index
    %c2 = arith.constant 2 : index
    %c0_15 = arith.constant 0 : index
    %10 = vector.load %arg1[%c0_14, %c2, %c0_15] : memref<1x326x4xf32, #tpu.memory_space<vmem>>, vector<1x288x4xf32>
    %11 = vector.shape_cast %10 : vector<1x288x4xf32> to vector<288x4xf32>
    %c0_16 = arith.constant 0 : index
    %c18 = arith.constant 18 : index
    %c0_17 = arith.constant 0 : index
    %12 = vector.load %arg1[%c0_16, %c18, %c0_17] : memref<1x326x4xf32, #tpu.memory_space<vmem>>, vector<1x288x4xf32>
    %13 = vector.shape_cast %12 : vector<1x288x4xf32> to vector<288x4xf32>
    %c0_18 = arith.constant 0 : index
    %c19 = arith.constant 19 : index
    %c0_19 = arith.constant 0 : index
    %14 = vector.load %arg1[%c0_18, %c19, %c0_19] : memref<1x326x4xf32, #tpu.memory_space<vmem>>, vector<1x288x4xf32>
    %15 = vector.shape_cast %14 : vector<1x288x4xf32> to vector<288x4xf32>
    %c0_20 = arith.constant 0 : index
    %c20 = arith.constant 20 : index
    %c0_21 = arith.constant 0 : index
    %16 = vector.load %arg1[%c0_20, %c20, %c0_21] : memref<1x326x4xf32, #tpu.memory_space<vmem>>, vector<1x288x4xf32>
    %17 = vector.shape_cast %16 : vector<1x288x4xf32> to vector<288x4xf32>
    %c0_22 = arith.constant 0 : index
    %c36 = arith.constant 36 : index
    %c0_23 = arith.constant 0 : index
    %18 = vector.load %arg1[%c0_22, %c36, %c0_23] : memref<1x326x4xf32, #tpu.memory_space<vmem>>, vector<1x288x4xf32>
    %19 = vector.shape_cast %18 : vector<1x288x4xf32> to vector<288x4xf32>
    %c0_24 = arith.constant 0 : index
    %c37 = arith.constant 37 : index
    %c0_25 = arith.constant 0 : index
    %20 = vector.load %arg1[%c0_24, %c37, %c0_25] : memref<1x326x4xf32, #tpu.memory_space<vmem>>, vector<1x288x4xf32>
    %21 = vector.shape_cast %20 : vector<1x288x4xf32> to vector<288x4xf32>
    %c0_26 = arith.constant 0 : index
    %c38 = arith.constant 38 : index
    %c0_27 = arith.constant 0 : index
    %22 = vector.load %arg1[%c0_26, %c38, %c0_27] : memref<1x326x4xf32, #tpu.memory_space<vmem>>, vector<1x288x4xf32>
    %23 = vector.shape_cast %22 : vector<1x288x4xf32> to vector<288x4xf32>
    %24 = tpu.concatenate %7, %9, %11, %13, %15, %17, %19, %21, %23 in 1 : vector<288x4xf32>, vector<288x4xf32>, vector<288x4xf32>, vector<288x4xf32>, vector<288x4xf32>, vector<288x4xf32>, vector<288x4xf32>, vector<288x4xf32>, vector<288x4xf32> -> vector<288x36xf32>
    %cst_28 = arith.constant dense<0.000000e+00> : vector<288x32xf32>
    %25 = tpu.matmul %24, %3, %cst_28 {dimension_numbers = #tpu.dot_dimension_numbers<[1], [0], [0], [1], [0, 0, 1, 1], [], []>} : vector<288x36xf32>, vector<36x32xf32>, vector<288x32xf32> -> vector<288x32xf32>
    %26 = vector.broadcast %4 : vector<1x32xf32> to vector<288x32xf32>
    %27 = arith.mulf %25, %26 : vector<288x32xf32>
    %28 = vector.broadcast %5 : vector<1x32xf32> to vector<288x32xf32>
    %29 = arith.addf %27, %28 : vector<288x32xf32>
    %cst_29 = arith.constant 0.000000e+00 : f32
    %30 = vector.broadcast %cst_29 : f32 to vector<288x32xf32>
    %31 = arith.maximumf %29, %30 : vector<288x32xf32>
    %32 = vector.broadcast %0 : vector<288x1xf32> to vector<288x32xf32>
    %33 = arith.mulf %31, %32 : vector<288x32xf32>
    %c19_30 = arith.constant 19 : index
    %c0_31 = arith.constant 0 : index
    %34 = vector.load %arg12[%c19_30, %c0_31] : memref<326x32xf32, #tpu.memory_space<vmem>>, vector<288x32xf32>
    tpu.vector_store %arg12[%c19_30, %c0_31], %33 {strides = array<i32>} : memref<326x32xf32, #tpu.memory_space<vmem>>, vector<288x32xf32>,
    %c0_32 = arith.constant 0 : index
    %c0_33 = arith.constant 0 : index
    %c0_34 = arith.constant 0 : index
    %35 = vector.load %arg6[%c0_32, %c0_33, %c0_34] : memref<2x288x32xf32, #tpu.memory_space<vmem>>, vector<1x288x32xf32>
    %36 = vector.shape_cast %35 : vector<1x288x32xf32> to vector<288x32xf32>
    %c0_35 = arith.constant 0 : index
    %c0_36 = arith.constant 0 : index
    %c0_37 = arith.constant 0 : index
    %37 = vector.load %arg7[%c0_35, %c0_36, %c0_37] : memref<2x1x32xf32, #tpu.memory_space<vmem>>, vector<1x1x32xf32>
    %38 = vector.shape_cast %37 : vector<1x1x32xf32> to vector<1x32xf32>
    %c0_38 = arith.constant 0 : index
    %c0_39 = arith.constant 0 : index
    %c0_40 = arith.constant 0 : index
    %39 = vector.load %arg8[%c0_38, %c0_39, %c0_40] : memref<2x1x32xf32, #tpu.memory_space<vmem>>, vector<1x1x32xf32>
    %40 = vector.shape_cast %39 : vector<1x1x32xf32> to vector<1x32xf32>
    %c0_41 = arith.constant 0 : index
    %c0_42 = arith.constant 0 : index
    %41 = vector.load %arg12[%c0_41, %c0_42] : memref<326x32xf32, #tpu.memory_space<vmem>>, vector<288x32xf32>
    %c1_43 = arith.constant 1 : index
    %c0_44 = arith.constant 0 : index
    %42 = vector.load %arg12[%c1_43, %c0_44] : memref<326x32xf32, #tpu.memory_space<vmem>>, vector<288x32xf32>
    %c2_45 = arith.constant 2 : index
    %c0_46 = arith.constant 0 : index
    %43 = vector.load %arg12[%c2_45, %c0_46] : memref<326x32xf32, #tpu.memory_space<vmem>>, vector<288x32xf32>
    %c18_47 = arith.constant 18 : index
    %c0_48 = arith.constant 0 : index
    %44 = vector.load %arg12[%c18_47, %c0_48] : memref<326x32xf32, #tpu.memory_space<vmem>>, vector<288x32xf32>
    %c19_49 = arith.constant 19 : index
    %c0_50 = arith.constant 0 : index
    %45 = vector.load %arg12[%c19_49, %c0_50] : memref<326x32xf32, #tpu.memory_space<vmem>>, vector<288x32xf32>
    %c20_51 = arith.constant 20 : index
    %c0_52 = arith.constant 0 : index
    %46 = vector.load %arg12[%c20_51, %c0_52] : memref<326x32xf32, #tpu.memory_space<vmem>>, vector<288x32xf32>
    %c36_53 = arith.constant 36 : index
    %c0_54 = arith.constant 0 : index
    %47 = vector.load %arg12[%c36_53, %c0_54] : memref<326x32xf32, #tpu.memory_space<vmem>>, vector<288x32xf32>
    %c37_55 = arith.constant 37 : index
    %c0_56 = arith.constant 0 : index
    %48 = vector.load %arg12[%c37_55, %c0_56] : memref<326x32xf32, #tpu.memory_space<vmem>>, vector<288x32xf32>
    %c38_57 = arith.constant 38 : index
    %c0_58 = arith.constant 0 : index
    %49 = vector.load %arg12[%c38_57, %c0_58] : memref<326x32xf32, #tpu.memory_space<vmem>>, vector<288x32xf32>
    %50 = tpu.concatenate %41, %42, %43, %44, %45, %46, %47, %48, %49 in 1 : vector<288x32xf32>, vector<288x32xf32>, vector<288x32xf32>, vector<288x32xf32>, vector<288x32xf32>, vector<288x32xf32>, vector<288x32xf32>, vector<288x32xf32>, vector<288x32xf32> -> vector<288x288xf32>
    %cst_59 = arith.constant dense<0.000000e+00> : vector<288x32xf32>
    %51 = tpu.matmul %50, %36, %cst_59 {dimension_numbers = #tpu.dot_dimension_numbers<[1], [0], [0], [1], [0, 0, 1, 1], [], []>} : vector<288x288xf32>, vector<288x32xf32>, vector<288x32xf32> -> vector<288x32xf32>
    %52 = vector.broadcast %38 : vector<1x32xf32> to vector<288x32xf32>
    %53 = arith.mulf %51, %52 : vector<288x32xf32>
    %54 = vector.broadcast %40 : vector<1x32xf32> to vector<288x32xf32>
    %55 = arith.addf %53, %54 : vector<288x32xf32>
    %cst_60 = arith.constant 0.000000e+00 : f32
    %56 = vector.broadcast %cst_60 : f32 to vector<288x32xf32>
    %57 = arith.maximumf %55, %56 : vector<288x32xf32>
    %58 = vector.broadcast %0 : vector<288x1xf32> to vector<288x32xf32>
    %59 = arith.mulf %57, %58 : vector<288x32xf32>
    %c19_61 = arith.constant 19 : index
    %c0_62 = arith.constant 0 : index
    %60 = vector.load %arg12[%c19_61, %c0_62] : memref<326x32xf32, #tpu.memory_space<vmem>>, vector<288x32xf32>
    tpu.vector_store %arg12[%c19_61, %c0_62], %59 {strides = array<i32>} : memref<326x32xf32, #tpu.memory_space<vmem>>, vector<288x32xf32>,
    %c1_63 = arith.constant 1 : index
    %c0_64 = arith.constant 0 : index
    %c0_65 = arith.constant 0 : index
    %61 = vector.load %arg6[%c1_63, %c0_64, %c0_65] : memref<2x288x32xf32, #tpu.memory_space<vmem>>, vector<1x288x32xf32>
    %62 = vector.shape_cast %61 : vector<1x288x32xf32> to vector<288x32xf32>
    %c1_66 = arith.constant 1 : index
    %c0_67 = arith.constant 0 : index
    %c0_68 = arith.constant 0 : index
    %63 = vector.load %arg7[%c1_66, %c0_67, %c0_68] : memref<2x1x32xf32, #tpu.memory_space<vmem>>, vector<1x1x32xf32>
    %64 = vector.shape_cast %63 : vector<1x1x32xf32> to vector<1x32xf32>
    %c1_69 = arith.constant 1 : index
    %c0_70 = arith.constant 0 : index
    %c0_71 = arith.constant 0 : index
    %65 = vector.load %arg8[%c1_69, %c0_70, %c0_71] : memref<2x1x32xf32, #tpu.memory_space<vmem>>, vector<1x1x32xf32>
    %66 = vector.shape_cast %65 : vector<1x1x32xf32> to vector<1x32xf32>
    %c0_72 = arith.constant 0 : index
    %c0_73 = arith.constant 0 : index
    %67 = vector.load %arg12[%c0_72, %c0_73] : memref<326x32xf32, #tpu.memory_space<vmem>>, vector<288x32xf32>
    %c1_74 = arith.constant 1 : index
    %c0_75 = arith.constant 0 : index
    %68 = vector.load %arg12[%c1_74, %c0_75] : memref<326x32xf32, #tpu.memory_space<vmem>>, vector<288x32xf32>
    %c2_76 = arith.constant 2 : index
    %c0_77 = arith.constant 0 : index
    %69 = vector.load %arg12[%c2_76, %c0_77] : memref<326x32xf32, #tpu.memory_space<vmem>>, vector<288x32xf32>
    %c18_78 = arith.constant 18 : index
    %c0_79 = arith.constant 0 : index
    %70 = vector.load %arg12[%c18_78, %c0_79] : memref<326x32xf32, #tpu.memory_space<vmem>>, vector<288x32xf32>
    %c19_80 = arith.constant 19 : index
    %c0_81 = arith.constant 0 : index
    %71 = vector.load %arg12[%c19_80, %c0_81] : memref<326x32xf32, #tpu.memory_space<vmem>>, vector<288x32xf32>
    %c20_82 = arith.constant 20 : index
    %c0_83 = arith.constant 0 : index
    %72 = vector.load %arg12[%c20_82, %c0_83] : memref<326x32xf32, #tpu.memory_space<vmem>>, vector<288x32xf32>
    %c36_84 = arith.constant 36 : index
    %c0_85 = arith.constant 0 : index
    %73 = vector.load %arg12[%c36_84, %c0_85] : memref<326x32xf32, #tpu.memory_space<vmem>>, vector<288x32xf32>
    %c37_86 = arith.constant 37 : index
    %c0_87 = arith.constant 0 : index
    %74 = vector.load %arg12[%c37_86, %c0_87] : memref<326x32xf32, #tpu.memory_space<vmem>>, vector<288x32xf32>
    %c38_88 = arith.constant 38 : index
    %c0_89 = arith.constant 0 : index
    %75 = vector.load %arg12[%c38_88, %c0_89] : memref<326x32xf32, #tpu.memory_space<vmem>>, vector<288x32xf32>
    %76 = tpu.concatenate %67, %68, %69, %70, %71, %72, %73, %74, %75 in 1 : vector<288x32xf32>, vector<288x32xf32>, vector<288x32xf32>, vector<288x32xf32>, vector<288x32xf32>, vector<288x32xf32>, vector<288x32xf32>, vector<288x32xf32>, vector<288x32xf32> -> vector<288x288xf32>
    %cst_90 = arith.constant dense<0.000000e+00> : vector<288x32xf32>
    %77 = tpu.matmul %76, %62, %cst_90 {dimension_numbers = #tpu.dot_dimension_numbers<[1], [0], [0], [1], [0, 0, 1, 1], [], []>} : vector<288x288xf32>, vector<288x32xf32>, vector<288x32xf32> -> vector<288x32xf32>
    %78 = vector.broadcast %64 : vector<1x32xf32> to vector<288x32xf32>
    %79 = arith.mulf %77, %78 : vector<288x32xf32>
    %80 = vector.broadcast %66 : vector<1x32xf32> to vector<288x32xf32>
    %81 = arith.addf %79, %80 : vector<288x32xf32>
    %cst_91 = arith.constant 0.000000e+00 : f32
    %82 = vector.broadcast %cst_91 : f32 to vector<288x32xf32>
    %83 = arith.maximumf %81, %82 : vector<288x32xf32>
    %84 = vector.broadcast %0 : vector<288x1xf32> to vector<288x32xf32>
    %85 = arith.mulf %83, %84 : vector<288x32xf32>
    %cst_92 = arith.constant dense<0.000000e+00> : vector<32xf32>
    %86 = vector.multi_reduction <add>, %85, %cst_92 [0] : vector<288x32xf32> to vector<32xf32>
    %87 = vector.shape_cast %86 : vector<32xf32> to vector<1x32xf32>
    %cst_93 = arith.constant 3.906250e-03 : f32
    %88 = vector.broadcast %cst_93 : f32 to vector<1x32xf32>
    %89 = arith.mulf %87, %88 : vector<1x32xf32>
    %c0_94 = arith.constant 0 : index
    %c0_95 = arith.constant 0 : index
    %90 = vector.load %arg9[%c0_94, %c0_95] : memref<32x9xf32, #tpu.memory_space<vmem>>, vector<32x9xf32>
    %cst_96 = arith.constant dense<0.000000e+00> : vector<1x9xf32>
    %91 = tpu.matmul %89, %90, %cst_96 {dimension_numbers = #tpu.dot_dimension_numbers<[1], [0], [0], [1], [0, 0, 1, 1], [], []>} : vector<1x32xf32>, vector<32x9xf32>, vector<1x9xf32> -> vector<1x9xf32>
    %c0_97 = arith.constant 0 : index
    %c0_98 = arith.constant 0 : index
    %92 = vector.load %arg10[%c0_97, %c0_98] : memref<1x9xf32, #tpu.memory_space<vmem>>, vector<1x9xf32>
    %93 = arith.addf %91, %92 : vector<1x9xf32>
    %94 = vector.shape_cast %93 : vector<1x9xf32> to vector<1x1x9xf32>
    %c0_99 = arith.constant 0 : index
    %c0_100 = arith.constant 0 : index
    %c0_101 = arith.constant 0 : index
    %95 = vector.load %arg11[%c0_99, %c0_100, %c0_101] : memref<1x1x9xf32, #tpu.memory_space<vmem>>, vector<1x1x9xf32>
    tpu.vector_store %arg11[%c0_99, %c0_100, %c0_101], %94 {strides = array<i32>} : memref<1x1x9xf32, #tpu.memory_space<vmem>>, vector<1x1x9xf32>,
    return
  }
  func.func @transform_0(%arg0: i32) -> (i32, i32, i32) {
    %c0_i32 = arith.constant 0 : i32
    %c0_i32_0 = arith.constant 0 : i32
    %c0_i32_1 = arith.constant 0 : i32
    return %arg0, %c0_i32, %c0_i32_0 : i32, i32, i32
  }
  func.func @transform_1(%arg0: i32) -> (i32, i32) {
    %c0_i32 = arith.constant 0 : i32
    %c0_i32_0 = arith.constant 0 : i32
    %c0_i32_1 = arith.constant 0 : i32
    return %c0_i32, %c0_i32_0 : i32, i32
  }
  func.func @transform_2(%arg0: i32) -> (i32, i32) {
    %c0_i32 = arith.constant 0 : i32
    %c0_i32_0 = arith.constant 0 : i32
    %c0_i32_1 = arith.constant 0 : i32
    return %c0_i32, %c0_i32_0 : i32, i32
  }
  func.func @transform_3(%arg0: i32) -> (i32, i32) {
    %c0_i32 = arith.constant 0 : i32
    %c0_i32_0 = arith.constant 0 : i32
    %c0_i32_1 = arith.constant 0 : i32
    return %c0_i32, %c0_i32_0 : i32, i32
  }
  func.func @transform_4(%arg0: i32) -> (i32, i32) {
    %c0_i32 = arith.constant 0 : i32
    %c0_i32_0 = arith.constant 0 : i32
    %c0_i32_1 = arith.constant 0 : i32
    return %c0_i32, %c0_i32_0 : i32, i32
  }
  func.func @transform_5(%arg0: i32) -> (i32, i32, i32) {
    %c0_i32 = arith.constant 0 : i32
    %c0_i32_0 = arith.constant 0 : i32
    %c0_i32_1 = arith.constant 0 : i32
    %c0_i32_2 = arith.constant 0 : i32
    return %c0_i32, %c0_i32_0, %c0_i32_1 : i32, i32, i32
  }
  func.func @transform_6(%arg0: i32) -> (i32, i32, i32) {
    %c0_i32 = arith.constant 0 : i32
    %c0_i32_0 = arith.constant 0 : i32
    %c0_i32_1 = arith.constant 0 : i32
    %c0_i32_2 = arith.constant 0 : i32
    return %c0_i32, %c0_i32_0, %c0_i32_1 : i32, i32, i32
  }
  func.func @transform_7(%arg0: i32) -> (i32, i32, i32) {
    %c0_i32 = arith.constant 0 : i32
    %c0_i32_0 = arith.constant 0 : i32
    %c0_i32_1 = arith.constant 0 : i32
    %c0_i32_2 = arith.constant 0 : i32
    return %c0_i32, %c0_i32_0, %c0_i32_1 : i32, i32, i32
  }
  func.func @transform_8(%arg0: i32) -> (i32, i32) {
    %c0_i32 = arith.constant 0 : i32
    %c0_i32_0 = arith.constant 0 : i32
    %c0_i32_1 = arith.constant 0 : i32
    return %c0_i32, %c0_i32_0 : i32, i32
  }
  func.func @transform_9(%arg0: i32) -> (i32, i32) {
    %c0_i32 = arith.constant 0 : i32
    %c0_i32_0 = arith.constant 0 : i32
    %c0_i32_1 = arith.constant 0 : i32
    return %c0_i32, %c0_i32_0 : i32, i32
  }
  func.func @transform_10(%arg0: i32) -> (i32, i32, i32) {
    %c0_i32 = arith.constant 0 : i32
    %c0_i32_0 = arith.constant 0 : i32
    %c0_i32_1 = arith.constant 0 : i32
    return %arg0, %c0_i32, %c0_i32_0 : i32, i32, i32
  }
}

</mosaic_0001>

<bundles_post_ra>
// kernel: tpu_custom_call.1
= control target key start
LH: loop header
LB: loop body
LE: loop exit
PB: predicated region body
PF: predicated region fallthrough
CT: control target
= control target key end

     0   :  { %15 = vsyncpa [#allocation4], 0  ;;  %s13029_s0 = inlined_call_operand.vmem [shape: f32[2,326,4], index: 0, kind: input, shape index: {}]   ;;  %s13030_s1 = inlined_call_operand.vmem [shape: f32[288,1], index: 1, kind: input, shape index: {}]   ;;  %s13031_s2 = inlined_call_operand.vmem [shape: f32[36,32], index: 2, kind: input, shape index: {}]   ;;  %s13032_s3 = inlined_call_operand.vmem [shape: f32[1,32], index: 3, kind: input, shape index: {}]   ;;  %s13033_s4 = inlined_call_operand.vmem [shape: f32[1,32], index: 4, kind: input, shape index: {}]   ;;  %s13034_s5 = inlined_call_operand.vmem [shape: f32[2,288,32], index: 5, kind: input, shape index: {}]   ;;  %s13035_s6 = inlined_call_operand.vmem [shape: f32[2,1,32], index: 6, kind: input, shape index: {}]   ;;  %s13036_s7 = inlined_call_operand.vmem [shape: f32[2,1,32], index: 7, kind: input, shape index: {}]   ;;  %s13037_s8 = inlined_call_operand.vmem [shape: f32[32,9], index: 8, kind: input, shape index: {}]   ;;  %s13038_s9 = inlined_call_operand.vmem [shape: f32[1,9], index: 9, kind: input, shape index: {}]   ;;  %s13039_s10 = inlined_call_operand.hbm [shape: f32[2,1,9], index: 10, kind: output, shape index: {}]  }
   0x1   :  { %17 = vsyncpa [#allocation4 + $0x1], 0  ;;  %s9088_s13 = smov 0   ;;  %s9090_s14 = smov 0  }
   0x2   :  { %s9092_s15 = smov 0   ;;  %s9094_s16 = smov 0  }
   0x3 LB: > { %s9109_s17 = sadd.s32 4294967295, %s9016_s16   ;;  %s7195_s18 = sadd.s32 4294967294, %s9016_s16   ;;  %s9016_s16 = sphi %s9094_s16, %s13351_s16   ;;  %s9012_s15 = sphi %s9092_s15, %s13350_s15   ;;  %s9008_s14 = sphi %s9090_s14, %s13349_s14   ;;  %s9004_s13 = sphi %s9088_s13, %s13348_s13  }
   0x4   : > { %s9113_s19 = sadd.s32 1, %s9016_s16   ;;  %s245_s20 = sadd.s32 1, %s9012_s15 }
   0x5   : > { %s242_s21 = ssub.s32 %s9016_s16, %s9113_s19  ;;  %p255_p0 = scmp.ne.s32.totalorder %s9012_s15, %s9008_s14 }
   0x6   : > { %p243_p1 = scmp.eq.s32.totalorder %s242_s21, 0  ;;  %p256_p2 = scmp.eq.s32.totalorder %s9109_s17, 1 }
   0x7   : > { %p261_p3 = scmp.ne.s32.totalorder %s9008_s14, %s9004_s13  ;;  %p262_p4 = scmp.eq.s32.totalorder %s7195_s18, 1 }
   0x8   : > { %s9124_s22 = scalar_select %p243_p1, %s9012_s15, %s245_s20  }
   0x9   : > { %p9126_p5 = por %p256_p2, %p255_p0  ;;  %p9130_p6 = por %p262_p4, %p261_p3 }
   0xa   : > { %p7198_p7 = scmp.ge.s32.totalorder %s9016_s16, 1  ;;  %p315_p8 = scmp.lt.s32.totalorder %s9016_s16, 3 }
   0xc   : > { %p316_p9 = pnand %p7198_p7, %p315_p8 }
   0xe   : > { %319 = sbr.rel (%p316_p9) target bundleno = 1996 (0x7cc), region = 60 }
  0x15   : > { %p352_p10 = scmp.lt.s32.totalorder %s9109_s17, 1  ;;  %s9018_s30 = smov 4   ;;  %vm2187_vm0 = vcmask 1043456   ;;  %vm1783_vm1 = vcmask 31744   ;;  %vm1820_vm2 = vcmask 64512   ;;  %vm1857_vm3 = vcmask 97280  }
  0x16   : > { %s9019_s11 = smov 8   ;;  %s9020_s12 = smov 12   ;;  %vm1894_vm4 = vcmask 130048   ;;  %vm1931_vm5 = vcmask 162816   ;;  %vm1968_vm6 = vcmask 195584   ;;  %vm2005_vm7 = vcmask 228352  }
  0x17   : > { %s353_s25 = scalar_select %p352_p10, %s9109_s17, 1  ;;  %vm393_vm8 = vcmask 261120   ;;  %vm2078_vm9 = vcmask 293888   ;;  %vm434_vm10 = vcmask 259072   ;;  %vm3934_vm11 = vcmask 523264  }
  0x18   : > { %s9021_s18 = smov 16   ;;  %s9022_s20 = smov 20   ;;  %vm3971_vm12 = vcmask 785408   ;;  %vm9031_vm13 = vmmov 0   ;;  %vm7125_vm14 = vcmask 65536  }
  0x19   : > { %s7812_s26 = smul.u32 328, %s353_s25  ;;  %s9023_s25 = smov 24  }
  0x1a   : > { %s9025_s27 = smov 32   ;;  %s9029_s28 = smov 64  }
  0x1b   : > { %s9141_s29 = scalar_lea.vmem %s13029_s0, %s7812_s26  ;;  %s9024_s26 = smov 28  }
  0x1c   : > { %v481_v0 = vld [vmem:[%s9141_s29 + $0x11] sm:$0xff]  ;;  %v479_v1 = vld [vmem:[%s9141_s29 + $0x1] sm:$0xff]  ;;  %v482_v2 = vld [vmem:[%s9141_s29 + $0x19] sm:$0xff] }
  0x1d   : > { %739 = vrot.lane.b32.xlu1 %v481_v0, %s9018_s30  ;;  %735 = vrot.lane.b32.xlu0 %v479_v1, %s9018_s30  ;;  %v480_v3 = vld [vmem:[%s9141_s29 + $0x9] sm:$0xff]  ;;  %v483_v5 = vld [vmem:[%s9141_s29 + $0x21] sm:$0xff] }
  0x1e   : > { %v484_v4 = vld [vmem:[%s9141_s29 + $0x29] sm:$0xff]  ;;  %v486_v6 = vld [vmem:[%s9141_s29 + $0x39] sm:$0xff]  ;;  %v485_v7 = vld [vmem:[%s9141_s29 + $0x31] sm:$0xff] }
  0x1f   : > { %v488_v8 = vld [vmem:[%s9141_s29 + $0x49] sm:$0xff]  ;;  %v487_v9 = vld [vmem:[%s9141_s29 + $0x41] sm:$0xff]  ;;  %v490_v10 = vld [vmem:[%s9141_s29 + $0x59] sm:$0xff] }
  0x20   : > { %v489_v11 = vld [vmem:[%s9141_s29 + $0x51] sm:$0xff]  ;;  %v492_v12 = vld [vmem:[%s9141_s29 + $0x69] sm:$0xff]  ;;  %v491_v13 = vld [vmem:[%s9141_s29 + $0x61] sm:$0xff] }
  0x21   : > { %741 = vrot.lane.b32.xlu1 %v482_v2, %s9018_s30  ;;  %737 = vrot.lane.b32.xlu0 %v480_v3, %s9018_s30  ;;  %v494_v14 = vld [vmem:[%s9141_s29 + $0x79] sm:$0xff]  ;;  %v493_v15 = vld [vmem:[%s9141_s29 + $0x71] sm:$0xff] }
  0x22   : > { %v496_v16 = vld [vmem:[%s9141_s29 + $0x89] sm:$0xff]  ;;  %v495_v17 = vld [vmem:[%s9141_s29 + $0x81] sm:$0xff]  ;;  %v498_v18 = vld [vmem:[%s9141_s29 + $0x99] sm:$0xff] }
  0x23   : > { %v497_v19 = vld [vmem:[%s9141_s29 + $0x91] sm:$0xff]  ;;  %v500_v20 = vld [vmem:[%s9141_s29 + $0xa9] sm:$0xff]  ;;  %v499_v21 = vld [vmem:[%s9141_s29 + $0xa1] sm:$0xff] }
  0x24   : > { %v502_v22 = vld [vmem:[%s9141_s29 + $0xb9] sm:$0xff]  ;;  %v501_v23 = vld [vmem:[%s9141_s29 + $0xb1] sm:$0xff]  ;;  %v504_v24 = vld [vmem:[%s9141_s29 + $0xc9] sm:$0xff] }
  0x25   : > { %745 = vrot.lane.b32.xlu1 %v484_v4, %s9018_s30  ;;  %743 = vrot.lane.b32.xlu0 %v483_v5, %s9018_s30  ;;  %v503_v25 = vld [vmem:[%s9141_s29 + $0xc1] sm:$0xff]  ;;  %v506_v26 = vld [vmem:[%s9141_s29 + $0xd9] sm:$0xff] }
  0x26   : > { %v505_v27 = vld [vmem:[%s9141_s29 + $0xd1] sm:$0xff]  ;;  %v508_v28 = vld [vmem:[%s9141_s29 + $0xe9] sm:$0xff]  ;;  %v507_v29 = vld [vmem:[%s9141_s29 + $0xe1] sm:$0xff] }
  0x27   : > { %v510_v30 = vld [vmem:[%s9141_s29 + $0xf9] sm:$0xff]  ;;  %v509_v31 = vld [vmem:[%s9141_s29 + $0xf1] sm:$0xff]  ;;  %v512_v32 = vld [vmem:[%s9141_s29 + $0x109] sm:$0xff] }
  0x28   : > { %v511_v33 = vld [vmem:[%s9141_s29 + $0x101] sm:$0xff]  ;;  %v514_v34 = vld [vmem:[%s9141_s29 + $0x119] sm:$0xff]  ;;  %v513_v35 = vld [vmem:[%s9141_s29 + $0x111] sm:$0xff] }
  0x29   : > { %749 = vrot.lane.b32.xlu1 %v486_v6, %s9018_s30  ;;  %747 = vrot.lane.b32.xlu0 %v485_v7, %s9018_s30  ;;  %v516_v36 = vld [vmem:[%s9141_s29 + $0xa] sm:$0xff]  ;;  %v515_v37 = vld [vmem:[%s9141_s29 + $0x2] sm:$0xff] }
  0x2a   : > { %v9220_v38 = vld [vmem:[%s9141_s29 + $0x1a] sm:$0xff]  ;;  %v9223_v39 = vld [vmem:[%s9141_s29 + $0x12] sm:$0xff]  ;;  %v9230_v40 = vld [vmem:[%s9141_s29 + $0x2a] sm:$0xff] }
  0x2b   : > { %v9233_v41 = vld [vmem:[%s9141_s29 + $0x22] sm:$0xff]  ;;  %v9240_v42 = vld [vmem:[%s9141_s29 + $0x3a] sm:$0xff]  ;;  %v9243_v43 = vld [vmem:[%s9141_s29 + $0x32] sm:$0xff] }
  0x2c   : > { %v9250_v44 = vld [vmem:[%s9141_s29 + $0x4a] sm:$0xff]  ;;  %v9253_v45 = vld [vmem:[%s9141_s29 + $0x42] sm:$0xff]  ;;  %v9260_v46 = vld [vmem:[%s9141_s29 + $0x5a] sm:$0xff] }
  0x2d   : > { %753 = vrot.lane.b32.xlu1 %v488_v8, %s9018_s30  ;;  %751 = vrot.lane.b32.xlu0 %v487_v9, %s9018_s30  ;;  %v9263_v47 = vld [vmem:[%s9141_s29 + $0x52] sm:$0xff]  ;;  %v9270_v48 = vld [vmem:[%s9141_s29 + $0x6a] sm:$0xff] }
  0x2e   : > { %v9273_v49 = vld [vmem:[%s9141_s29 + $0x62] sm:$0xff]  ;;  %v9280_v50 = vld [vmem:[%s9141_s29 + $0x7a] sm:$0xff]  ;;  %v9283_v51 = vld [vmem:[%s9141_s29 + $0x72] sm:$0xff] }
  0x2f   : > { %v9290_v52 = vld [vmem:[%s9141_s29 + $0x8a] sm:$0xff]  ;;  %v9293_v53 = vld [vmem:[%s9141_s29 + $0x82] sm:$0xff]  ;;  %v9300_v54 = vld [vmem:[%s9141_s29 + $0x9a] sm:$0xff] }
  0x30   : > { %v9303_v55 = vld [vmem:[%s9141_s29 + $0x92] sm:$0xff]  ;;  %v9310_v56 = vld [vmem:[%s9141_s29 + $0xaa] sm:$0xff]  ;;  %v9313_v57 = vld [vmem:[%s9141_s29 + $0xa2] sm:$0xff] }
  0x31   : > { %757 = vrot.lane.b32.xlu1 %v490_v10, %s9018_s30  ;;  %755 = vrot.lane.b32.xlu0 %v489_v11, %s9018_s30  ;;  %v9320_v58 = vld [vmem:[%s9141_s29 + $0xba] sm:$0xff]  ;;  %v9323_v59 = vld [vmem:[%s9141_s29 + $0xb2] sm:$0xff] }
  0x32   : > { %v9334_v62 = vld [vmem:[%s9141_s29 + $0xca] sm:$0xff]  ;;  %v9337_v63 = vld [vmem:[%s9141_s29 + $0xc2] sm:$0xff]  ;;  %v9348_v2 = vld [vmem:[%s9141_s29 + $0xda] sm:$0xff] }
  0x33   : > { %v9351_v3 = vld [vmem:[%s9141_s29 + $0xd2] sm:$0xff]  ;;  %v9362_v6 = vld [vmem:[%s9141_s29 + $0xea] sm:$0xff]  ;;  %v9365_v7 = vld [vmem:[%s9141_s29 + $0xe2] sm:$0xff] }
  0x34   : > { %v9376_v10 = vld [vmem:[%s9141_s29 + $0xfa] sm:$0xff]  ;;  %v9379_v11 = vld [vmem:[%s9141_s29 + $0xf2] sm:$0xff] }
  0x35   : > { %761 = vrot.lane.b32.xlu1 %v492_v12, %s9018_s30  ;;  %759 = vrot.lane.b32.xlu0 %v491_v13, %s9018_s30 }
  0x39   : > { %765 = vrot.lane.b32.xlu1 %v494_v14, %s9018_s30  ;;  %763 = vrot.lane.b32.xlu0 %v493_v15, %s9018_s30  ;;  %v9390_v14 = vld [vmem:[%s9141_s29 + $0x10a] sm:$0xff]  ;;  %v9393_v15 = vld [vmem:[%s9141_s29 + $0x102] sm:$0xff] }
  0x3d   : > { %769 = vrot.lane.b32.xlu1 %v496_v16, %s9018_s30  ;;  %767 = vrot.lane.b32.xlu0 %v495_v17, %s9018_s30 }
  0x41   : > { %773 = vrot.lane.b32.xlu1 %v498_v18, %s9018_s30  ;;  %771 = vrot.lane.b32.xlu0 %v497_v19, %s9018_s30  ;;  %v9404_v18 = vld [vmem:[%s9141_s29 + $0x11a] sm:$0xff]  ;;  %v9407_v19 = vld [vmem:[%s9141_s29 + $0x112] sm:$0xff] }
  0x45   : > { %777 = vrot.lane.b32.xlu1 %v500_v20, %s9018_s30  ;;  %775 = vrot.lane.b32.xlu0 %v499_v21, %s9018_s30 }
  0x49   : > { %781 = vrot.lane.b32.xlu1 %v502_v22, %s9018_s30  ;;  %779 = vrot.lane.b32.xlu0 %v501_v23, %s9018_s30 }
  0x4d   : > { %785 = vrot.lane.b32.xlu1 %v504_v24, %s9018_s30  ;;  %783 = vrot.lane.b32.xlu0 %v503_v25, %s9018_s30 }
  0x51   : > { %789 = vrot.lane.b32.xlu1 %v506_v26, %s9018_s30  ;;  %787 = vrot.lane.b32.xlu0 %v505_v27, %s9018_s30 }
  0x55   : > { %793 = vrot.lane.b32.xlu1 %v508_v28, %s9018_s30  ;;  %791 = vrot.lane.b32.xlu0 %v507_v29, %s9018_s30 }
  0x59   : > { %797 = vrot.lane.b32.xlu1 %v510_v30, %s9018_s30  ;;  %795 = vrot.lane.b32.xlu0 %v509_v31, %s9018_s30 }
  0x5d   : > { %801 = vrot.lane.b32.xlu1 %v512_v32, %s9018_s30  ;;  %799 = vrot.lane.b32.xlu0 %v511_v33, %s9018_s30 }
  0x61   : > { %805 = vrot.lane.b32.xlu1 %v514_v34, %s9018_s30  ;;  %803 = vrot.lane.b32.xlu0 %v513_v35, %s9018_s30  ;;  %s9030_s30 = smov 96  }
  0x65   : > { %881 = vrot.lane.b32.xlu1 %v516_v36, %s9019_s11  ;;  %879 = vrot.lane.b32.xlu0 %v515_v37, %s9019_s11 }
  0x69   : > { %885 = vrot.lane.b32.xlu1 %v9220_v38, %s9019_s11  ;;  %883 = vrot.lane.b32.xlu0 %v9223_v39, %s9019_s11 }
  0x6d   : > { %889 = vrot.lane.b32.xlu1 %v9230_v40, %s9019_s11  ;;  %887 = vrot.lane.b32.xlu0 %v9233_v41, %s9019_s11 }
  0x71   : > { %893 = vrot.lane.b32.xlu1 %v9240_v42, %s9019_s11  ;;  %891 = vrot.lane.b32.xlu0 %v9243_v43, %s9019_s11 }
  0x75   : > { %897 = vrot.lane.b32.xlu1 %v9250_v44, %s9019_s11  ;;  %895 = vrot.lane.b32.xlu0 %v9253_v45, %s9019_s11 }
  0x79   : > { %901 = vrot.lane.b32.xlu1 %v9260_v46, %s9019_s11  ;;  %899 = vrot.lane.b32.xlu0 %v9263_v47, %s9019_s11 }
  0x7d   : > { %905 = vrot.lane.b32.xlu1 %v9270_v48, %s9019_s11  ;;  %903 = vrot.lane.b32.xlu0 %v9273_v49, %s9019_s11 }
  0x81   : > { %909 = vrot.lane.b32.xlu1 %v9280_v50, %s9019_s11  ;;  %907 = vrot.lane.b32.xlu0 %v9283_v51, %s9019_s11 }
  0x85   : > { %913 = vrot.lane.b32.xlu1 %v9290_v52, %s9019_s11  ;;  %911 = vrot.lane.b32.xlu0 %v9293_v53, %s9019_s11 }
  0x89   : > { %917 = vrot.lane.b32.xlu1 %v9300_v54, %s9019_s11  ;;  %915 = vrot.lane.b32.xlu0 %v9303_v55, %s9019_s11 }
  0x8d   : > { %921 = vrot.lane.b32.xlu1 %v9310_v56, %s9019_s11  ;;  %919 = vrot.lane.b32.xlu0 %v9313_v57, %s9019_s11 }
  0x8f   : > { %v9325_v60 = vpop.permute.xlu1 %739  ;;  %v9327_v61 = vpop.permute.xlu0 %735 }
  0x91   : > { %925 = vrot.lane.b32.xlu1 %v9320_v58, %s9019_s11  ;;  %923 = vrot.lane.b32.xlu0 %v9323_v59, %s9019_s11 }
  0x93   : > { %v9339_v0 = vpop.permute.xlu1 %741  ;;  %v9341_v1 = vpop.permute.xlu0 %737 }
  0x95   : > { %929 = vrot.lane.b32.xlu1 %v9334_v62, %s9019_s11  ;;  %927 = vrot.lane.b32.xlu0 %v9337_v63, %s9019_s11 }
  0x97   : > { %v9353_v4 = vpop.permute.xlu1 %745  ;;  %v9355_v5 = vpop.permute.xlu0 %743 }
  0x99   : > { %933 = vrot.lane.b32.xlu1 %v9348_v2, %s9019_s11  ;;  %931 = vrot.lane.b32.xlu0 %v9351_v3, %s9019_s11 }
  0x9b   : > { %v9367_v8 = vpop.permute.xlu1 %749  ;;  %v9369_v9 = vpop.permute.xlu0 %747 }
  0x9d   : > { %937 = vrot.lane.b32.xlu1 %v9362_v6, %s9019_s11  ;;  %935 = vrot.lane.b32.xlu0 %v9365_v7, %s9019_s11 }
  0x9f   : > { %v9381_v12 = vpop.permute.xlu1 %753  ;;  %v9383_v13 = vpop.permute.xlu0 %751 }
  0xa1   : > { %941 = vrot.lane.b32.xlu1 %v9376_v10, %s9019_s11  ;;  %939 = vrot.lane.b32.xlu0 %v9379_v11, %s9019_s11 }
  0xa3   : > { %v9395_v16 = vpop.permute.xlu1 %757  ;;  %v9397_v17 = vpop.permute.xlu0 %755 }
  0xa4   : > { %13082 = vst [vmem:[#allocation6_spill] sm:$0xff] %v9395_v16 }
  0xa5   : > { %945 = vrot.lane.b32.xlu1 %v9390_v14, %s9019_s11  ;;  %943 = vrot.lane.b32.xlu0 %v9393_v15, %s9019_s11 }
  0xa7   : > { %v9409_v20 = vpop.permute.xlu1 %761  ;;  %v9411_v21 = vpop.permute.xlu0 %759 }
  0xa8   : > { %13083 = vst [vmem:[#allocation7_spill] sm:$0xff] %v9409_v20  ;;  %13084 = vst [vmem:[#allocation8_spill] sm:$0xff] %v9411_v21 }
  0xa9   : > { %949 = vrot.lane.b32.xlu1 %v9404_v18, %s9019_s11  ;;  %947 = vrot.lane.b32.xlu0 %v9407_v19, %s9019_s11 }
  0xab   : > { %v9417_v22 = vpop.permute.xlu1 %765  ;;  %v9419_v23 = vpop.permute.xlu0 %763 }
  0xac   : > { %13085 = vst [vmem:[#allocation9_spill] sm:$0xff] %v9417_v22  ;;  %13086 = vst [vmem:[#allocation10_spill] sm:$0xff] %v9419_v23 }
  0xad   : > { %991 = vrot.lane.b32.xlu1 %v9220_v38, %s9020_s12  ;;  %989 = vrot.lane.b32.xlu0 %v9223_v39, %s9020_s12 }
  0xaf   : > { %v9425_v24 = vpop.permute.xlu1 %769  ;;  %v9427_v25 = vpop.permute.xlu0 %767 }
  0xb0   : > { %13087 = vst [vmem:[#allocation11_spill] sm:$0xff] %v9425_v24  ;;  %13088 = vst [vmem:[#allocation12_spill] sm:$0xff] %v9427_v25  ;;  %v439_v25 = vld [vmem:[%s13031_s2 + $0x18] sm:$0xff] }
  0xb1   : > { %995 = vrot.lane.b32.xlu1 %v9230_v40, %s9020_s12  ;;  %993 = vrot.lane.b32.xlu0 %v9233_v41, %s9020_s12 }
  0xb3   : > { %v9433_v26 = vpop.permute.xlu1 %773  ;;  %v9435_v27 = vpop.permute.xlu0 %771 }
  0xb4   : > { %13089 = vst [vmem:[#allocation13_spill] sm:$0xff] %v9433_v26  ;;  %13090 = vst [vmem:[#allocation14_spill] sm:$0xff] %v9435_v27 }
  0xb5   : > { %999 = vrot.lane.b32.xlu1 %v9240_v42, %s9020_s12  ;;  %997 = vrot.lane.b32.xlu0 %v9243_v43, %s9020_s12 }
  0xb7   : > { %v9441_v28 = vpop.permute.xlu1 %777  ;;  %v9443_v29 = vpop.permute.xlu0 %775 }
  0xb8   : > { %13091 = vst [vmem:[#allocation15_spill] sm:$0xff] %v9441_v28  ;;  %13092 = vst [vmem:[#allocation16_spill] sm:$0xff] %v9443_v29  ;;  %v593_v28 = vld [vmem:[%s9141_s29 + $0x34] sm:$0xff] }
  0xb9   : > { %1003 = vrot.lane.b32.xlu1 %v9250_v44, %s9020_s12  ;;  %1001 = vrot.lane.b32.xlu0 %v9253_v45, %s9020_s12 }
  0xbb   : > { %v9449_v30 = vpop.permute.xlu1 %781  ;;  %v9451_v31 = vpop.permute.xlu0 %779 }
  0xbc   : > { %13093 = vst [vmem:[#allocation17_spill] sm:$0xff] %v9449_v30  ;;  %13094 = vst [vmem:[#allocation18_spill] sm:$0xff] %v9451_v31 }
  0xbd   : > { %1007 = vrot.lane.b32.xlu1 %v9260_v46, %s9020_s12  ;;  %1005 = vrot.lane.b32.xlu0 %v9263_v47, %s9020_s12 }
  0xbf   : > { %v9457_v32 = vpop.permute.xlu1 %785  ;;  %v9459_v33 = vpop.permute.xlu0 %783 }
  0xc0   : > { %13095 = vst [vmem:[#allocation19_spill] sm:$0xff] %v9457_v32  ;;  %13096 = vst [vmem:[#allocation20_spill] sm:$0xff] %v9459_v33  ;;  %v585_v32 = vld [vmem:[%s9141_s29 + $0x113] sm:$0xff] }
  0xc1   : > { %1011 = vrot.lane.b32.xlu1 %v9270_v48, %s9020_s12  ;;  %1009 = vrot.lane.b32.xlu0 %v9273_v49, %s9020_s12 }
  0xc3   : > { %v9465_v34 = vpop.permute.xlu1 %789  ;;  %v9467_v35 = vpop.permute.xlu0 %787 }
  0xc4   : > { %13097 = vst [vmem:[#allocation21_spill] sm:$0xff] %v9465_v34  ;;  %13098 = vst [vmem:[#allocation22_spill] sm:$0xff] %v9467_v35  ;;  %v581_v34 = vld [vmem:[%s9141_s29 + $0xf3] sm:$0xff] }
  0xc5   : > { %1015 = vrot.lane.b32.xlu1 %v9280_v50, %s9020_s12  ;;  %1013 = vrot.lane.b32.xlu0 %v9283_v51, %s9020_s12 }
  0xc7   : > { %v9473_v36 = vpop.permute.xlu1 %793  ;;  %v9475_v37 = vpop.permute.xlu0 %791 }
  0xc8   : > { %13099 = vst [vmem:[#allocation23_spill] sm:$0xff] %v9473_v36  ;;  %13100 = vst [vmem:[#allocation24_spill] sm:$0xff] %v9475_v37  ;;  %v569_v36 = vld [vmem:[%s9141_s29 + $0x93] sm:$0xff] }
  0xc9   : > { %1019 = vrot.lane.b32.xlu1 %v9290_v52, %s9020_s12  ;;  %1017 = vrot.lane.b32.xlu0 %v9293_v53, %s9020_s12 }
  0xcb   : > { %v9481_v38 = vpop.permute.xlu1 %797  ;;  %v9483_v39 = vpop.permute.xlu0 %795 }
  0xcc   : > { %13101 = vst [vmem:[#allocation25_spill] sm:$0xff] %v9481_v38  ;;  %13102 = vst [vmem:[#allocation26_spill] sm:$0xff] %v9483_v39  ;;  %v567_v38 = vld [vmem:[%s9141_s29 + $0x83] sm:$0xff] }
  0xcd   : > { %1023 = vrot.lane.b32.xlu1 %v9300_v54, %s9020_s12  ;;  %1021 = vrot.lane.b32.xlu0 %v9303_v55, %s9020_s12 }
  0xcf   : > { %v9489_v40 = vpop.permute.xlu1 %801  ;;  %v9491_v41 = vpop.permute.xlu0 %799 }
  0xd0   : > { %13103 = vst [vmem:[#allocation27_spill] sm:$0xff] %v9489_v40  ;;  %13104 = vst [vmem:[#allocation28_spill] sm:$0xff] %v9491_v41  ;;  %v565_v40 = vld [vmem:[%s9141_s29 + $0x73] sm:$0xff] }
  0xd1   : > { %1027 = vrot.lane.b32.xlu1 %v9310_v56, %s9020_s12  ;;  %1025 = vrot.lane.b32.xlu0 %v9313_v57, %s9020_s12  ;;  %v552_v56 = vld [vmem:[%s9141_s29 + $0x12a] sm:$0xff]  ;;  %v551_v57 = vld [vmem:[%s9141_s29 + $0x122] sm:$0xff] }
  0xd3   : > { %v9497_v42 = vpop.permute.xlu1 %805  ;;  %v9499_v43 = vpop.permute.xlu0 %803 }
  0xd4   : > { %13105 = vst [vmem:[#allocation29_spill] sm:$0xff] %v9497_v42  ;;  %13106 = vst [vmem:[#allocation30_spill] sm:$0xff] %v9499_v43  ;;  %v563_v42 = vld [vmem:[%s9141_s29 + $0x63] sm:$0xff] }
  0xd5   : > { %1031 = vrot.lane.b32.xlu1 %v9320_v58, %s9020_s12  ;;  %1029 = vrot.lane.b32.xlu0 %v9323_v59, %s9020_s12 }
  0xd7   : > { %v9505_v44 = vpop.permute.xlu1 %881  ;;  %v9507_v45 = vpop.permute.xlu0 %879 }
  0xd9   : > { %1035 = vrot.lane.b32.xlu1 %v9334_v62, %s9020_s12  ;;  %1033 = vrot.lane.b32.xlu0 %v9337_v63, %s9020_s12  ;;  %v554_v62 = vld [vmem:[%s9141_s29 + $0x1b] sm:$0xff]  ;;  %v553_v63 = vld [vmem:[%s9141_s29 + $0x13] sm:$0xff] }
  0xdb   : > { %v9513_v46 = vpop.permute.xlu1 %885  ;;  %v9515_v47 = vpop.permute.xlu0 %883 }
  0xdd   : > { %1039 = vrot.lane.b32.xlu1 %v9348_v2, %s9020_s12  ;;  %1037 = vrot.lane.b32.xlu0 %v9351_v3, %s9020_s12 }
  0xdf   : > { %v9521_v48 = vpop.permute.xlu1 %889  ;;  %v9523_v49 = vpop.permute.xlu0 %887 }
  0xe1   : > { %1043 = vrot.lane.b32.xlu1 %v9362_v6, %s9020_s12  ;;  %1041 = vrot.lane.b32.xlu0 %v9365_v7, %s9020_s12  ;;  %v556_v6 = vld [vmem:[%s9141_s29 + $0x2b] sm:$0xff]  ;;  %v555_v7 = vld [vmem:[%s9141_s29 + $0x23] sm:$0xff] }
  0xe3   : > { %v9529_v50 = vpop.permute.xlu1 %893  ;;  %v9531_v51 = vpop.permute.xlu0 %891 }
  0xe5   : > { %1047 = vrot.lane.b32.xlu1 %v9376_v10, %s9020_s12  ;;  %1045 = vrot.lane.b32.xlu0 %v9379_v11, %s9020_s12 }
  0xe7   : > { %v9537_v52 = vpop.permute.xlu1 %897  ;;  %v9539_v53 = vpop.permute.xlu0 %895 }
  0xe9   : > { %1051 = vrot.lane.b32.xlu1 %v9390_v14, %s9020_s12  ;;  %1049 = vrot.lane.b32.xlu0 %v9393_v15, %s9020_s12  ;;  %v558_v14 = vld [vmem:[%s9141_s29 + $0x3b] sm:$0xff]  ;;  %v557_v15 = vld [vmem:[%s9141_s29 + $0x33] sm:$0xff] }
  0xeb   : > { %v9545_v54 = vpop.permute.xlu1 %901  ;;  %v9547_v55 = vpop.permute.xlu0 %899 }
  0xec   : > { %13107 = vst [vmem:[#allocation31_spill] sm:$0xff] %v9545_v54  ;;  %v679_v54 = vld [vmem:[%s9141_s29 + $0xa6] sm:$0xff] }
  0xed   : > { %1055 = vrot.lane.b32.xlu1 %v9404_v18, %s9020_s12  ;;  %1053 = vrot.lane.b32.xlu0 %v9407_v19, %s9020_s12 }
  0xef   : > { %v9555_v58 = vpop.permute.xlu1 %905  ;;  %v9557_v59 = vpop.permute.xlu0 %903 }
  0xf0   : > { %13108 = vst [vmem:[#allocation32_spill] sm:$0xff] %v9555_v58  ;;  %13109 = vst [vmem:[#allocation33_spill] sm:$0xff] %v9557_v59 }
  0xf1   : > { %1059 = vrot.lane.b32.xlu1 %v552_v56, %s9020_s12  ;;  %1057 = vrot.lane.b32.xlu0 %v551_v57, %s9020_s12  ;;  %v560_v56 = vld [vmem:[%s9141_s29 + $0x4b] sm:$0xff]  ;;  %v559_v57 = vld [vmem:[%s9141_s29 + $0x43] sm:$0xff] }
  0xf3   : > { %v9563_v2 = vpop.permute.xlu1 %909  ;;  %v9565_v3 = vpop.permute.xlu0 %907 }
  0xf4   : > { %13110 = vst [vmem:[#allocation34_spill] sm:$0xff] %v9563_v2  ;;  %13111 = vst [vmem:[#allocation35_spill] sm:$0xff] %v9565_v3 }
  0xf5   : > { %1135 = vrot.lane.b32.xlu1 %v554_v62, %s9021_s18  ;;  %1133 = vrot.lane.b32.xlu0 %v553_v63, %s9021_s18 }
  0xf7   : > { %v9571_v10 = vpop.permute.xlu1 %913  ;;  %v9573_v11 = vpop.permute.xlu0 %911 }
  0xf8   : > { %13112 = vst [vmem:[#allocation36_spill] sm:$0xff] %v9571_v10  ;;  %13113 = vst [vmem:[#allocation37_spill] sm:$0xff] %v9573_v11  ;;  %v438_v10 = vld [vmem:[%s13031_s2 + $0x10] sm:$0xff] }
  0xf9   : > { %1139 = vrot.lane.b32.xlu1 %v556_v6, %s9021_s18  ;;  %1137 = vrot.lane.b32.xlu0 %v555_v7, %s9021_s18  ;;  %v562_v6 = vld [vmem:[%s9141_s29 + $0x5b] sm:$0xff]  ;;  %v561_v7 = vld [vmem:[%s9141_s29 + $0x53] sm:$0xff] }
  0xfb   : > { %v9579_v18 = vpop.permute.xlu1 %917  ;;  %v9581_v19 = vpop.permute.xlu0 %915 }
  0xfc   : > { %13114 = vst [vmem:[#allocation38_spill] sm:$0xff] %v9579_v18  ;;  %13115 = vst [vmem:[#allocation39_spill] sm:$0xff] %v9581_v19  ;;  %v9736_v18 = vld [vmem:[%s9141_s29 + $0x44] sm:$0xff] }
  0xfd   : > { %1143 = vrot.lane.b32.xlu1 %v558_v14, %s9021_s18  ;;  %1141 = vrot.lane.b32.xlu0 %v557_v15, %s9021_s18  ;;  %v564_v15 = vld [vmem:[%s9141_s29 + $0x6b] sm:$0xff] }
  0xff   : > { %v9587_v62 = vpop.permute.xlu1 %921  ;;  %v9589_v63 = vpop.permute.xlu0 %919 }
 0x100   : > { %13116 = vst [vmem:[#allocation40_spill] sm:$0xff] %v9587_v62  ;;  %13117 = vst [vmem:[#allocation41_spill] sm:$0xff] %v9589_v63  ;;  %v591_v62 = vld [vmem:[%s9141_s29 + $0x24] sm:$0xff] }
 0x101   : > { %1147 = vrot.lane.b32.xlu1 %v560_v56, %s9021_s18  ;;  %1145 = vrot.lane.b32.xlu0 %v559_v57, %s9021_s18  ;;  %v566_v57 = vld [vmem:[%s9141_s29 + $0x7b] sm:$0xff] }
 0x103   : > { %v9595_v43 = vpop.permute.xlu1 %925  ;;  %v9597_v14 = vpop.permute.xlu0 %923 }
 0x104   : > { %13118 = vst [vmem:[#allocation42_spill] sm:$0xff] %v9595_v43  ;;  %13119 = vst [vmem:[#allocation43_spill] sm:$0xff] %v9597_v14 }
 0x105   : > { %1151 = vrot.lane.b32.xlu1 %v562_v6, %s9021_s18  ;;  %1149 = vrot.lane.b32.xlu0 %v561_v7, %s9021_s18  ;;  %v568_v7 = vld [vmem:[%s9141_s29 + $0x8b] sm:$0xff] }
 0x107   : > { %v9603_v41 = vpop.permute.xlu1 %929  ;;  %v9605_v56 = vpop.permute.xlu0 %927 }
 0x108   : > { %13120 = vst [vmem:[#allocation44_spill] sm:$0xff] %v9603_v41  ;;  %13121 = vst [vmem:[#allocation45_spill] sm:$0xff] %v9605_v56  ;;  %v583_v41 = vld [vmem:[%s9141_s29 + $0x103] sm:$0xff] }
 0x109   : > { %1155 = vrot.lane.b32.xlu1 %v564_v15, %s9021_s18  ;;  %1153 = vrot.lane.b32.xlu0 %v563_v42, %s9021_s18  ;;  %v570_v42 = vld [vmem:[%s9141_s29 + $0x9b] sm:$0xff] }
 0x10b   : > { %v9611_v39 = vpop.permute.xlu1 %933  ;;  %v9613_v6 = vpop.permute.xlu0 %931 }
 0x10c   : > { %13122 = vst [vmem:[#allocation46_spill] sm:$0xff] %v9611_v39  ;;  %13123 = vst [vmem:[#allocation47_spill] sm:$0xff] %v9613_v6  ;;  %v579_v39 = vld [vmem:[%s9141_s29 + $0xe3] sm:$0xff] }
 0x10d   : > { %1159 = vrot.lane.b32.xlu1 %v566_v57, %s9021_s18  ;;  %1157 = vrot.lane.b32.xlu0 %v565_v40, %s9021_s18  ;;  %v572_v40 = vld [vmem:[%s9141_s29 + $0xab] sm:$0xff] }
 0x10f   : > { %v9619_v37 = vpop.permute.xlu1 %937  ;;  %v9621_v15 = vpop.permute.xlu0 %935 }
 0x110   : > { %13124 = vst [vmem:[#allocation48_spill] sm:$0xff] %v9619_v37  ;;  %13125 = vst [vmem:[#allocation49_spill] sm:$0xff] %v9621_v15  ;;  %v571_v37 = vld [vmem:[%s9141_s29 + $0xa3] sm:$0xff] }
 0x111   : > { %1163 = vrot.lane.b32.xlu1 %v568_v7, %s9021_s18  ;;  %1161 = vrot.lane.b32.xlu0 %v567_v38, %s9021_s18  ;;  %v574_v38 = vld [vmem:[%s9141_s29 + $0xbb] sm:$0xff] }
 0x113   : > { %v9627_v6 = vpop.permute.xlu1 %941  ;;  %v9629_v57 = vpop.permute.xlu0 %939 }
 0x114   : > { %13126 = vst [vmem:[#allocation50_spill] sm:$0xff] %v9627_v6  ;;  %13127 = vst [vmem:[#allocation51_spill] sm:$0xff] %v9629_v57  ;;  %v573_v6 = vld [vmem:[%s9141_s29 + $0xb3] sm:$0xff] }
 0x115   : > { %1167 = vrot.lane.b32.xlu1 %v570_v42, %s9021_s18  ;;  %1165 = vrot.lane.b32.xlu0 %v569_v36, %s9021_s18  ;;  %v576_v36 = vld [vmem:[%s9141_s29 + $0xcb] sm:$0xff] }
 0x117   : > { %v9635_v15 = vpop.permute.xlu1 %945  ;;  %v9637_v7 = vpop.permute.xlu0 %943 }
 0x118   : > { %13128 = vst [vmem:[#allocation52_spill] sm:$0xff] %v9635_v15  ;;  %13129 = vst [vmem:[#allocation53_spill] sm:$0xff] %v9637_v7  ;;  %v575_v15 = vld [vmem:[%s9141_s29 + $0xc3] sm:$0xff] }
 0x119   : > { %1171 = vrot.lane.b32.xlu1 %v572_v40, %s9021_s18  ;;  %1169 = vrot.lane.b32.xlu0 %v571_v37, %s9021_s18  ;;  %v578_v37 = vld [vmem:[%s9141_s29 + $0xdb] sm:$0xff] }
 0x11b   : > { %v9643_v57 = vpop.permute.xlu1 %949  ;;  %v9645_v42 = vpop.permute.xlu0 %947 }
 0x11c   : > { %13130 = vst [vmem:[#allocation54_spill] sm:$0xff] %v9643_v57  ;;  %13131 = vst [vmem:[#allocation55_spill] sm:$0xff] %v9645_v42  ;;  %v577_v57 = vld [vmem:[%s9141_s29 + $0xd3] sm:$0xff] }
 0x11d   : > { %1175 = vrot.lane.b32.xlu1 %v574_v38, %s9021_s18  ;;  %1173 = vrot.lane.b32.xlu0 %v573_v6, %s9021_s18  ;;  %v580_v6 = vld [vmem:[%s9141_s29 + $0xeb] sm:$0xff] }
 0x11f   : > { %v9651_v7 = vpop.permute.xlu1 %991  ;;  %v9653_v40 = vpop.permute.xlu0 %989 }
 0x121   : > { %1179 = vrot.lane.b32.xlu1 %v576_v36, %s9021_s18  ;;  %1177 = vrot.lane.b32.xlu0 %v575_v15, %s9021_s18  ;;  %v582_v15 = vld [vmem:[%s9141_s29 + $0xfb] sm:$0xff] }
 0x123   : > { %v9659_v42 = vpop.permute.xlu1 %995  ;;  %v9661_v38 = vpop.permute.xlu0 %993 }
 0x125   : > { %1183 = vrot.lane.b32.xlu1 %v578_v37, %s9021_s18  ;;  %1181 = vrot.lane.b32.xlu0 %v577_v57, %s9021_s18  ;;  %v584_v57 = vld [vmem:[%s9141_s29 + $0x10b] sm:$0xff] }
 0x127   : > { %v9667_v35 = vpop.permute.xlu1 %999  ;;  %v9669_v36 = vpop.permute.xlu0 %997 }
 0x129   : > { %1187 = vrot.lane.b32.xlu1 %v580_v6, %s9021_s18  ;;  %1185 = vrot.lane.b32.xlu0 %v579_v39, %s9021_s18  ;;  %v586_v39 = vld [vmem:[%s9141_s29 + $0x11b] sm:$0xff] }
 0x12b   : > { %v9675_v56 = vpop.permute.xlu1 %1003  ;;  %v9677_v37 = vpop.permute.xlu0 %1001 }
 0x12d   : > { %1191 = vrot.lane.b32.xlu1 %v582_v15, %s9021_s18  ;;  %1189 = vrot.lane.b32.xlu0 %v581_v34, %s9021_s18  ;;  %v588_v34 = vld [vmem:[%s9141_s29 + $0x12b] sm:$0xff]  ;;  %v587_v15 = vld [vmem:[%s9141_s29 + $0x123] sm:$0xff] }
 0x12f   : > { %v9683_v33 = vpop.permute.xlu1 %1007  ;;  %v9685_v6 = vpop.permute.xlu0 %1005 }
 0x131   : > { %1195 = vrot.lane.b32.xlu1 %v584_v57, %s9021_s18  ;;  %1193 = vrot.lane.b32.xlu0 %v583_v41, %s9021_s18  ;;  %v590_v41 = vld [vmem:[%s9141_s29 + $0x1c] sm:$0xff]  ;;  %v589_v57 = vld [vmem:[%s9141_s29 + $0x14] sm:$0xff] }
 0x133   : > { %v9691_v14 = vpop.permute.xlu1 %1011  ;;  %v9693_v43 = vpop.permute.xlu0 %1009 }
 0x134   : > { %13132 = vst [vmem:[#allocation56_spill] sm:$0xff] %v9691_v14  ;;  %13133 = vst [vmem:[#allocation57_spill] sm:$0xff] %v9693_v43  ;;  %v680_v14 = vld [vmem:[%s9141_s29 + $0xae] sm:$0xff] }
 0x135   : > { %1199 = vrot.lane.b32.xlu1 %v586_v39, %s9021_s18  ;;  %1197 = vrot.lane.b32.xlu0 %v585_v32, %s9021_s18  ;;  %v592_v32 = vld [vmem:[%s9141_s29 + $0x2c] sm:$0xff] }
 0x137   : > { %v9699_v31 = vpop.permute.xlu1 %1015  ;;  %v9701_v30 = vpop.permute.xlu0 %1013 }
 0x138   : > { %13134 = vst [vmem:[#allocation58_spill] sm:$0xff] %v9699_v31  ;;  %13135 = vst [vmem:[#allocation59_spill] sm:$0xff] %v9701_v30 }
 0x139   : > { %1203 = vrot.lane.b32.xlu1 %v588_v34, %s9021_s18  ;;  %1201 = vrot.lane.b32.xlu0 %v587_v15, %s9021_s18  ;;  %v9722_v15 = vld [vmem:[%s9141_s29 + $0x3c] sm:$0xff]  ;;  %s7354_s18 = sshll.u32 %s9109_s17, 4  ;;  %s9032_s17 = smov [#allocation3]  }
 0x13b   : > { %v9707_v63 = vpop.permute.xlu1 %1019  ;;  %v9709_v39 = vpop.permute.xlu0 %1017 }
 0x13c   : > { %13136 = vst [vmem:[#allocation60_spill] sm:$0xff] %v9707_v63  ;;  %13137 = vst [vmem:[#allocation61_spill] sm:$0xff] %v9709_v39  ;;  %v9787_v39 = vld [vmem:[%s9141_s29 + $0x74] sm:$0xff] }
 0x13d   : > { %1279 = vrot.lane.b32.xlu1 %v590_v41, %s9022_s20  ;;  %1277 = vrot.lane.b32.xlu0 %v589_v57, %s9022_s20  ;;  %v9733_v57 = vld [vmem:[%s9141_s29 + $0x4c] sm:$0xff] }
 0x13f   : > { %v9715_v29 = vpop.permute.xlu1 %1023  ;;  %v9717_v34 = vpop.permute.xlu0 %1021 }
 0x140   : > { %13138 = vst [vmem:[#allocation62_spill] sm:$0xff] %v9715_v29  ;;  %13139 = vst [vmem:[#allocation63_spill] sm:$0xff] %v9717_v34  ;;  %v9753_v34 = vld [vmem:[%s9141_s29 + $0x5c] sm:$0xff] }
 0x141   : > { %1283 = vrot.lane.b32.xlu1 %v592_v32, %s9022_s20  ;;  %1281 = vrot.lane.b32.xlu0 %v591_v62, %s9022_s20 }
 0x143   : > { %v9725_v19 = vpop.permute.xlu1 %1027  ;;  %v9727_v41 = vpop.permute.xlu0 %1025 }
 0x144   : > { %13140 = vst [vmem:[#allocation64_spill] sm:$0xff] %v9725_v19  ;;  %13141 = vst [vmem:[#allocation65_spill] sm:$0xff] %v9727_v41  ;;  %v436_v19 = vld [vmem:[%s13031_s2] sm:$0xff]  ;;  %v437_v41 = vld [vmem:[%s13031_s2 + $0x8] sm:$0xff] }
 0x145   : > { %1287 = vrot.lane.b32.xlu1 %v9722_v15, %s9022_s20  ;;  %1285 = vrot.lane.b32.xlu0 %v593_v28, %s9022_s20 }
 0x147   : > { %v9738_v27 = vpop.permute.xlu1 %1031  ;;  %v9740_v26 = vpop.permute.xlu0 %1029 }
 0x148   : > { %13142 = vst [vmem:[#allocation66_spill] sm:$0xff] %v9738_v27  ;;  %13143 = vst [vmem:[#allocation67_spill] sm:$0xff] %v9740_v26  ;;  %v9756_v27 = vld [vmem:[%s9141_s29 + $0x54] sm:$0xff]  ;;  %v7682_v26 = vpack.c.bf16 %v437_v41, %v436_v19  ;;  %v7686_v19 = vpack.c.bf16 %v439_v25, %v438_v10  ;;  %v9773_v41 = vld [vmem:[%s9141_s29 + $0x6c] sm:$0xff] }
 0x149   : > { %1291 = vrot.lane.b32.xlu1 %v9733_v57, %s9022_s20  ;;  %1289 = vrot.lane.b32.xlu0 %v9736_v18, %s9022_s20  ;;  %v440_v25 = vld [vmem:[%s13031_s2 + $0x20] sm:$0xf] }
 0x14a   : > { %7683 = vmatprep.subr.bf16.mxu0 %v7682_v26 }
 0x14b   : > { %v9758_v29 = vpop.permute.xlu1 %1035  ;;  %v9760_v11 = vpop.permute.xlu0 %1033  ;;  %7685 = vmatpush3.bf16.msra.mxu0 %v7682_v26 }
 0x14c   : > { %13144 = vst [vmem:[#allocation68_spill] sm:$0xff] %v9758_v29  ;;  %13145 = vst [vmem:[#allocation69_spill] sm:$0xff] %v9760_v11  ;;  %v9776_v29 = vld [vmem:[%s9141_s29 + $0x64] sm:$0xff]  ;;  %7687 = vmatprep.subr.bf16.mxu0 %v7686_v19 }
 0x14d   : > { %1295 = vrot.lane.b32.xlu1 %v9753_v34, %s9022_s20  ;;  %1293 = vrot.lane.b32.xlu0 %v9756_v27, %s9022_s20 }
 0x14f   : > { %v9778_v11 = vpop.permute.xlu1 %1039  ;;  %v9780_v24 = vpop.permute.xlu0 %1037  ;;  %7689 = vmatpush3.bf16.msra.mxu0 %v7686_v19  ;;  %v627_v19 = vld [vmem:[%s9141_s29 + $0x25] sm:$0xff] }
 0x150   : > { %13146 = vst [vmem:[#allocation70_spill] sm:$0xff] %v9778_v11  ;;  %13147 = vst [vmem:[#allocation71_spill] sm:$0xff] %v9780_v24  ;;  %7491 = vmatprep.subr.msk.mxu0 %vm2187_vm0, %v440_v25 }
 0x151   : > { %1299 = vrot.lane.b32.xlu1 %v9773_v41, %s9022_s20  ;;  %1297 = vrot.lane.b32.xlu0 %v9776_v29, %s9022_s20 }
 0x153   : > { %v9792_v26 = vpop.permute.xlu1 %1043  ;;  %v9794_v10 = vpop.permute.xlu0 %1041  ;;  %7492 = vmatpush3.msk.msra.mxu0 %vm2187_vm0, %v440_v25  ;;  %v664_v25 = vld [vmem:[%s9141_s29 + $0x2e] sm:$0xff] }
 0x154   : > { %13148 = vst [vmem:[#allocation72_spill] sm:$0xff] %v9792_v26  ;;  %13149 = vst [vmem:[#allocation73_spill] sm:$0xff] %v9794_v10  ;;  %v663_v10 = vld [vmem:[%s9141_s29 + $0x26] sm:$0xff] }
 0x155   : > { %1387 = vrot.lane.b32.xlu1 %v591_v62, %s9023_s25  ;;  %1301 = vrot.lane.b32.xlu0 %v9787_v39, %s9022_s20  ;;  %v628_v26 = vld [vmem:[%s9141_s29 + $0x2d] sm:$0xff] }
 0x157   : > { %v9800_v24 = vpop.permute.xlu1 %1047  ;;  %v9802_v11 = vpop.permute.xlu0 %1045 }
 0x158   : > { %13150 = vst [vmem:[#allocation74_spill] sm:$0xff] %v9800_v24  ;;  %13151 = vst [vmem:[#allocation75_spill] sm:$0xff] %v9802_v11 }
 0x159   : > { %1531 = vrot.lane.b32.xlu1 %v627_v19, %s9024_s26  ;;  %1389 = vrot.lane.b32.xlu0 %v592_v32, %s9023_s25  ;;  %v629_v32 = vld [vmem:[%s9141_s29 + $0x35] sm:$0xff] }
 0x15b   : > { %v9808_v62 = vpop.permute.xlu1 %1051  ;;  %v9810_v63 = vpop.permute.xlu0 %1049 }
 0x15c   : > { %13152 = vst [vmem:[#allocation76_spill] sm:$0xff] %v9808_v62  ;;  %13153 = vst [vmem:[#allocation77_spill] sm:$0xff] %v9810_v63 }
 0x15d   : > { %1675 = vrot.lane.b32.xlu1 %v663_v10, %s9025_s27  ;;  %1533 = vrot.lane.b32.xlu0 %v628_v26, %s9024_s26  ;;  %v665_v26 = vld [vmem:[%s9141_s29 + $0x36] sm:$0xff] }
 0x15e   : > { %v630_v10 = vld [vmem:[%s9141_s29 + $0x3d] sm:$0xff] }
 0x15f   : > { %v9815_v11 = vpop.permute.xlu1 %1055  ;;  %v9817_v19 = vpop.permute.xlu0 %1053 }
 0x160   : > { %13154 = vst [vmem:[#allocation78_spill] sm:$0xff] %v9815_v11  ;;  %13155 = vst [vmem:[#allocation79_spill] sm:$0xff] %v9817_v19 }
 0x161   : > { %1391 = vrot.lane.b32.xlu1 %v593_v28, %s9023_s25  ;;  %1677 = vrot.lane.b32.xlu0 %v664_v25, %s9025_s27  ;;  %v666_v25 = vld [vmem:[%s9141_s29 + $0x3e] sm:$0xff] }
 0x163   : > { %v9822_v62 = vpop.permute.xlu1 %1059  ;;  %v9824_v63 = vpop.permute.xlu0 %1057 }
 0x164   : > { %13156 = vst [vmem:[#allocation80_spill] sm:$0xff] %v9822_v62  ;;  %13157 = vst [vmem:[#allocation81_spill] sm:$0xff] %v9824_v63 }
 0x165   : > { %1535 = vrot.lane.b32.xlu1 %v629_v32, %s9024_s26  ;;  %1393 = vrot.lane.b32.xlu0 %v9722_v15, %s9023_s25  ;;  %v631_v15 = vld [vmem:[%s9141_s29 + $0x45] sm:$0xff] }
 0x167   : > { %v9831_v19 = vpop.permute.xlu1 %1135  ;;  %v9833_v28 = vpop.permute.xlu0 %1133 }
 0x169   : > { %1679 = vrot.lane.b32.xlu1 %v665_v26, %s9025_s27  ;;  %1537 = vrot.lane.b32.xlu0 %v630_v10, %s9024_s26  ;;  %v667_v26 = vld [vmem:[%s9141_s29 + $0x46] sm:$0xff] }
 0x16a   : > { %v632_v10 = vld [vmem:[%s9141_s29 + $0x4d] sm:$0xff] }
 0x16b   : > { %v9838_v63 = vpop.permute.xlu1 %1139  ;;  %v9840_v32 = vpop.permute.xlu0 %1137 }
 0x16d   : > { %1395 = vrot.lane.b32.xlu1 %v9736_v18, %s9023_s25  ;;  %1681 = vrot.lane.b32.xlu0 %v666_v25, %s9025_s27  ;;  %v668_v25 = vld [vmem:[%s9141_s29 + $0x4e] sm:$0xff] }
 0x16f   : > { %v9846_v62 = vpop.permute.xlu1 %1143  ;;  %v9848_v11 = vpop.permute.xlu0 %1141 }
 0x171   : > { %1539 = vrot.lane.b32.xlu1 %v631_v15, %s9024_s26  ;;  %1397 = vrot.lane.b32.xlu0 %v9733_v57, %s9023_s25  ;;  %v633_v57 = vld [vmem:[%s9141_s29 + $0x55] sm:$0xff] }
 0x173   : > { %v9855_v24 = vpop.permute.xlu1 %1147  ;;  %v9857_v18 = vpop.permute.xlu0 %1145 }
 0x175   : > { %1683 = vrot.lane.b32.xlu1 %v667_v26, %s9025_s27  ;;  %1541 = vrot.lane.b32.xlu0 %v632_v10, %s9024_s26  ;;  %v669_v26 = vld [vmem:[%s9141_s29 + $0x56] sm:$0xff] }
 0x176   : > { %v634_v10 = vld [vmem:[%s9141_s29 + $0x5d] sm:$0xff] }
 0x177   : > { %v9862_v3 = vpop.permute.xlu1 %1151  ;;  %v9864_v15 = vpop.permute.xlu0 %1149 }
 0x179   : > { %1399 = vrot.lane.b32.xlu1 %v9756_v27, %s9023_s25  ;;  %1685 = vrot.lane.b32.xlu0 %v668_v25, %s9025_s27  ;;  %v670_v25 = vld [vmem:[%s9141_s29 + $0x5e] sm:$0xff] }
 0x17b   : > { %v9870_v2 = vpop.permute.xlu1 %1155  ;;  %v9872_v23 = vpop.permute.xlu0 %1153 }
 0x17c   : > { %13158 = vst [vmem:[#allocation82_spill] sm:$0xff] %v9870_v2  ;;  %13159 = vst [vmem:[#allocation83_spill] sm:$0xff] %v9872_v23 }
 0x17d   : > { %1543 = vrot.lane.b32.xlu1 %v633_v57, %s9024_s26  ;;  %1401 = vrot.lane.b32.xlu0 %v9753_v34, %s9023_s25  ;;  %v635_v34 = vld [vmem:[%s9141_s29 + $0x65] sm:$0xff] }
 0x17f   : > { %v9879_v22 = vpop.permute.xlu1 %1159  ;;  %v9881_v27 = vpop.permute.xlu0 %1157 }
 0x180   : > { %13160 = vst [vmem:[#allocation84_spill] sm:$0xff] %v9879_v22  ;;  %13161 = vst [vmem:[#allocation85_spill] sm:$0xff] %v9881_v27 }
 0x181   : > { %1687 = vrot.lane.b32.xlu1 %v669_v26, %s9025_s27  ;;  %1545 = vrot.lane.b32.xlu0 %v634_v10, %s9024_s26  ;;  %v671_v26 = vld [vmem:[%s9141_s29 + $0x66] sm:$0xff] }
 0x182   : > { %v636_v10 = vld [vmem:[%s9141_s29 + $0x6d] sm:$0xff] }
 0x183   : > { %v9886_v30 = vpop.permute.xlu1 %1163  ;;  %v9888_v57 = vpop.permute.xlu0 %1161 }
 0x184   : > { %13162 = vst [vmem:[#allocation86_spill] sm:$0xff] %v9886_v30  ;;  %13163 = vst [vmem:[#allocation87_spill] sm:$0xff] %v9888_v57 }
 0x185   : > { %1403 = vrot.lane.b32.xlu1 %v9776_v29, %s9023_s25  ;;  %1689 = vrot.lane.b32.xlu0 %v670_v25, %s9025_s27  ;;  %v672_v25 = vld [vmem:[%s9141_s29 + $0x6e] sm:$0xff] }
 0x187   : > { %v9894_v22 = vpop.permute.xlu1 %1167  ;;  %v9896_v27 = vpop.permute.xlu0 %1165 }
 0x188   : > { %13164 = vst [vmem:[#allocation88_spill] sm:$0xff] %v9894_v22  ;;  %13165 = vst [vmem:[#allocation89_spill] sm:$0xff] %v9896_v27 }
 0x189   : > { %1547 = vrot.lane.b32.xlu1 %v635_v34, %s9024_s26  ;;  %1405 = vrot.lane.b32.xlu0 %v9773_v41, %s9023_s25  ;;  %v637_v41 = vld [vmem:[%s9141_s29 + $0x75] sm:$0xff] }
 0x18b   : > { %v9903_v57 = vpop.permute.xlu1 %1171  ;;  %v9905_v29 = vpop.permute.xlu0 %1169 }
 0x18c   : > { %13166 = vst [vmem:[#allocation90_spill] sm:$0xff] %v9903_v57  ;;  %13167 = vst [vmem:[#allocation91_spill] sm:$0xff] %v9905_v29  ;;  %v602_v57 = vld [vmem:[%s9141_s29 + $0x7c] sm:$0xff] }
 0x18d   : > { %1691 = vrot.lane.b32.xlu1 %v671_v26, %s9025_s27  ;;  %1549 = vrot.lane.b32.xlu0 %v636_v10, %s9024_s26  ;;  %v673_v10 = vld [vmem:[%s9141_s29 + $0x76] sm:$0xff] }
 0x18f   : > { %v9910_v22 = vpop.permute.xlu1 %1175  ;;  %v9912_v34 = vpop.permute.xlu0 %1173 }
 0x190   : > { %13168 = vst [vmem:[#allocation92_spill] sm:$0xff] %v9910_v22  ;;  %13169 = vst [vmem:[#allocation93_spill] sm:$0xff] %v9912_v34  ;;  %v638_v22 = vld [vmem:[%s9141_s29 + $0x7d] sm:$0xff] }
 0x191   : > { %1407 = vrot.lane.b32.xlu1 %v9787_v39, %s9023_s25  ;;  %1693 = vrot.lane.b32.xlu0 %v672_v25, %s9025_s27  ;;  %v674_v25 = vld [vmem:[%s9141_s29 + $0x7e] sm:$0xff] }
 0x193   : > { %v9919_v27 = vpop.permute.xlu1 %1179  ;;  %v9921_v26 = vpop.permute.xlu0 %1177 }
 0x194   : > { %13170 = vst [vmem:[#allocation94_spill] sm:$0xff] %v9919_v27  ;;  %13171 = vst [vmem:[#allocation95_spill] sm:$0xff] %v9921_v26 }
 0x195   : > { %1551 = vrot.lane.b32.xlu1 %v637_v41, %s9024_s26  ;;  %1409 = vrot.lane.b32.xlu0 %v602_v57, %s9023_s25  ;;  %v604_v41 = vld [vmem:[%s9141_s29 + $0x8c] sm:$0xff] }
 0x197   : > { %v9927_v34 = vpop.permute.xlu1 %1183  ;;  %v9929_v39 = vpop.permute.xlu0 %1181 }
 0x198   : > { %13172 = vst [vmem:[#allocation96_spill] sm:$0xff] %v9927_v34  ;;  %13173 = vst [vmem:[#allocation97_spill] sm:$0xff] %v9929_v39  ;;  %v603_v34 = vld [vmem:[%s9141_s29 + $0x84] sm:$0xff] }
 0x199   : > { %1695 = vrot.lane.b32.xlu1 %v673_v10, %s9025_s27  ;;  %1553 = vrot.lane.b32.xlu0 %v638_v22, %s9024_s26  ;;  %v640_v22 = vld [vmem:[%s9141_s29 + $0x8d] sm:$0xff]  ;;  %v639_v10 = vld [vmem:[%s9141_s29 + $0x85] sm:$0xff] }
 0x19b   : > { %v9934_v27 = vpop.permute.xlu1 %1187  ;;  %v9936_v26 = vpop.permute.xlu0 %1185 }
 0x19c   : > { %13174 = vst [vmem:[#allocation98_spill] sm:$0xff] %v9934_v27  ;;  %13175 = vst [vmem:[#allocation99_spill] sm:$0xff] %v9936_v26 }
 0x19d   : > { %1303 = vrot.lane.b32.xlu1 %v602_v57, %s9022_s20  ;;  %1697 = vrot.lane.b32.xlu0 %v674_v25, %s9025_s27  ;;  %v676_v57 = vld [vmem:[%s9141_s29 + $0x8e] sm:$0xff]  ;;  %v675_v25 = vld [vmem:[%s9141_s29 + $0x86] sm:$0xff] }
 0x19f   : > { %v9942_v29 = vpop.permute.xlu1 %1191  ;;  %v9944_v39 = vpop.permute.xlu0 %1189 }
 0x1a0   : > { %13176 = vst [vmem:[#allocation100_spill] sm:$0xff] %v9942_v29  ;;  %13177 = vst [vmem:[#allocation101_spill] sm:$0xff] %v9944_v39 }
 0x1a1   : > { %1413 = vrot.lane.b32.xlu1 %v604_v41, %s9023_s25  ;;  %1411 = vrot.lane.b32.xlu0 %v603_v34, %s9023_s25 }
 0x1a3   : > { %v9950_v26 = vpop.permute.xlu1 %1195  ;;  %v9952_v27 = vpop.permute.xlu0 %1193 }
 0x1a4   : > { %13178 = vst [vmem:[#allocation102_spill] sm:$0xff] %v9950_v26  ;;  %13179 = vst [vmem:[#allocation103_spill] sm:$0xff] %v9952_v27 }
 0x1a5   : > { %1557 = vrot.lane.b32.xlu1 %v640_v22, %s9024_s26  ;;  %1555 = vrot.lane.b32.xlu0 %v639_v10, %s9024_s26  ;;  %v606_v22 = vld [vmem:[%s9141_s29 + $0x9c] sm:$0xff]  ;;  %v605_v10 = vld [vmem:[%s9141_s29 + $0x94] sm:$0xff] }
 0x1a7   : > { %v9958_v39 = vpop.permute.xlu1 %1199  ;;  %v9960_v29 = vpop.permute.xlu0 %1197 }
 0x1a8   : > { %13180 = vst [vmem:[#allocation104_spill] sm:$0xff] %v9958_v39  ;;  %13181 = vst [vmem:[#allocation105_spill] sm:$0xff] %v9960_v29 }
 0x1a9   : > { %1701 = vrot.lane.b32.xlu1 %v676_v57, %s9025_s27  ;;  %1699 = vrot.lane.b32.xlu0 %v675_v25, %s9025_s27  ;;  %v642_v57 = vld [vmem:[%s9141_s29 + $0x9d] sm:$0xff]  ;;  %v641_v25 = vld [vmem:[%s9141_s29 + $0x95] sm:$0xff] }
 0x1ab   : > { %v9964_v30 = vpop.permute.xlu1 %1203  ;;  %v9966_v27 = vpop.permute.xlu0 %1201 }
 0x1ac   : > { %13182 = vst [vmem:[#allocation106_spill] sm:$0xff] %v9964_v30  ;;  %13183 = vst [vmem:[#allocation107_spill] sm:$0xff] %v9966_v27 }
 0x1ad   : > { %1307 = vrot.lane.b32.xlu1 %v604_v41, %s9022_s20  ;;  %1305 = vrot.lane.b32.xlu0 %v603_v34, %s9022_s20  ;;  %v678_v34 = vld [vmem:[%s9141_s29 + $0x9e] sm:$0xff]  ;;  %v677_v41 = vld [vmem:[%s9141_s29 + $0x96] sm:$0xff] }
 0x1af   : > { %v9972_v26 = vpop.permute.xlu1 %1279  ;;  %v1278_v39 = vpop.permute.xlu0 %1277 }
 0x1b1   : > { %1417 = vrot.lane.b32.xlu1 %v606_v22, %s9023_s25  ;;  %1415 = vrot.lane.b32.xlu0 %v605_v10, %s9023_s25 }
 0x1b3   : > { %v9978_v30 = vpop.permute.xlu1 %1283  ;;  %v9980_v27 = vpop.permute.xlu0 %1281 }
 0x1b5   : > { %1561 = vrot.lane.b32.xlu1 %v642_v57, %s9024_s26  ;;  %1559 = vrot.lane.b32.xlu0 %v641_v25, %s9024_s26  ;;  %v608_v57 = vld [vmem:[%s9141_s29 + $0xac] sm:$0xff]  ;;  %v607_v25 = vld [vmem:[%s9141_s29 + $0xa4] sm:$0xff] }
 0x1b7   : > { %v9986_v29 = vpop.permute.xlu1 %1287  ;;  %v9988_v31 = vpop.permute.xlu0 %1285 }
 0x1b9   : > { %1705 = vrot.lane.b32.xlu1 %v678_v34, %s9025_s27  ;;  %1703 = vrot.lane.b32.xlu0 %v677_v41, %s9025_s27  ;;  %v644_v34 = vld [vmem:[%s9141_s29 + $0xad] sm:$0xff]  ;;  %v643_v41 = vld [vmem:[%s9141_s29 + $0xa5] sm:$0xff] }
 0x1bb   : > { %v9992_v59 = vpop.permute.xlu1 %1291  ;;  %v9994_v58 = vpop.permute.xlu0 %1289 }
 0x1bd   : > { %1311 = vrot.lane.b32.xlu1 %v606_v22, %s9022_s20  ;;  %1309 = vrot.lane.b32.xlu0 %v605_v10, %s9022_s20  ;;  %v443_v10 = vld [vmem:[%s9141_s29] sm:$0xff] }
 0x1be   : > { %v1784_v43 = vsel %vm1783_vm1, %v443_v10, %v9327_v61 }
 0x1bf   : > { %v10000_v21 = vpop.permute.xlu1 %1295  ;;  %v10002_v20 = vpop.permute.xlu0 %1293 }
 0x1c1   : > { %1421 = vrot.lane.b32.xlu1 %v608_v57, %s9023_s25  ;;  %1419 = vrot.lane.b32.xlu0 %v607_v25, %s9023_s25 }
 0x1c3   : > { %v10008_v2 = vpop.permute.xlu1 %1299  ;;  %v10010_v22 = vpop.permute.xlu0 %1297 }
 0x1c4   : > { %13184 = vst [vmem:[#allocation108_spill] sm:$0xff] %v10008_v2  ;;  %13185 = vst [vmem:[#allocation109_spill] sm:$0xff] %v10010_v22 }
 0x1c5   : > { %1565 = vrot.lane.b32.xlu1 %v644_v34, %s9024_s26  ;;  %1563 = vrot.lane.b32.xlu0 %v643_v41, %s9024_s26  ;;  %v444_v34 = vld [vmem:[%s9141_s29 + $0x8] sm:$0xff]  ;;  %v1821_v41 = vsel %vm1820_vm2, %v1784_v43, %v9507_v45 }
 0x1c6   : > { %v1858_v2 = vsel %vm1857_vm3, %v1821_v41, %v9653_v40  ;;  %v610_v40 = vld [vmem:[%s9141_s29 + $0xbc] sm:$0xff] }
 0x1c7   : > { %v1388_v16 = vpop.permute.xlu1 %1387  ;;  %v10017_v23 = vpop.permute.xlu0 %1301  ;;  %v1895_v61 = vsel %vm1894_vm4, %v1858_v2, %v9833_v28  ;;  %v609_v2 = vld [vmem:[%s9141_s29 + $0xb4] sm:$0xff] }
 0x1c8   : > { %13186 = vst [vmem:[#allocation110_spill] sm:$0xff] %v10017_v23 }
 0x1c9   : > { %1709 = vrot.lane.b32.xlu1 %v680_v14, %s9025_s27  ;;  %1707 = vrot.lane.b32.xlu0 %v679_v54, %s9025_s27  ;;  %v1785_v54 = vsel %vm1783_vm1, %v444_v34, %v9341_v1  ;;  %v1932_v14 = vsel %vm1931_vm5, %v1895_v61, %v1278_v39  ;;  %v645_v34 = vld [vmem:[%s9141_s29 + $0xb5] sm:$0xff] }
 0x1ca   : > { %v1822_v43 = vsel %vm1820_vm2, %v1785_v54, %v9505_v44  ;;  %v1969_v45 = vsel %vm1968_vm6, %v1932_v14, %v1388_v16  ;;  %v445_v44 = vld [vmem:[%s9141_s29 + $0x10] sm:$0xff]  ;;  %v446_v14 = vld [vmem:[%s9141_s29 + $0x18] sm:$0xff] }
 0x1cb   : > { %v1532_v23 = vpop.permute.xlu1 %1531  ;;  %v1390_v22 = vpop.permute.xlu0 %1389  ;;  %v1859_v1 = vsel %vm1857_vm3, %v1822_v43, %v9651_v7  ;;  %v646_v7 = vld [vmem:[%s9141_s29 + $0xbd] sm:$0xff] }
 0x1cc   : > { %v2006_v28 = vsel %vm2005_vm7, %v1969_v45, %v1532_v23  ;;  %v682_v43 = vld [vmem:[%s9141_s29 + $0xbe] sm:$0xff]  ;;  %v681_v45 = vld [vmem:[%s9141_s29 + $0xb6] sm:$0xff] }
 0x1cd   : > { %1315 = vrot.lane.b32.xlu1 %v608_v57, %s9022_s20  ;;  %1313 = vrot.lane.b32.xlu0 %v607_v25, %s9022_s20  ;;  %v1896_v25 = vsel %vm1894_vm4, %v1859_v1, %v9831_v19 }
 0x1ce   : > { %v1933_v16 = vsel %vm1931_vm5, %v1896_v25, %v9972_v26  ;;  %v1786_v26 = vsel %vm1783_vm1, %v445_v44, %v9325_v60 }
 0x1cf   : > { %v1676_v39 = vpop.permute.xlu1 %1675  ;;  %v1534_v57 = vpop.permute.xlu0 %1533  ;;  %v1970_v23 = vsel %vm1968_vm6, %v1933_v16, %v1390_v22  ;;  %v1823_v22 = vsel %vm1820_vm2, %v1786_v26, %v9515_v47  ;;  %v648_v26 = vld [vmem:[%s9141_s29 + $0xcd] sm:$0xff] }
 0x1d0   : > { %v2042_v10 = vsel %vm393_vm8, %v2006_v28, %v1676_v39  ;;  %v2007_v19 = vsel %vm2005_vm7, %v1970_v23, %v1534_v57  ;;  %v1860_v1 = vsel %vm1857_vm3, %v1823_v22, %v9661_v38  ;;  %v1787_v57 = vsel %vm1783_vm1, %v446_v14, %v9339_v0  ;;  %v647_v14 = vld [vmem:[%s9141_s29 + $0xc5] sm:$0xff] }
 0x1d1   : > { %1425 = vrot.lane.b32.xlu1 %v610_v40, %s9023_s25  ;;  %1423 = vrot.lane.b32.xlu0 %v609_v2, %s9023_s25  ;;  %v1897_v60 = vsel %vm1894_vm4, %v1860_v1, %v9840_v32  ;;  %v1824_v47 = vsel %vm1820_vm2, %v1787_v57, %v9513_v46  ;;  %v447_v46 = vld [vmem:[%s9141_s29 + $0x20] sm:$0xff] }
 0x1d2   : > { %7493 = vmatprep.mubr.msk.f32.mxu0 %vm2078_vm9, %v2042_v10  ;;  %v1934_v25 = vsel %vm1931_vm5, %v1897_v60, %v9980_v27  ;;  %v1861_v32 = vsel %vm1857_vm3, %v1824_v47, %v9659_v42  ;;  %v683_v60 = vld [vmem:[%s9141_s29 + $0xc6] sm:$0xff] }
 0x1d3   : > { %v1392_v41 = vpop.permute.xlu1 %1391  ;;  %v1678_v61 = vpop.permute.xlu0 %1677  ;;  %v1898_v27 = vsel %vm1894_vm4, %v1861_v32, %v9838_v63  ;;  %v9026_v63 = vmov 0  }
 0x1d4   : > { %v2043_v54 = vsel %vm393_vm8, %v2007_v19, %v1678_v61  ;;  %v1971_v38 = vsel %vm1968_vm6, %v1934_v25, %v1392_v41  ;;  %v1935_v23 = vsel %vm1931_vm5, %v1898_v27, %v9978_v30  ;;  %7867 = vset.pattern.permute.xlu1 %v9026_v63  ;;  %7866 = vset.pattern.permute.xlu0 %v9026_v63  ;;  %v448_v61 = vld [vmem:[%s9141_s29 + $0x28] sm:$0xff] }
 0x1d5   : > { %1569 = vrot.lane.b32.xlu1 %v646_v7, %s9024_s26  ;;  %1567 = vrot.lane.b32.xlu0 %v645_v34, %s9024_s26  ;;  %v612_v7 = vld [vmem:[%s9141_s29 + $0xcc] sm:$0xff]  ;;  %v611_v34 = vld [vmem:[%s9141_s29 + $0xc4] sm:$0xff]  ;;  %v1789_v1 = vsel %vm1783_vm1, %v448_v61, %v9353_v4 }
 0x1d6   : > { %7494 = vmatmul.mubr.msk.f32.vlgmr.msra.gmra.mrb[0].mxu0 %vm2078_vm9, %v2043_v54  ;;  %v451_v61 = vld [vmem:[%s9141_s29 + $0x40] sm:$0xff] }
 0x1d7   : > { %v1536_v28 = vpop.permute.xlu1 %1535  ;;  %v1394_v39 = vpop.permute.xlu0 %1393 }
 0x1d8   : > { %v2008_v10 = vsel %vm2005_vm7, %v1971_v38, %v1536_v28  ;;  %v1972_v42 = vsel %vm1968_vm6, %v1935_v23, %v1394_v39  ;;  %v684_v39 = vld [vmem:[%s9141_s29 + $0xce] sm:$0xff] }
 0x1d9   : > { %1713 = vrot.lane.b32.xlu1 %v682_v43, %s9025_s27  ;;  %1711 = vrot.lane.b32.xlu0 %v681_v45, %s9025_s27  ;;  %v613_v23 = vld [vmem:[%s9141_s29 + $0xd4] sm:$0xff] }
 0x1db   : > { %v1680_v0 = vpop.permute.xlu1 %1679  ;;  %v1538_v16 = vpop.permute.xlu0 %1537 }
 0x1dc   : > { %v2044_v44 = vsel %vm393_vm8, %v2008_v10, %v1680_v0  ;;  %v2009_v19 = vsel %vm2005_vm7, %v1972_v42, %v1538_v16  ;;  %v450_v16 = vld [vmem:[%s9141_s29 + $0x38] sm:$0xff] }
 0x1dd   : > { %1319 = vrot.lane.b32.xlu1 %v610_v40, %s9022_s20  ;;  %1317 = vrot.lane.b32.xlu0 %v609_v2, %s9022_s20  ;;  %v1788_v2 = vsel %vm1783_vm1, %v447_v46, %v9355_v5 }
 0x1de   : > { %7496 = vmatprep.mubr.msk.f32.mxu0 %vm2078_vm9, %v2044_v44  ;;  %v1825_v54 = vsel %vm1820_vm2, %v1788_v2, %v9523_v49  ;;  %v1826_v49 = vsel %vm1820_vm2, %v1789_v1, %v9521_v48  ;;  %v614_v44 = vld [vmem:[%s9141_s29 + $0xdc] sm:$0xff] }
 0x1df   : > { %v1396_v41 = vpop.permute.xlu1 %1395  ;;  %v1682_v30 = vpop.permute.xlu0 %1681  ;;  %v1862_v22 = vsel %vm1857_vm3, %v1825_v54, %v9669_v36  ;;  %v686_v54 = vld [vmem:[%s9141_s29 + $0xde] sm:$0xff] }
 0x1e0   : > { %v2045_v40 = vsel %vm393_vm8, %v2009_v19, %v1682_v30  ;;  %v1899_v5 = vsel %vm1894_vm4, %v1862_v22, %v9848_v11  ;;  %v1863_v11 = vsel %vm1857_vm3, %v1826_v49, %v9667_v35  ;;  %v449_v35 = vld [vmem:[%s9141_s29 + $0x30] sm:$0xff]  ;;  %v650_v19 = vld [vmem:[%s9141_s29 + $0xdd] sm:$0xff] }
 0x1e1   : > { %1429 = vrot.lane.b32.xlu1 %v612_v7, %s9023_s25  ;;  %1427 = vrot.lane.b32.xlu0 %v611_v34, %s9023_s25  ;;  %v1936_v28 = vsel %vm1931_vm5, %v1899_v5, %v9988_v31  ;;  %v1900_v31 = vsel %vm1894_vm4, %v1863_v11, %v9846_v62 }
 0x1e2   : > { %7497 = vmatmul.mubr.msk.f32.gmra.mrb[2].mxu0 %vm2078_vm9, %v2045_v40  ;;  %v1973_v36 = vsel %vm1968_vm6, %v1936_v28, %v1396_v41  ;;  %v1937_v48 = vsel %vm1931_vm5, %v1900_v31, %v9986_v29  ;;  %v1790_v29 = vsel %vm1783_vm1, %v449_v35, %v9369_v9  ;;  %v453_v31 = vld [vmem:[%s9141_s29 + $0x50] sm:$0xff] }
 0x1e3   : > { %v1540_v43 = vpop.permute.xlu1 %1539  ;;  %v1398_v45 = vpop.permute.xlu0 %1397  ;;  %v1827_v27 = vsel %vm1820_vm2, %v1790_v29, %v9531_v51  ;;  %v687_v29 = vld [vmem:[%s9141_s29 + $0xe6] sm:$0xff] }
 0x1e4   : > { %v2010_v4 = vsel %vm2005_vm7, %v1973_v36, %v1540_v43  ;;  %v1974_v38 = vsel %vm1968_vm6, %v1937_v48, %v1398_v45  ;;  %v1864_v46 = vsel %vm1857_vm3, %v1827_v27, %v9677_v37  ;;  %v452_v45 = vld [vmem:[%s9141_s29 + $0x48] sm:$0xff] }
 0x1e5   : > { %1573 = vrot.lane.b32.xlu1 %v648_v26, %s9024_s26  ;;  %1571 = vrot.lane.b32.xlu0 %v647_v14, %s9024_s26  ;;  %v1901_v9 = vsel %vm1894_vm4, %v1864_v46, %v9857_v18  ;;  %v649_v18 = vld [vmem:[%s9141_s29 + $0xd5] sm:$0xff]  ;;  %v1793_v36 = vsel %vm1783_vm1, %v452_v45, %v9381_v12  ;;  %v651_v48 = vld [vmem:[%s9141_s29 + $0xe5] sm:$0xff] }
 0x1e6   : > { %v685_v26 = vld [vmem:[%s9141_s29 + $0xd6] sm:$0xff] }
 0x1e7   : > { %v1684_v57 = vpop.permute.xlu1 %1683  ;;  %v1542_v25 = vpop.permute.xlu0 %1541  ;;  %v13188_v46 = vld [vmem:[#allocation83_spill] sm:$0xff]  ;;  %v654_v45 = vld [vmem:[%s9141_s29 + $0xfd] sm:$0xff] }
 0x1e8   : > { %v2046_v47 = vsel %vm393_vm8, %v2010_v4, %v1684_v57  ;;  %v2011_v32 = vsel %vm2005_vm7, %v1974_v38, %v1542_v25 }
 0x1e9   : > { %1717 = vrot.lane.b32.xlu1 %v684_v39, %s9025_s27  ;;  %1715 = vrot.lane.b32.xlu0 %v683_v60, %s9025_s27  ;;  %v616_v60 = vld [vmem:[%s9141_s29 + $0xec] sm:$0xff] }
 0x1ea   : > { %7499 = vmatprep.mubr.msk.f32.mxu0 %vm2078_vm9, %v2046_v47  ;;  %v652_v47 = vld [vmem:[%s9141_s29 + $0xed] sm:$0xff] }
 0x1eb   : > { %v1400_v10 = vpop.permute.xlu1 %1399  ;;  %v1686_v62 = vpop.permute.xlu0 %1685 }
 0x1ec   : > { %v2047_v0 = vsel %vm393_vm8, %v2011_v32, %v1686_v62 }
 0x1ed   : > { %1323 = vrot.lane.b32.xlu1 %v612_v7, %s9022_s20  ;;  %1321 = vrot.lane.b32.xlu0 %v611_v34, %s9022_s20  ;;  %v1791_v7 = vsel %vm1783_vm1, %v450_v16, %v9367_v8  ;;  %v1938_v34 = vsel %vm1931_vm5, %v1901_v9, %v9994_v58  ;;  %v13187_v16 = vld [vmem:[#allocation57_spill] sm:$0xff] }
 0x1ee   : > { %7500 = vmatmul.mubr.msk.f32.gmra.mrb[4].mxu0 %vm2078_vm9, %v2047_v0  ;;  %v1828_v51 = vsel %vm1820_vm2, %v1791_v7, %v9529_v50  ;;  %v1975_v37 = vsel %vm1968_vm6, %v1938_v34, %v1400_v10  ;;  %v454_v10 = vld [vmem:[%s9141_s29 + $0x58] sm:$0xff]  ;;  %v688_v0 = vld [vmem:[%s9141_s29 + $0xee] sm:$0xff]  ;;  %v13190_v9 = vld [vmem:[#allocation109_spill] sm:$0xff] }
 0x1ef   : > { %v1544_v42 = vpop.permute.xlu1 %1543  ;;  %v1402_v63 = vpop.permute.xlu0 %1401  ;;  %v1865_v8 = vsel %vm1857_vm3, %v1828_v51, %v9675_v56 }
 0x1f0   : > { %v2012_v41 = vsel %vm2005_vm7, %v1975_v37, %v1544_v42  ;;  %v1902_v40 = vsel %vm1894_vm4, %v1865_v8, %v9855_v24  ;;  %v13189_v42 = vld [vmem:[#allocation6_spill] sm:$0xff]  ;;  %v13192_v37 = vld [vmem:[#allocation56_spill] sm:$0xff] }
 0x1f1   : > { %1433 = vrot.lane.b32.xlu1 %v614_v44, %s9023_s25  ;;  %1431 = vrot.lane.b32.xlu0 %v613_v23, %s9023_s25  ;;  %v1939_v50 = vsel %vm1931_vm5, %v1902_v40, %v9992_v59  ;;  %v1792_v59 = vsel %vm1783_vm1, %v451_v61, %v9383_v13 }
 0x1f2   : > { %v1976_v56 = vsel %vm1968_vm6, %v1939_v50, %v1402_v63  ;;  %v1829_v5 = vsel %vm1820_vm2, %v1792_v59, %v9539_v53  ;;  %v1830_v53 = vsel %vm1820_vm2, %v1793_v36, %v9537_v52  ;;  %v1795_v63 = vsel %vm1783_vm1, %v454_v10, %v13189_v42  ;;  %v455_v59 = vld [vmem:[%s9141_s29 + $0x60] sm:$0xff] }
 0x1f3   : > { %v1688_v58 = vpop.permute.xlu1 %1687  ;;  %v1546_v30 = vpop.permute.xlu0 %1545  ;;  %v1866_v1 = vsel %vm1857_vm3, %v1829_v5, %v9685_v6  ;;  %v1867_v12 = vsel %vm1857_vm3, %v1830_v53, %v9683_v33  ;;  %v653_v5 = vld [vmem:[%s9141_s29 + $0xf5] sm:$0xff] }
 0x1f4   : > { %v2048_v2 = vsel %vm393_vm8, %v2012_v41, %v1688_v58  ;;  %v2013_v14 = vsel %vm2005_vm7, %v1976_v56, %v1546_v30  ;;  %v1903_v13 = vsel %vm1894_vm4, %v1866_v1, %v9864_v15  ;;  %v615_v15 = vld [vmem:[%s9141_s29 + $0xe4] sm:$0xff]  ;;  %v1904_v57 = vsel %vm1894_vm4, %v1867_v12, %v9862_v3  ;;  %v618_v56 = vld [vmem:[%s9141_s29 + $0xfc] sm:$0xff] }
 0x1f5   : > { %1577 = vrot.lane.b32.xlu1 %v650_v19, %s9024_s26  ;;  %1575 = vrot.lane.b32.xlu0 %v649_v18, %s9024_s26  ;;  %v1940_v39 = vsel %vm1931_vm5, %v1903_v13, %v10002_v20  ;;  %v1941_v52 = vsel %vm1931_vm5, %v1904_v57, %v10000_v21  ;;  %v1794_v21 = vsel %vm1783_vm1, %v453_v31, %v9397_v17  ;;  %v13193_v58 = vld [vmem:[#allocation82_spill] sm:$0xff]  ;;  %v13196_v36 = vld [vmem:[#allocation8_spill] sm:$0xff]  ;;  %v13200_v57 = vld [vmem:[#allocation59_spill] sm:$0xff] }
 0x1f6   : > { %7502 = vmatprep.mubr.msk.f32.mxu0 %vm2078_vm9, %v2048_v2  ;;  %v1831_v62 = vsel %vm1820_vm2, %v1794_v21, %v9547_v55  ;;  %v13191_v55 = vld [vmem:[#allocation31_spill] sm:$0xff]  ;;  %v13194_v2 = vld [vmem:[#allocation108_spill] sm:$0xff] }
 0x1f7   : > { %v1404_v24 = vpop.permute.xlu1 %1403  ;;  %v1690_v22 = vpop.permute.xlu0 %1689  ;;  %v1868_v27 = vsel %vm1857_vm3, %v1831_v62, %v13187_v16  ;;  %v1832_v34 = vsel %vm1820_vm2, %v1795_v63, %v13191_v55  ;;  %v13197_v53 = vld [vmem:[#allocation32_spill] sm:$0xff]  ;;  %v655_v55 = vld [vmem:[%s9141_s29 + $0x105] sm:$0xff] }
 0x1f8   : > { %v2049_v43 = vsel %vm393_vm8, %v2013_v14, %v1690_v22  ;;  %v1977_v6 = vsel %vm1968_vm6, %v1940_v39, %v1404_v24  ;;  %v1905_v17 = vsel %vm1894_vm4, %v1868_v27, %v13188_v46  ;;  %v1869_v19 = vsel %vm1857_vm3, %v1832_v34, %v13192_v37  ;;  %v690_v12 = vld [vmem:[%s9141_s29 + $0xfe] sm:$0xff] }
 0x1f9   : > { %1721 = vrot.lane.b32.xlu1 %v686_v54, %s9025_s27  ;;  %1719 = vrot.lane.b32.xlu0 %v685_v26, %s9025_s27  ;;  %v1942_v7 = vsel %vm1931_vm5, %v1905_v17, %v13190_v9  ;;  %v1906_v30 = vsel %vm1894_vm4, %v1869_v19, %v13193_v58  ;;  %v617_v54 = vld [vmem:[%s9141_s29 + $0xf4] sm:$0xff]  ;;  %v1796_v39 = vsel %vm1783_vm1, %v455_v59, %v13196_v36  ;;  %v619_v46 = vld [vmem:[%s9141_s29 + $0x104] sm:$0xff] }
 0x1fa   : > { %7503 = vmatmul.mubr.msk.f32.gmra.mrb[6].mxu0 %vm2078_vm9, %v2049_v43  ;;  %v1943_v50 = vsel %vm1931_vm5, %v1906_v30, %v13194_v2  ;;  %v456_v43 = vld [vmem:[%s9141_s29 + $0x68] sm:$0xff]  ;;  %v458_v63 = vld [vmem:[%s9141_s29 + $0x78] sm:$0xff]  ;;  %v457_v9 = vld [vmem:[%s9141_s29 + $0x70] sm:$0xff] }
 0x1fb   : > { %v1548_v28 = vpop.permute.xlu1 %1547  ;;  %v1406_v49 = vpop.permute.xlu0 %1405  ;;  %v13204_v37 = vld [vmem:[#allocation9_spill] sm:$0xff]  ;;  %v13207_v30 = vld [vmem:[#allocation35_spill] sm:$0xff] }
 0x1fc   : > { %v2014_v11 = vsel %vm2005_vm7, %v1977_v6, %v1548_v28  ;;  %v1978_v33 = vsel %vm1968_vm6, %v1941_v52, %v1406_v49  ;;  %v13195_v49 = vld [vmem:[#allocation7_spill] sm:$0xff]  ;;  %v1799_v19 = vsel %vm1783_vm1, %v458_v63, %v13204_v37  ;;  %v13219_v63 = vld [vmem:[#allocation89_spill] sm:$0xff] }
 0x1fd   : > { %1327 = vrot.lane.b32.xlu1 %v614_v44, %s9022_s20  ;;  %1325 = vrot.lane.b32.xlu0 %v613_v23, %s9022_s20  ;;  %v1797_v13 = vsel %vm1783_vm1, %v456_v43, %v13195_v49  ;;  %v692_v2 = vld [vmem:[%s9141_s29 + $0x10e] sm:$0xff] }
 0x1fe   : > { %v1834_v6 = vsel %vm1820_vm2, %v1797_v13, %v13197_v53  ;;  %v13211_v59 = vld [vmem:[#allocation87_spill] sm:$0xff] }
 0x1ff   : > { %v1692_v20 = vpop.permute.xlu1 %1691  ;;  %v1550_v4 = vpop.permute.xlu0 %1549 }
 0x200   : > { %v2050_v25 = vsel %vm393_vm8, %v2014_v11, %v1692_v20  ;;  %v2015_v3 = vsel %vm2005_vm7, %v1978_v33, %v1550_v4  ;;  %v689_v11 = vld [vmem:[%s9141_s29 + $0xf6] sm:$0xff]  ;;  %v13199_v20 = vld [vmem:[#allocation58_spill] sm:$0xff] }
 0x201   : > { %1437 = vrot.lane.b32.xlu1 %v616_v60, %s9023_s25  ;;  %1435 = vrot.lane.b32.xlu0 %v615_v15, %s9023_s25  ;;  %v1871_v4 = vsel %vm1857_vm3, %v1834_v6, %v13199_v20  ;;  %v13201_v33 = vld [vmem:[#allocation84_spill] sm:$0xff] }
 0x202   : > { %7505 = vmatprep.mubr.msk.f32.mxu0 %vm2078_vm9, %v2050_v25 }
 0x203   : > { %v1408_v35 = vpop.permute.xlu1 %1407  ;;  %v1694_v38 = vpop.permute.xlu0 %1693 }
 0x204   : > { %v2051_v32 = vsel %vm393_vm8, %v2015_v3, %v1694_v38  ;;  %v1979_v51 = vsel %vm1968_vm6, %v1942_v7, %v1408_v35  ;;  %v13203_v35 = vld [vmem:[#allocation110_spill] sm:$0xff] }
 0x205   : > { %1581 = vrot.lane.b32.xlu1 %v652_v47, %s9024_s26  ;;  %1579 = vrot.lane.b32.xlu0 %v651_v48, %s9024_s26  ;;  %v1908_v47 = vsel %vm1894_vm4, %v1871_v4, %v13201_v33  ;;  %v13202_v48 = vld [vmem:[#allocation85_spill] sm:$0xff]  ;;  %v656_v7 = vld [vmem:[%s9141_s29 + $0x10d] sm:$0xff] }
 0x206   : > { %7506 = vmatmul.mubr.msk.f32.gmra.mrb[8].mxu0 %vm2078_vm9, %v2051_v32  ;;  %v460_v4 = vld [vmem:[%s9141_s29 + $0x88] sm:$0xff] }
 0x207   : > { %v1552_v44 = vpop.permute.xlu1 %1551  ;;  %v1410_v23 = vpop.permute.xlu0 %1409 }
 0x208   : > { %v2016_v18 = vsel %vm2005_vm7, %v1979_v51, %v1552_v44  ;;  %v1980_v61 = vsel %vm1968_vm6, %v1943_v50, %v1410_v23  ;;  %v620_v23 = vld [vmem:[%s9141_s29 + $0x10c] sm:$0xff] }
 0x209   : > { %1725 = vrot.lane.b32.xlu1 %v688_v0, %s9025_s27  ;;  %1723 = vrot.lane.b32.xlu0 %v687_v29, %s9025_s27  ;;  %v691_v50 = vld [vmem:[%s9141_s29 + $0x106] sm:$0xff] }
 0x20b   : > { %v1696_v8 = vpop.permute.xlu1 %1695  ;;  %v1554_v41 = vpop.permute.xlu0 %1553 }
 0x20c   : > { %v2052_v40 = vsel %vm393_vm8, %v2016_v18, %v1696_v8  ;;  %v2017_v26 = vsel %vm2005_vm7, %v1980_v61, %v1554_v41  ;;  %v13205_v18 = vld [vmem:[#allocation10_spill] sm:$0xff]  ;;  %v13208_v61 = vld [vmem:[#allocation60_spill] sm:$0xff] }
 0x20d   : > { %1331 = vrot.lane.b32.xlu1 %v616_v60, %s9022_s20  ;;  %1329 = vrot.lane.b32.xlu0 %v615_v15, %s9022_s20  ;;  %v13198_v60 = vld [vmem:[#allocation33_spill] sm:$0xff]  ;;  %v1798_v8 = vsel %vm1783_vm1, %v457_v9, %v13205_v18  ;;  %v13206_v41 = vld [vmem:[#allocation34_spill] sm:$0xff] }
 0x20e   : > { %7508 = vmatprep.mubr.msk.f32.mxu0 %vm2078_vm9, %v2052_v40  ;;  %v1833_v15 = vsel %vm1820_vm2, %v1796_v39, %v13198_v60  ;;  %v1836_v58 = vsel %vm1820_vm2, %v1799_v19, %v13206_v41  ;;  %v1835_v40 = vsel %vm1820_vm2, %v1798_v8, %v13207_v30  ;;  %v624_v30 = vld [vmem:[%s9141_s29 + $0x12c] sm:$0xff] }
 0x20f   : > { %v1304_v14 = vpop.permute.xlu1 %1303  ;;  %v1698_v24 = vpop.permute.xlu0 %1697  ;;  %v1870_v25 = vsel %vm1857_vm3, %v1833_v15, %v13200_v57  ;;  %v622_v15 = vld [vmem:[%s9141_s29 + $0x11c] sm:$0xff] }
 0x210   : > { %v2053_v22 = vsel %vm393_vm8, %v2017_v26, %v1698_v24  ;;  %v1907_v3 = vsel %vm1894_vm4, %v1870_v25, %v13202_v48  ;;  %v1945_v32 = vsel %vm1931_vm5, %v1908_v47, %v1304_v14  ;;  %v459_v57 = vld [vmem:[%s9141_s29 + $0x80] sm:$0xff]  ;;  %v13212_v47 = vld [vmem:[#allocation11_spill] sm:$0xff] }
 0x211   : > { %1441 = vrot.lane.b32.xlu1 %v618_v56, %s9023_s25  ;;  %1439 = vrot.lane.b32.xlu0 %v617_v54, %s9023_s25  ;;  %v1944_v38 = vsel %vm1931_vm5, %v1907_v3, %v13203_v35  ;;  %v658_v25 = vld [vmem:[%s9141_s29 + $0x11d] sm:$0xff]  ;;  %v1801_v48 = vsel %vm1783_vm1, %v460_v4, %v13212_v47  ;;  %v13227_v4 = vld [vmem:[#allocation91_spill] sm:$0xff] }
 0x212   : > { %7509 = vmatmul.mubr.msk.f32.gmra.mrb[10].mxu0 %vm2078_vm9, %v2053_v22  ;;  %v13210_v22 = vld [vmem:[#allocation86_spill] sm:$0xff]  ;;  %v13213_v3 = vld [vmem:[#allocation12_spill] sm:$0xff] }
 0x213   : > { %v1414_v1 = vpop.permute.xlu1 %1413  ;;  %v1412_v28 = vpop.permute.xlu0 %1411  ;;  %v1800_v35 = vsel %vm1783_vm1, %v459_v57, %v13213_v3 }
 0x214   : > { %v1982_v21 = vsel %vm1968_vm6, %v1945_v32, %v1414_v1  ;;  %v1981_v10 = vsel %vm1968_vm6, %v1944_v38, %v1412_v28  ;;  %v13214_v38 = vld [vmem:[#allocation36_spill] sm:$0xff] }
 0x215   : > { %1585 = vrot.lane.b32.xlu1 %v654_v45, %s9024_s26  ;;  %1583 = vrot.lane.b32.xlu0 %v653_v5, %s9024_s26  ;;  %v1838_v32 = vsel %vm1820_vm2, %v1801_v48, %v13214_v38 }
 0x217   : > { %v1558_v52 = vpop.permute.xlu1 %1557  ;;  %v1556_v31 = vpop.permute.xlu0 %1555 }
 0x218   : > { %v2019_v62 = vsel %vm2005_vm7, %v1982_v21, %v1558_v52  ;;  %v2018_v0 = vsel %vm2005_vm7, %v1981_v10, %v1556_v31  ;;  %v657_v52 = vld [vmem:[%s9141_s29 + $0x115] sm:$0xff]  ;;  %v13215_v21 = vld [vmem:[#allocation37_spill] sm:$0xff] }
 0x219   : > { %1729 = vrot.lane.b32.xlu1 %v690_v12, %s9025_s27  ;;  %1727 = vrot.lane.b32.xlu0 %v689_v11, %s9025_s27  ;;  %v621_v12 = vld [vmem:[%s9141_s29 + $0x114] sm:$0xff]  ;;  %v1837_v10 = vsel %vm1820_vm2, %v1800_v35, %v13215_v21  ;;  %v626_v21 = vld [vmem:[%s9141_s29 + $0x13c] sm:$0xff] }
 0x21b   : > { %v1702_v29 = vpop.permute.xlu1 %1701  ;;  %v1700_v16 = vpop.permute.xlu0 %1699 }
 0x21c   : > { %v2055_v27 = vsel %vm393_vm8, %v2019_v62, %v1702_v29  ;;  %v2054_v44 = vsel %vm393_vm8, %v2018_v0, %v1700_v16  ;;  %v694_v62 = vld [vmem:[%s9141_s29 + $0x11e] sm:$0xff]  ;;  %v693_v0 = vld [vmem:[%s9141_s29 + $0x116] sm:$0xff]  ;;  %v13216_v29 = vld [vmem:[#allocation62_spill] sm:$0xff] }
 0x21d   : > { %1335 = vrot.lane.b32.xlu1 %v618_v56, %s9022_s20  ;;  %1333 = vrot.lane.b32.xlu0 %v617_v54, %s9022_s20  ;;  %v1873_v56 = vsel %vm1857_vm3, %v1836_v58, %v13208_v61  ;;  %v13209_v54 = vld [vmem:[#allocation61_spill] sm:$0xff]  ;;  %v1875_v16 = vsel %vm1857_vm3, %v1838_v32, %v13216_v29  ;;  %v462_v61 = vld [vmem:[%s9141_s29 + $0x98] sm:$0xff] }
 0x21e   : > { %7511 = vmatprep.mubr.msk.f32.mxu0 %vm2078_vm9, %v2054_v44  ;;  %v1872_v26 = vsel %vm1857_vm3, %v1835_v40, %v13209_v54  ;;  %v1910_v43 = vsel %vm1894_vm4, %v1873_v56, %v13210_v22  ;;  %v623_v40 = vld [vmem:[%s9141_s29 + $0x124] sm:$0xff]  ;;  %v461_v56 = vld [vmem:[%s9141_s29 + $0x90] sm:$0xff] }
 0x21f   : > { %7512 = vmatmul.mubr.msk.f32.gmra.mrb[12].mxu0 %vm2078_vm9, %v2055_v27  ;;  %v1308_v17 = vpop.permute.xlu1 %1307  ;;  %v1306_v42 = vpop.permute.xlu0 %1305  ;;  %v1909_v45 = vsel %vm1894_vm4, %v1872_v26, %v13211_v59  ;;  %v13217_v27 = vld [vmem:[#allocation63_spill] sm:$0xff]  ;;  %v659_v26 = vld [vmem:[%s9141_s29 + $0x125] sm:$0xff] }
 0x220   : > { %v1947_v5 = vsel %vm1931_vm5, %v1910_v43, %v1308_v17  ;;  %v1946_v1 = vsel %vm1931_vm5, %v1909_v45, %v1306_v42  ;;  %v1874_v44 = vsel %vm1857_vm3, %v1837_v10, %v13217_v27  ;;  %v13218_v17 = vld [vmem:[#allocation88_spill] sm:$0xff]  ;;  %v660_v54 = vld [vmem:[%s9141_s29 + $0x12d] sm:$0xff]  ;;  %v13220_v22 = vld [vmem:[#allocation13_spill] sm:$0xff] }
 0x221   : > { %1445 = vrot.lane.b32.xlu1 %v620_v23, %s9023_s25  ;;  %1443 = vrot.lane.b32.xlu0 %v619_v46, %s9023_s25  ;;  %v1912_v42 = vsel %vm1894_vm4, %v1875_v16, %v13218_v17  ;;  %v1911_v9 = vsel %vm1894_vm4, %v1874_v44, %v13219_v63  ;;  %v1803_v43 = vsel %vm1783_vm1, %v462_v61, %v13220_v22  ;;  %v13221_v59 = vld [vmem:[#allocation14_spill] sm:$0xff]  ;;  %v625_v10 = vld [vmem:[%s9141_s29 + $0x134] sm:$0xff]  ;;  %v463_v16 = vld [vmem:[%s9141_s29 + $0xa0] sm:$0xff] }
 0x222   : > { %v1802_v45 = vsel %vm1783_vm1, %v461_v56, %v13221_v59  ;;  %v464_v29 = vld [vmem:[%s9141_s29 + $0xa8] sm:$0xff]  ;;  %v662_v27 = vld [vmem:[%s9141_s29 + $0x13d] sm:$0xff]  ;;  %v661_v44 = vld [vmem:[%s9141_s29 + $0x135] sm:$0xff] }
 0x223   : > { %v1418_v34 = vpop.permute.xlu1 %1417  ;;  %v1416_v51 = vpop.permute.xlu0 %1415  ;;  %v13228_v17 = vld [vmem:[#allocation15_spill] sm:$0xff]  ;;  %v13229_v63 = vld [vmem:[#allocation16_spill] sm:$0xff]  ;;  %v13235_v61 = vld [vmem:[#allocation93_spill] sm:$0xff] }
 0x224   : > { %v1984_v28 = vsel %vm1968_vm6, %v1947_v5, %v1418_v34  ;;  %v1983_v49 = vsel %vm1968_vm6, %v1946_v1, %v1416_v51  ;;  %v13222_v5 = vld [vmem:[#allocation38_spill] sm:$0xff] }
 0x225   : > { %1589 = vrot.lane.b32.xlu1 %v656_v7, %s9024_s26  ;;  %1587 = vrot.lane.b32.xlu0 %v655_v55, %s9024_s26  ;;  %v1840_v1 = vsel %vm1820_vm2, %v1803_v43, %v13222_v5  ;;  %v358_v22 = vld [vmem:[%s13030_s1 + $0x8] sm:$0xff]  ;;  %v357_v43 = vld [vmem:[%s13030_s1] sm:$0xff] }
 0x227   : > { %v1562_v14 = vpop.permute.xlu1 %1561  ;;  %v1560_v24 = vpop.permute.xlu0 %1559 }
 0x228   : > { %v2021_v13 = vsel %vm2005_vm7, %v1984_v28, %v1562_v14  ;;  %v2020_v36 = vsel %vm2005_vm7, %v1983_v49, %v1560_v24  ;;  %v13223_v28 = vld [vmem:[#allocation39_spill] sm:$0xff] }
 0x229   : > { %1733 = vrot.lane.b32.xlu1 %v692_v2, %s9025_s27  ;;  %1731 = vrot.lane.b32.xlu0 %v691_v50, %s9025_s27  ;;  %v1839_v49 = vsel %vm1820_vm2, %v1802_v45, %v13223_v28 }
 0x22b   : > { %v1706_v39 = vpop.permute.xlu1 %1705  ;;  %v1704_v53 = vpop.permute.xlu0 %1703 }
 0x22c   : > { %v2057_v6 = vsel %vm393_vm8, %v2021_v13, %v1706_v39  ;;  %v2056_v60 = vsel %vm393_vm8, %v2020_v36, %v1704_v53  ;;  %v696_v13 = vld [vmem:[%s9141_s29 + $0x12e] sm:$0xff]  ;;  %v695_v36 = vld [vmem:[%s9141_s29 + $0x126] sm:$0xff]  ;;  %v13224_v39 = vld [vmem:[#allocation64_spill] sm:$0xff] }
 0x22d   : > { %1339 = vrot.lane.b32.xlu1 %v620_v23, %s9022_s20  ;;  %1337 = vrot.lane.b32.xlu0 %v619_v46, %s9022_s20  ;;  %v1877_v53 = vsel %vm1857_vm3, %v1840_v1, %v13224_v39 }
 0x22e   : > { %7514 = vmatprep.mubr.msk.f32.mxu0 %vm2078_vm9, %v2056_v60 }
 0x22f   : > { %7515 = vmatmul.mubr.msk.f32.gmra.mrb[14].mxu0 %vm2078_vm9, %v2057_v6  ;;  %v1312_v11 = vpop.permute.xlu1 %1311  ;;  %v1310_v20 = vpop.permute.xlu0 %1309  ;;  %v13225_v6 = vld [vmem:[#allocation65_spill] sm:$0xff] }
 0x230   : > { %v1949_v7 = vsel %vm1931_vm5, %v1912_v42, %v1312_v11  ;;  %v1948_v55 = vsel %vm1931_vm5, %v1911_v9, %v1310_v20  ;;  %v1876_v60 = vsel %vm1857_vm3, %v1839_v49, %v13225_v6  ;;  %v13226_v11 = vld [vmem:[#allocation90_spill] sm:$0xff]  ;;  %v1805_v42 = vsel %vm1783_vm1, %v464_v29, %v13228_v17  ;;  %v13241_v29 = vld [vmem:[#allocation69_spill] sm:$0xff]  ;;  %v13243_v17 = vld [vmem:[#allocation95_spill] sm:$0xff] }
 0x231   : > { %1449 = vrot.lane.b32.xlu1 %v622_v15, %s9023_s25  ;;  %1447 = vrot.lane.b32.xlu0 %v621_v12, %s9023_s25  ;;  %v1914_v20 = vsel %vm1894_vm4, %v1877_v53, %v13226_v11  ;;  %v1913_v57 = vsel %vm1894_vm4, %v1876_v60, %v13227_v4  ;;  %v1804_v9 = vsel %vm1783_vm1, %v463_v16, %v13229_v63  ;;  %v13040_v6 = vmov 0.0   ;;  %v466_v60 = vld [vmem:[%s9141_s29 + $0xb8] sm:$0xff]  ;;  %v362_v11 = vld [vmem:[%s13030_s1 + $0x28] sm:$0xff] }
 0x232   : > { %397 = vst.msk [vmem:[#allocation2 + $0x18] sm:$0xff] %vm393_vm8, %v13040_v6  ;;  %398 = vst.msk [vmem:[#allocation2 + $0x20] sm:$0xff] %vm393_vm8, %v13040_v6 }
 0x233   : > { %v1422_v31 = vpop.permute.xlu1 %1421  ;;  %v1420_v33 = vpop.permute.xlu0 %1419  ;;  %394 = vst.msk [vmem:[#allocation2] sm:$0xff] %vm393_vm8, %v13040_v6  ;;  %395 = vst.msk [vmem:[#allocation2 + $0x8] sm:$0xff] %vm393_vm8, %v13040_v6 }
 0x234   : > { %v1986_v34 = vsel %vm1968_vm6, %v1949_v7, %v1422_v31  ;;  %v1985_v51 = vsel %vm1968_vm6, %v1948_v55, %v1420_v33  ;;  %v13230_v7 = vld [vmem:[#allocation40_spill] sm:$0xff]  ;;  %396 = vst.msk [vmem:[#allocation2 + $0x10] sm:$0xff] %vm393_vm8, %v13040_v6  ;;  %399 = vst.msk [vmem:[#allocation2 + $0x28] sm:$0xff] %vm393_vm8, %v13040_v6 }
 0x235   : > { %1593 = vrot.lane.b32.xlu1 %v658_v25, %s9024_s26  ;;  %1591 = vrot.lane.b32.xlu0 %v657_v52, %s9024_s26  ;;  %v1842_v55 = vsel %vm1820_vm2, %v1805_v42, %v13230_v7  ;;  %400 = vst.msk [vmem:[#allocation2 + $0x30] sm:$0xff] %vm393_vm8, %v13040_v6  ;;  %401 = vst.msk [vmem:[#allocation2 + $0x38] sm:$0xff] %vm393_vm8, %v13040_v6  ;;  %v2842_v7 = vld [vmem:[%s13034_s5 + $0x110] sm:$0xff] }
 0x236   : > { %402 = vst.msk [vmem:[#allocation2 + $0x40] sm:$0xff] %vm393_vm8, %v13040_v6  ;;  %403 = vst.msk [vmem:[#allocation2 + $0x48] sm:$0xff] %vm393_vm8, %v13040_v6 }
 0x237   : > { %v1566_v23 = vpop.permute.xlu1 %1565  ;;  %v1564_v46 = vpop.permute.xlu0 %1563  ;;  %404 = vst.msk [vmem:[#allocation2 + $0x50] sm:$0xff] %vm393_vm8, %v13040_v6  ;;  %405 = vst.msk [vmem:[#allocation2 + $0x58] sm:$0xff] %vm393_vm8, %v13040_v6 }
 0x238   : > { %v2023_v37 = vsel %vm2005_vm7, %v1986_v34, %v1566_v23  ;;  %v2022_v19 = vsel %vm2005_vm7, %v1985_v51, %v1564_v46  ;;  %v13231_v34 = vld [vmem:[#allocation41_spill] sm:$0xff]  ;;  %406 = vst.msk [vmem:[#allocation2 + $0x60] sm:$0xff] %vm393_vm8, %v13040_v6  ;;  %407 = vst.msk [vmem:[#allocation2 + $0x68] sm:$0xff] %vm393_vm8, %v13040_v6 }
 0x239   : > { %1737 = vrot.lane.b32.xlu1 %v694_v62, %s9025_s27  ;;  %1735 = vrot.lane.b32.xlu0 %v693_v0, %s9025_s27  ;;  %v1841_v51 = vsel %vm1820_vm2, %v1804_v9, %v13231_v34  ;;  %408 = vst.msk [vmem:[#allocation2 + $0x70] sm:$0xff] %vm393_vm8, %v13040_v6  ;;  %409 = vst.msk [vmem:[#allocation2 + $0x78] sm:$0xff] %vm393_vm8, %v13040_v6 }
 0x23a   : > { %410 = vst.msk [vmem:[#allocation2 + $0x80] sm:$0xff] %vm393_vm8, %v13040_v6  ;;  %411 = vst.msk [vmem:[#allocation2 + $0x88] sm:$0xff] %vm393_vm8, %v13040_v6 }
 0x23b   : > { %v1710_v18 = vpop.permute.xlu1 %1709  ;;  %v1708_v8 = vpop.permute.xlu0 %1707  ;;  %412 = vst.msk [vmem:[#allocation2 + $0x90] sm:$0xff] %vm393_vm8, %v13040_v6  ;;  %413 = vst.msk [vmem:[#allocation2 + $0x98] sm:$0xff] %vm393_vm8, %v13040_v6 }
 0x23c   : > { %v2059_v41 = vsel %vm393_vm8, %v2023_v37, %v1710_v18  ;;  %v2058_v58 = vsel %vm393_vm8, %v2022_v19, %v1708_v8  ;;  %v698_v37 = vld [vmem:[%s9141_s29 + $0x13e] sm:$0xff]  ;;  %v697_v19 = vld [vmem:[%s9141_s29 + $0x136] sm:$0xff]  ;;  %v13232_v18 = vld [vmem:[#allocation66_spill] sm:$0xff]  ;;  %414 = vst.msk [vmem:[#allocation2 + $0xa0] sm:$0xff] %vm393_vm8, %v13040_v6 }
 0x23d   : > { %1343 = vrot.lane.b32.xlu1 %v622_v15, %s9022_s20  ;;  %1341 = vrot.lane.b32.xlu0 %v621_v12, %s9022_s20  ;;  %v1879_v8 = vsel %vm1857_vm3, %v1842_v55, %v13232_v18  ;;  %415 = vst.msk [vmem:[#allocation2 + $0xa8] sm:$0xff] %vm393_vm8, %v13040_v6  ;;  %416 = vst.msk [vmem:[#allocation2 + $0xb0] sm:$0xff] %vm393_vm8, %v13040_v6  ;;  %v2843_v55 = vld [vmem:[%s13034_s5 + $0x118] sm:$0xff] }
 0x23e   : > { %7517 = vmatprep.mubr.msk.f32.mxu0 %vm2078_vm9, %v2058_v58  ;;  %417 = vst.msk [vmem:[#allocation2 + $0xb8] sm:$0xff] %vm393_vm8, %v13040_v6  ;;  %418 = vst.msk [vmem:[#allocation2 + $0xc0] sm:$0xff] %vm393_vm8, %v13040_v6  ;;  %v10620_v18 = vpack.c.bf16 %v2843_v55, %v2842_v7  ;;  %v378_v7 = vld [vmem:[%s13030_s1 + $0xa8] sm:$0xff] }
 0x23f   : > { %7518 = vmatmul.mubr.msk.f32.gmra.mrb[16].mxu0 %vm2078_vm9, %v2059_v41  ;;  %v1316_v2 = vpop.permute.xlu1 %1315  ;;  %v1314_v50 = vpop.permute.xlu0 %1313  ;;  %v13233_v41 = vld [vmem:[#allocation67_spill] sm:$0xff]  ;;  %419 = vst.msk [vmem:[#allocation2 + $0xc8] sm:$0xff] %vm393_vm8, %v13040_v6  ;;  %420 = vst.msk [vmem:[#allocation2 + $0xd0] sm:$0xff] %vm393_vm8, %v13040_v6 }
 0x240   : > { %v1951_v25 = vsel %vm1931_vm5, %v1914_v20, %v1316_v2  ;;  %v1950_v52 = vsel %vm1931_vm5, %v1913_v57, %v1314_v50  ;;  %v1878_v58 = vsel %vm1857_vm3, %v1841_v51, %v13233_v41  ;;  %v13234_v2 = vld [vmem:[#allocation92_spill] sm:$0xff]  ;;  %421 = vst.msk [vmem:[#allocation2 + $0xd8] sm:$0xff] %vm393_vm8, %v13040_v6  ;;  %422 = vst.msk [vmem:[#allocation2 + $0xe0] sm:$0xff] %vm393_vm8, %v13040_v6  ;;  %v13236_v57 = vld [vmem:[#allocation17_spill] sm:$0xff] }
 0x241   : > { %1453 = vrot.lane.b32.xlu1 %v624_v30, %s9023_s25  ;;  %1451 = vrot.lane.b32.xlu0 %v623_v40, %s9023_s25  ;;  %v1916_v50 = vsel %vm1894_vm4, %v1879_v8, %v13234_v2  ;;  %v1915_v56 = vsel %vm1894_vm4, %v1878_v58, %v13235_v61  ;;  %423 = vst.msk [vmem:[#allocation2 + $0xe8] sm:$0xff] %vm393_vm8, %v13040_v6  ;;  %424 = vst.msk [vmem:[#allocation2 + $0xf0] sm:$0xff] %vm393_vm8, %v13040_v6  ;;  %v368_v61 = vld [vmem:[%s13030_s1 + $0x58] sm:$0xff] }
 0x242   : > { %425 = vst.msk [vmem:[#allocation2 + $0xf8] sm:$0xff] %vm393_vm8, %v13040_v6  ;;  %426 = vst.msk [vmem:[#allocation2 + $0x100] sm:$0xff] %vm393_vm8, %v13040_v6 }
 0x243   : > { %v1426_v14 = vpop.permute.xlu1 %1425  ;;  %v1424_v24 = vpop.permute.xlu0 %1423  ;;  %427 = vst.msk [vmem:[#allocation2 + $0x108] sm:$0xff] %vm393_vm8, %v13040_v6  ;;  %428 = vst.msk [vmem:[#allocation2 + $0x110] sm:$0xff] %vm393_vm8, %v13040_v6 }
 0x244   : > { %v1988_v31 = vsel %vm1968_vm6, %v1951_v25, %v1426_v14  ;;  %v1987_v33 = vsel %vm1968_vm6, %v1950_v52, %v1424_v24  ;;  %429 = vst.msk [vmem:[#allocation2 + $0x118] sm:$0xff] %vm393_vm8, %v13040_v6  ;;  %430 = vst.msk [vmem:[#allocation2 + $0x120] sm:$0xff] %vm393_vm8, %v13040_v6  ;;  %v1807_v25 = vsel %vm1783_vm1, %v466_v60, %v13236_v57  ;;  %v13237_v52 = vld [vmem:[#allocation18_spill] sm:$0xff]  ;;  %v372_v60 = vld [vmem:[%s13030_s1 + $0x78] sm:$0xff] }
 0x245   : > { %1597 = vrot.lane.b32.xlu1 %v660_v54, %s9024_s26  ;;  %1595 = vrot.lane.b32.xlu0 %v659_v26, %s9024_s26  ;;  %431 = vst.msk [vmem:[#allocation2 + $0x128] sm:$0xff] %vm393_vm8, %v13040_v6  ;;  %432 = vst.msk [vmem:[#allocation2 + $0x130] sm:$0xff] %vm393_vm8, %v13040_v6 }
 0x246   : > { %433 = vst.msk [vmem:[#allocation2 + $0x138] sm:$0xff] %vm393_vm8, %v13040_v6 }
 0x247   : > { %v1570_v15 = vpop.permute.xlu1 %1569  ;;  %v1568_v12 = vpop.permute.xlu0 %1567  ;;  %435 = vst.msk [vmem:[#allocation2 + $0x140] sm:$0x3f] %vm434_vm10, %v13040_v6 }
 0x248   : > { %v2025_v47 = vsel %vm2005_vm7, %v1988_v31, %v1570_v15  ;;  %v2024_v48 = vsel %vm2005_vm7, %v1987_v33, %v1568_v12  ;;  %v465_v15 = vld [vmem:[%s9141_s29 + $0xb0] sm:$0xff]  ;;  %v361_v12 = vld [vmem:[%s13030_s1 + $0x20] sm:$0xff] }
 0x249   : > { %1741 = vrot.lane.b32.xlu1 %v696_v13, %s9025_s27  ;;  %1739 = vrot.lane.b32.xlu0 %v695_v36, %s9025_s27  ;;  %v359_v13 = vld [vmem:[%s13030_s1 + $0x10] sm:$0xff]  ;;  %v360_v36 = vld [vmem:[%s13030_s1 + $0x18] sm:$0xff]  ;;  %v1806_v31 = vsel %vm1783_vm1, %v465_v15, %v13237_v52 }
 0x24a   : > { %v2840_v33 = vld [vmem:[%s13034_s5 + $0x100] sm:$0xff]  ;;  %v13248_v15 = vld [vmem:[#allocation70_spill] sm:$0xff] }
 0x24b   : > { %v1714_v3 = vpop.permute.xlu1 %1713  ;;  %v1712_v35 = vpop.permute.xlu0 %1711 }
 0x24c   : > { %v2061_v38 = vsel %vm393_vm8, %v2025_v47, %v1714_v3  ;;  %v2060_v32 = vsel %vm393_vm8, %v2024_v48, %v1712_v35  ;;  %v2841_v47 = vld [vmem:[%s13034_s5 + $0x108] sm:$0xff]  ;;  %v13239_v35 = vld [vmem:[#allocation43_spill] sm:$0xff] }
 0x24d   : > { %1347 = vrot.lane.b32.xlu1 %v624_v30, %s9022_s20  ;;  %1345 = vrot.lane.b32.xlu0 %v623_v40, %s9022_s20  ;;  %v13238_v48 = vld [vmem:[#allocation42_spill] sm:$0xff] }
 0x24e   : > { %7520 = vmatprep.mubr.msk.f32.mxu0 %vm2078_vm9, %v2060_v32  ;;  %v1844_v3 = vsel %vm1820_vm2, %v1807_v25, %v13238_v48  ;;  %v363_v32 = vld [vmem:[%s13030_s1 + $0x30] sm:$0xff]  ;;  %v13250_v25 = vld [vmem:[#allocation96_spill] sm:$0xff] }
 0x24f   : > { %7521 = vmatmul.mubr.msk.f32.gmra.mrb[18].mxu0 %vm2078_vm9, %v2061_v38  ;;  %v1320_v62 = vpop.permute.xlu1 %1319  ;;  %v1318_v0 = vpop.permute.xlu0 %1317  ;;  %v1843_v38 = vsel %vm1820_vm2, %v1806_v31, %v13239_v35  ;;  %v13251_v31 = vld [vmem:[#allocation97_spill] sm:$0xff] }
 0x250   : > { %v1953_v54 = vsel %vm1931_vm5, %v1916_v50, %v1320_v62  ;;  %v1952_v26 = vsel %vm1931_vm5, %v1915_v56, %v1318_v0  ;;  %v13240_v62 = vld [vmem:[#allocation68_spill] sm:$0xff]  ;;  %v1880_v16 = vsel %vm1857_vm3, %v1843_v38, %v13241_v29  ;;  %v367_v50 = vld [vmem:[%s13030_s1 + $0x50] sm:$0xff] }
 0x251   : > { %1457 = vrot.lane.b32.xlu1 %v626_v21, %s9023_s25  ;;  %1455 = vrot.lane.b32.xlu0 %v625_v10, %s9023_s25  ;;  %v364_v21 = vld [vmem:[%s13030_s1 + $0x38] sm:$0xff]  ;;  %v10590_v10 = vpack.c.bf16 %v2841_v47, %v2840_v33  ;;  %v1881_v0 = vsel %vm1857_vm3, %v1844_v3, %v13240_v62  ;;  %v1917_v42 = vsel %vm1894_vm4, %v1880_v16, %v13243_v17  ;;  %v373_v38 = vld [vmem:[%s13030_s1 + $0x80] sm:$0xff] }
 0x253   : > { %v1430_v23 = vpop.permute.xlu1 %1429  ;;  %v1428_v46 = vpop.permute.xlu0 %1427  ;;  %7739 = vmatprep.subr.bf16.mxu0 %v10590_v10 }
 0x254   : > { %v1990_v14 = vsel %vm1968_vm6, %v1953_v54, %v1430_v23  ;;  %v1989_v24 = vsel %vm1968_vm6, %v1952_v26, %v1428_v46  ;;  %v13242_v23 = vld [vmem:[#allocation94_spill] sm:$0xff]  ;;  %7741 = vmatpush3.bf16.msra.mxu0 %v10590_v10 }
 0x255   : > { %1601 = vrot.lane.b32.xlu1 %v662_v27, %s9024_s26  ;;  %1599 = vrot.lane.b32.xlu0 %v661_v44, %s9024_s26  ;;  %v1918_v46 = vsel %vm1894_vm4, %v1881_v0, %v13242_v23  ;;  %v468_v26 = vld [vmem:[%s9141_s29 + $0xc8] sm:$0xff]  ;;  %v376_v23 = vld [vmem:[%s13030_s1 + $0x98] sm:$0xff] }
 0x256   : > { %7743 = vmatprep.subr.bf16.mxu0 %v10620_v18 }
 0x257   : > { %v1574_v30 = vpop.permute.xlu1 %1573  ;;  %v1572_v40 = vpop.permute.xlu0 %1571 }
 0x258   : > { %v2027_v59 = vsel %vm2005_vm7, %v1990_v14, %v1574_v30  ;;  %v2026_v45 = vsel %vm2005_vm7, %v1989_v24, %v1572_v40  ;;  %7745 = vmatpush3.bf16.msra.mxu0 %v10620_v18  ;;  %v467_v14 = vld [vmem:[%s9141_s29 + $0xc0] sm:$0xff] }
 0x259   : > { %1745 = vrot.lane.b32.xlu1 %v698_v37, %s9025_s27  ;;  %1743 = vrot.lane.b32.xlu0 %v697_v19, %s9025_s27  ;;  %v365_v37 = vld [vmem:[%s13030_s1 + $0x40] sm:$0xff]  ;;  %v366_v19 = vld [vmem:[%s13030_s1 + $0x48] sm:$0xff] }
 0x25a   : > { %v369_v24 = vld [vmem:[%s13030_s1 + $0x60] sm:$0xff] }
 0x25b   : > { %v1718_v5 = vpop.permute.xlu1 %1717  ;;  %v1716_v1 = vpop.permute.xlu0 %1715 }
 0x25c   : > { %v2063_v28 = vsel %vm393_vm8, %v2027_v59, %v1718_v5  ;;  %v2062_v49 = vsel %vm393_vm8, %v2026_v45, %v1716_v1  ;;  %v13244_v45 = vld [vmem:[#allocation19_spill] sm:$0xff]  ;;  %v13245_v1 = vld [vmem:[#allocation20_spill] sm:$0xff] }
 0x25d   : > { %2563 = vperm.xlu1 %7867, %v358_v22   ;;  %2558 = vperm.xlu0 %7866, %v357_v43   ;;  %v370_v22 = vld [vmem:[%s13030_s1 + $0x68] sm:$0xff]  ;;  %v1809_v5 = vsel %vm1783_vm1, %v468_v26, %v13244_v45 }
 0x25e   : > { %7523 = vmatprep.mubr.msk.f32.mxu0 %vm2078_vm9, %v2062_v49  ;;  %v13246_v49 = vld [vmem:[#allocation44_spill] sm:$0xff] }
 0x25f   : > { %7524 = vmatmul.mubr.msk.f32.gmra.mrb[20].mxu0 %vm2078_vm9, %v2063_v28  ;;  %v10478_v39 = vpop.permute.xlu1 %1323  ;;  %v10480_v53 = vpop.permute.xlu0 %1321  ;;  %v1808_v28 = vsel %vm1783_vm1, %v467_v14, %v13245_v1  ;;  %v13258_v14 = vld [vmem:[#allocation98_spill] sm:$0xff] }
 0x260   : > { %v1955_v63 = vsel %vm1931_vm5, %v1918_v46, %v10478_v39  ;;  %v1954_v9 = vsel %vm1931_vm5, %v1917_v42, %v10480_v53  ;;  %v371_v53 = vld [vmem:[%s13030_s1 + $0x70] sm:$0xff]  ;;  %v470_v42 = vld [vmem:[%s9141_s29 + $0xd8] sm:$0xff] }
 0x261   : > { %2568 = vperm.xlu1 %7867, %v359_v13   ;;  %2573 = vperm.xlu0 %7866, %v360_v36   ;;  %v1846_v13 = vsel %vm1820_vm2, %v1809_v5, %v13246_v49  ;;  %v13247_v36 = vld [vmem:[#allocation45_spill] sm:$0xff] }
 0x262   : > { %v1845_v39 = vsel %vm1820_vm2, %v1808_v28, %v13247_v36 }
 0x263   : > { %v1434_v20 = vpop.permute.xlu1 %1433  ;;  %v1432_v4 = vpop.permute.xlu0 %1431 }
 0x264   : > { %v1992_v34 = vsel %vm1968_vm6, %v1955_v63, %v1434_v20  ;;  %v1991_v51 = vsel %vm1968_vm6, %v1954_v9, %v1432_v4  ;;  %v469_v63 = vld [vmem:[%s9141_s29 + $0xd0] sm:$0xff]  ;;  %v377_v9 = vld [vmem:[%s13030_s1 + $0xa0] sm:$0xff] }
 0x265   : > { %2578 = vperm.xlu1 %7867, %v361_v12   ;;  %2583 = vperm.xlu0 %7866, %v362_v11   ;;  %v1883_v12 = vsel %vm1857_vm3, %v1846_v13, %v13248_v15  ;;  %v13249_v11 = vld [vmem:[#allocation71_spill] sm:$0xff] }
 0x266   : > { %v1882_v20 = vsel %vm1857_vm3, %v1845_v39, %v13249_v11  ;;  %v1920_v52 = vsel %vm1894_vm4, %v1883_v12, %v13250_v25  ;;  %v472_v12 = vld [vmem:[%s9141_s29 + $0xe8] sm:$0xff]  ;;  %v471_v11 = vld [vmem:[%s9141_s29 + $0xe0] sm:$0xff] }
 0x267   : > { %v1578_v27 = vpop.permute.xlu1 %1577  ;;  %v1576_v44 = vpop.permute.xlu0 %1575  ;;  %v1919_v33 = vsel %vm1894_vm4, %v1882_v20, %v13251_v31 }
 0x268   : > { %v2029_v8 = vsel %vm2005_vm7, %v1992_v34, %v1578_v27  ;;  %v2028_v41 = vsel %vm2005_vm7, %v1991_v51, %v1576_v44  ;;  %v375_v44 = vld [vmem:[%s13030_s1 + $0x90] sm:$0xff]  ;;  %v13252_v51 = vld [vmem:[#allocation21_spill] sm:$0xff] }
 0x269   : > { %2588 = vperm.xlu1 %7867, %v363_v32   ;;  %2593 = vperm.xlu0 %7866, %v364_v21   ;;  %v374_v32 = vld [vmem:[%s13030_s1 + $0x88] sm:$0xff] }
 0x26b   : > { %v1722_v58 = vpop.permute.xlu1 %1721  ;;  %v1720_v30 = vpop.permute.xlu0 %1719 }
 0x26c   : > { %v2065_v40 = vsel %vm393_vm8, %v2029_v8, %v1722_v58  ;;  %v2064_v2 = vsel %vm393_vm8, %v2028_v41, %v1720_v30  ;;  %v13254_v41 = vld [vmem:[#allocation46_spill] sm:$0xff]  ;;  %v13255_v30 = vld [vmem:[#allocation47_spill] sm:$0xff] }
 0x26d   : > { %2598 = vperm.xlu1 %7867, %v365_v37   ;;  %2603 = vperm.xlu0 %7866, %v366_v19   ;;  %v1811_v37 = vsel %vm1783_vm1, %v470_v42, %v13252_v51  ;;  %v13253_v19 = vld [vmem:[#allocation22_spill] sm:$0xff] }
 0x26e   : > { %7526 = vmatprep.mubr.msk.f32.mxu0 %vm2078_vm9, %v2064_v2  ;;  %v1810_v8 = vsel %vm1783_vm1, %v469_v63, %v13253_v19  ;;  %v1848_v58 = vsel %vm1820_vm2, %v1811_v37, %v13254_v41  ;;  %v13256_v2 = vld [vmem:[#allocation72_spill] sm:$0xff]  ;;  %v473_v41 = vld [vmem:[%s9141_s29 + $0xf0] sm:$0xff] }
 0x26f   : > { %7527 = vmatmul.mubr.msk.f32.gmra.mrb[22].mxu0 %vm2078_vm9, %v2065_v40  ;;  %v1328_v56 = vpop.permute.xlu1 %1327  ;;  %v1326_v54 = vpop.permute.xlu0 %1325  ;;  %v1847_v40 = vsel %vm1820_vm2, %v1810_v8, %v13255_v30  ;;  %v474_v8 = vld [vmem:[%s9141_s29 + $0xf8] sm:$0xff] }
 0x270   : > { %v1957_v47 = vsel %vm1931_vm5, %v1920_v52, %v1328_v56  ;;  %v1956_v48 = vsel %vm1931_vm5, %v1919_v33, %v1326_v54  ;;  %v13261_v52 = vld [vmem:[#allocation24_spill] sm:$0xff] }
 0x271   : > { %2608 = vperm.xlu1 %7867, %v367_v50   ;;  %2613 = vperm.xlu0 %7866, %v368_v61   ;;  %v1885_v50 = vsel %vm1857_vm3, %v1848_v58, %v13256_v2  ;;  %v13257_v61 = vld [vmem:[#allocation73_spill] sm:$0xff]  ;;  %v1812_v31 = vsel %vm1783_vm1, %v471_v11, %v13261_v52  ;;  %v13262_v33 = vld [vmem:[#allocation48_spill] sm:$0xff] }
 0x272   : > { %v1884_v56 = vsel %vm1857_vm3, %v1847_v40, %v13257_v61  ;;  %v13268_v40 = vld [vmem:[#allocation25_spill] sm:$0xff] }
 0x273   : > { %v1438_v43 = vpop.permute.xlu1 %1437  ;;  %v1436_v59 = vpop.permute.xlu0 %1435  ;;  %v1815_v2 = vsel %vm1783_vm1, %v474_v8, %v13268_v40  ;;  %v13281_v40 = vld [vmem:[#allocation79_spill] sm:$0xff] }
 0x274   : > { %v1994_v3 = vsel %vm1968_vm6, %v1957_v47, %v1438_v43  ;;  %v1993_v35 = vsel %vm1968_vm6, %v1956_v48, %v1436_v59  ;;  %v13263_v48 = vld [vmem:[#allocation49_spill] sm:$0xff] }
 0x275   : > { %2618 = vperm.xlu1 %7867, %v369_v24   ;;  %2623 = vperm.xlu0 %7866, %v370_v22   ;;  %v1922_v24 = vsel %vm1894_vm4, %v1885_v50, %v13258_v14  ;;  %v13259_v22 = vld [vmem:[#allocation99_spill] sm:$0xff]  ;;  %v13269_v50 = vld [vmem:[#allocation26_spill] sm:$0xff] }
 0x276   : > { %v1921_v43 = vsel %vm1894_vm4, %v1884_v56, %v13259_v22  ;;  %v1814_v61 = vsel %vm1783_vm1, %v473_v41, %v13269_v50  ;;  %v13270_v56 = vld [vmem:[#allocation50_spill] sm:$0xff] }
 0x277   : > { %v1582_v4 = vpop.permute.xlu1 %1581  ;;  %v1580_v57 = vpop.permute.xlu0 %1579 }
 0x278   : > { %v2031_v21 = vsel %vm2005_vm7, %v1994_v3, %v1582_v4  ;;  %v2030_v62 = vsel %vm2005_vm7, %v1993_v35, %v1580_v57  ;;  %v13260_v57 = vld [vmem:[#allocation23_spill] sm:$0xff]  ;;  %v1849_v3 = vsel %vm1820_vm2, %v1812_v31, %v13263_v48  ;;  %v13264_v35 = vld [vmem:[#allocation74_spill] sm:$0xff] }
 0x279   : > { %2628 = vperm.xlu1 %7867, %v371_v53   ;;  %2633 = vperm.xlu0 %7866, %v372_v60   ;;  %v1813_v25 = vsel %vm1783_vm1, %v472_v12, %v13260_v57 }
 0x27a   : > { %v1850_v47 = vsel %vm1820_vm2, %v1813_v25, %v13262_v33  ;;  %v13041_v33 = vmov 0.0|0.0  }
 0x27b   : > { %v1726_v0 = vpop.permute.xlu1 %1725  ;;  %v1724_v29 = vpop.permute.xlu0 %1723  ;;  %7690 = vmatprep.subr.bf16.mxu1 %v13041_v33  ;;  %7746 = vmatprep.subr.bf16.mxu0 %v13041_v33 }
 0x27c   : > { %v2067_v16 = vsel %vm393_vm8, %v2031_v21, %v1726_v0  ;;  %v2066_v27 = vsel %vm393_vm8, %v2030_v62, %v1724_v29  ;;  %v13266_v29 = vld [vmem:[#allocation100_spill] sm:$0xff] }
 0x27d   : > { %2638 = vperm.xlu1 %7867, %v373_v38   ;;  %2643 = vperm.xlu0 %7866, %v374_v32   ;;  %v1887_v38 = vsel %vm1857_vm3, %v1850_v47, %v13264_v35  ;;  %v13265_v32 = vld [vmem:[#allocation75_spill] sm:$0xff] }
 0x27e   : > { %7529 = vmatprep.mubr.msk.f32.mxu0 %vm2078_vm9, %v2066_v27  ;;  %v1886_v21 = vsel %vm1857_vm3, %v1849_v3, %v13265_v32  ;;  %v13267_v27 = vld [vmem:[#allocation101_spill] sm:$0xff]  ;;  %v2810_v3 = vld [vmem:[%s13034_s5 + $0x10] sm:$0xff]  ;;  %v2811_v35 = vld [vmem:[%s13034_s5 + $0x18] sm:$0xff] }
 0x27f   : > { %7530 = vmatmul.mubr.msk.f32.gmra.mrb[24].mxu0 %vm2078_vm9, %v2067_v16  ;;  %v1332_v46 = vpop.permute.xlu1 %1331  ;;  %v1330_v17 = vpop.permute.xlu0 %1329  ;;  %v1924_v16 = vsel %vm1894_vm4, %v1887_v38, %v13266_v29  ;;  %v7694_v38 = vpack.c.bf16 %v2811_v35, %v2810_v3  ;;  %v2812_v32 = vld [vmem:[%s13034_s5 + $0x20] sm:$0xff]  ;;  %v477_v3 = vld [vmem:[%s9141_s29 + $0x110] sm:$0xff] }
 0x280   : > { %v1959_v59 = vsel %vm1931_vm5, %v1922_v24, %v1332_v46  ;;  %v1958_v45 = vsel %vm1931_vm5, %v1921_v43, %v1330_v17  ;;  %v13272_v24 = vld [vmem:[#allocation76_spill] sm:$0xff]  ;;  %v13273_v43 = vld [vmem:[#allocation77_spill] sm:$0xff] }
 0x281   : > { %2648 = vperm.xlu1 %7867, %v375_v44   ;;  %2653 = vperm.xlu0 %7866, %v376_v23   ;;  %v1923_v44 = vsel %vm1894_vm4, %v1886_v21, %v13267_v27  ;;  %v2813_v21 = vld [vmem:[%s13034_s5 + $0x28] sm:$0xff]  ;;  %v475_v27 = vld [vmem:[%s9141_s29 + $0x100] sm:$0xff] }
 0x282   : > { %v7697_v29 = vpack.c.bf16 %v2813_v21, %v2812_v32  ;;  %v13284_v21 = vld [vmem:[#allocation29_spill] sm:$0xff] }
 0x283   : > { %v1442_v55 = vpop.permute.xlu1 %1441  ;;  %v1440_v34 = vpop.permute.xlu0 %1439 }
 0x284   : > { %v1996_v5 = vsel %vm1968_vm6, %v1959_v59, %v1442_v55  ;;  %v1995_v1 = vsel %vm1968_vm6, %v1958_v45, %v1440_v34 }
 0x285   : > { %2658 = vperm.xlu1 %7867, %v377_v9   ;;  %2663 = vperm.xlu0 %7866, %v378_v7  }
 0x287   : > { %v1586_v54 = vpop.permute.xlu1 %1585  ;;  %v1584_v26 = vpop.permute.xlu0 %1583 }
 0x288   : > { %v2033_v28 = vsel %vm2005_vm7, %v1996_v5, %v1586_v54  ;;  %v2032_v49 = vsel %vm2005_vm7, %v1995_v1, %v1584_v26  ;;  %v1852_v54 = vsel %vm1820_vm2, %v1815_v2, %v13270_v56  ;;  %v13271_v26 = vld [vmem:[#allocation51_spill] sm:$0xff]  ;;  %v13274_v1 = vld [vmem:[#allocation102_spill] sm:$0xff]  ;;  %v13282_v56 = vld [vmem:[#allocation104_spill] sm:$0xff] }
 0x289   : > { %v1851_v14 = vsel %vm1820_vm2, %v1814_v61, %v13271_v26  ;;  %v1889_v22 = vsel %vm1857_vm3, %v1852_v54, %v13272_v24  ;;  %v13283_v26 = vld [vmem:[#allocation105_spill] sm:$0xff] }
 0x28a   : > { %v1888_v59 = vsel %vm1857_vm3, %v1851_v14, %v13273_v43  ;;  %v2816_v43 = vld [vmem:[%s13034_s5 + $0x40] sm:$0xff] }
 0x28b   : > { %v1730_v13 = vpop.permute.xlu1 %1729  ;;  %v1728_v36 = vpop.permute.xlu0 %1727 }
 0x28c   : > { %v2069_v39 = vsel %vm393_vm8, %v2033_v28, %v1730_v13  ;;  %v2068_v53 = vsel %vm393_vm8, %v2032_v49, %v1728_v36  ;;  %v1926_v28 = vsel %vm1894_vm4, %v1889_v22, %v13274_v1  ;;  %v13275_v49 = vld [vmem:[#allocation103_spill] sm:$0xff] }
 0x28d   : > { %7532 = vmatprep.mubr.msk.f32.mxu0 %vm2078_vm9, %v2068_v53  ;;  %v1925_v13 = vsel %vm1894_vm4, %v1888_v59, %v13275_v49  ;;  %v2817_v59 = vld [vmem:[%s13034_s5 + $0x48] sm:$0xff] }
 0x28e   : > { %7533 = vmatmul.mubr.msk.f32.gmra.mrb[26].mxu0 %vm2078_vm9, %v2069_v39  ;;  %v7703_v1 = vpack.c.bf16 %v2817_v59, %v2816_v43 }
 0x28f   : > { %v1336_v60 = vpop.permute.xlu1 %1335  ;;  %v1334_v15 = vpop.permute.xlu0 %1333 }
 0x290   : > { %v1961_v23 = vsel %vm1931_vm5, %v1924_v16, %v1336_v60  ;;  %v1960_v46 = vsel %vm1931_vm5, %v1923_v44, %v1334_v15  ;;  %v2808_v60 = vld [vmem:[%s13034_s5] sm:$0xff]  ;;  %v2809_v15 = vld [vmem:[%s13034_s5 + $0x8] sm:$0xff] }
 0x291   : > { %v476_v16 = vld [vmem:[%s9141_s29 + $0x108] sm:$0xff] }
 0x293   : > { %v1446_v20 = vpop.permute.xlu1 %1445  ;;  %v1444_v4 = vpop.permute.xlu0 %1443 }
 0x294   : > { %v1998_v17 = vsel %vm1968_vm6, %v1961_v23, %v1446_v20  ;;  %v1997_v42 = vsel %vm1968_vm6, %v1960_v46, %v1444_v4  ;;  %v7691_v4 = vpack.c.bf16 %v2809_v15, %v2808_v60  ;;  %v13276_v46 = vld [vmem:[#allocation27_spill] sm:$0xff] }
 0x295   : > { %v2818_v15 = vld [vmem:[%s13034_s5 + $0x50] sm:$0xff] }
 0x296   : > { %7692 = vmatpush1.bf16.msra.mxu1 %v7691_v4  ;;  %v2820_v4 = vld [vmem:[%s13034_s5 + $0x60] sm:$0xff] }
 0x297   : > { %v1590_v62 = vpop.permute.xlu1 %1589  ;;  %v1588_v0 = vpop.permute.xlu0 %1587  ;;  %7693 = vmatprep.subr.bf16.mxu1 %v13041_v33 }
 0x298   : > { %v2035_v63 = vsel %vm2005_vm7, %v1998_v17, %v1590_v62  ;;  %v2034_v9 = vsel %vm2005_vm7, %v1997_v42, %v1588_v0  ;;  %v1817_v17 = vsel %vm1783_vm1, %v476_v16, %v13276_v46  ;;  %v13277_v42 = vld [vmem:[#allocation28_spill] sm:$0xff]  ;;  %v2822_v16 = vld [vmem:[%s13034_s5 + $0x70] sm:$0xff] }
 0x299   : > { %v13287_v46 = vld [vmem:[#allocation55_spill] sm:$0xff] }
 0x29a   : > { %7695 = vmatpush1.bf16.msra.mxu1 %v7694_v38 }
 0x29b   : > { %v1734_v7 = vpop.permute.xlu1 %1733  ;;  %v1732_v55 = vpop.permute.xlu0 %1731  ;;  %7696 = vmatprep.subr.bf16.mxu1 %v13041_v33 }
 0x29c   : > { %v2071_v34 = vsel %vm393_vm8, %v2035_v63, %v1734_v7  ;;  %v2070_v51 = vsel %vm393_vm8, %v2034_v9, %v1732_v55  ;;  %v1816_v63 = vsel %vm1783_vm1, %v475_v27, %v13277_v42  ;;  %v2814_v7 = vld [vmem:[%s13034_s5 + $0x30] sm:$0xff]  ;;  %v2815_v55 = vld [vmem:[%s13034_s5 + $0x38] sm:$0xff] }
 0x29d   : > { %7535 = vmatprep.mubr.msk.f32.mxu0 %vm2078_vm9, %v2070_v51  ;;  %v7700_v41 = vpack.c.bf16 %v2815_v55, %v2814_v7  ;;  %v2823_v27 = vld [vmem:[%s13034_s5 + $0x78] sm:$0xff]  ;;  %v13289_v55 = vld [vmem:[#allocation81_spill] sm:$0xff] }
 0x29e   : > { %7536 = vmatmul.mubr.msk.f32.gmra.mrb[28].mxu0 %vm2078_vm9, %v2071_v34  ;;  %7698 = vmatpush1.bf16.msra.mxu1 %v7697_v29  ;;  %v13278_v34 = vld [vmem:[#allocation52_spill] sm:$0xff]  ;;  %v7712_v42 = vpack.c.bf16 %v2823_v27, %v2822_v16 }
 0x29f   : > { %v1340_v37 = vpop.permute.xlu1 %1339  ;;  %v1338_v19 = vpop.permute.xlu0 %1337  ;;  %7699 = vmatprep.subr.bf16.mxu1 %v13041_v33  ;;  %v1854_v51 = vsel %vm1820_vm2, %v1817_v17, %v13278_v34 }
 0x2a0   : > { %v1963_v36 = vsel %vm1931_vm5, %v1926_v28, %v1340_v37  ;;  %v1962_v39 = vsel %vm1931_vm5, %v1925_v13, %v1338_v19  ;;  %v13279_v37 = vld [vmem:[#allocation53_spill] sm:$0xff] }
 0x2a1   : > { %v1853_v19 = vsel %vm1820_vm2, %v1816_v63, %v13279_v37  ;;  %v13288_v63 = vld [vmem:[#allocation80_spill] sm:$0xff] }
 0x2a2   : > { %v1890_v2 = vsel %vm1857_vm3, %v1853_v19, %v13281_v40  ;;  %7701 = vmatpush1.bf16.msra.mxu1 %v7700_v41  ;;  %v13290_v19 = vld [vmem:[#allocation106_spill] sm:$0xff]  ;;  %v2824_v40 = vld [vmem:[%s13034_s5 + $0x80] sm:$0xff] }
 0x2a3   : > { %v1450_v58 = vpop.permute.xlu1 %1449  ;;  %v1448_v30 = vpop.permute.xlu0 %1447  ;;  %v1927_v14 = vsel %vm1894_vm4, %v1890_v2, %v13283_v26  ;;  %7702 = vmatprep.subr.bf16.mxu1 %v13041_v33  ;;  %v2825_v2 = vld [vmem:[%s13034_s5 + $0x88] sm:$0xff] }
 0x2a4   : > { %v2000_v12 = vsel %vm1968_vm6, %v1963_v36, %v1450_v58  ;;  %v1999_v11 = vsel %vm1968_vm6, %v1962_v39, %v1448_v30  ;;  %v13280_v58 = vld [vmem:[#allocation78_spill] sm:$0xff] }
 0x2a5   : > { %v1891_v30 = vsel %vm1857_vm3, %v1854_v51, %v13280_v58  ;;  %v13291_v58 = vld [vmem:[#allocation107_spill] sm:$0xff] }
 0x2a6   : > { %v1928_v54 = vsel %vm1894_vm4, %v1891_v30, %v13282_v56  ;;  %7704 = vmatpush1.bf16.msra.mxu1 %v7703_v1  ;;  %v7715_v56 = vpack.c.bf16 %v2825_v2, %v2824_v40 }
 0x2a7   : > { %v1594_v45 = vpop.permute.xlu1 %1593  ;;  %v1592_v5 = vpop.permute.xlu0 %1591  ;;  %7705 = vmatprep.subr.bf16.mxu1 %v13041_v33 }
 0x2a8   : > { %v2037_v57 = vsel %vm2005_vm7, %v2000_v12, %v1594_v45  ;;  %v2036_v25 = vsel %vm2005_vm7, %v1999_v11, %v1592_v5  ;;  %v2819_v12 = vld [vmem:[%s13034_s5 + $0x58] sm:$0xff] }
 0x2a9   : > { %v10770_v53 = vpop.f32.mrb[0].mxu0  ;;  %v7706_v11 = vpack.c.bf16 %v2819_v12, %v2818_v15 }
 0x2aa   : > { %v10780_v20 = vpop.f32.mrb[1].mxu0 }
 0x2ab   : > { %v1738_v52 = vpop.permute.xlu1 %1737  ;;  %v1736_v31 = vpop.permute.xlu0 %1735  ;;  %7707 = vmatpush1.bf16.msra.mxu1 %v7706_v11 }
 0x2ac   : > { %v2073_v47 = vsel %vm393_vm8, %v2037_v57, %v1738_v52  ;;  %v2072_v48 = vsel %vm393_vm8, %v2036_v25, %v1736_v31  ;;  %v2821_v57 = vld [vmem:[%s13034_s5 + $0x68] sm:$0xff]  ;;  %7708 = vmatprep.subr.bf16.mxu1 %v13041_v33 }
 0x2ad   : > { %7538 = vmatprep.mubr.msk.f32.mxu0 %vm2078_vm9, %v2072_v48  ;;  %v7709_v31 = vpack.c.bf16 %v2821_v57, %v2820_v4  ;;  %v478_v48 = vld [vmem:[%s9141_s29 + $0x118] sm:$0xff]  ;;  %v10936_v4 = vld [vmem:[%s13033_s4] ss:$0 sm:$0xff]  ;;  %v2830_v57 = vld [vmem:[%s13034_s5 + $0xb0] sm:$0xff]  ;;  %s12987_s29 = scalar_lea.hbm %s13039_s10, %s7354_s18 }
 0x2ae   : > { %7539 = vmatmul.mubr.msk.f32.gmra.mrb[30].mxu0 %vm2078_vm9, %v2073_v47 }
 0x2af   : > { %v1344_v62 = vpop.permute.xlu1 %1343  ;;  %v1342_v0 = vpop.permute.xlu0 %1341  ;;  %7710 = vmatpush1.bf16.msra.mxu1 %v7709_v31 }
 0x2b0   : > { %v1965_v24 = vsel %vm1931_vm5, %v1928_v54, %v1344_v62  ;;  %v1964_v22 = vsel %vm1931_vm5, %v1927_v14, %v1342_v0  ;;  %v1819_v62 = vsel %vm1783_vm1, %v478_v48, %v13284_v21  ;;  %v13285_v0 = vld [vmem:[#allocation30_spill] sm:$0xff]  ;;  %7711 = vmatprep.subr.bf16.mxu1 %v13041_v33 }
 0x2b1   : > { %v1818_v29 = vsel %vm1783_vm1, %v477_v3, %v13285_v0  ;;  %v2826_v14 = vld [vmem:[%s13034_s5 + $0x90] sm:$0xff]  ;;  %v2832_v3 = vld [vmem:[%s13034_s5 + $0xc0] sm:$0xff] }
 0x2b2   : > { %v1855_v17 = vsel %vm1820_vm2, %v1818_v29, %v13287_v46  ;;  %v2834_v46 = vld [vmem:[%s13034_s5 + $0xd0] sm:$0xff] }
 0x2b3   : > { %v1454_v44 = vpop.permute.xlu1 %1453  ;;  %v1452_v23 = vpop.permute.xlu0 %1451  ;;  %v1892_v34 = vsel %vm1857_vm3, %v1855_v17, %v13289_v55  ;;  %7713 = vmatpush1.bf16.msra.mxu1 %v7712_v42  ;;  %v2835_v17 = vld [vmem:[%s13034_s5 + $0xd8] sm:$0xff] }
 0x2b4   : > { %v2002_v45 = vsel %vm1968_vm6, %v1965_v24, %v1454_v44  ;;  %v2001_v5 = vsel %vm1968_vm6, %v1964_v22, %v1452_v23  ;;  %v13286_v44 = vld [vmem:[#allocation54_spill] sm:$0xff]  ;;  %v1929_v30 = vsel %vm1894_vm4, %v1892_v34, %v13291_v58  ;;  %7714 = vmatprep.subr.bf16.mxu1 %v13041_v33  ;;  %v2827_v24 = vld [vmem:[%s13034_s5 + $0x98] sm:$0xff]  ;;  %v2836_v58 = vld [vmem:[%s13034_s5 + $0xe0] sm:$0xff] }
 0x2b5   : > { %v10810_v9 = vpop.f32.mrb[2].mxu0  ;;  %v1856_v23 = vsel %vm1820_vm2, %v1819_v62, %v13286_v44 }
 0x2b6   : > { %v10823_v8 = vpop.f32.mrb[3].mxu0  ;;  %v1893_v7 = vsel %vm1857_vm3, %v1856_v23, %v13288_v63 }
 0x2b7   : > { %v1598_v50 = vpop.permute.xlu1 %1597  ;;  %v1596_v61 = vpop.permute.xlu0 %1595  ;;  %v1930_v41 = vsel %vm1894_vm4, %v1893_v7, %v13290_v19  ;;  %7716 = vmatpush1.bf16.msra.mxu1 %v7715_v56 }
 0x2b8   : > { %v2039_v28 = vsel %vm2005_vm7, %v2002_v45, %v1598_v50  ;;  %v2038_v49 = vsel %vm2005_vm7, %v2001_v5, %v1596_v61  ;;  %7717 = vmatprep.subr.bf16.mxu1 %v13041_v33 }
 0x2bb   : > { %v1742_v13 = vpop.permute.xlu1 %1741  ;;  %v1740_v36 = vpop.permute.xlu0 %1739 }
 0x2bc   : > { %v2075_v39 = vsel %vm393_vm8, %v2039_v28, %v1742_v13  ;;  %v2074_v60 = vsel %vm393_vm8, %v2038_v49, %v1740_v36  ;;  %v7718_v28 = vpack.c.bf16 %v2827_v24, %v2826_v14  ;;  %v2828_v36 = vld [vmem:[%s13034_s5 + $0xa0] sm:$0xff] }
 0x2bd   : > { %7541 = vmatprep.mubr.msk.f32.mxu0 %vm2078_vm9, %v2074_v60  ;;  %v10926_v60 = vld [vmem:[%s13032_s3] ss:$0 sm:$0xff] }
 0x2be   : > { %7542 = vmatmul.mubr.msk.f32.gmra.mrb[32].mxu0 %vm2078_vm9, %v2075_v39  ;;  %v2829_v39 = vld [vmem:[%s13034_s5 + $0xa8] sm:$0xff]  ;;  %7719 = vmatpush1.bf16.msra.mxu1 %v7718_v28  ;;  %v2443_v12 = vmul.f32 %v10770_v53, %v10926_v60  ;;  %v2442_v11 = vmul.f32 %v10926_v60, %v10780_v20  ;;  %v2445_v31 = vmul.f32 %v10810_v9, %v10926_v60 }
 0x2bf   : > { %v1348_v25 = vpop.permute.xlu1 %1347  ;;  %v1346_v52 = vpop.permute.xlu0 %1345  ;;  %v7721_v15 = vpack.c.bf16 %v2829_v39, %v2828_v36  ;;  %7720 = vmatprep.subr.bf16.mxu1 %v13041_v33  ;;  %v2444_v48 = vmul.f32 %v10926_v60, %v10823_v8 }
 0x2c0   : > { %v1967_v50 = vsel %vm1931_vm5, %v1930_v41, %v1348_v25  ;;  %v1966_v61 = vsel %vm1931_vm5, %v1929_v30, %v1346_v52  ;;  %v2831_v25 = vld [vmem:[%s13034_s5 + $0xb8] sm:$0xff]  ;;  %v2485_v53 = vadd.f32 %v10936_v4, %v2443_v12  ;;  %v2484_v20 = vadd.f32 %v10936_v4, %v2442_v11  ;;  %v2837_v30 = vld [vmem:[%s13034_s5 + $0xe8] sm:$0xff] }
 0x2c1   : > { %v10863_v47 = vpop.f32.mrb[4].mxu0  ;;  %v7724_v52 = vpack.c.bf16 %v2831_v25, %v2830_v57  ;;  %v2487_v9 = vadd.f32 %v10936_v4, %v2445_v31  ;;  %v2486_v8 = vadd.f32 %v10936_v4, %v2444_v48  ;;  %v2838_v25 = vld [vmem:[%s13034_s5 + $0xf0] sm:$0xff]  ;;  %v2839_v31 = vld [vmem:[%s13034_s5 + $0xf8] sm:$0xff] }
 0x2c2   : > { %v10868_v35 = vpop.f32.mrb[5].mxu0  ;;  %7722 = vmatpush1.bf16.msra.mxu1 %v7721_v15  ;;  %v2521_v62 = vmax.f32 %v2485_v53, 0.0  ;;  %v2520_v0 = vmax.f32 %v2484_v20, 0.0  ;;  %v2447_v16 = vmul.f32 %v10863_v47, %v10926_v60 }
 0x2c3   : > { %v1458_v38 = vpop.permute.xlu1 %1457  ;;  %v1456_v32 = vpop.permute.xlu0 %1455  ;;  %7723 = vmatprep.subr.bf16.mxu1 %v13041_v33  ;;  %v2446_v27 = vmul.f32 %v10926_v60, %v10868_v35  ;;  %v7730_v35 = vpack.c.bf16 %v2835_v17, %v2834_v46  ;;  %v2523_v55 = vmax.f32 %v2487_v9, 0.0  ;;  %v2522_v34 = vmax.f32 %v2486_v8, 0.0 }
 0x2c4   : > { %v2004_v54 = vsel %vm1968_vm6, %v1967_v50, %v1458_v38  ;;  %v2003_v26 = vsel %vm1968_vm6, %v1966_v61, %v1456_v32  ;;  %v2833_v38 = vld [vmem:[%s13034_s5 + $0xc8] sm:$0xff]  ;;  %v7733_v50 = vpack.c.bf16 %v2837_v30, %v2836_v58 }
 0x2c5   : > { %v7727_v21 = vpack.c.bf16 %v2833_v38, %v2832_v3  ;;  %v7736_v38 = vpack.c.bf16 %v2839_v31, %v2838_v25 }
 0x2c6   : > { %7725 = vmatpush1.bf16.msra.mxu1 %v7724_v52  ;;  %v2918_v52 = vld [vmem:[#allocation2 + $0x2] sm:$0xff] }
 0x2c7   : > { %v1602_v51 = vpop.permute.xlu1 %1601  ;;  %v1600_v37 = vpop.permute.xlu0 %1599  ;;  %7726 = vmatprep.subr.bf16.mxu1 %v13041_v33 }
 0x2c8   : > { %v2041_v22 = vsel %vm2005_vm7, %v2004_v54, %v1602_v51  ;;  %v2040_v43 = vsel %vm2005_vm7, %v2003_v26, %v1600_v37  ;;  %v2489_v51 = vadd.f32 %v10936_v4, %v2447_v16  ;;  %v2488_v37 = vadd.f32 %v10936_v4, %v2446_v27 }
 0x2ca   : > { %7728 = vmatpush1.bf16.msra.mxu1 %v7727_v21  ;;  %v2525_v26 = vmax.f32 %v2489_v51, 0.0  ;;  %v2524_v14 = vmax.f32 %v2488_v37, 0.0 }
 0x2cb   : > { %v1746_v59 = vpop.permute.xlu1 %1745  ;;  %v1744_v45 = vpop.permute.xlu0 %1743  ;;  %7729 = vmatprep.subr.bf16.mxu1 %v13041_v33 }
 0x2cc   : > { %v2077_v5 = vsel %vm393_vm8, %v2041_v22, %v1746_v59  ;;  %v2076_v1 = vsel %vm393_vm8, %v2040_v43, %v1744_v45  ;;  %v2882_v59 = vld [vmem:[#allocation2 + $0x1] sm:$0xff] }
 0x2cd   : > { %v7504_v49 = vpop.f32.mrb[6].mxu0  ;;  %7544 = vmatprep.mubr.msk.f32.mxu0 %vm2078_vm9, %v2076_v1 }
 0x2ce   : > { %v2287_v13 = vpop.f32.mrb[7].mxu0  ;;  %7545 = vmatmul.mubr.msk.f32.gmra.mrb[34].mxu0 %vm2078_vm9, %v2077_v5  ;;  %v2449_v63 = vmul.f32 %v7504_v49, %v10926_v60  ;;  %7731 = vmatpush1.bf16.msra.mxu1 %v7730_v35 }
 0x2cf   : > { %v2448_v7 = vmul.f32 %v10926_v60, %v2287_v13  ;;  %7732 = vmatprep.subr.bf16.mxu1 %v13041_v33 }
 0x2d0   : > { %v2491_v61 = vadd.f32 %v10936_v4, %v2449_v63 }
 0x2d1   : > { %v2490_v56 = vadd.f32 %v10936_v4, %v2448_v7 }
 0x2d2   : > { %7734 = vmatpush1.bf16.msra.mxu1 %v7733_v50  ;;  %v2527_v28 = vmax.f32 %v2491_v61, 0.0  ;;  %v2919_v50 = vld [vmem:[#allocation2 + $0xa] sm:$0xff] }
 0x2d3   : > { %7735 = vmatprep.subr.bf16.mxu1 %v13041_v33  ;;  %v2526_v49 = vmax.f32 %v2490_v56, 0.0 }
 0x2d6   : > { %7737 = vmatpush1.bf16.msra.mxu1 %v7736_v38 }
 0x2d7   : > { %7808 = vmatprep.subr.bf16.mxu1 %v10590_v10 }
 0x2d9   : > { %v7507_v32 = vpop.f32.mrb[8].mxu0 }
 0x2da   : > { %v2297_v29 = vpop.f32.mrb[9].mxu0  ;;  %v2451_v54 = vmul.f32 %v7507_v32, %v10926_v60 }
 0x2db   : > { %v2450_v24 = vmul.f32 %v10926_v60, %v2297_v29 }
 0x2dc   : > { %v10964_v44 = vpop.permute.xlu1 %2563  ;;  %v10966_v23 = vpop.permute.xlu0 %2558  ;;  %v2493_v13 = vadd.f32 %v10936_v4, %v2451_v54 }
 0x2dd   : > { %13292 = vst [vmem:[#allocation57_spill] sm:$0xff] %v10966_v23  ;;  %v2737_v42 = vmul.f32 %v10964_v44, %v2521_v62  ;;  %v2736_v47 = vmul.f32 %v10966_v23, %v2520_v0  ;;  %v2492_v15 = vadd.f32 %v10936_v4, %v2450_v24  ;;  %v379_v62 = vld [vmem:[%s13030_s1 + $0xb0] sm:$0xff] }
 0x2de   : > { %v2529_v32 = vmax.f32 %v2493_v13, 0.0 }
 0x2df   : > { %2773 = vst.msk [vmem:[#allocation2 + $0x1b] sm:$0xff] %vm393_vm8, %v2737_v42  ;;  %2772 = vst.msk [vmem:[#allocation2 + $0x13] sm:$0xff] %vm393_vm8, %v2736_v47  ;;  %v2528_v29 = vmax.f32 %v2492_v15, 0.0  ;;  %v2883_v42 = vld [vmem:[#allocation2 + $0x9] sm:$0xff] }
 0x2e0   : > { %v10983_v19 = vpop.permute.xlu1 %2568  ;;  %v10985_v41 = vpop.permute.xlu0 %2573 }
 0x2e1   : > { %v2738_v40 = vmul.f32 %v10983_v19, %v2522_v34  ;;  %v2739_v2 = vmul.f32 %v10985_v41, %v2523_v55 }
 0x2e3   : > { %2774 = vst.msk [vmem:[#allocation2 + $0x23] sm:$0xff] %vm393_vm8, %v2738_v40  ;;  %2775 = vst.msk [vmem:[#allocation2 + $0x2b] sm:$0xff] %vm393_vm8, %v2739_v2 }
 0x2e4   : > { %v11002_v22 = vpop.permute.xlu1 %2578  ;;  %v11004_v43 = vpop.permute.xlu0 %2583 }
 0x2e5   : > { %v2740_v45 = vmul.f32 %v11002_v22, %v2524_v14  ;;  %v2741_v5 = vmul.f32 %v11004_v43, %v2525_v26  ;;  %v7510_v1 = vpop.f32.mrb[10].mxu0 }
 0x2e6   : > { %v2307_v36 = vpop.f32.mrb[11].mxu0  ;;  %v2992_v39 = vld [vmem:[#allocation2 + $0x14] sm:$0xff]  ;;  %v2453_v12 = vmul.f32 %v7510_v1, %v10926_v60 }
 0x2e7   : > { %2776 = vst.msk [vmem:[#allocation2 + $0x33] sm:$0xff] %vm393_vm8, %v2740_v45  ;;  %2777 = vst.msk [vmem:[#allocation2 + $0x3b] sm:$0xff] %vm393_vm8, %v2741_v5  ;;  %v2452_v11 = vmul.f32 %v10926_v60, %v2307_v36  ;;  %v7868_v57 = vpack.i.bf16 %v2882_v59, %v2992_v39  ;;  %v2920_v34 = vld [vmem:[#allocation2 + $0x12] sm:$0xff] }
 0x2e8   : > { %v11018_v53 = vpop.permute.xlu1 %2588  ;;  %v11020_v20 = vpop.permute.xlu0 %2593  ;;  %v2495_v9 = vadd.f32 %v10936_v4, %v2453_v12  ;;  %v380_v59 = vld [vmem:[%s13030_s1 + $0xb8] sm:$0xff] }
 0x2e9   : > { %v2742_v48 = vmul.f32 %v11018_v53, %v2526_v49  ;;  %v2743_v3 = vmul.f32 %v11020_v20, %v2527_v28  ;;  %7869 = vrot.lane.b32.xlu1 %v7868_v57, %s9025_s27  ;;  %v2494_v8 = vadd.f32 %v10936_v4, %v2452_v11  ;;  %v2884_v36 = vld [vmem:[#allocation2 + $0x11] sm:$0xff]  ;;  %v2921_v11 = vld [vmem:[#allocation2 + $0x1a] sm:$0xff] }
 0x2ea   : > { %v3066_v21 = vld [vmem:[#allocation2 + $0x26] sm:$0xff]  ;;  %v2993_v47 = vld [vmem:[#allocation2 + $0x1c] sm:$0xff]  ;;  %v2531_v51 = vmax.f32 %v2495_v9, 0.0 }
 0x2eb   : > { %v11031_v0 = vld [vmem:[#allocation2 + $0x24] sm:$0xff]  ;;  %2778 = vst.msk [vmem:[#allocation2 + $0x43] sm:$0xff] %vm393_vm8, %v2742_v48  ;;  %2779 = vst.msk [vmem:[#allocation2 + $0x4b] sm:$0xff] %vm393_vm8, %v2743_v3  ;;  %7555 = vmatprep.mubr.msk.f32.mxu0 %vm393_vm8, %v3066_v21  ;;  %v2530_v37 = vmax.f32 %v2494_v8, 0.0  ;;  %v7883_v30 = vpack.i.bf16 %v2883_v42, %v2993_v47 }
 0x2ec   : > { %v7873_v16 = vpack.i.bf16 %v2918_v52, %v11031_v0  ;;  %v11039_v27 = vpop.permute.xlu1 %2598  ;;  %v11041_v46 = vpop.permute.xlu0 %2603  ;;  %v3030_v17 = vld [vmem:[#allocation2 + $0x25] sm:$0xff]  ;;  %v7898_v25 = vpack.i.bf16 %v2884_v36, %v11031_v0  ;;  %v383_v36 = vld [vmem:[%s13030_s1 + $0xd0] sm:$0xff] }
 0x2ed   : > { %v2744_v35 = vmul.f32 %v11039_v27, %v2528_v29  ;;  %v2745_v63 = vmul.f32 %v11041_v46, %v2529_v32  ;;  %2668 = vperm.xlu1 %7867, %v379_v62   ;;  %v7878_v58 = vpack.i.bf16 %v2920_v34, %v3030_v17  ;;  %v381_v0 = vld [vmem:[%s13030_s1 + $0xc0] sm:$0xff] }
 0x2ee   : > { %7874 = vrot.lane.b32.xlu0 %v7873_v16, %s9029_s28  ;;  %v3067_v7 = vld [vmem:[#allocation2 + $0x2e] sm:$0xff]  ;;  %v3068_v55 = vld [vmem:[#allocation2 + $0x36] sm:$0xff]  ;;  %v2922_v17 = vld [vmem:[#allocation2 + $0x22] sm:$0xff] }
 0x2ef   : > { %2780 = vst.msk [vmem:[#allocation2 + $0x53] sm:$0xff] %vm393_vm8, %v2744_v35  ;;  %2781 = vst.msk [vmem:[#allocation2 + $0x5b] sm:$0xff] %vm393_vm8, %v2745_v63  ;;  %7556 = vmatmul.mubr.msk.f32.vlgmr.msra.gmra.mrb[36].mxu0 %vm393_vm8, %v3067_v7  ;;  %v2995_v61 = vld [vmem:[#allocation2 + $0x2c] sm:$0xff]  ;;  %v2996_v3 = vld [vmem:[#allocation2 + $0x34] sm:$0xff] }
 0x2f0   : > { %v11050_v40 = vpop.permute.xlu1 %2608  ;;  %v11052_v2 = vpop.permute.xlu0 %2613  ;;  %7558 = vmatprep.mubr.msk.f32.mxu0 %vm393_vm8, %v3068_v55  ;;  %v7888_v1 = vpack.i.bf16 %v2919_v50, %v2995_v61  ;;  %v3031_v49 = vld [vmem:[#allocation2 + $0x2d] sm:$0xff]  ;;  %v7903_v9 = vpack.i.bf16 %v2920_v34, %v2996_v3  ;;  %v3032_v8 = vld [vmem:[#allocation2 + $0x35] sm:$0xff] }
 0x2f1   : > { %v2746_v56 = vmul.f32 %v11050_v40, %v2530_v37  ;;  %v2747_v54 = vmul.f32 %v11052_v2, %v2531_v51  ;;  %7884 = vrot.lane.b32.xlu1 %v7883_v30, %s9025_s27  ;;  %v7893_v52 = vpack.i.bf16 %v2921_v11, %v3031_v49  ;;  %v2885_v16 = vld [vmem:[#allocation2 + $0x19] sm:$0xff]  ;;  %v7908_v47 = vpack.i.bf16 %v2922_v17, %v3032_v8  ;;  %v382_v7 = vld [vmem:[%s13030_s1 + $0xc8] sm:$0xff] }
 0x2f2   : > { %7879 = vrot.lane.b32.xlu0 %v7878_v58, %s9030_s30  ;;  %v7513_v26 = vpop.f32.mrb[12].mxu0  ;;  %v3069_v14 = vld [vmem:[#allocation2 + $0x3e] sm:$0xff]  ;;  %v3070_v24 = vld [vmem:[#allocation2 + $0x46] sm:$0xff]  ;;  %v7913_v42 = vpack.i.bf16 %v2885_v16, %v2995_v61 }
 0x2f3   : > { %2782 = vst.msk [vmem:[#allocation2 + $0x63] sm:$0xff] %vm393_vm8, %v2746_v56  ;;  %2783 = vst.msk [vmem:[#allocation2 + $0x6b] sm:$0xff] %vm393_vm8, %v2747_v54  ;;  %v2455_v45 = vmul.f32 %v7513_v26, %v10926_v60  ;;  %v2317_v5 = vpop.f32.mrb[13].mxu0  ;;  %7559 = vmatmul.mubr.msk.f32.gmra.mrb[38].mxu0 %vm393_vm8, %v3069_v14  ;;  %v2997_v35 = vld [vmem:[#allocation2 + $0x3c] sm:$0xff]  ;;  %v2998_v49 = vld [vmem:[#allocation2 + $0x44] sm:$0xff] }
 0x2f4   : > { %v2454_v28 = vmul.f32 %v10926_v60, %v2317_v5  ;;  %7561 = vmatprep.mubr.msk.f32.mxu0 %vm393_vm8, %v3070_v24  ;;  %v11073_v48 = vpop.permute.xlu0 %2623  ;;  %v11076_v38 = vpop.permute.xlu1 %2618  ;;  %v7918_v30 = vpack.i.bf16 %v2921_v11, %v2997_v35  ;;  %v3033_v61 = vld [vmem:[#allocation2 + $0x3d] sm:$0xff]  ;;  %v2923_v24 = vld [vmem:[#allocation2 + $0x2a] sm:$0xff] }
 0x2f5   : > { %v2497_v13 = vadd.f32 %v10936_v4, %v2455_v45  ;;  %2673 = vperm.xlu1 %7867, %v380_v59   ;;  %v2886_v54 = vld [vmem:[#allocation2 + $0x21] sm:$0xff]  ;;  %v7923_v5 = vpack.i.bf16 %v2923_v24, %v3033_v61 }
 0x2f6   : > { %7889 = vrot.lane.b32.xlu0 %v7888_v1, %s9029_s28  ;;  %v2496_v39 = vadd.f32 %v10936_v4, %v2454_v28  ;;  %v3071_v15 = vld [vmem:[#allocation2 + $0x4e] sm:$0xff]  ;;  %v3072_v12 = vld [vmem:[#allocation2 + $0x56] sm:$0xff]  ;;  %v7928_v14 = vpack.i.bf16 %v2886_v54, %v2996_v3 }
 0x2f7   : > { %v2533_v57 = vmax.f32 %v2497_v13, 0.0  ;;  %7562 = vmatmul.mubr.msk.f32.gmra.mrb[40].mxu0 %vm393_vm8, %v3071_v15  ;;  %v3034_v15 = vld [vmem:[#allocation2 + $0x45] sm:$0xff]  ;;  %v384_v3 = vld [vmem:[%s13030_s1 + $0xd8] sm:$0xff]  ;;  %v3035_v16 = vld [vmem:[#allocation2 + $0x4d] sm:$0xff] }
 0x2f8   : > { %v2532_v31 = vmax.f32 %v2496_v39, 0.0  ;;  %7564 = vmatprep.mubr.msk.f32.mxu0 %vm393_vm8, %v3072_v12  ;;  %v11102_v59 = vpop.permute.xlu0 %2633  ;;  %v11104_v1 = vpop.permute.xlu1 %2628  ;;  %v7933_v39 = vpack.i.bf16 %v2922_v17, %v2998_v49  ;;  %v2887_v12 = vld [vmem:[#allocation2 + $0x29] sm:$0xff]  ;;  %v2889_v54 = vld [vmem:[#allocation2 + $0x39] sm:$0xff] }
 0x2f9   : > { %v2749_v32 = vmul.f32 %v11073_v48, %v2533_v57  ;;  %7899 = vrot.lane.b32.xlu1 %v7898_v25, %s9025_s27  ;;  %v7943_v11 = vpack.i.bf16 %v2887_v12, %v2997_v35  ;;  %v2924_v57 = vld [vmem:[#allocation2 + $0x32] sm:$0xff] }
 0x2fa   : > { %7894 = vrot.lane.b32.xlu0 %v7893_v52, %s9030_s30  ;;  %v2748_v21 = vmul.f32 %v11076_v38, %v2532_v31  ;;  %v3073_v62 = vld [vmem:[#allocation2 + $0x5e] sm:$0xff]  ;;  %v3074_v29 = vld [vmem:[#allocation2 + $0x66] sm:$0xff]  ;;  %v7938_v25 = vpack.i.bf16 %v2924_v57, %v3034_v15 }
 0x2fb   : > { %2785 = vst.msk [vmem:[#allocation2 + $0x7b] sm:$0xff] %vm393_vm8, %v2749_v32  ;;  %7565 = vmatmul.mubr.msk.f32.gmra.mrb[42].mxu0 %vm393_vm8, %v3073_v62  ;;  %v2999_v52 = vld [vmem:[#allocation2 + $0x4c] sm:$0xff] }
 0x2fc   : > { %2784 = vst.msk [vmem:[#allocation2 + $0x73] sm:$0xff] %vm393_vm8, %v2748_v21  ;;  %7567 = vmatprep.mubr.msk.f32.mxu0 %vm393_vm8, %v3074_v29 }
 0x2fd   : > { %2678 = vperm.xlu1 %7867, %v381_v0  }
 0x2fe   : > { %7904 = vrot.lane.b32.xlu0 %v7903_v9, %s9029_s28  ;;  %v7948_v9 = vpack.i.bf16 %v2923_v24, %v2999_v52 }
 0x301   : > { %7914 = vrot.lane.b32.xlu1 %v7913_v42, %s9025_s27  ;;  %v2888_v42 = vld [vmem:[#allocation2 + $0x31] sm:$0xff] }
 0x302   : > { %7909 = vrot.lane.b32.xlu0 %v7908_v47, %s9030_s30  ;;  %v7516_v63 = vpop.f32.mrb[14].mxu0  ;;  %v7958_v35 = vpack.i.bf16 %v2888_v42, %v2998_v49 }
 0x303   : > { %v2457_v55 = vmul.f32 %v7516_v63, %v10926_v60  ;;  %v2327_v34 = vpop.f32.mrb[15].mxu0  ;;  %v3075_v51 = vld [vmem:[#allocation2 + $0x6e] sm:$0xff]  ;;  %v3076_v37 = vld [vmem:[#allocation2 + $0x76] sm:$0xff] }
 0x304   : > { %v2456_v58 = vmul.f32 %v10926_v60, %v2327_v34  ;;  %7568 = vmatmul.mubr.msk.f32.gmra.mrb[44].mxu0 %vm393_vm8, %v3075_v51  ;;  %v2925_v63 = vld [vmem:[#allocation2 + $0x3a] sm:$0xff]  ;;  %v11130_v51 = vpop.permute.xlu1 %2638 }
 0x305   : > { %v2499_v50 = vadd.f32 %v10936_v4, %v2457_v55  ;;  %7570 = vmatprep.mubr.msk.f32.mxu0 %vm393_vm8, %v3076_v37  ;;  %2683 = vperm.xlu1 %7867, %v382_v7   ;;  %v11128_v7 = vpop.permute.xlu0 %2643  ;;  %v7953_v34 = vpack.i.bf16 %v2925_v63, %v3035_v16 }
 0x306   : > { %v2498_v56 = vadd.f32 %v10936_v4, %v2456_v58  ;;  %7919 = vrot.lane.b32.xlu0 %v7918_v30, %s9029_s28  ;;  %v3000_v58 = vld [vmem:[#allocation2 + $0x54] sm:$0xff] }
 0x307   : > { %v2535_v26 = vmax.f32 %v2499_v50, 0.0  ;;  %v385_v50 = vld [vmem:[%s13030_s1 + $0xe0] sm:$0xff]  ;;  %v7963_v61 = vpack.i.bf16 %v2924_v57, %v3000_v58 }
 0x308   : > { %v2534_v45 = vmax.f32 %v2498_v56, 0.0  ;;  %v3036_v56 = vld [vmem:[#allocation2 + $0x55] sm:$0xff]  ;;  %v3037_v57 = vld [vmem:[#allocation2 + $0x5d] sm:$0xff] }
 0x309   : > { %v2751_v28 = vmul.f32 %v11102_v59, %v2535_v26  ;;  %7929 = vrot.lane.b32.xlu1 %v7928_v14, %s9025_s27  ;;  %v7973_v26 = vpack.i.bf16 %v2889_v54, %v2999_v52  ;;  %v2926_v14 = vld [vmem:[#allocation2 + $0x42] sm:$0xff] }
 0x30a   : > { %v2750_v13 = vmul.f32 %v11104_v1, %v2534_v45  ;;  %7924 = vrot.lane.b32.xlu0 %v7923_v5, %s9030_s30  ;;  %v7968_v24 = vpack.i.bf16 %v2926_v14, %v3036_v56  ;;  %v3001_v45 = vld [vmem:[#allocation2 + $0x5c] sm:$0xff] }
 0x30b   : > { %2787 = vst.msk [vmem:[#allocation2 + $0x8b] sm:$0xff] %vm393_vm8, %v2751_v28  ;;  %v386_v28 = vld [vmem:[%s13030_s1 + $0xe8] sm:$0xff]  ;;  %v7978_v12 = vpack.i.bf16 %v2925_v63, %v3001_v45 }
 0x30c   : > { %2786 = vst.msk [vmem:[#allocation2 + $0x83] sm:$0xff] %vm393_vm8, %v2750_v13  ;;  %v2890_v52 = vld [vmem:[#allocation2 + $0x41] sm:$0xff] }
 0x30d   : > { %2688 = vperm.xlu1 %7867, %v383_v36  }
 0x30e   : > { %7934 = vrot.lane.b32.xlu0 %v7933_v39, %s9029_s28 }
 0x311   : > { %7944 = vrot.lane.b32.xlu1 %v7943_v11, %s9025_s27 }
 0x312   : > { %7939 = vrot.lane.b32.xlu0 %v7938_v25, %s9030_s30  ;;  %v7519_v31 = vpop.f32.mrb[16].mxu0 }
 0x313   : > { %v2459_v32 = vmul.f32 %v7519_v31, %v10926_v60  ;;  %v2337_v21 = vpop.f32.mrb[17].mxu0  ;;  %v3077_v62 = vld [vmem:[#allocation2 + $0x7e] sm:$0xff]  ;;  %v3078_v29 = vld [vmem:[#allocation2 + $0x86] sm:$0xff] }
 0x314   : > { %v2458_v0 = vmul.f32 %v10926_v60, %v2337_v21  ;;  %7571 = vmatmul.mubr.msk.f32.gmra.mrb[46].mxu0 %vm393_vm8, %v3077_v62  ;;  %v11154_v21 = vpop.permute.xlu0 %2653 }
 0x315   : > { %v2501_v8 = vadd.f32 %v10936_v4, %v2459_v32  ;;  %7573 = vmatprep.mubr.msk.f32.mxu0 %vm393_vm8, %v3078_v29  ;;  %2693 = vperm.xlu1 %7867, %v384_v3   ;;  %v7988_v3 = vpack.i.bf16 %v2890_v52, %v3000_v58  ;;  %v2927_v32 = vld [vmem:[#allocation2 + $0x4a] sm:$0xff]  ;;  %13293 = vst [vmem:[#allocation83_spill] sm:$0xff] %v11154_v21 }
 0x316   : > { %v2500_v17 = vadd.f32 %v10936_v4, %v2458_v0  ;;  %7949 = vrot.lane.b32.xlu0 %v7948_v9, %s9029_s28  ;;  %v7983_v29 = vpack.i.bf16 %v2927_v32, %v3037_v57  ;;  %v11156_v0 = vpop.permute.xlu1 %2648 }
 0x317   : > { %v2537_v47 = vmax.f32 %v2501_v8, 0.0  ;;  %13294 = vst [vmem:[#allocation6_spill] sm:$0xff] %v11156_v0  ;;  %v3002_v8 = vld [vmem:[#allocation2 + $0x64] sm:$0xff] }
 0x318   : > { %v2536_v55 = vmax.f32 %v2500_v17, 0.0  ;;  %v387_v17 = vld [vmem:[%s13030_s1 + $0xf0] sm:$0xff]  ;;  %v7993_v42 = vpack.i.bf16 %v2926_v14, %v3002_v8 }
 0x319   : > { %v2753_v37 = vmul.f32 %v11128_v7, %v2537_v47  ;;  %7959 = vrot.lane.b32.xlu1 %v7958_v35, %s9025_s27  ;;  %v3038_v47 = vld [vmem:[#allocation2 + $0x65] sm:$0xff] }
 0x31a   : > { %v2752_v30 = vmul.f32 %v11130_v51, %v2536_v55  ;;  %7954 = vrot.lane.b32.xlu0 %v7953_v34, %s9030_s30  ;;  %v2891_v35 = vld [vmem:[#allocation2 + $0x49] sm:$0xff]  ;;  %v2928_v55 = vld [vmem:[#allocation2 + $0x52] sm:$0xff] }
 0x31b   : > { %2789 = vst.msk [vmem:[#allocation2 + $0x9b] sm:$0xff] %vm393_vm8, %v2753_v37  ;;  %v8003_v63 = vpack.i.bf16 %v2891_v35, %v3001_v45  ;;  %v7998_v34 = vpack.i.bf16 %v2928_v55, %v3038_v47  ;;  %v3003_v37 = vld [vmem:[#allocation2 + $0x6c] sm:$0xff] }
 0x31c   : > { %2788 = vst.msk [vmem:[#allocation2 + $0x93] sm:$0xff] %vm393_vm8, %v2752_v30  ;;  %v388_v30 = vld [vmem:[%s13030_s1 + $0xf8] sm:$0xff]  ;;  %v8008_v14 = vpack.i.bf16 %v2927_v32, %v3003_v37  ;;  %v3039_v45 = vld [vmem:[#allocation2 + $0x6d] sm:$0xff] }
 0x31d   : > { %2698 = vperm.xlu1 %7867, %v385_v50   ;;  %v3040_v32 = vld [vmem:[#allocation2 + $0x75] sm:$0xff] }
 0x31e   : > { %7964 = vrot.lane.b32.xlu0 %v7963_v61, %s9029_s28 }
 0x321   : > { %7974 = vrot.lane.b32.xlu1 %v7973_v26, %s9025_s27 }
 0x322   : > { %7969 = vrot.lane.b32.xlu0 %v7968_v24, %s9030_s30  ;;  %v7522_v5 = vpop.f32.mrb[18].mxu0 }
 0x323   : > { %v2461_v49 = vmul.f32 %v7522_v5, %v10926_v60  ;;  %v2347_v13 = vpop.f32.mrb[19].mxu0  ;;  %v3079_v36 = vld [vmem:[#allocation2 + $0x8e] sm:$0xff]  ;;  %v3080_v39 = vld [vmem:[#allocation2 + $0x96] sm:$0xff] }
 0x324   : > { %v2460_v15 = vmul.f32 %v10926_v60, %v2347_v13  ;;  %7574 = vmatmul.mubr.msk.f32.gmra.mrb[48].mxu0 %vm393_vm8, %v3079_v36  ;;  %v2929_v36 = vld [vmem:[#allocation2 + $0x5a] sm:$0xff] }
 0x325   : > { %v2503_v11 = vadd.f32 %v10936_v4, %v2461_v49  ;;  %7576 = vmatprep.mubr.msk.f32.mxu0 %vm393_vm8, %v3080_v39  ;;  %2703 = vperm.xlu1 %7867, %v386_v28   ;;  %v2892_v28 = vld [vmem:[#allocation2 + $0x51] sm:$0xff]  ;;  %v11180_v39 = vpop.permute.xlu0 %2663 }
 0x326   : > { %v2502_v25 = vadd.f32 %v10936_v4, %v2460_v15  ;;  %7979 = vrot.lane.b32.xlu0 %v7978_v12, %s9029_s28  ;;  %v8018_v13 = vpack.i.bf16 %v2892_v28, %v3002_v8  ;;  %13295 = vst [vmem:[#allocation109_spill] sm:$0xff] %v11180_v39  ;;  %v8013_v12 = vpack.i.bf16 %v2929_v36, %v3039_v45  ;;  %v2932_v45 = vld [vmem:[#allocation2 + $0x72] sm:$0xff] }
 0x327   : > { %v2539_v31 = vmax.f32 %v2503_v11, 0.0  ;;  %v11182_v11 = vpop.permute.xlu1 %2658  ;;  %v3007_v28 = vld [vmem:[#allocation2 + $0x8c] sm:$0xff] }
 0x328   : > { %v2538_v62 = vmax.f32 %v2502_v25, 0.0  ;;  %13296 = vst [vmem:[#allocation31_spill] sm:$0xff] %v11182_v11  ;;  %v3004_v25 = vld [vmem:[#allocation2 + $0x74] sm:$0xff] }
 0x329   : > { %v2755_v9 = vmul.f32 %v11154_v21, %v2539_v31  ;;  %7989 = vrot.lane.b32.xlu1 %v7988_v3, %s9025_s27  ;;  %v389_v31 = vld [vmem:[%s13030_s1 + $0x100] sm:$0xff]  ;;  %v8023_v3 = vpack.i.bf16 %v2928_v55, %v3004_v25 }
 0x32a   : > { %v2754_v16 = vmul.f32 %v11156_v0, %v2538_v62  ;;  %7984 = vrot.lane.b32.xlu0 %v7983_v29, %s9030_s30  ;;  %v2893_v62 = vld [vmem:[#allocation2 + $0x59] sm:$0xff] }
 0x32b   : > { %2791 = vst.msk [vmem:[#allocation2 + $0xab] sm:$0xff] %vm393_vm8, %v2755_v9  ;;  %v8033_v29 = vpack.i.bf16 %v2893_v62, %v3003_v37  ;;  %v2930_v9 = vld [vmem:[#allocation2 + $0x62] sm:$0xff] }
 0x32c   : > { %2790 = vst.msk [vmem:[#allocation2 + $0xa3] sm:$0xff] %vm393_vm8, %v2754_v16  ;;  %v8028_v8 = vpack.i.bf16 %v2930_v9, %v3040_v32  ;;  %v3005_v16 = vld [vmem:[#allocation2 + $0x7c] sm:$0xff]  ;;  %v3008_v32 = vld [vmem:[#allocation2 + $0x94] sm:$0xff] }
 0x32d   : > { %2708 = vperm.xlu1 %7867, %v387_v17   ;;  %v8038_v55 = vpack.i.bf16 %v2929_v36, %v3005_v16  ;;  %v2894_v37 = vld [vmem:[#allocation2 + $0x61] sm:$0xff] }
 0x32e   : > { %7994 = vrot.lane.b32.xlu0 %v7993_v42, %s9029_s28  ;;  %v390_v42 = vld [vmem:[%s13030_s1 + $0x108] sm:$0xff] }
 0x32f   : > { %v2934_v62 = vld [vmem:[#allocation2 + $0x82] sm:$0xff] }
 0x331   : > { %8004 = vrot.lane.b32.xlu1 %v8003_v63, %s9025_s27 }
 0x332   : > { %7999 = vrot.lane.b32.xlu0 %v7998_v34, %s9030_s30  ;;  %v7525_v58 = vpop.f32.mrb[20].mxu0  ;;  %v3041_v34 = vld [vmem:[#allocation2 + $0x7d] sm:$0xff] }
 0x333   : > { %v2463_v50 = vmul.f32 %v7525_v58, %v10926_v60  ;;  %v2357_v61 = vpop.f32.mrb[21].mxu0  ;;  %v3081_v56 = vld [vmem:[#allocation2 + $0x9e] sm:$0xff]  ;;  %v3082_v54 = vld [vmem:[#allocation2 + $0xa6] sm:$0xff]  ;;  %v8048_v58 = vpack.i.bf16 %v2894_v37, %v3004_v25 }
 0x334   : > { %v2462_v26 = vmul.f32 %v10926_v60, %v2357_v61  ;;  %7577 = vmatmul.mubr.msk.f32.gmra.mrb[50].mxu0 %vm393_vm8, %v3081_v56  ;;  %v3006_v61 = vld [vmem:[#allocation2 + $0x84] sm:$0xff]  ;;  %v391_v56 = vld [vmem:[%s13030_s1 + $0x110] sm:$0xff] }
 0x335   : > { %v2505_v24 = vadd.f32 %v10936_v4, %v2463_v50  ;;  %7579 = vmatprep.mubr.msk.f32.mxu0 %vm393_vm8, %v3082_v54  ;;  %2713 = vperm.xlu1 %7867, %v388_v30   ;;  %v2931_v30 = vld [vmem:[#allocation2 + $0x6a] sm:$0xff]  ;;  %v8053_v54 = vpack.i.bf16 %v2930_v9, %v3006_v61  ;;  %v8083_v9 = vpack.i.bf16 %v2932_v45, %v3008_v32 }
 0x336   : > { %v2504_v5 = vadd.f32 %v10936_v4, %v2462_v26  ;;  %8009 = vrot.lane.b32.xlu0 %v8008_v14, %s9029_s28  ;;  %v8043_v50 = vpack.i.bf16 %v2931_v30, %v3041_v34  ;;  %v3042_v26 = vld [vmem:[#allocation2 + $0x85] sm:$0xff] }
 0x337   : > { %v2541_v49 = vmax.f32 %v2505_v24, 0.0  ;;  %v2895_v14 = vld [vmem:[#allocation2 + $0x69] sm:$0xff] }
 0x338   : > { %v2540_v15 = vmax.f32 %v2504_v5, 0.0  ;;  %v8063_v24 = vpack.i.bf16 %v2895_v14, %v3005_v16  ;;  %v8058_v5 = vpack.i.bf16 %v2932_v45, %v3042_v26  ;;  %v2935_v26 = vld [vmem:[#allocation2 + $0x8a] sm:$0xff]  ;;  %v2898_v14 = vld [vmem:[#allocation2 + $0x81] sm:$0xff] }
 0x339   : > { %v2757_v57 = vmul.f32 %v11180_v39, %v2541_v49  ;;  %8019 = vrot.lane.b32.xlu1 %v8018_v13, %s9025_s27  ;;  %v392_v13 = vld [vmem:[%s13030_s1 + $0x118] sm:$0xff] }
 0x33a   : > { %v2756_v52 = vmul.f32 %v11182_v11, %v2540_v15  ;;  %8014 = vrot.lane.b32.xlu0 %v8013_v12, %s9030_s30  ;;  %v8068_v15 = vpack.i.bf16 %v2931_v30, %v3007_v28  ;;  %v3043_v12 = vld [vmem:[#allocation2 + $0x8d] sm:$0xff] }
 0x33b   : > { %2793 = vst.msk [vmem:[#allocation2 + $0xbb] sm:$0xff] %vm393_vm8, %v2757_v57  ;;  %v2896_v57 = vld [vmem:[#allocation2 + $0x71] sm:$0xff] }
 0x33c   : > { %2792 = vst.msk [vmem:[#allocation2 + $0xb3] sm:$0xff] %vm393_vm8, %v2756_v52  ;;  %v8078_v25 = vpack.i.bf16 %v2896_v57, %v3006_v61  ;;  %v2933_v52 = vld [vmem:[#allocation2 + $0x7a] sm:$0xff] }
 0x33d   : > { %2718 = vperm.xlu1 %7867, %v389_v31   ;;  %v8073_v31 = vpack.i.bf16 %v2933_v52, %v3043_v12 }
 0x33e   : > { %8024 = vrot.lane.b32.xlu0 %v8023_v3, %s9029_s28  ;;  %v3044_v3 = vld [vmem:[#allocation2 + $0x95] sm:$0xff] }
 0x341   : > { %8034 = vrot.lane.b32.xlu1 %v8033_v29, %s9025_s27  ;;  %v8088_v29 = vpack.i.bf16 %v2934_v62, %v3044_v3 }
 0x342   : > { %8029 = vrot.lane.b32.xlu0 %v8028_v8, %s9030_s30  ;;  %v11196_v17 = vpop.f32.mrb[22].mxu0  ;;  %v11225_v8 = vld [vmem:[#allocation2 + $0x9c] sm:$0xff] }
 0x343   : > { %v11201_v47 = vpop.f32.mrb[23].mxu0  ;;  %v3083_v35 = vld [vmem:[#allocation2 + $0xae] sm:$0xff]  ;;  %v3084_v63 = vld [vmem:[#allocation2 + $0xb6] sm:$0xff] }
 0x344   : > { %7580 = vmatmul.mubr.msk.f32.gmra.mrb[52].mxu0 %vm393_vm8, %v3083_v35  ;;  %v2897_v35 = vld [vmem:[#allocation2 + $0x79] sm:$0xff] }
 0x345   : > { %7582 = vmatprep.mubr.msk.f32.mxu0 %vm393_vm8, %v3084_v63  ;;  %2723 = vperm.xlu1 %7867, %v390_v42   ;;  %v8098_v63 = vpack.i.bf16 %v2933_v52, %v11225_v8  ;;  %v8093_v37 = vpack.i.bf16 %v2897_v35, %v3007_v28  ;;  %v8108_v28 = vpack.i.bf16 %v2898_v14, %v3008_v32  ;;  %v3046_v52 = vld [vmem:[#allocation2 + $0xa5] sm:$0xff] }
 0x346   : > { %8039 = vrot.lane.b32.xlu0 %v8038_v55, %s9029_s28 }
 0x349   : > { %8049 = vrot.lane.b32.xlu1 %v8048_v58, %s9025_s27  ;;  %v3045_v58 = vld [vmem:[#allocation2 + $0x9d] sm:$0xff] }
 0x34a   : > { %8044 = vrot.lane.b32.xlu0 %v8043_v50, %s9030_s30 }
 0x34d   : > { %2728 = vperm.xlu1 %7867, %v391_v56   ;;  %v2846_v56 = vld [vmem:[#allocation2] sm:$0xff] }
 0x34e   : > { %8054 = vrot.lane.b32.xlu0 %v8053_v54, %s9029_s28 }
 0x351   : > { %8064 = vrot.lane.b32.xlu1 %v8063_v24, %s9025_s27  ;;  %v2464_v24 = vmul.f32 %v10926_v60, %v11201_v47 }
 0x352   : > { %8059 = vrot.lane.b32.xlu0 %v8058_v5, %s9030_s30  ;;  %v11214_v49 = vpop.f32.mrb[24].mxu0  ;;  %v8103_v5 = vpack.i.bf16 %v2935_v26, %v3045_v58 }
 0x353   : > { %v11219_v36 = vpop.f32.mrb[25].mxu0 }
 0x355   : > { %2733 = vperm.xlu1 %7867, %v392_v13   ;;  %v2956_v13 = vld [vmem:[#allocation2 + $0x13] sm:$0xff] }
 0x356   : > { %8069 = vrot.lane.b32.xlu0 %v8068_v15, %s9029_s28 }
 0x359   : > { %8079 = vrot.lane.b32.xlu1 %v8078_v25, %s9025_s27 }
 0x35a   : > { %8074 = vrot.lane.b32.xlu0 %v8073_v31, %s9030_s30 }
 0x35b   : > { %v7870_v16 = vpop.permute.xlu1 %7869 }
 0x35c   : > { %v7872_v55 = vunpack.i.h.bf16 %v7870_v16  ;;  %v7871_v34 = vunpack.i.l.bf16 %v7870_v16  ;;  %v2506_v16 = vadd.f32 %v10936_v4, %v2464_v24  ;;  %v2900_v24 = vld [vmem:[#allocation2 + $0x91] sm:$0xff] }
 0x35d   : > { %8089 = vrot.lane.b32.xlu1 %v8088_v29, %s9030_s30  ;;  %v3010_v29 = vld [vmem:[#allocation2 + $0xa4] sm:$0xff] }
 0x35e   : > { %8084 = vrot.lane.b32.xlu0 %v8083_v9, %s9029_s28  ;;  %v4008_v57 = vsel %vm393_vm8, %v2956_v13, %v7871_v34  ;;  %v3898_v25 = vsel %vm393_vm8, %v2846_v56, %v7872_v55  ;;  %v2936_v9 = vld [vmem:[#allocation2 + $0x92] sm:$0xff]  ;;  %v2465_v34 = vmul.f32 %v11196_v17, %v10926_v60 }
 0x35f   : > { %v8118_v35 = vpack.i.bf16 %v2936_v9, %v3046_v52  ;;  %v11247_v55 = vld [vmem:[#allocation2 + $0xac] sm:$0xff]  ;;  %v11270_v52 = vld [vmem:[#allocation2 + $0xa2] sm:$0xff] }
 0x360   : > { %v7875_v42 = vpop.permute.xlu0 %7874  ;;  %v2507_v17 = vadd.f32 %v10936_v4, %v2465_v34 }
 0x361   : > { %v7877_v30 = vunpack.i.h.bf16 %v7875_v42  ;;  %v7876_v50 = vunpack.i.l.bf16 %v7875_v42  ;;  %8099 = vrot.lane.b32.xlu1 %v8098_v63, %s9029_s28  ;;  %v11231_v61 = vpop.f32.mrb[26].mxu0  ;;  %v8113_v63 = vpack.i.bf16 %v2934_v62, %v3010_v29 }
 0x362   : > { %8094 = vrot.lane.b32.xlu0 %v8093_v37, %s9025_s27  ;;  %v11234_v54 = vpop.f32.mrb[27].mxu0  ;;  %v2542_v37 = vmax.f32 %v2506_v16, 0.0  ;;  %v2957_v16 = vld [vmem:[#allocation2 + $0x1b] sm:$0xff] }
 0x363   : > { %v4044_v31 = vsel %vm3934_vm11, %v4008_v57, %v7876_v50  ;;  %v3935_v3 = vsel %vm3934_vm11, %v3898_v25, %v7877_v30  ;;  %v2899_v30 = vld [vmem:[#allocation2 + $0x89] sm:$0xff]  ;;  %v8128_v50 = vpack.i.bf16 %v2935_v26, %v11247_v55  ;;  %v2937_v26 = vld [vmem:[#allocation2 + $0x9a] sm:$0xff] }
 0x364   : > { %v7880_v45 = vpop.permute.xlu0 %7879  ;;  %v8123_v62 = vpack.i.bf16 %v2899_v30, %v11225_v8  ;;  %v3012_v25 = vld [vmem:[#allocation2 + $0xb4] sm:$0xff] }
 0x365   : > { %v7882_v15 = vunpack.i.h.bf16 %v7880_v45  ;;  %v7881_v12 = vunpack.i.l.bf16 %v7880_v45  ;;  %8109 = vrot.lane.b32.xlu1 %v8108_v28, %s9025_s27  ;;  %v3048_v28 = vld [vmem:[#allocation2 + $0xb5] sm:$0xff] }
 0x366   : > { %8104 = vrot.lane.b32.xlu0 %v8103_v5, %s9030_s30  ;;  %v8138_v5 = vpack.i.bf16 %v2900_v24, %v3010_v29 }
 0x367   : > { %v4080_v47 = vsel %vm3971_vm12, %v4044_v31, %v7881_v12  ;;  %v3972_v32 = vsel %vm3971_vm12, %v3935_v3, %v7882_v15  ;;  %v2847_v15 = vld [vmem:[#allocation2 + $0x8] sm:$0xff]  ;;  %v2543_v31 = vmax.f32 %v2507_v17, 0.0  ;;  %v2466_v3 = vmul.f32 %v10926_v60, %v11219_v36 }
 0x368   : > { %4288 = vmatprep.mubr.f32.mxu1 %v4080_v47  ;;  %v7890_v42 = vpop.permute.xlu0 %7889 }
 0x369   : > { %4289 = vmatmul.mubr.f32.vlgmr.msra.gmra.mrb[0].mxu1 %v3972_v32  ;;  %8119 = vrot.lane.b32.xlu1 %v8118_v35, %s9030_s30  ;;  %v7891_v47 = vunpack.i.l.bf16 %v7890_v42  ;;  %v8148_v32 = vpack.i.bf16 %v11270_v52, %v3048_v28  ;;  %v7892_v35 = vunpack.i.h.bf16 %v7890_v42 }
 0x36a   : > { %7810 = vmatpush3.bf16.msra.mxu1 %v10590_v10  ;;  %8114 = vrot.lane.b32.xlu0 %v8113_v63, %s9029_s28  ;;  %v3047_v10 = vld [vmem:[#allocation2 + $0xad] sm:$0xff] }
 0x36b   : > { %7809 = vmatprep.subr.bf16.mxu1 %v10620_v18  ;;  %v8133_v13 = vpack.i.bf16 %v2937_v26, %v3047_v10 }
 0x36c   : > { %v7895_v58 = vpop.permute.xlu0 %7894  ;;  %v11256_v56 = vpop.permute.xlu1 %2668 }
 0x36d   : > { %13297 = vst [vmem:[#allocation56_spill] sm:$0xff] %v11256_v56  ;;  %v2758_v14 = vmul.f32 %v11256_v56, %v2542_v37  ;;  %8129 = vrot.lane.b32.xlu1 %v8128_v50, %s9029_s28  ;;  %v7896_v63 = vunpack.i.l.bf16 %v7895_v58  ;;  %v7897_v50 = vunpack.i.h.bf16 %v7895_v58 }
 0x36e   : > { %7811 = vmatpush3.bf16.msra.mxu1 %v10620_v18  ;;  %8124 = vrot.lane.b32.xlu0 %v8123_v62, %s9025_s27 }
 0x36f   : > { %2794 = vst.msk [vmem:[#allocation2 + $0xc3] sm:$0xff] %vm393_vm8, %v2758_v14  ;;  %v8143_v14 = vpack.i.bf16 %v2936_v9, %v3012_v25  ;;  %v2508_v9 = vadd.f32 %v10936_v4, %v2466_v3  ;;  %v11302_v4 = vld [vmem:[%s13032_s3] ss:$0 sm:$0xff] }
 0x370   : > { %v11265_v45 = vpop.permute.xlu0 %7904  ;;  %v7885_v8 = vpop.permute.xlu1 %7884  ;;  %v2467_v3 = vmul.f32 %v11302_v4, %v11214_v49 }
 0x371   : > { %v7887_v12 = vunpack.i.h.bf16 %v7885_v8  ;;  %v7886_v57 = vunpack.i.l.bf16 %v7885_v8  ;;  %8139 = vrot.lane.b32.xlu1 %v8138_v5, %s9025_s27  ;;  %v11268_v18 = vpop.f32.mrb[28].mxu0  ;;  %v2901_v5 = vld [vmem:[#allocation2 + $0x99] sm:$0xff] }
 0x372   : > { %8134 = vrot.lane.b32.xlu0 %v8133_v13, %s9030_s30  ;;  %v11275_v29 = vpop.f32.mrb[29].mxu0 }
 0x373   : > { %v4009_v37 = vsel %vm393_vm8, %v2957_v16, %v7886_v57  ;;  %v3899_v30 = vsel %vm393_vm8, %v2847_v15, %v7887_v12  ;;  %v8153_v15 = vpack.i.bf16 %v2901_v5, %v11247_v55  ;;  %v2958_v16 = vld [vmem:[#allocation2 + $0x23] sm:$0xff] }
 0x374   : > { %v7910_v34 = vpop.permute.xlu0 %7909  ;;  %v11280_v62 = vpop.permute.xlu1 %2673  ;;  %v4045_v60 = vsel %vm3934_vm11, %v4009_v37, %v7891_v47  ;;  %v3936_v42 = vsel %vm3934_vm11, %v3899_v30, %v7892_v35  ;;  %v2902_v47 = vld [vmem:[#allocation2 + $0xa1] sm:$0xff]  ;;  %v2848_v35 = vld [vmem:[#allocation2 + $0x10] sm:$0xff] }
 0x375   : > { %13298 = vst [vmem:[#allocation82_spill] sm:$0xff] %v11280_v62  ;;  %v2759_v36 = vmul.f32 %v11280_v62, %v2543_v31  ;;  %8149 = vrot.lane.b32.xlu1 %v8148_v32, %s9030_s30  ;;  %v4081_v10 = vsel %vm3971_vm12, %v4045_v60, %v7896_v63  ;;  %v3973_v17 = vsel %vm3971_vm12, %v3936_v42, %v7897_v50  ;;  %v7906_v32 = vunpack.i.l.bf16 %v11265_v45  ;;  %v11309_v30 = vld [vmem:[#allocation2 + $0xaa] sm:$0xff] }
 0x376   : > { %8144 = vrot.lane.b32.xlu0 %v8143_v14, %s9029_s28  ;;  %4293 = vmatprep.mubr.f32.mxu1 %v4081_v10  ;;  %v3085_v24 = vld [vmem:[#allocation2 + $0xbe] sm:$0xff]  ;;  %v8168_v55 = vpack.i.bf16 %v2902_v47, %v3012_v25  ;;  %v2544_v63 = vmax.f32 %v2508_v9, 0.0  ;;  %v7911_v37 = vunpack.i.l.bf16 %v7910_v34  ;;  %v7912_v60 = vunpack.i.h.bf16 %v7910_v34 }
 0x377   : > { %v11289_v58 = vld [vmem:[#allocation2 + $0xbc] sm:$0xff]  ;;  %2795 = vst.msk [vmem:[#allocation2 + $0xcb] sm:$0xff] %vm393_vm8, %v2759_v36  ;;  %4294 = vmatmul.mubr.f32.gmra.mrb[2].mxu1 %v3973_v17  ;;  %7583 = vmatmul.mubr.msk.f32.gmra.mrb[54].mxu0 %vm393_vm8, %v3085_v24  ;;  %v11321_v24 = vld [vmem:[#allocation2 + $0xb2] sm:$0xff] }
 0x378   : > { %v8158_v28 = vpack.i.bf16 %v2937_v26, %v11289_v58  ;;  %v11295_v8 = vpop.permute.xlu0 %7919  ;;  %v7900_v13 = vpop.permute.xlu1 %7899  ;;  %v3049_v31 = vld [vmem:[#allocation2 + $0xbd] sm:$0xff]  ;;  %v7907_v26 = vunpack.i.h.bf16 %v11265_v45 }
 0x379   : > { %v7902_v12 = vunpack.i.h.bf16 %v7900_v13  ;;  %v7901_v57 = vunpack.i.l.bf16 %v7900_v13  ;;  %v8163_v10 = vpack.i.bf16 %v11309_v30, %v3049_v31  ;;  %v11330_v13 = vld [vmem:[%s13033_s4] ss:$0 sm:$0xff] }
 0x37a   : > { %8159 = vrot.lane.b32.xlu1 %v8158_v28, %s9029_s28  ;;  %8154 = vrot.lane.b32.xlu0 %v8153_v15, %s9025_s27  ;;  %v2509_v15 = vadd.f32 %v11330_v13, %v2467_v3  ;;  %v2468_v3 = vmul.f32 %v11302_v4, %v11234_v54 }
 0x37b   : > { %v4010_v50 = vsel %vm393_vm8, %v2958_v16, %v7901_v57  ;;  %v3900_v14 = vsel %vm393_vm8, %v2848_v35, %v7902_v12  ;;  %v7922_v16 = vunpack.i.h.bf16 %v11295_v8  ;;  %v7921_v35 = vunpack.i.l.bf16 %v11295_v8 }
 0x37c   : > { %v7925_v36 = vpop.permute.xlu0 %7924  ;;  %v11313_v49 = vpop.permute.xlu1 %2678  ;;  %v4046_v45 = vsel %vm3934_vm11, %v4010_v50, %v7906_v32  ;;  %v3937_v25 = vsel %vm3934_vm11, %v3900_v14, %v7907_v26  ;;  %v2849_v50 = vld [vmem:[#allocation2 + $0x18] sm:$0xff]  ;;  %v2545_v14 = vmax.f32 %v2509_v15, 0.0  ;;  %v2510_v15 = vadd.f32 %v11330_v13, %v2468_v3 }
 0x37d   : > { %13299 = vst [vmem:[#allocation108_spill] sm:$0xff] %v11313_v49  ;;  %v2760_v42 = vmul.f32 %v11313_v49, %v2544_v63  ;;  %v4082_v17 = vsel %vm3971_vm12, %v4046_v45, %v7911_v37  ;;  %v3974_v34 = vsel %vm3971_vm12, %v3937_v25, %v7912_v60  ;;  %v2903_v63 = vld [vmem:[#allocation2 + $0xa9] sm:$0xff]  ;;  %v7927_v25 = vunpack.i.h.bf16 %v7925_v36 }
 0x37e   : > { %8169 = vrot.lane.b32.xlu1 %v8168_v55, %s9025_s27  ;;  %8164 = vrot.lane.b32.xlu0 %v8163_v10, %s9030_s30  ;;  %v3086_v9 = vld [vmem:[#allocation2 + $0xc6] sm:$0xff]  ;;  %v8183_v60 = vpack.i.bf16 %v2903_v63, %v11289_v58  ;;  %v7926_v54 = vunpack.i.l.bf16 %v7925_v36 }
 0x37f   : > { %4298 = vmatprep.mubr.f32.mxu1 %v4082_v17  ;;  %v11325_v5 = vld [vmem:[#allocation2 + $0xc4] sm:$0xff]  ;;  %2796 = vst.msk [vmem:[#allocation2 + $0xd3] sm:$0xff] %vm393_vm8, %v2760_v42  ;;  %7585 = vmatprep.mubr.msk.f32.mxu0 %vm393_vm8, %v3086_v9 }
 0x380   : > { %v3050_v28 = vld [vmem:[#allocation2 + $0xc5] sm:$0xff]  ;;  %4299 = vmatmul.mubr.f32.gmra.mrb[4].mxu1 %v3974_v34  ;;  %v8173_v12 = vpack.i.bf16 %v11270_v52, %v11325_v5  ;;  %v7935_v31 = vpop.permute.xlu0 %7934  ;;  %v7915_v47 = vpop.permute.xlu1 %7914 }
 0x381   : > { %v8178_v57 = vpack.i.bf16 %v11321_v24, %v3050_v28  ;;  %v7917_v26 = vunpack.i.h.bf16 %v7915_v47  ;;  %v7916_v32 = vunpack.i.l.bf16 %v7915_v47  ;;  %v11339_v55 = vpop.f32.mrb[30].mxu0  ;;  %v2959_v37 = vld [vmem:[#allocation2 + $0x2b] sm:$0xff]  ;;  %v11356_v28 = vld [vmem:[#allocation2 + $0xba] sm:$0xff] }
 0x382   : > { %8174 = vrot.lane.b32.xlu0 %v8173_v12, %s9029_s28  ;;  %v11346_v52 = vpop.f32.mrb[31].mxu0 }
 0x383   : > { %8179 = vrot.lane.b32.xlu1 %v8178_v57, %s9030_s30  ;;  %v4011_v10 = vsel %vm393_vm8, %v2959_v37, %v7916_v32  ;;  %v3901_v45 = vsel %vm393_vm8, %v2849_v50, %v7917_v26  ;;  %v2469_v37 = vmul.f32 %v11302_v4, %v11231_v61  ;;  %v2546_v50 = vmax.f32 %v2510_v15, 0.0 }
 0x384   : > { %v7940_v42 = vpop.permute.xlu0 %7939  ;;  %v11351_v17 = vpop.permute.xlu1 %2683  ;;  %v4047_v8 = vsel %vm3934_vm11, %v4011_v10, %v7921_v35  ;;  %v3938_v34 = vsel %vm3934_vm11, %v3901_v45, %v7922_v16  ;;  %v2904_v10 = vld [vmem:[#allocation2 + $0xb1] sm:$0xff] }
 0x385   : > { %13300 = vst [vmem:[#allocation7_spill] sm:$0xff] %v11351_v17  ;;  %v2761_v9 = vmul.f32 %v11351_v17, %v2545_v14  ;;  %v4083_v58 = vsel %vm3971_vm12, %v4047_v8, %v7926_v54  ;;  %v3975_v12 = vsel %vm3971_vm12, %v3938_v34, %v7927_v25  ;;  %v7937_v14 = vunpack.i.h.bf16 %v7935_v31  ;;  %v2960_v45 = vld [vmem:[#allocation2 + $0x33] sm:$0xff]  ;;  %v2850_v25 = vld [vmem:[#allocation2 + $0x20] sm:$0xff] }
 0x386   : > { %8184 = vrot.lane.b32.xlu0 %v8183_v60, %s9025_s27  ;;  %v3087_v36 = vld [vmem:[#allocation2 + $0xce] sm:$0xff]  ;;  %4303 = vmatprep.mubr.f32.mxu1 %v4083_v58  ;;  %v7936_v60 = vunpack.i.l.bf16 %v7935_v31  ;;  %v7941_v54 = vunpack.i.l.bf16 %v7940_v42 }
 0x387   : > { %v3051_v57 = vld [vmem:[#allocation2 + $0xcd] sm:$0xff]  ;;  %2797 = vst.msk [vmem:[#allocation2 + $0xdb] sm:$0xff] %vm393_vm8, %v2761_v9  ;;  %7586 = vmatmul.mubr.msk.f32.gmra.mrb[56].mxu0 %vm393_vm8, %v3087_v36  ;;  %4304 = vmatmul.mubr.f32.gmra.mrb[6].mxu1 %v3975_v12  ;;  %v7942_v9 = vunpack.i.h.bf16 %v7940_v42 }
 0x388   : > { %v11362_v47 = vld [vmem:[#allocation2 + $0xcc] sm:$0xff]  ;;  %v8193_v26 = vpack.i.bf16 %v11356_v28, %v3051_v57  ;;  %v7950_v3 = vpop.permute.xlu0 %7949  ;;  %v7930_v16 = vpop.permute.xlu1 %7929  ;;  %v11383_v57 = vld [vmem:[#allocation2 + $0xc2] sm:$0xff] }
 0x389   : > { %v8188_v32 = vpack.i.bf16 %v11309_v30, %v11362_v47  ;;  %v7932_v35 = vunpack.i.h.bf16 %v7930_v16  ;;  %v7931_v63 = vunpack.i.l.bf16 %v7930_v16  ;;  %v8198_v30 = vpack.i.bf16 %v2904_v10, %v11325_v5 }
 0x38a   : > { %8194 = vrot.lane.b32.xlu0 %v8193_v26, %s9030_s30  ;;  %v2511_v16 = vadd.f32 %v11330_v13, %v2469_v37  ;;  %v2470_v37 = vmul.f32 %v11302_v4, %v11275_v29 }
 0x38b   : > { %8189 = vrot.lane.b32.xlu1 %v8188_v32, %s9029_s28  ;;  %v4012_v8 = vsel %vm393_vm8, %v2960_v45, %v7931_v63  ;;  %v3902_v34 = vsel %vm393_vm8, %v2850_v25, %v7932_v35  ;;  %v7952_v25 = vunpack.i.h.bf16 %v7950_v3 }
 0x38c   : > { %v7955_v58 = vpop.permute.xlu0 %7954  ;;  %v11376_v12 = vpop.permute.xlu1 %2688  ;;  %v4048_v61 = vsel %vm3934_vm11, %v4012_v8, %v7936_v60  ;;  %v3939_v31 = vsel %vm3934_vm11, %v3902_v34, %v7937_v14  ;;  %v2961_v8 = vld [vmem:[#allocation2 + $0x3b] sm:$0xff]  ;;  %v2851_v34 = vld [vmem:[#allocation2 + $0x28] sm:$0xff] }
 0x38d   : > { %13301 = vst [vmem:[#allocation8_spill] sm:$0xff] %v11376_v12  ;;  %v2762_v15 = vmul.f32 %v11376_v12, %v2546_v50  ;;  %v4084_v36 = vsel %vm3971_vm12, %v4048_v61, %v7941_v54  ;;  %v3976_v5 = vsel %vm3971_vm12, %v3939_v31, %v7942_v9  ;;  %v7951_v54 = vunpack.i.l.bf16 %v7950_v3 }
 0x38e   : > { %4308 = vmatprep.mubr.f32.mxu1 %v4084_v36  ;;  %v3088_v26 = vld [vmem:[#allocation2 + $0xd6] sm:$0xff]  ;;  %v2547_v9 = vmax.f32 %v2511_v16, 0.0  ;;  %v7957_v36 = vunpack.i.h.bf16 %v7955_v58  ;;  %v11411_v16 = vld [vmem:[#allocation2 + $0xca] sm:$0xff] }
 0x38f   : > { %8199 = vrot.lane.b32.xlu1 %v8198_v30, %s9025_s27  ;;  %v11386_v42 = vld [vmem:[#allocation2 + $0xd4] sm:$0xff]  ;;  %2798 = vst.msk [vmem:[#allocation2 + $0xe3] sm:$0xff] %vm393_vm8, %v2762_v15  ;;  %4309 = vmatmul.mubr.f32.gmra.mrb[8].mxu1 %v3976_v5  ;;  %v7956_v5 = vunpack.i.l.bf16 %v7955_v58 }
 0x390   : > { %v3052_v32 = vld [vmem:[#allocation2 + $0xd5] sm:$0xff]  ;;  %7588 = vmatprep.mubr.msk.f32.mxu0 %vm393_vm8, %v3088_v26  ;;  %v8203_v35 = vpack.i.bf16 %v11321_v24, %v11386_v42  ;;  %v7965_v50 = vpop.permute.xlu0 %7964  ;;  %v7945_v14 = vpop.permute.xlu1 %7944 }
 0x391   : > { %v8208_v63 = vpack.i.bf16 %v11383_v57, %v3052_v32  ;;  %v7947_v60 = vunpack.i.h.bf16 %v7945_v14  ;;  %v7946_v10 = vunpack.i.l.bf16 %v7945_v14  ;;  %v11396_v45 = vpop.f32.mrb[32].mxu0  ;;  %v2905_v24 = vld [vmem:[#allocation2 + $0xb9] sm:$0xff] }
 0x392   : > { %8204 = vrot.lane.b32.xlu0 %v8203_v35, %s9029_s28  ;;  %v11400_v30 = vpop.f32.mrb[33].mxu0  ;;  %v8213_v61 = vpack.i.bf16 %v2905_v24, %v11362_v47  ;;  %v2512_v47 = vadd.f32 %v11330_v13, %v2470_v37 }
 0x393   : > { %8209 = vrot.lane.b32.xlu1 %v8208_v63, %s9030_s30  ;;  %v4013_v31 = vsel %vm393_vm8, %v2961_v8, %v7946_v10  ;;  %v3903_v15 = vsel %vm393_vm8, %v2851_v34, %v7947_v60 }
 0x394   : > { %v7970_v26 = vpop.permute.xlu0 %7969  ;;  %v11405_v32 = vpop.permute.xlu1 %2693  ;;  %v4049_v29 = vsel %vm3934_vm11, %v4013_v31, %v7951_v54  ;;  %v3940_v3 = vsel %vm3934_vm11, %v3903_v15, %v7952_v25  ;;  %v7967_v31 = vunpack.i.h.bf16 %v7965_v50  ;;  %v7966_v15 = vunpack.i.l.bf16 %v7965_v50 }
 0x395   : > { %13302 = vst [vmem:[#allocation32_spill] sm:$0xff] %v11405_v32  ;;  %v2763_v35 = vmul.f32 %v11405_v32, %v2547_v9  ;;  %v4085_v63 = vsel %vm3971_vm12, %v4049_v29, %v7956_v5  ;;  %v3977_v14 = vsel %vm3971_vm12, %v3940_v3, %v7957_v36  ;;  %v2471_v9 = vmul.f32 %v11302_v4, %v11268_v18  ;;  %v2906_v36 = vld [vmem:[#allocation2 + $0xc1] sm:$0xff]  ;;  %v2852_v29 = vld [vmem:[#allocation2 + $0x30] sm:$0xff] }
 0x396   : > { %8214 = vrot.lane.b32.xlu0 %v8213_v61, %s9025_s27  ;;  %v3089_v58 = vld [vmem:[#allocation2 + $0xde] sm:$0xff]  ;;  %4313 = vmatprep.mubr.f32.mxu1 %v4085_v63  ;;  %v2548_v61 = vmax.f32 %v2512_v47, 0.0  ;;  %v7971_v3 = vunpack.i.l.bf16 %v7970_v26 }
 0x397   : > { %v3053_v60 = vld [vmem:[#allocation2 + $0xdd] sm:$0xff]  ;;  %2799 = vst.msk [vmem:[#allocation2 + $0xeb] sm:$0xff] %vm393_vm8, %v2763_v35  ;;  %7589 = vmatmul.mubr.msk.f32.gmra.mrb[58].mxu0 %vm393_vm8, %v3089_v58  ;;  %4314 = vmatmul.mubr.f32.gmra.mrb[10].mxu1 %v3977_v14  ;;  %v7972_v14 = vunpack.i.h.bf16 %v7970_v26 }
 0x398   : > { %v11416_v10 = vld [vmem:[#allocation2 + $0xdc] sm:$0xff]  ;;  %v8223_v25 = vpack.i.bf16 %v11411_v16, %v3053_v60  ;;  %v7980_v37 = vpop.permute.xlu0 %7979  ;;  %v7960_v24 = vpop.permute.xlu1 %7959 }
 0x399   : > { %v8218_v54 = vpack.i.bf16 %v11356_v28, %v11416_v10  ;;  %v7962_v8 = vunpack.i.h.bf16 %v7960_v24  ;;  %v7961_v34 = vunpack.i.l.bf16 %v7960_v24  ;;  %v2962_v5 = vld [vmem:[#allocation2 + $0x43] sm:$0xff]  ;;  %v8228_v28 = vpack.i.bf16 %v2906_v36, %v11386_v42 }
 0x39a   : > { %8224 = vrot.lane.b32.xlu0 %v8223_v25, %s9030_s30  ;;  %v11491_v6 = vld [vmem:[#allocation2 + $0xe2] sm:$0xff] }
 0x39b   : > { %8219 = vrot.lane.b32.xlu1 %v8218_v54, %s9029_s28  ;;  %v4014_v35 = vsel %vm393_vm8, %v2962_v5, %v7961_v34  ;;  %v3904_v63 = vsel %vm393_vm8, %v2852_v29, %v7962_v8  ;;  %v11437_v54 = vld [vmem:[#allocation2 + $0xd2] sm:$0xff]  ;;  %v2513_v34 = vadd.f32 %v11330_v13, %v2471_v9  ;;  %v2472_v9 = vmul.f32 %v11302_v4, %v11346_v52 }
 0x39c   : > { %v7985_v58 = vpop.permute.xlu0 %7984  ;;  %v11430_v60 = vpop.permute.xlu1 %2698  ;;  %v4050_v25 = vsel %vm3934_vm11, %v4014_v35, %v7966_v15  ;;  %v3941_v18 = vsel %vm3934_vm11, %v3904_v63, %v7967_v31  ;;  %v7981_v35 = vunpack.i.l.bf16 %v7980_v37 }
 0x39d   : > { %13303 = vst [vmem:[#allocation33_spill] sm:$0xff] %v11430_v60  ;;  %v2764_v50 = vmul.f32 %v11430_v60, %v2548_v61  ;;  %v4086_v47 = vsel %vm3971_vm12, %v4050_v25, %v7971_v3  ;;  %v3978_v42 = vsel %vm3971_vm12, %v3941_v18, %v7972_v14  ;;  %v2963_v14 = vld [vmem:[#allocation2 + $0x4b] sm:$0xff]  ;;  %v2853_v25 = vld [vmem:[#allocation2 + $0x38] sm:$0xff]  ;;  %v2549_v18 = vmax.f32 %v2513_v34, 0.0 }
 0x39e   : > { %4318 = vmatprep.mubr.f32.mxu1 %v4086_v47  ;;  %v3090_v24 = vld [vmem:[#allocation2 + $0xe6] sm:$0xff]  ;;  %v11465_v34 = vld [vmem:[#allocation2 + $0xda] sm:$0xff] }
 0x39f   : > { %8229 = vrot.lane.b32.xlu1 %v8228_v28, %s9025_s27  ;;  %v11440_v26 = vld [vmem:[#allocation2 + $0xe4] sm:$0xff]  ;;  %2800 = vst.msk [vmem:[#allocation2 + $0xf3] sm:$0xff] %vm393_vm8, %v2764_v50  ;;  %4319 = vmatmul.mubr.f32.gmra.mrb[12].mxu1 %v3978_v42  ;;  %v7982_v28 = vunpack.i.h.bf16 %v7980_v37 }
 0x3a0   : > { %v3054_v8 = vld [vmem:[#allocation2 + $0xe5] sm:$0xff]  ;;  %7591 = vmatprep.mubr.msk.f32.mxu0 %vm393_vm8, %v3090_v24  ;;  %v8233_v61 = vpack.i.bf16 %v11383_v57, %v11440_v26  ;;  %v7995_v15 = vpop.permute.xlu0 %7994  ;;  %v7975_v36 = vpop.permute.xlu1 %7974  ;;  %v7987_v24 = vunpack.i.h.bf16 %v7985_v58 }
 0x3a1   : > { %v8238_v31 = vpack.i.bf16 %v11437_v54, %v3054_v8  ;;  %v7977_v5 = vunpack.i.h.bf16 %v7975_v36  ;;  %v7976_v29 = vunpack.i.l.bf16 %v7975_v36  ;;  %v11450_v3 = vpop.f32.mrb[34].mxu0  ;;  %v2907_v57 = vld [vmem:[#allocation2 + $0xc9] sm:$0xff]  ;;  %v7986_v8 = vunpack.i.l.bf16 %v7985_v58 }
 0x3a2   : > { %8234 = vrot.lane.b32.xlu0 %v8233_v61, %s9029_s28  ;;  %v11454_v63 = vpop.f32.mrb[35].mxu0  ;;  %v8243_v50 = vpack.i.bf16 %v2907_v57, %v11416_v10  ;;  %v2514_v10 = vadd.f32 %v11330_v13, %v2472_v9 }
 0x3a3   : > { %8239 = vrot.lane.b32.xlu1 %v8238_v31, %s9030_s30  ;;  %v4015_v47 = vsel %vm393_vm8, %v2963_v14, %v7976_v29  ;;  %v3905_v42 = vsel %vm393_vm8, %v2853_v25, %v7977_v5 }
 0x3a4   : > { %v8000_v61 = vpop.permute.xlu0 %7999  ;;  %v11459_v31 = vpop.permute.xlu1 %2703  ;;  %v4051_v52 = vsel %vm3934_vm11, %v4015_v47, %v7981_v35  ;;  %v3942_v37 = vsel %vm3934_vm11, %v3905_v42, %v7982_v28  ;;  %v2473_v47 = vmul.f32 %v11302_v4, %v11339_v55  ;;  %v2550_v42 = vmax.f32 %v2514_v10, 0.0 }
 0x3a5   : > { %13304 = vst [vmem:[#allocation58_spill] sm:$0xff] %v11459_v31  ;;  %v2765_v36 = vmul.f32 %v11459_v31, %v2549_v18  ;;  %v4087_v29 = vsel %vm3971_vm12, %v4051_v52, %v7986_v8  ;;  %v3979_v5 = vsel %vm3971_vm12, %v3942_v37, %v7987_v24  ;;  %v7997_v24 = vunpack.i.h.bf16 %v7995_v15  ;;  %v2908_v52 = vld [vmem:[#allocation2 + $0xd1] sm:$0xff] }
 0x3a6   : > { %8244 = vrot.lane.b32.xlu0 %v8243_v50, %s9025_s27  ;;  %v3091_v58 = vld [vmem:[#allocation2 + $0xee] sm:$0xff]  ;;  %4323 = vmatprep.mubr.f32.mxu1 %v4087_v29  ;;  %v7996_v8 = vunpack.i.l.bf16 %v7995_v15  ;;  %v8001_v29 = vunpack.i.l.bf16 %v8000_v61 }
 0x3a7   : > { %v3055_v57 = vld [vmem:[#allocation2 + $0xed] sm:$0xff]  ;;  %2801 = vst.msk [vmem:[#allocation2 + $0xfb] sm:$0xff] %vm393_vm8, %v2765_v36  ;;  %7592 = vmatmul.mubr.msk.f32.gmra.mrb[60].mxu0 %vm393_vm8, %v3091_v58  ;;  %4324 = vmatmul.mubr.f32.gmra.mrb[14].mxu1 %v3979_v5  ;;  %v2854_v36 = vld [vmem:[#allocation2 + $0x40] sm:$0xff] }
 0x3a8   : > { %v11470_v14 = vld [vmem:[#allocation2 + $0xec] sm:$0xff]  ;;  %v8253_v28 = vpack.i.bf16 %v11465_v34, %v3055_v57  ;;  %v8010_v9 = vpop.permute.xlu0 %8009  ;;  %v7990_v25 = vpop.permute.xlu1 %7989  ;;  %v8002_v57 = vunpack.i.h.bf16 %v8000_v61 }
 0x3a9   : > { %v8248_v35 = vpack.i.bf16 %v11411_v16, %v11470_v14  ;;  %v7992_v18 = vunpack.i.h.bf16 %v7990_v25  ;;  %v7991_v50 = vunpack.i.l.bf16 %v7990_v25  ;;  %v2964_v37 = vld [vmem:[#allocation2 + $0x53] sm:$0xff]  ;;  %v8258_v16 = vpack.i.bf16 %v2908_v52, %v11440_v26  ;;  %v2971_v31 = vld [vmem:[#allocation2 + $0x8b] sm:$0xff] }
 0x3aa   : > { %8254 = vrot.lane.b32.xlu0 %v8253_v28, %s9030_s30  ;;  %v2515_v26 = vadd.f32 %v11330_v13, %v2473_v47  ;;  %v2876_v62 = vld [vmem:[#allocation2 + $0xf0] sm:$0xff] }
 0x3ab   : > { %8249 = vrot.lane.b32.xlu1 %v8248_v35, %s9029_s28  ;;  %v4016_v5 = vsel %vm393_vm8, %v2964_v37, %v7991_v50  ;;  %v3906_v58 = vsel %vm393_vm8, %v2854_v36, %v7992_v18 }
 0x3ac   : > { %v8015_v28 = vpop.permute.xlu0 %8014  ;;  %v11484_v25 = vpop.permute.xlu1 %2708  ;;  %v4052_v35 = vsel %vm3934_vm11, %v4016_v5, %v7996_v8  ;;  %v3943_v55 = vsel %vm3934_vm11, %v3906_v58, %v7997_v24  ;;  %v8012_v5 = vunpack.i.h.bf16 %v8010_v9  ;;  %v8011_v58 = vunpack.i.l.bf16 %v8010_v9 }
 0x3ad   : > { %13305 = vst [vmem:[#allocation59_spill] sm:$0xff] %v11484_v25  ;;  %v2766_v15 = vmul.f32 %v11484_v25, %v2550_v42  ;;  %v4088_v10 = vsel %vm3971_vm12, %v4052_v35, %v8001_v29  ;;  %v3980_v61 = vsel %vm3971_vm12, %v3943_v55, %v8002_v57  ;;  %v2551_v29 = vmax.f32 %v2515_v26, 0.0  ;;  %v2909_v57 = vld [vmem:[#allocation2 + $0xd9] sm:$0xff]  ;;  %v2855_v55 = vld [vmem:[#allocation2 + $0x48] sm:$0xff] }
 0x3ae   : > { %4328 = vmatprep.mubr.f32.mxu1 %v4088_v10  ;;  %v3092_v18 = vld [vmem:[#allocation2 + $0xf6] sm:$0xff] }
 0x3af   : > { %8259 = vrot.lane.b32.xlu1 %v8258_v16, %s9025_s27  ;;  %v11495_v50 = vld [vmem:[#allocation2 + $0xf4] sm:$0xff]  ;;  %2802 = vst.msk [vmem:[#allocation2 + $0x103] sm:$0xff] %vm393_vm8, %v2766_v15  ;;  %4329 = vmatmul.mubr.f32.gmra.mrb[16].mxu1 %v3980_v61  ;;  %v2474_v16 = vmul.f32 %v11302_v4, %v11400_v30  ;;  %v8273_v15 = vpack.i.bf16 %v2909_v57, %v11470_v14 }
 0x3b0   : > { %v3056_v52 = vld [vmem:[#allocation2 + $0xf5] sm:$0xff]  ;;  %7594 = vmatprep.mubr.msk.f32.mxu0 %vm393_vm8, %v3092_v18  ;;  %v8263_v42 = vpack.i.bf16 %v11437_v54, %v11495_v50  ;;  %v8025_v8 = vpop.permute.xlu0 %8024  ;;  %v8005_v37 = vpop.permute.xlu1 %8004  ;;  %v8016_v54 = vunpack.i.l.bf16 %v8015_v28  ;;  %v8017_v18 = vunpack.i.h.bf16 %v8015_v28 }
 0x3b1   : > { %v8268_v24 = vpack.i.bf16 %v11491_v6, %v3056_v52  ;;  %v8007_v47 = vunpack.i.h.bf16 %v8005_v37  ;;  %v8006_v36 = vunpack.i.l.bf16 %v8005_v37  ;;  %v2965_v35 = vld [vmem:[#allocation2 + $0x5b] sm:$0xff]  ;;  %v11516_v37 = vld [vmem:[#allocation2 + $0xea] sm:$0xff]  ;;  %v2516_v14 = vadd.f32 %v11330_v13, %v2474_v16 }
 0x3b2   : > { %8264 = vrot.lane.b32.xlu0 %v8263_v42, %s9029_s28 }
 0x3b3   : > { %8269 = vrot.lane.b32.xlu1 %v8268_v24, %s9030_s30  ;;  %v4017_v10 = vsel %vm393_vm8, %v2965_v35, %v8006_v36  ;;  %v3907_v61 = vsel %vm393_vm8, %v2855_v55, %v8007_v47 }
 0x3b4   : > { %v8030_v52 = vpop.permute.xlu0 %8029  ;;  %v11509_v42 = vpop.permute.xlu1 %2713  ;;  %v4053_v26 = vsel %vm3934_vm11, %v4017_v10, %v8011_v58  ;;  %v3944_v30 = vsel %vm3934_vm11, %v3907_v61, %v8012_v5  ;;  %v8027_v10 = vunpack.i.h.bf16 %v8025_v8  ;;  %v8026_v61 = vunpack.i.l.bf16 %v8025_v8 }
 0x3b5   : > { %13306 = vst [vmem:[#allocation84_spill] sm:$0xff] %v11509_v42  ;;  %v2767_v9 = vmul.f32 %v11509_v42, %v2551_v29  ;;  %v4089_v24 = vsel %vm3971_vm12, %v4053_v26, %v8016_v54  ;;  %v3981_v28 = vsel %vm3971_vm12, %v3944_v30, %v8017_v18  ;;  %v2475_v54 = vmul.f32 %v11302_v4, %v11396_v45  ;;  %v2910_v18 = vld [vmem:[#allocation2 + $0xe1] sm:$0xff]  ;;  %v2856_v30 = vld [vmem:[#allocation2 + $0x50] sm:$0xff] }
 0x3b6   : > { %8274 = vrot.lane.b32.xlu0 %v8273_v15, %s9025_s27  ;;  %4333 = vmatprep.mubr.f32.mxu1 %v4089_v24  ;;  %v3093_v47 = vld [vmem:[#allocation2 + $0xfe] sm:$0xff]  ;;  %v2552_v15 = vmax.f32 %v2516_v14, 0.0 }
 0x3b7   : > { %v3057_v36 = vld [vmem:[#allocation2 + $0xfd] sm:$0xff]  ;;  %2803 = vst.msk [vmem:[#allocation2 + $0x10b] sm:$0xff] %vm393_vm8, %v2767_v9  ;;  %4334 = vmatmul.mubr.f32.gmra.mrb[18].mxu1 %v3981_v28  ;;  %7595 = vmatmul.mubr.msk.f32.gmra.mrb[62].mxu0 %vm393_vm8, %v3093_v47  ;;  %v8031_v9 = vunpack.i.l.bf16 %v8030_v52  ;;  %v8032_v47 = vunpack.i.h.bf16 %v8030_v52 }
 0x3b8   : > { %v11520_v57 = vld [vmem:[#allocation2 + $0xfc] sm:$0xff]  ;;  %v8283_v29 = vpack.i.bf16 %v11516_v37, %v3057_v36  ;;  %v8040_v58 = vpop.permute.xlu0 %8039  ;;  %v8020_v35 = vpop.permute.xlu1 %8019 }
 0x3b9   : > { %v8278_v5 = vpack.i.bf16 %v11465_v34, %v11520_v57  ;;  %v8022_v16 = vunpack.i.h.bf16 %v8020_v35  ;;  %v8021_v55 = vunpack.i.l.bf16 %v8020_v35  ;;  %v2966_v26 = vld [vmem:[#allocation2 + $0x63] sm:$0xff]  ;;  %v8288_v34 = vpack.i.bf16 %v2910_v18, %v11495_v50  ;;  %v11541_v35 = vld [vmem:[#allocation2 + $0xf2] sm:$0xff] }
 0x3ba   : > { %8284 = vrot.lane.b32.xlu0 %v8283_v29, %s9030_s30  ;;  %v2517_v50 = vadd.f32 %v11330_v13, %v2475_v54  ;;  %v11609_v25 = vld [vmem:[#allocation2 + $0x102] sm:$0xff] }
 0x3bb   : > { %8279 = vrot.lane.b32.xlu1 %v8278_v5, %s9029_s28  ;;  %v4018_v24 = vsel %vm393_vm8, %v2966_v26, %v8021_v55  ;;  %v3908_v28 = vsel %vm393_vm8, %v2856_v30, %v8022_v16 }
 0x3bc   : > { %v8045_v36 = vpop.permute.xlu0 %8044  ;;  %v11534_v29 = vpop.permute.xlu1 %2718  ;;  %v4054_v5 = vsel %vm3934_vm11, %v4018_v24, %v8026_v61  ;;  %v3945_v45 = vsel %vm3934_vm11, %v3908_v28, %v8027_v10  ;;  %v8042_v24 = vunpack.i.h.bf16 %v8040_v58  ;;  %v8041_v28 = vunpack.i.l.bf16 %v8040_v58 }
 0x3bd   : > { %13307 = vst [vmem:[#allocation85_spill] sm:$0xff] %v11534_v29  ;;  %v2768_v8 = vmul.f32 %v11534_v29, %v2552_v15  ;;  %v4090_v14 = vsel %vm3971_vm12, %v4054_v5, %v8031_v9  ;;  %v3982_v52 = vsel %vm3971_vm12, %v3945_v45, %v8032_v47  ;;  %v2553_v9 = vmax.f32 %v2517_v50, 0.0  ;;  %v2967_v5 = vld [vmem:[#allocation2 + $0x6b] sm:$0xff]  ;;  %v2857_v45 = vld [vmem:[#allocation2 + $0x58] sm:$0xff] }
 0x3be   : > { %4338 = vmatprep.mubr.f32.mxu1 %v4090_v14  ;;  %v3094_v16 = vld [vmem:[#allocation2 + $0x106] sm:$0xff]  ;;  %v8047_v50 = vunpack.i.h.bf16 %v8045_v36  ;;  %v11572_v29 = vld [vmem:[#allocation2 + $0xfa] sm:$0xff] }
 0x3bf   : > { %8289 = vrot.lane.b32.xlu1 %v8288_v34, %s9025_s27  ;;  %v11545_v55 = vld [vmem:[#allocation2 + $0x104] sm:$0xff]  ;;  %2804 = vst.msk [vmem:[#allocation2 + $0x113] sm:$0xff] %vm393_vm8, %v2768_v8  ;;  %4339 = vmatmul.mubr.f32.gmra.mrb[20].mxu1 %v3982_v52  ;;  %v2476_v34 = vmul.f32 %v11302_v4, %v11454_v63  ;;  %v8046_v8 = vunpack.i.l.bf16 %v8045_v36 }
 0x3c0   : > { %v3058_v18 = vld [vmem:[#allocation2 + $0x105] sm:$0xff]  ;;  %7597 = vmatprep.mubr.msk.f32.mxu0 %vm393_vm8, %v3094_v16  ;;  %v8293_v15 = vpack.i.bf16 %v11491_v6, %v11545_v55  ;;  %v11552_v61 = vpop.permute.xlu0 %8054  ;;  %v8035_v54 = vpop.permute.xlu1 %8034 }
 0x3c1   : > { %v8298_v10 = vpack.i.bf16 %v11541_v35, %v3058_v18  ;;  %v8037_v26 = vunpack.i.h.bf16 %v8035_v54  ;;  %v8036_v30 = vunpack.i.l.bf16 %v8035_v54  ;;  %v2911_v6 = vld [vmem:[#allocation2 + $0xe9] sm:$0xff] }
 0x3c2   : > { %8294 = vrot.lane.b32.xlu0 %v8293_v15, %s9029_s28  ;;  %v11558_v47 = vpop.f32.mrb[36].mxu0  ;;  %v8303_v52 = vpack.i.bf16 %v2911_v6, %v11520_v57  ;;  %v2518_v57 = vadd.f32 %v11330_v13, %v2476_v34 }
 0x3c3   : > { %8299 = vrot.lane.b32.xlu1 %v8298_v10, %s9030_s30  ;;  %v11560_v14 = vpop.f32.mrb[37].mxu0  ;;  %v4019_v16 = vsel %vm393_vm8, %v2967_v5, %v8036_v30  ;;  %v3909_v18 = vsel %vm393_vm8, %v2857_v45, %v8037_v26 }
 0x3c4   : > { %v8060_v15 = vpop.permute.xlu0 %8059  ;;  %v11565_v10 = vpop.permute.xlu1 %2723  ;;  %v4055_v63 = vsel %vm3934_vm11, %v4019_v16, %v8041_v28  ;;  %v3946_v58 = vsel %vm3934_vm11, %v3909_v18, %v8042_v24  ;;  %v2554_v16 = vmax.f32 %v2518_v57, 0.0  ;;  %v8057_v18 = vunpack.i.h.bf16 %v11552_v61 }
 0x3c5   : > { %13308 = vst [vmem:[#allocation110_spill] sm:$0xff] %v11565_v10  ;;  %v2769_v54 = vmul.f32 %v11565_v10, %v2553_v9  ;;  %v4091_v33 = vsel %vm3971_vm12, %v4055_v63, %v8046_v8  ;;  %v3983_v36 = vsel %vm3971_vm12, %v3946_v58, %v8047_v50  ;;  %v8056_v50 = vunpack.i.l.bf16 %v11552_v61  ;;  %v2968_v58 = vld [vmem:[#allocation2 + $0x73] sm:$0xff] }
 0x3c6   : > { %8304 = vrot.lane.b32.xlu0 %v8303_v52, %s9025_s27  ;;  %4343 = vmatprep.mubr.f32.mxu1 %v4091_v33  ;;  %v11575_v26 = vpop.f32.mrb[38].mxu0  ;;  %v3095_v30 = vld [vmem:[#allocation2 + $0x10e] sm:$0xff]  ;;  %v2477_v52 = vmul.f32 %v11302_v4, %v11450_v3  ;;  %v8062_v4 = vunpack.i.h.bf16 %v8060_v15 }
 0x3c7   : > { %v3059_v6 = vld [vmem:[#allocation2 + $0x10d] sm:$0xff]  ;;  %2805 = vst.msk [vmem:[#allocation2 + $0x11b] sm:$0xff] %vm393_vm8, %v2769_v54  ;;  %4344 = vmatmul.mubr.f32.gmra.mrb[22].mxu1 %v3983_v36  ;;  %v11581_v9 = vpop.f32.mrb[39].mxu0  ;;  %7598 = vmatmul.mubr.msk.f32.gmra.mrb[64].mxu0 %vm393_vm8, %v3095_v30  ;;  %v2858_v54 = vld [vmem:[#allocation2 + $0x60] sm:$0xff]  ;;  %v8061_v36 = vunpack.i.l.bf16 %v8060_v15 }
 0x3c8   : > { %v11578_v28 = vld [vmem:[#allocation2 + $0x10c] sm:$0xff]  ;;  %v8313_v24 = vpack.i.bf16 %v11572_v29, %v3059_v6  ;;  %v11587_v34 = vpop.permute.xlu0 %8069  ;;  %v8050_v5 = vpop.permute.xlu1 %8049 }
 0x3c9   : > { %v8308_v33 = vpack.i.bf16 %v11516_v37, %v11578_v28  ;;  %v8052_v45 = vunpack.i.h.bf16 %v8050_v5  ;;  %v8051_v8 = vunpack.i.l.bf16 %v8050_v5  ;;  %v2912_v37 = vld [vmem:[#allocation2 + $0xf1] sm:$0xff] }
 0x3ca   : > { %8314 = vrot.lane.b32.xlu0 %v8313_v24, %s9030_s30  ;;  %v11595_v63 = vpop.f32.mrb[40].mxu0  ;;  %v8318_v6 = vpack.i.bf16 %v2912_v37, %v11545_v55  ;;  %v2519_v55 = vadd.f32 %v11330_v13, %v2477_v52 }
 0x3cb   : > { %8309 = vrot.lane.b32.xlu1 %v8308_v33, %s9029_s28  ;;  %v11597_v30 = vpop.f32.mrb[41].mxu0  ;;  %v4020_v24 = vsel %vm393_vm8, %v2968_v58, %v8051_v8  ;;  %v3910_v33 = vsel %vm393_vm8, %v2858_v54, %v8052_v45 }
 0x3cc   : > { %v8075_v3 = vpop.permute.xlu0 %8074  ;;  %v11602_v57 = vpop.permute.xlu1 %2728  ;;  %v4056_v61 = vsel %vm3934_vm11, %v4020_v24, %v8056_v50  ;;  %v3947_v5 = vsel %vm3934_vm11, %v3910_v33, %v8057_v18  ;;  %v2913_v24 = vld [vmem:[#allocation2 + $0xf9] sm:$0xff] }
 0x3cd   : > { %13309 = vst [vmem:[#allocation9_spill] sm:$0xff] %v11602_v57  ;;  %v2770_v10 = vmul.f32 %v11602_v57, %v2554_v16  ;;  %v4092_v42 = vsel %vm3971_vm12, %v4056_v61, %v8061_v36  ;;  %v3984_v15 = vsel %vm3971_vm12, %v3947_v5, %v8062_v4  ;;  %v2555_v36 = vmax.f32 %v2519_v55, 0.0  ;;  %v2969_v33 = vld [vmem:[#allocation2 + $0x7b] sm:$0xff]  ;;  %v2859_v4 = vld [vmem:[#allocation2 + $0x68] sm:$0xff]  ;;  %v11664_v57 = vld [vmem:[#allocation2 + $0x112] sm:$0xff] }
 0x3ce   : > { %4348 = vmatprep.mubr.f32.mxu1 %v4092_v42  ;;  %v11612_v45 = vpop.f32.mrb[42].mxu0  ;;  %v3096_v8 = vld [vmem:[#allocation2 + $0x116] sm:$0xff]  ;;  %v8333_v61 = vpack.i.bf16 %v2913_v24, %v11578_v28  ;;  %v11639_v28 = vld [vmem:[#allocation2 + $0x10a] sm:$0xff] }
 0x3cf   : > { %8319 = vrot.lane.b32.xlu1 %v8318_v6, %s9025_s27  ;;  %v3024_v37 = vld [vmem:[#allocation2 + $0x114] sm:$0xff]  ;;  %2806 = vst.msk [vmem:[#allocation2 + $0x123] sm:$0xff] %vm393_vm8, %v2770_v10  ;;  %4349 = vmatmul.mubr.f32.gmra.mrb[24].mxu1 %v3984_v15  ;;  %v11616_v16 = vpop.f32.mrb[43].mxu0  ;;  %v8072_v10 = vunpack.i.h.bf16 %v11587_v34  ;;  %v8071_v6 = vunpack.i.l.bf16 %v11587_v34 }
 0x3d0   : > { %v3060_v50 = vld [vmem:[#allocation2 + $0x115] sm:$0xff]  ;;  %7600 = vmatprep.mubr.msk.f32.mxu0 %vm393_vm8, %v3096_v8  ;;  %v8323_v18 = vpack.i.bf16 %v11541_v35, %v3024_v37  ;;  %v11621_v13 = vpop.permute.xlu0 %8084  ;;  %v8065_v42 = vpop.permute.xlu1 %8064  ;;  %v8076_v35 = vunpack.i.l.bf16 %v8075_v3  ;;  %v8077_v8 = vunpack.i.h.bf16 %v8075_v3 }
 0x3d1   : > { %v8328_v58 = vpack.i.bf16 %v11609_v25, %v3060_v50  ;;  %v8067_v52 = vunpack.i.h.bf16 %v8065_v42  ;;  %v8066_v54 = vunpack.i.l.bf16 %v8065_v42 }
 0x3d2   : > { %8324 = vrot.lane.b32.xlu0 %v8323_v18, %s9029_s28 }
 0x3d3   : > { %8329 = vrot.lane.b32.xlu1 %v8328_v58, %s9030_s30  ;;  %v4021_v5 = vsel %vm393_vm8, %v2969_v33, %v8066_v54  ;;  %v3911_v15 = vsel %vm393_vm8, %v2859_v4, %v8067_v52 }
 0x3d4   : > { %v11630_v50 = vpop.permute.xlu0 %8094  ;;  %v11632_v18 = vpop.permute.xlu1 %2733  ;;  %v4057_v55 = vsel %vm3934_vm11, %v4021_v5, %v8071_v6  ;;  %v3948_v58 = vsel %vm3934_vm11, %v3911_v15, %v8072_v10  ;;  %v2914_v15 = vld [vmem:[#allocation2 + $0x101] sm:$0xff] }
 0x3d5   : > { %13310 = vst [vmem:[#allocation10_spill] sm:$0xff] %v11632_v18  ;;  %v2771_v34 = vmul.f32 %v11632_v18, %v2555_v36  ;;  %v4093_v42 = vsel %vm3971_vm12, %v4057_v55, %v8076_v35  ;;  %v3985_v52 = vsel %vm3971_vm12, %v3948_v58, %v8077_v8  ;;  %v8348_v8 = vpack.i.bf16 %v2914_v15, %v3024_v37  ;;  %v2970_v55 = vld [vmem:[#allocation2 + $0x83] sm:$0xff]  ;;  %v2860_v58 = vld [vmem:[#allocation2 + $0x70] sm:$0xff] }
 0x3d6   : > { %8334 = vrot.lane.b32.xlu0 %v8333_v61, %s9025_s27  ;;  %4353 = vmatprep.mubr.f32.mxu1 %v4093_v42  ;;  %v3097_v3 = vld [vmem:[#allocation2 + $0x11e] sm:$0xff] }
 0x3d7   : > { %v3061_v54 = vld [vmem:[#allocation2 + $0x11d] sm:$0xff]  ;;  %2807 = vst.msk [vmem:[#allocation2 + $0x12b] sm:$0xff] %vm393_vm8, %v2771_v34  ;;  %v11645_v6 = vpop.f32.mrb[44].mxu0  ;;  %4354 = vmatmul.mubr.f32.gmra.mrb[26].mxu1 %v3985_v52  ;;  %7601 = vmatmul.mubr.msk.f32.gmra.mrb[66].mxu0 %vm393_vm8, %v3097_v3  ;;  %v8087_v52 = vunpack.i.h.bf16 %v11621_v13  ;;  %v8086_v3 = vunpack.i.l.bf16 %v11621_v13 }
 0x3d8   : > { %v11642_v24 = vld [vmem:[#allocation2 + $0x11c] sm:$0xff]  ;;  %v8343_v36 = vpack.i.bf16 %v11639_v28, %v3061_v54  ;;  %v8105_v33 = vpop.permute.xlu0 %8104  ;;  %v11651_v4 = vpop.f32.mrb[45].mxu0 }
 0x3d9   : > { %v8338_v10 = vpack.i.bf16 %v11572_v29, %v11642_v24  ;;  %v8080_v35 = vpop.permute.xlu1 %8079 }
 0x3da   : > { %8344 = vrot.lane.b32.xlu0 %v8343_v36, %s9030_s30  ;;  %v8082_v61 = vunpack.i.h.bf16 %v8080_v35  ;;  %v8081_v5 = vunpack.i.l.bf16 %v8080_v35  ;;  %v8097_v36 = vunpack.i.h.bf16 %v11630_v50 }
 0x3db   : > { %8339 = vrot.lane.b32.xlu1 %v8338_v10, %s9029_s28  ;;  %v8096_v10 = vunpack.i.l.bf16 %v11630_v50 }
 0x3dc   : > { %v11655_v34 = vpop.permute.xlu0 %8114  ;;  %v4022_v42 = vsel %vm393_vm8, %v2970_v55, %v8081_v5  ;;  %v3912_v29 = vsel %vm393_vm8, %v2860_v58, %v8082_v61 }
 0x3dd   : > { %v8090_v54 = vpop.permute.xlu1 %8089  ;;  %v4058_v5 = vsel %vm3934_vm11, %v4022_v42, %v8086_v3  ;;  %v3949_v61 = vsel %vm3934_vm11, %v3912_v29, %v8087_v52  ;;  %v2861_v29 = vld [vmem:[#allocation2 + $0x78] sm:$0xff]  ;;  %v8107_v52 = vunpack.i.h.bf16 %v8105_v33 }
 0x3de   : > { %v8092_v37 = vunpack.i.h.bf16 %v8090_v54  ;;  %v8091_v35 = vunpack.i.l.bf16 %v8090_v54  ;;  %v3026_v15 = vld [vmem:[#allocation2 + $0x124] sm:$0xff]  ;;  %v11675_v60 = vld [vmem:[#allocation2 + $0x12c] sm:$0xff] }
 0x3df   : > { %8349 = vrot.lane.b32.xlu1 %v8348_v8, %s9025_s27  ;;  %v3062_v18 = vld [vmem:[#allocation2 + $0x125] sm:$0xff]  ;;  %v8353_v55 = vpack.i.bf16 %v11609_v25, %v3026_v15  ;;  %v4023_v25 = vsel %vm393_vm8, %v2971_v31, %v8096_v10 }
 0x3e0   : > { %v8358_v13 = vpack.i.bf16 %v11664_v57, %v3062_v18  ;;  %v11670_v58 = vpop.permute.xlu0 %8124  ;;  %v4094_v8 = vsel %vm3971_vm12, %v4058_v5, %v8091_v35  ;;  %v3986_v50 = vsel %vm3971_vm12, %v3949_v61, %v8092_v37  ;;  %v2915_v18 = vld [vmem:[#allocation2 + $0x109] sm:$0xff]  ;;  %v8106_v35 = vunpack.i.l.bf16 %v8105_v33 }
 0x3e1   : > { %4358 = vmatprep.mubr.f32.mxu1 %v4094_v8  ;;  %v8100_v54 = vpop.permute.xlu1 %8099  ;;  %8354 = vrot.lane.b32.xlu0 %v8353_v55, %s9029_s28  ;;  %v8363_v37 = vpack.i.bf16 %v2915_v18, %v11642_v24  ;;  %v3913_v5 = vsel %vm393_vm8, %v2861_v29, %v8097_v36  ;;  %v8368_v8 = vpack.i.bf16 %v11639_v28, %v11675_v60  ;;  %v2953_v36 = vld [vmem:[#allocation2 + $0x11a] sm:$0xff] }
 0x3e2   : > { %v8102_v42 = vunpack.i.h.bf16 %v8100_v54  ;;  %v8101_v3 = vunpack.i.l.bf16 %v8100_v54  ;;  %4359 = vmatmul.mubr.f32.gmra.mrb[28].mxu1 %v3986_v50  ;;  %v2972_v18 = vld [vmem:[#allocation2 + $0x93] sm:$0xff] }
 0x3e3   : > { %8359 = vrot.lane.b32.xlu1 %v8358_v13, %s9030_s30  ;;  %v3063_v13 = vld [vmem:[#allocation2 + $0x12d] sm:$0xff] }
 0x3e4   : > { %v11681_v61 = vpop.permute.xlu0 %8134  ;;  %v4059_v55 = vsel %vm3934_vm11, %v4023_v25, %v8101_v3  ;;  %v3950_v50 = vsel %vm3934_vm11, %v3913_v5, %v8102_v42  ;;  %v2862_v3 = vld [vmem:[#allocation2 + $0x80] sm:$0xff]  ;;  %v8373_v28 = vpack.i.bf16 %v2953_v36, %v3063_v13  ;;  %v2916_v42 = vld [vmem:[#allocation2 + $0x111] sm:$0xff] }
 0x3e5   : > { %v8110_v54 = vpop.permute.xlu1 %8109  ;;  %v4095_v31 = vsel %vm3971_vm12, %v4059_v55, %v8106_v35  ;;  %8364 = vrot.lane.b32.xlu0 %v8363_v37, %s9025_s27  ;;  %v3987_v33 = vsel %vm3971_vm12, %v3950_v50, %v8107_v52  ;;  %v3028_v29 = vld [vmem:[#allocation2 + $0x134] sm:$0xff]  ;;  %v8378_v37 = vpack.i.bf16 %v2916_v42, %v3026_v15  ;;  %v8116_v50 = vunpack.i.l.bf16 %v11655_v34  ;;  %v2954_v13 = vld [vmem:[#allocation2 + $0x122] sm:$0xff] }
 0x3e6   : > { %v8112_v24 = vunpack.i.h.bf16 %v8110_v54  ;;  %v8111_v10 = vunpack.i.l.bf16 %v8110_v54  ;;  %4363 = vmatprep.mubr.f32.mxu1 %v4095_v31  ;;  %v3064_v31 = vld [vmem:[#allocation2 + $0x135] sm:$0xff]  ;;  %v8383_v12 = vpack.i.bf16 %v11664_v57, %v3028_v29  ;;  %v8127_v15 = vunpack.i.h.bf16 %v11670_v58 }
 0x3e7   : > { %8369 = vrot.lane.b32.xlu1 %v8368_v8, %s9029_s28  ;;  %4364 = vmatmul.mubr.f32.gmra.mrb[30].mxu1 %v3987_v33  ;;  %v11691_v25 = vpop.f32.mrb[46].mxu0  ;;  %v8117_v8 = vunpack.i.h.bf16 %v11655_v34  ;;  %v2917_v57 = vld [vmem:[#allocation2 + $0x119] sm:$0xff] }
 0x3e8   : > { %v11693_v5 = vpop.permute.xlu0 %8144  ;;  %v11695_v35 = vpop.f32.mrb[47].mxu0  ;;  %v4024_v52 = vsel %vm393_vm8, %v2972_v18, %v8111_v10  ;;  %v3914_v55 = vsel %vm393_vm8, %v2862_v3, %v8112_v24  ;;  %v8126_v10 = vunpack.i.l.bf16 %v11670_v58  ;;  %v8388_v18 = vpack.i.bf16 %v2954_v13, %v3064_v31  ;;  %v3029_v29 = vld [vmem:[#allocation2 + $0x13c] sm:$0xff] }
 0x3e9   : > { %v8120_v54 = vpop.permute.xlu1 %8119  ;;  %8374 = vrot.lane.b32.xlu0 %v8373_v28, %s9030_s30  ;;  %v4060_v24 = vsel %vm3934_vm11, %v4024_v52, %v8116_v50  ;;  %v3951_v3 = vsel %vm3934_vm11, %v3914_v55, %v8117_v8  ;;  %v2973_v58 = vld [vmem:[#allocation2 + $0x9b] sm:$0xff]  ;;  %v8393_v52 = vpack.i.bf16 %v2917_v57, %v11675_v60  ;;  %v2863_v55 = vld [vmem:[#allocation2 + $0x88] sm:$0xff]  ;;  %v8136_v8 = vunpack.i.l.bf16 %v11681_v61 }
 0x3ea   : > { %v8122_v33 = vunpack.i.h.bf16 %v8120_v54  ;;  %v8121_v32 = vunpack.i.l.bf16 %v8120_v54  ;;  %v4025_v50 = vsel %vm393_vm8, %v2973_v58, %v8126_v10  ;;  %v3915_v13 = vsel %vm393_vm8, %v2863_v55, %v8127_v15 }
 0x3eb   : > { %8379 = vrot.lane.b32.xlu1 %v8378_v37, %s9025_s27  ;;  %v8146_v58 = vunpack.i.l.bf16 %v11693_v5 }
 0x3ec   : > { %v11708_v34 = vpop.permute.xlu0 %8154  ;;  %v4096_v28 = vsel %vm3971_vm12, %v4060_v24, %v8121_v32  ;;  %v3988_v42 = vsel %vm3971_vm12, %v3951_v3, %v8122_v33  ;;  %v8137_v32 = vunpack.i.h.bf16 %v11681_v61  ;;  %v8398_v33 = vpack.i.bf16 %v2953_v36, %v3029_v29  ;;  %v2955_v3 = vld [vmem:[#allocation2 + $0x12a] sm:$0xff] }
 0x3ed   : > { %4368 = vmatprep.mubr.f32.mxu1 %v4096_v28  ;;  %v8130_v54 = vpop.permute.xlu1 %8129  ;;  %8384 = vrot.lane.b32.xlu0 %v8383_v12, %s9029_s28  ;;  %v3065_v28 = vld [vmem:[#allocation2 + $0x13d] sm:$0xff]  ;;  %v2864_v36 = vld [vmem:[#allocation2 + $0x90] sm:$0xff]  ;;  %v8157_v55 = vunpack.i.h.bf16 %v11708_v34 }
 0x3ee   : > { %v8132_v37 = vunpack.i.h.bf16 %v8130_v54  ;;  %v8131_v17 = vunpack.i.l.bf16 %v8130_v54  ;;  %4369 = vmatmul.mubr.f32.gmra.mrb[32].mxu1 %v3988_v42  ;;  %v8403_v15 = vpack.i.bf16 %v2955_v3, %v3065_v28 }
 0x3ef   : > { %8389 = vrot.lane.b32.xlu1 %v8388_v18, %s9030_s30 }
 0x3f0   : > { %v8165_v12 = vpop.permute.xlu0 %8164  ;;  %v4061_v31 = vsel %vm3934_vm11, %v4025_v50, %v8131_v17  ;;  %v3952_v24 = vsel %vm3934_vm11, %v3915_v13, %v8132_v37  ;;  %v2974_v17 = vld [vmem:[#allocation2 + $0xa3] sm:$0xff]  ;;  %v8147_v37 = vunpack.i.h.bf16 %v11693_v5 }
 0x3f1   : > { %v8140_v42 = vpop.permute.xlu1 %8139  ;;  %v4097_v60 = vsel %vm3971_vm12, %v4061_v31, %v8136_v8  ;;  %8394 = vrot.lane.b32.xlu0 %v8393_v52, %s9025_s27  ;;  %v3989_v18 = vsel %vm3971_vm12, %v3952_v24, %v8137_v32  ;;  %v7309_v50 = vld [vmem:[%s13034_s5 + $0x220] sm:$0xff]  ;;  %v7310_v13 = vld [vmem:[%s13034_s5 + $0x228] sm:$0xff]  ;;  %v8156_v31 = vunpack.i.l.bf16 %v11708_v34 }
 0x3f2   : > { %v8142_v61 = vunpack.i.h.bf16 %v8140_v42  ;;  %v8141_v54 = vunpack.i.l.bf16 %v8140_v42  ;;  %4373 = vmatprep.mubr.f32.mxu1 %v4097_v60  ;;  %v11742_v3 = vpack.c.bf16 %v7310_v13, %v7309_v50 }
 0x3f3   : > { %8399 = vrot.lane.b32.xlu1 %v8398_v33, %s9029_s28  ;;  %4374 = vmatmul.mubr.f32.gmra.mrb[34].mxu1 %v3989_v18 }
 0x3f4   : > { %v8175_v10 = vpop.permute.xlu0 %8174  ;;  %v4026_v57 = vsel %vm393_vm8, %v2974_v17, %v8141_v54  ;;  %v3916_v29 = vsel %vm393_vm8, %v2864_v36, %v8142_v61  ;;  %7795 = vmatprep.subr.bf16.mxu1 %v11742_v3  ;;  %v2865_v17 = vld [vmem:[#allocation2 + $0x98] sm:$0xff]  ;;  %v8167_v36 = vunpack.i.h.bf16 %v8165_v12 }
 0x3f5   : > { %v8150_v52 = vpop.permute.xlu1 %8149  ;;  %8404 = vrot.lane.b32.xlu0 %v8403_v15, %s9030_s30  ;;  %v4062_v5 = vsel %vm3934_vm11, %v4026_v57, %v8146_v58  ;;  %v3953_v24 = vsel %vm3934_vm11, %v3916_v29, %v8147_v37  ;;  %v2975_v15 = vld [vmem:[#allocation2 + $0xab] sm:$0xff]  ;;  %v8166_v57 = vunpack.i.l.bf16 %v8165_v12  ;;  %v3917_v37 = vsel %vm393_vm8, %v2865_v17, %v8157_v55  ;;  %v2866_v12 = vld [vmem:[#allocation2 + $0xa0] sm:$0xff] }
 0x3f6   : > { %v8152_v32 = vunpack.i.h.bf16 %v8150_v52  ;;  %v8151_v8 = vunpack.i.l.bf16 %v8150_v52  ;;  %v4027_v29 = vsel %vm393_vm8, %v2975_v15, %v8156_v31 }
 0x3f7   : > { %v11738_v33 = vpop.f32.mrb[48].mxu0 }
 0x3f8   : > { %v11744_v28 = vpop.f32.mrb[49].mxu0  ;;  %v4098_v42 = vsel %vm3971_vm12, %v4062_v5, %v8151_v8  ;;  %v3990_v60 = vsel %vm3971_vm12, %v3953_v24, %v8152_v32  ;;  %v8185_v18 = vpop.permute.xlu0 %8184 }
 0x3f9   : > { %4378 = vmatprep.mubr.f32.mxu1 %v4098_v42  ;;  %v8160_v61 = vpop.permute.xlu1 %8159  ;;  %v2976_v42 = vld [vmem:[#allocation2 + $0xb3] sm:$0xff]  ;;  %v8187_v17 = vunpack.i.h.bf16 %v8185_v18 }
 0x3fa   : > { %v8162_v34 = vunpack.i.h.bf16 %v8160_v61  ;;  %v8161_v54 = vunpack.i.l.bf16 %v8160_v61  ;;  %4379 = vmatmul.mubr.f32.gmra.mrb[36].mxu1 %v3990_v60  ;;  %v8177_v60 = vunpack.i.h.bf16 %v8175_v10  ;;  %v8176_v61 = vunpack.i.l.bf16 %v8175_v10  ;;  %v2977_v10 = vld [vmem:[#allocation2 + $0xbb] sm:$0xff] }
 0x3fc   : > { %v4063_v58 = vsel %vm3934_vm11, %v4027_v29, %v8161_v54  ;;  %v3954_v52 = vsel %vm3934_vm11, %v3917_v37, %v8162_v34  ;;  %v8195_v24 = vpop.permute.xlu0 %8194 }
 0x3fd   : > { %v8170_v32 = vpop.permute.xlu1 %8169  ;;  %v4099_v8 = vsel %vm3971_vm12, %v4063_v58, %v8166_v57  ;;  %v3991_v50 = vsel %vm3971_vm12, %v3954_v52, %v8167_v36  ;;  %v8186_v57 = vunpack.i.l.bf16 %v8185_v18 }
 0x3fe   : > { %v8172_v13 = vunpack.i.h.bf16 %v8170_v32  ;;  %v8171_v5 = vunpack.i.l.bf16 %v8170_v32  ;;  %4383 = vmatprep.mubr.f32.mxu1 %v4099_v8 }
 0x3ff   : > { %4384 = vmatmul.mubr.f32.gmra.mrb[38].mxu1 %v3991_v50  ;;  %v4029_v18 = vsel %vm393_vm8, %v2977_v10, %v8186_v57  ;;  %v2868_v57 = vld [vmem:[#allocation2 + $0xb0] sm:$0xff] }
 0x400   : > { %v4028_v31 = vsel %vm393_vm8, %v2976_v42, %v8171_v5  ;;  %v3918_v55 = vsel %vm393_vm8, %v2866_v12, %v8172_v13  ;;  %v2867_v13 = vld [vmem:[#allocation2 + $0xa8] sm:$0xff]  ;;  %v8197_v5 = vunpack.i.h.bf16 %v8195_v24  ;;  %v8196_v42 = vunpack.i.l.bf16 %v8195_v24 }
 0x401   : > { %v8180_v54 = vpop.permute.xlu1 %8179  ;;  %v4064_v36 = vsel %vm3934_vm11, %v4028_v31, %v8176_v61  ;;  %v3955_v37 = vsel %vm3934_vm11, %v3918_v55, %v8177_v60  ;;  %v3919_v31 = vsel %vm393_vm8, %v2867_v13, %v8187_v17 }
 0x402   : > { %v8182_v34 = vunpack.i.h.bf16 %v8180_v54  ;;  %v8181_v15 = vunpack.i.l.bf16 %v8180_v54 }
 0x404   : > { %v8205_v29 = vpop.permute.xlu0 %8204  ;;  %v4100_v58 = vsel %vm3971_vm12, %v4064_v36, %v8181_v15  ;;  %v3992_v52 = vsel %vm3971_vm12, %v3955_v37, %v8182_v34 }
 0x405   : > { %4388 = vmatprep.mubr.f32.mxu1 %v4100_v58  ;;  %v8190_v32 = vpop.permute.xlu1 %8189  ;;  %v2978_v58 = vld [vmem:[#allocation2 + $0xc3] sm:$0xff] }
 0x406   : > { %v8192_v8 = vunpack.i.h.bf16 %v8190_v32  ;;  %v8191_v50 = vunpack.i.l.bf16 %v8190_v32  ;;  %4389 = vmatmul.mubr.f32.gmra.mrb[40].mxu1 %v3992_v52  ;;  %v8207_v32 = vunpack.i.h.bf16 %v8205_v29 }
 0x407   : > { %v11761_v12 = vpop.f32.mrb[50].mxu0 }
 0x408   : > { %v11765_v55 = vpop.f32.mrb[51].mxu0  ;;  %v4065_v60 = vsel %vm3934_vm11, %v4029_v18, %v8191_v50  ;;  %v3956_v61 = vsel %vm3934_vm11, %v3919_v31, %v8192_v8  ;;  %v8215_v54 = vpop.permute.xlu0 %8214  ;;  %v8206_v50 = vunpack.i.l.bf16 %v8205_v29  ;;  %v2979_v29 = vld [vmem:[#allocation2 + $0xcb] sm:$0xff] }
 0x409   : > { %v8200_v34 = vpop.permute.xlu1 %8199  ;;  %v4101_v15 = vsel %vm3971_vm12, %v4065_v60, %v8196_v42  ;;  %v3993_v36 = vsel %vm3971_vm12, %v3956_v61, %v8197_v5  ;;  %v8217_v18 = vunpack.i.h.bf16 %v8215_v54  ;;  %v8216_v31 = vunpack.i.l.bf16 %v8215_v54 }
 0x40a   : > { %v8202_v37 = vunpack.i.h.bf16 %v8200_v34  ;;  %v8201_v24 = vunpack.i.l.bf16 %v8200_v34  ;;  %4393 = vmatprep.mubr.f32.mxu1 %v4101_v15 }
 0x40b   : > { %4394 = vmatmul.mubr.f32.gmra.mrb[42].mxu1 %v3993_v36  ;;  %v4031_v54 = vsel %vm393_vm8, %v2979_v29, %v8216_v31  ;;  %v2870_v31 = vld [vmem:[#allocation2 + $0xc0] sm:$0xff] }
 0x40c   : > { %v4030_v17 = vsel %vm393_vm8, %v2978_v58, %v8201_v24  ;;  %v3920_v52 = vsel %vm393_vm8, %v2868_v57, %v8202_v37  ;;  %v8225_v42 = vpop.permute.xlu0 %8224  ;;  %v2869_v24 = vld [vmem:[#allocation2 + $0xb8] sm:$0xff] }
 0x40d   : > { %v8210_v10 = vpop.permute.xlu1 %8209  ;;  %v4066_v5 = vsel %vm3934_vm11, %v4030_v17, %v8206_v50  ;;  %v3957_v60 = vsel %vm3934_vm11, %v3920_v52, %v8207_v32  ;;  %v8227_v58 = vunpack.i.h.bf16 %v8225_v42  ;;  %v8226_v57 = vunpack.i.l.bf16 %v8225_v42 }
 0x40e   : > { %v8212_v8 = vunpack.i.h.bf16 %v8210_v10  ;;  %v8211_v13 = vunpack.i.l.bf16 %v8210_v10  ;;  %v3921_v17 = vsel %vm393_vm8, %v2869_v24, %v8217_v18 }
 0x410   : > { %v4102_v61 = vsel %vm3971_vm12, %v4066_v5, %v8211_v13  ;;  %v3994_v34 = vsel %vm3971_vm12, %v3957_v60, %v8212_v8 }
 0x411   : > { %4398 = vmatprep.mubr.f32.mxu1 %v4102_v61  ;;  %v8220_v15 = vpop.permute.xlu1 %8219 }
 0x412   : > { %v8222_v36 = vunpack.i.h.bf16 %v8220_v15  ;;  %v8221_v37 = vunpack.i.l.bf16 %v8220_v15  ;;  %4399 = vmatmul.mubr.f32.gmra.mrb[44].mxu1 %v3994_v34  ;;  %v2980_v34 = vld [vmem:[#allocation2 + $0xd3] sm:$0xff] }
 0x414   : > { %v8235_v10 = vpop.permute.xlu0 %8234  ;;  %v4067_v52 = vsel %vm3934_vm11, %v4031_v54, %v8221_v37  ;;  %v3958_v32 = vsel %vm3934_vm11, %v3921_v17, %v8222_v36 }
 0x415   : > { %v8230_v50 = vpop.permute.xlu1 %8229  ;;  %v4103_v8 = vsel %vm3971_vm12, %v4067_v52, %v8226_v57  ;;  %v3995_v13 = vsel %vm3971_vm12, %v3958_v32, %v8227_v58  ;;  %v8237_v37 = vunpack.i.h.bf16 %v8235_v10  ;;  %v8236_v29 = vunpack.i.l.bf16 %v8235_v10  ;;  %v2981_v10 = vld [vmem:[#allocation2 + $0xdb] sm:$0xff] }
 0x416   : > { %v8232_v5 = vunpack.i.h.bf16 %v8230_v50  ;;  %v8231_v60 = vunpack.i.l.bf16 %v8230_v50  ;;  %4403 = vmatprep.mubr.f32.mxu1 %v4103_v8 }
 0x417   : > { %4404 = vmatmul.mubr.f32.gmra.mrb[46].mxu1 %v3995_v13  ;;  %v11783_v61 = vpop.f32.mrb[52].mxu0 }
 0x418   : > { %v8245_v42 = vpop.permute.xlu0 %8244  ;;  %v11785_v15 = vpop.f32.mrb[53].mxu0  ;;  %v4032_v18 = vsel %vm393_vm8, %v2980_v34, %v8231_v60  ;;  %v3922_v36 = vsel %vm393_vm8, %v2870_v31, %v8232_v5  ;;  %v2871_v31 = vld [vmem:[#allocation2 + $0xc8] sm:$0xff] }
 0x419   : > { %v8240_v24 = vpop.permute.xlu1 %8239  ;;  %v8247_v54 = vunpack.i.h.bf16 %v8245_v42  ;;  %v8246_v17 = vunpack.i.l.bf16 %v8245_v42  ;;  %v4068_v52 = vsel %vm3934_vm11, %v4032_v18, %v8236_v29  ;;  %v3959_v32 = vsel %vm3934_vm11, %v3922_v36, %v8237_v37 }
 0x41a   : > { %v8242_v57 = vunpack.i.h.bf16 %v8240_v24  ;;  %v8241_v58 = vunpack.i.l.bf16 %v8240_v24 }
 0x41b   : > { %v4033_v42 = vsel %vm393_vm8, %v2981_v10, %v8246_v17  ;;  %v3923_v18 = vsel %vm393_vm8, %v2871_v31, %v8247_v54  ;;  %v2872_v17 = vld [vmem:[#allocation2 + $0xd0] sm:$0xff] }
 0x41c   : > { %v8255_v50 = vpop.permute.xlu0 %8254  ;;  %v4104_v8 = vsel %vm3971_vm12, %v4068_v52, %v8241_v58  ;;  %v3996_v13 = vsel %vm3971_vm12, %v3959_v32, %v8242_v57 }
 0x41d   : > { %4408 = vmatprep.mubr.f32.mxu1 %v4104_v8  ;;  %v8250_v60 = vpop.permute.xlu1 %8249  ;;  %v8257_v49 = vunpack.i.h.bf16 %v8255_v50  ;;  %v8256_v24 = vunpack.i.l.bf16 %v8255_v50 }
 0x41e   : > { %v8252_v34 = vunpack.i.h.bf16 %v8250_v60  ;;  %v8251_v5 = vunpack.i.l.bf16 %v8250_v60  ;;  %4409 = vmatmul.mubr.f32.gmra.mrb[48].mxu1 %v3996_v13  ;;  %v2982_v60 = vld [vmem:[#allocation2 + $0xe3] sm:$0xff] }
 0x420   : > { %v4069_v36 = vsel %vm3934_vm11, %v4033_v42, %v8251_v5  ;;  %v3960_v37 = vsel %vm3934_vm11, %v3923_v18, %v8252_v34 }
 0x421   : > { %v8260_v29 = vpop.permute.xlu1 %8259  ;;  %v4105_v57 = vsel %vm3971_vm12, %v4069_v36, %v8256_v24  ;;  %v3997_v58 = vsel %vm3971_vm12, %v3960_v37, %v8257_v49 }
 0x422   : > { %v8262_v52 = vunpack.i.h.bf16 %v8260_v29  ;;  %v8261_v32 = vunpack.i.l.bf16 %v8260_v29  ;;  %4413 = vmatprep.mubr.f32.mxu1 %v4105_v57 }
 0x423   : > { %4414 = vmatmul.mubr.f32.gmra.mrb[50].mxu1 %v3997_v58 }
 0x424   : > { %v8265_v8 = vpop.permute.xlu0 %8264  ;;  %v4034_v54 = vsel %vm393_vm8, %v2982_v60, %v8261_v32  ;;  %v3924_v5 = vsel %vm393_vm8, %v2872_v17, %v8262_v52  ;;  %v2983_v17 = vld [vmem:[#allocation2 + $0xeb] sm:$0xff] }
 0x425   : > { %v8267_v13 = vunpack.i.h.bf16 %v8265_v8  ;;  %v8266_v50 = vunpack.i.l.bf16 %v8265_v8  ;;  %v8270_v10 = vpop.permute.xlu1 %8269 }
 0x426   : > { %v8272_v34 = vunpack.i.h.bf16 %v8270_v10  ;;  %v8271_v31 = vunpack.i.l.bf16 %v8270_v10  ;;  %v2873_v10 = vld [vmem:[#allocation2 + $0xd8] sm:$0xff] }
 0x427   : > { %v4070_v24 = vsel %vm3934_vm11, %v4034_v54, %v8266_v50  ;;  %v3961_v49 = vsel %vm3934_vm11, %v3924_v5, %v8267_v13  ;;  %v7277_v54 = vld [vmem:[%s13034_s5 + $0x120] sm:$0xff]  ;;  %v7278_v5 = vld [vmem:[%s13034_s5 + $0x128] sm:$0xff] }
 0x428   : > { %v8275_v42 = vpop.permute.xlu0 %8274  ;;  %v4106_v18 = vsel %vm3971_vm12, %v4070_v24, %v8271_v31  ;;  %v3998_v36 = vsel %vm3971_vm12, %v3961_v49, %v8272_v34  ;;  %v7747_v24 = vpack.c.bf16 %v7278_v5, %v7277_v54  ;;  %v7280_v5 = vld [vmem:[%s13034_s5 + $0x138] sm:$0xff] }
 0x429   : > { %v8277_v37 = vunpack.i.h.bf16 %v8275_v42  ;;  %v8276_v29 = vunpack.i.l.bf16 %v8275_v42  ;;  %4418 = vmatprep.mubr.f32.mxu1 %v4106_v18 }
 0x42a   : > { %4419 = vmatmul.mubr.f32.gmra.mrb[52].mxu1 %v3998_v36  ;;  %7748 = vmatpush1.bf16.msra.mxu0 %v7747_v24 }
 0x42b   : > { %v4035_v50 = vsel %vm393_vm8, %v2983_v17, %v8276_v29  ;;  %v3925_v13 = vsel %vm393_vm8, %v2873_v10, %v8277_v37  ;;  %v13311_v29 = vmov 0.0|0.0  }
 0x42c   : > { %v8285_v57 = vpop.permute.xlu0 %8284  ;;  %7749 = vmatprep.subr.bf16.mxu0 %v13311_v29 }
 0x42d   : > { %v8280_v58 = vpop.permute.xlu1 %8279  ;;  %v8287_v32 = vunpack.i.h.bf16 %v8285_v57  ;;  %v8286_v8 = vunpack.i.l.bf16 %v8285_v57 }
 0x42e   : > { %v8282_v52 = vunpack.i.h.bf16 %v8280_v58  ;;  %v8281_v60 = vunpack.i.l.bf16 %v8280_v58 }
 0x430   : > { %v4071_v34 = vsel %vm3934_vm11, %v4035_v50, %v8281_v60  ;;  %v3962_v31 = vsel %vm3934_vm11, %v3925_v13, %v8282_v52  ;;  %v2984_v52 = vld [vmem:[#allocation2 + $0xf3] sm:$0xff]  ;;  %v2874_v13 = vld [vmem:[#allocation2 + $0xe0] sm:$0xff] }
 0x431   : > { %v8290_v49 = vpop.permute.xlu1 %8289  ;;  %v4107_v42 = vsel %vm3971_vm12, %v4071_v34, %v8286_v8  ;;  %v3999_v18 = vsel %vm3971_vm12, %v3962_v31, %v8287_v32  ;;  %v7279_v32 = vld [vmem:[%s13034_s5 + $0x130] sm:$0xff]  ;;  %v7281_v34 = vld [vmem:[%s13034_s5 + $0x140] sm:$0xff] }
 0x432   : > { %4423 = vmatprep.mubr.f32.mxu1 %v4107_v42  ;;  %v8292_v36 = vunpack.i.h.bf16 %v8290_v49  ;;  %v8291_v37 = vunpack.i.l.bf16 %v8290_v49  ;;  %v7750_v49 = vpack.c.bf16 %v7280_v5, %v7279_v32  ;;  %v7282_v42 = vld [vmem:[%s13034_s5 + $0x148] sm:$0xff]  ;;  %v11846_v5 = vld [vmem:[%s13036_s7] ss:$0 sm:$0xff] }
 0x433   : > { %4424 = vmatmul.mubr.f32.gmra.mrb[54].mxu1 %v3999_v18 }
 0x434   : > { %v8295_v57 = vpop.permute.xlu0 %8294  ;;  %v4036_v54 = vsel %vm393_vm8, %v2984_v52, %v8291_v37  ;;  %v3926_v8 = vsel %vm393_vm8, %v2874_v13, %v8292_v36  ;;  %7751 = vmatpush1.bf16.msra.mxu0 %v7750_v49  ;;  %v2875_v49 = vld [vmem:[#allocation2 + $0xe8] sm:$0xff] }
 0x435   : > { %v8300_v58 = vpop.permute.xlu1 %8299  ;;  %v8297_v17 = vunpack.i.h.bf16 %v8295_v57  ;;  %v8296_v10 = vunpack.i.l.bf16 %v8295_v57  ;;  %v7753_v57 = vpack.c.bf16 %v7282_v42, %v7281_v34  ;;  %7752 = vmatprep.subr.bf16.mxu0 %v13311_v29 }
 0x436   : > { %v8302_v60 = vunpack.i.h.bf16 %v8300_v58  ;;  %v8301_v50 = vunpack.i.l.bf16 %v8300_v58 }
 0x437   : > { %v4072_v31 = vsel %vm3934_vm11, %v4036_v54, %v8296_v10  ;;  %v3963_v24 = vsel %vm3934_vm11, %v3926_v8, %v8297_v17  ;;  %v11840_v17 = vld [vmem:[%s13035_s6] ss:$0 sm:$0xff] }
 0x438   : > { %v8305_v18 = vpop.permute.xlu0 %8304  ;;  %v4108_v36 = vsel %vm3971_vm12, %v4072_v31, %v8301_v50  ;;  %v4000_v37 = vsel %vm3971_vm12, %v3963_v24, %v8302_v60  ;;  %7754 = vmatpush1.bf16.msra.mxu0 %v7753_v57  ;;  %v2985_v24 = vld [vmem:[#allocation2 + $0xfb] sm:$0xff] }
 0x439   : > { %4428 = vmatprep.mubr.f32.mxu1 %v4108_v36  ;;  %v8307_v58 = vunpack.i.h.bf16 %v8305_v18  ;;  %v8306_v10 = vunpack.i.l.bf16 %v8305_v18  ;;  %7755 = vmatprep.subr.bf16.mxu0 %v13311_v29 }
 0x43a   : > { %4429 = vmatmul.mubr.f32.gmra.mrb[56].mxu1 %v4000_v37 }
 0x43b   : > { %v3927_v18 = vsel %vm393_vm8, %v2875_v49, %v8307_v58  ;;  %v7285_v58 = vld [vmem:[%s13034_s5 + $0x160] sm:$0xff] }
 0x43c   : > { %v4290_v52 = vpop.f32.mrb[0].mxu1  ;;  %v8315_v13 = vpop.permute.xlu0 %8314 }
 0x43d   : > { %v4536_v54 = vadd.f32 %v11560_v14, %v4290_v52  ;;  %v8317_v50 = vunpack.i.h.bf16 %v8315_v13  ;;  %v8316_v8 = vunpack.i.l.bf16 %v8315_v13  ;;  %v8310_v60 = vpop.permute.xlu1 %8309  ;;  %v4292_v32 = vpop.f32.mrb[1].mxu1  ;;  %v4037_v14 = vsel %vm393_vm8, %v2985_v24, %v8306_v10  ;;  %v7284_v10 = vld [vmem:[%s13034_s5 + $0x158] sm:$0xff] }
 0x43e   : > { %v8312_v34 = vunpack.i.h.bf16 %v8310_v60  ;;  %v8311_v31 = vunpack.i.l.bf16 %v8310_v60  ;;  %v7283_v32 = vld [vmem:[%s13034_s5 + $0x150] sm:$0xff] }
 0x43f   : > { %v4720_v42 = vmul.f32 %v11840_v17, %v4536_v54 }
 0x440   : > { %v4073_v36 = vsel %vm3934_vm11, %v4037_v14, %v8311_v31  ;;  %v3964_v37 = vsel %vm3934_vm11, %v3927_v18, %v8312_v34  ;;  %v7756_v31 = vpack.c.bf16 %v7284_v10, %v7283_v32 }
 0x441   : > { %v4762_v57 = vadd.f32 %v11846_v5, %v4720_v42  ;;  %v8320_v52 = vpop.permute.xlu1 %8319  ;;  %v4109_v13 = vsel %vm3971_vm12, %v4073_v36, %v8316_v8  ;;  %v4001_v60 = vsel %vm3971_vm12, %v3964_v37, %v8317_v50  ;;  %v7286_v50 = vld [vmem:[%s13034_s5 + $0x168] sm:$0xff] }
 0x442   : > { %v8322_v54 = vunpack.i.h.bf16 %v8320_v52  ;;  %v8321_v34 = vunpack.i.l.bf16 %v8320_v52  ;;  %4433 = vmatprep.mubr.f32.mxu1 %v4109_v13  ;;  %7757 = vmatpush1.bf16.msra.mxu0 %v7756_v31  ;;  %v7759_v49 = vpack.c.bf16 %v7286_v50, %v7285_v58  ;;  %v2986_v37 = vld [vmem:[#allocation2 + $0x103] sm:$0xff] }
 0x443   : > { %v4798_v8 = vmax.f32 %v4762_v57, 0.0  ;;  %4434 = vmatmul.mubr.f32.gmra.mrb[58].mxu1 %v4001_v60  ;;  %7758 = vmatprep.subr.bf16.mxu0 %v13311_v29  ;;  %v7287_v57 = vld [vmem:[%s13034_s5 + $0x170] sm:$0xff]  ;;  %v7288_v60 = vld [vmem:[%s13034_s5 + $0x178] sm:$0xff] }
 0x444   : > { %v8325_v24 = vpop.permute.xlu0 %8324  ;;  %v4038_v32 = vsel %vm393_vm8, %v2986_v37, %v8321_v34  ;;  %v3928_v10 = vsel %vm393_vm8, %v2876_v62, %v8322_v54  ;;  %v7762_v62 = vpack.c.bf16 %v7288_v60, %v7287_v57 }
 0x445   : > { %v4834_v42 = vmul.f32 %v4798_v8, %v10966_v23  ;;  %v8327_v14 = vunpack.i.h.bf16 %v8325_v24  ;;  %v8326_v18 = vunpack.i.l.bf16 %v8325_v24  ;;  %v8330_v36 = vpop.permute.xlu1 %8329 }
 0x446   : > { %v8332_v52 = vunpack.i.h.bf16 %v8330_v36  ;;  %v8331_v13 = vunpack.i.l.bf16 %v8330_v36  ;;  %7760 = vmatpush1.bf16.msra.mxu0 %v7759_v49  ;;  %v7289_v49 = vld [vmem:[%s13034_s5 + $0x180] sm:$0xff] }
 0x447   : > { %4870 = vst.msk [vmem:[#allocation2 + $0x13] sm:$0xff] %vm393_vm8, %v4834_v42  ;;  %v4074_v58 = vsel %vm3934_vm11, %v4038_v32, %v8326_v18  ;;  %v3965_v31 = vsel %vm3934_vm11, %v3928_v10, %v8327_v14  ;;  %7761 = vmatprep.subr.bf16.mxu0 %v13311_v29 }
 0x448   : > { %v8335_v50 = vpop.permute.xlu0 %8334  ;;  %v4110_v8 = vsel %vm3971_vm12, %v4074_v58, %v8331_v13  ;;  %v4002_v34 = vsel %vm3971_vm12, %v3965_v31, %v8332_v52  ;;  %v7290_v52 = vld [vmem:[%s13034_s5 + $0x188] sm:$0xff]  ;;  %v2877_v58 = vld [vmem:[#allocation2 + $0xf8] sm:$0xff]  ;;  %v7291_v31 = vld [vmem:[%s13034_s5 + $0x190] sm:$0xff] }
 0x449   : > { %4438 = vmatprep.mubr.f32.mxu1 %v4110_v8  ;;  %v8337_v54 = vunpack.i.h.bf16 %v8335_v50  ;;  %v8336_v42 = vunpack.i.l.bf16 %v8335_v50  ;;  %v7292_v50 = vld [vmem:[%s13034_s5 + $0x198] sm:$0xff] }
 0x44a   : > { %4439 = vmatmul.mubr.f32.gmra.mrb[60].mxu1 %v4002_v34  ;;  %v4295_v24 = vpop.f32.mrb[2].mxu1  ;;  %v11885_v36 = vpop.f32.mrb[54].mxu0  ;;  %7763 = vmatpush1.bf16.msra.mxu0 %v7762_v62  ;;  %v2987_v34 = vld [vmem:[#allocation2 + $0x10b] sm:$0xff]  ;;  %v7768_v11 = vpack.c.bf16 %v7292_v50, %v7291_v31  ;;  %v2878_v50 = vld [vmem:[#allocation2 + $0x100] sm:$0xff] }
 0x44b   : > { %13312 = vst [vmem:[#allocation34_spill] sm:$0xff] %v11885_v36  ;;  %v4541_v18 = vadd.f32 %v11558_v47, %v4295_v24  ;;  %v4297_v37 = vpop.f32.mrb[3].mxu1  ;;  %v11888_v14 = vpop.f32.mrb[55].mxu0  ;;  %7764 = vmatprep.subr.bf16.mxu0 %v13311_v29  ;;  %v3929_v62 = vsel %vm393_vm8, %v2877_v58, %v8337_v54  ;;  %v7765_v24 = vpack.c.bf16 %v7290_v52, %v7289_v49  ;;  %v7293_v54 = vld [vmem:[%s13034_s5 + $0x1a0] sm:$0xff] }
 0x44c   : > { %v8345_v13 = vpop.permute.xlu0 %8344 }
 0x44d   : > { %v8340_v32 = vpop.permute.xlu1 %8339  ;;  %v4721_v10 = vmul.f32 %v11840_v17, %v4541_v18  ;;  %v8347_v57 = vunpack.i.h.bf16 %v8345_v13  ;;  %v8346_v47 = vunpack.i.l.bf16 %v8345_v13  ;;  %v4039_v18 = vsel %vm393_vm8, %v2987_v34, %v8336_v42  ;;  %v7294_v42 = vld [vmem:[%s13034_s5 + $0x1a8] sm:$0xff] }
 0x44e   : > { %v8342_v60 = vunpack.i.h.bf16 %v8340_v32  ;;  %v8341_v8 = vunpack.i.l.bf16 %v8340_v32  ;;  %7766 = vmatpush1.bf16.msra.mxu0 %v7765_v24 }
 0x44f   : > { %v4763_v37 = vadd.f32 %v11846_v5, %v4721_v10  ;;  %7767 = vmatprep.subr.bf16.mxu0 %v13311_v29 }
 0x450   : > { %v3966_v13 = vsel %vm3934_vm11, %v3929_v62, %v8342_v60  ;;  %v4075_v56 = vsel %vm3934_vm11, %v4039_v18, %v8341_v8  ;;  %v7771_v8 = vpack.c.bf16 %v7294_v42, %v7293_v54  ;;  %v7296_v42 = vld [vmem:[%s13034_s5 + $0x1b8] sm:$0xff] }
 0x451   : > { %v8350_v23 = vpop.permute.xlu1 %8349  ;;  %v4003_v39 = vsel %vm3971_vm12, %v3966_v13, %v8347_v57  ;;  %v4799_v21 = vmax.f32 %v4763_v37, 0.0  ;;  %v4111_v36 = vsel %vm3971_vm12, %v4075_v56, %v8346_v47  ;;  %v2988_v56 = vld [vmem:[#allocation2 + $0x113] sm:$0xff] }
 0x452   : > { %v8352_v0 = vunpack.i.h.bf16 %v8350_v23  ;;  %v8351_v32 = vunpack.i.l.bf16 %v8350_v23  ;;  %4443 = vmatprep.mubr.f32.mxu1 %v4111_v36  ;;  %7769 = vmatpush1.bf16.msra.mxu0 %v7768_v11 }
 0x453   : > { %v4300_v49 = vpop.f32.mrb[4].mxu1  ;;  %v4835_v52 = vmul.f32 %v4799_v21, %v10964_v44  ;;  %4444 = vmatmul.mubr.f32.gmra.mrb[62].mxu1 %v4003_v39  ;;  %v8355_v57 = vpop.permute.xlu0 %8354  ;;  %7770 = vmatprep.subr.bf16.mxu0 %v13311_v29 }
 0x454   : > { %v4546_v10 = vadd.f32 %v11581_v9, %v4300_v49  ;;  %v4302_v23 = vpop.f32.mrb[5].mxu1  ;;  %v8357_v47 = vunpack.i.h.bf16 %v8355_v57  ;;  %v8356_v60 = vunpack.i.l.bf16 %v8355_v57  ;;  %v4040_v31 = vsel %vm393_vm8, %v2988_v56, %v8351_v32  ;;  %v7297_v57 = vld [vmem:[%s13034_s5 + $0x1c0] sm:$0xff]  ;;  %v7298_v56 = vld [vmem:[%s13034_s5 + $0x1c8] sm:$0xff] }
 0x455   : > { %v8360_v58 = vpop.permute.xlu1 %8359  ;;  %4871 = vst.msk [vmem:[#allocation2 + $0x1b] sm:$0xff] %vm393_vm8, %v4835_v52  ;;  %v3930_v39 = vsel %vm393_vm8, %v2878_v50, %v8352_v0  ;;  %v7295_v0 = vld [vmem:[%s13034_s5 + $0x1b0] sm:$0xff]  ;;  %v2879_v50 = vld [vmem:[#allocation2 + $0x108] sm:$0xff] }
 0x456   : > { %v4722_v36 = vmul.f32 %v11840_v17, %v4546_v10  ;;  %v8362_v34 = vunpack.i.h.bf16 %v8360_v58  ;;  %v8361_v21 = vunpack.i.l.bf16 %v8360_v58  ;;  %v4076_v9 = vsel %vm3934_vm11, %v4040_v31, %v8356_v60  ;;  %7772 = vmatpush1.bf16.msra.mxu0 %v7771_v8  ;;  %v2989_v10 = vld [vmem:[#allocation2 + $0x11b] sm:$0xff] }
 0x457   : > { %v3967_v62 = vsel %vm3934_vm11, %v3930_v39, %v8357_v47  ;;  %v8365_v37 = vpop.permute.xlu0 %8364  ;;  %7773 = vmatprep.subr.bf16.mxu0 %v13311_v29  ;;  %v7774_v23 = vpack.c.bf16 %v7296_v42, %v7295_v0  ;;  %v4983_v31 = vld [vmem:[#allocation2 + $0x1] sm:$0xff] }
 0x458   : > { %v4764_v24 = vadd.f32 %v11846_v5, %v4722_v36  ;;  %v4112_v11 = vsel %vm3971_vm12, %v4076_v9, %v8361_v21  ;;  %v4004_v18 = vsel %vm3971_vm12, %v3967_v62, %v8362_v34  ;;  %v8367_v13 = vunpack.i.h.bf16 %v8365_v37 }
 0x459   : > { %v8366_v32 = vunpack.i.l.bf16 %v8365_v37  ;;  %v8370_v54 = vpop.permute.xlu1 %8369  ;;  %4448 = vmatprep.mubr.f32.mxu1 %v4112_v11  ;;  %v7777_v37 = vpack.c.bf16 %v7298_v56, %v7297_v57 }
 0x45a   : > { %v4800_v49 = vmax.f32 %v4764_v24, 0.0  ;;  %v8371_v52 = vunpack.i.l.bf16 %v8370_v54  ;;  %4449 = vmatmul.mubr.f32.gmra.mrb[64].mxu1 %v4004_v18  ;;  %v8372_v47 = vunpack.i.h.bf16 %v8370_v54  ;;  %v11943_v60 = vpop.f32.mrb[56].mxu0  ;;  %v4305_v36 = vpop.f32.mrb[6].mxu1  ;;  %v3931_v21 = vsel %vm393_vm8, %v2879_v50, %v8367_v13  ;;  %7775 = vmatpush1.bf16.msra.mxu0 %v7774_v23  ;;  %v7299_v13 = vld [vmem:[%s13034_s5 + $0x1d0] sm:$0xff] }
 0x45b   : > { %v4041_v58 = vsel %vm393_vm8, %v2989_v10, %v8366_v32  ;;  %v11947_v34 = vpop.f32.mrb[57].mxu0  ;;  %v4551_v39 = vadd.f32 %v11575_v26, %v4305_v36  ;;  %v4307_v9 = vpop.f32.mrb[7].mxu1  ;;  %7776 = vmatprep.subr.bf16.mxu0 %v13311_v29  ;;  %v7300_v26 = vld [vmem:[%s13034_s5 + $0x1d8] sm:$0xff] }
 0x45c   : > { %v4836_v8 = vmul.f32 %v4800_v49, %v10983_v19  ;;  %v8375_v62 = vpop.permute.xlu0 %8374  ;;  %v5093_v24 = vld [vmem:[#allocation2 + $0x14] sm:$0xff]  ;;  %v4077_v54 = vsel %vm3934_vm11, %v4041_v58, %v8371_v52  ;;  %v3968_v23 = vsel %vm3934_vm11, %v3931_v21, %v8372_v47  ;;  %v7780_v50 = vpack.c.bf16 %v7300_v26, %v7299_v13 }
 0x45d   : > { %v8377_v11 = vunpack.i.h.bf16 %v8375_v62  ;;  %v8376_v18 = vunpack.i.l.bf16 %v8375_v62  ;;  %v8380_v32 = vpop.permute.xlu1 %8379  ;;  %v8408_v0 = vpack.i.bf16 %v4983_v31, %v5093_v24  ;;  %v4723_v42 = vmul.f32 %v11840_v17, %v4551_v39  ;;  %v2990_v31 = vld [vmem:[#allocation2 + $0x123] sm:$0xff]  ;;  %v2880_v47 = vld [vmem:[#allocation2 + $0x110] sm:$0xff] }
 0x45e   : > { %4872 = vst.msk [vmem:[#allocation2 + $0x23] sm:$0xff] %vm393_vm8, %v4836_v8  ;;  %v8382_v49 = vunpack.i.h.bf16 %v8380_v32  ;;  %v8381_v10 = vunpack.i.l.bf16 %v8380_v32  ;;  %7778 = vmatpush1.bf16.msra.mxu0 %v7777_v37 }
 0x45f   : > { %v4113_v57 = vsel %vm3971_vm12, %v4077_v54, %v8376_v18  ;;  %8409 = vrot.lane.b32.xlu1 %v8408_v0, %s9025_s27  ;;  %v4005_v52 = vsel %vm3971_vm12, %v3968_v23, %v8377_v11  ;;  %v4765_v56 = vadd.f32 %v11846_v5, %v4723_v42  ;;  %7779 = vmatprep.subr.bf16.mxu0 %v13311_v29 }
 0x460   : > { %v8385_v58 = vpop.permute.xlu0 %8384  ;;  %4453 = vmatprep.mubr.f32.mxu1 %v4113_v57  ;;  %v4042_v9 = vsel %vm393_vm8, %v2990_v31, %v8381_v10  ;;  %v3932_v18 = vsel %vm393_vm8, %v2880_v47, %v8382_v49 }
 0x461   : > { %v8387_v8 = vunpack.i.h.bf16 %v8385_v58  ;;  %v8386_v36 = vunpack.i.l.bf16 %v8385_v58  ;;  %v8390_v39 = vpop.permute.xlu1 %8389  ;;  %4454 = vmatmul.mubr.f32.gmra.mrb[66].mxu1 %v4005_v52  ;;  %v4801_v21 = vmax.f32 %v4765_v56, 0.0  ;;  %v7302_v56 = vld [vmem:[%s13034_s5 + $0x1e8] sm:$0xff]  ;;  %v7303_v58 = vld [vmem:[%s13034_s5 + $0x1f0] sm:$0xff] }
 0x462   : > { %v8392_v62 = vunpack.i.h.bf16 %v8390_v39  ;;  %v8391_v24 = vunpack.i.l.bf16 %v8390_v39  ;;  %v4310_v11 = vpop.f32.mrb[8].mxu1  ;;  %7781 = vmatpush1.bf16.msra.mxu0 %v7780_v50 }
 0x463   : > { %v4556_v32 = vadd.f32 %v11597_v30, %v4310_v11  ;;  %v4312_v54 = vpop.f32.mrb[9].mxu1  ;;  %v4078_v37 = vsel %vm3934_vm11, %v4042_v9, %v8386_v36  ;;  %v3969_v0 = vsel %vm3934_vm11, %v3932_v18, %v8387_v8  ;;  %v4837_v13 = vmul.f32 %v4801_v21, %v10985_v41  ;;  %7782 = vmatprep.subr.bf16.mxu0 %v13311_v29  ;;  %v7301_v30 = vld [vmem:[%s13034_s5 + $0x1e0] sm:$0xff]  ;;  %v2991_v8 = vld [vmem:[#allocation2 + $0x12b] sm:$0xff]  ;;  %v2881_v36 = vld [vmem:[#allocation2 + $0x118] sm:$0xff] }
 0x464   : > { %v8395_v26 = vpop.permute.xlu0 %8394  ;;  %v4114_v42 = vsel %vm3971_vm12, %v4078_v37, %v8391_v24  ;;  %v4006_v10 = vsel %vm3971_vm12, %v3969_v0, %v8392_v62  ;;  %v7783_v39 = vpack.c.bf16 %v7302_v56, %v7301_v30  ;;  %v7304_v9 = vld [vmem:[%s13034_s5 + $0x1f8] sm:$0xff]  ;;  %v5019_v30 = vld [vmem:[#allocation2 + $0x2] sm:$0xff] }
 0x465   : > { %v4724_v23 = vmul.f32 %v11840_v17, %v4556_v32  ;;  %v8397_v57 = vunpack.i.h.bf16 %v8395_v26  ;;  %v8396_v52 = vunpack.i.l.bf16 %v8395_v26  ;;  %v8400_v49 = vpop.permute.xlu1 %8399  ;;  %4458 = vmatprep.mubr.f32.mxu1 %v4114_v42  ;;  %4873 = vst.msk [vmem:[#allocation2 + $0x2b] sm:$0xff] %vm393_vm8, %v4837_v13  ;;  %v7786_v11 = vpack.c.bf16 %v7304_v9, %v7303_v58  ;;  %v7305_v26 = vld [vmem:[%s13034_s5 + $0x200] sm:$0xff]  ;;  %v7306_v42 = vld [vmem:[%s13034_s5 + $0x208] sm:$0xff] }
 0x466   : > { %v8402_v31 = vunpack.i.h.bf16 %v8400_v49  ;;  %v8401_v50 = vunpack.i.l.bf16 %v8400_v49  ;;  %4459 = vmatmul.mubr.f32.gmra.mrb[68].mxu1 %v4006_v10  ;;  %7784 = vmatpush1.bf16.msra.mxu0 %v7783_v39  ;;  %v12017_v39 = vld [vmem:[#allocation2 + $0x12] sm:$0xff] }
 0x467   : > { %v4766_v47 = vadd.f32 %v11846_v5, %v4724_v23  ;;  %v4043_v21 = vsel %vm393_vm8, %v2991_v8, %v8396_v52  ;;  %v3933_v62 = vsel %vm393_vm8, %v2881_v36, %v8397_v57  ;;  %7785 = vmatprep.subr.bf16.mxu0 %v13311_v29  ;;  %v7312_v8 = vld [vmem:[%s13034_s5 + $0x238] sm:$0xff] }
 0x468   : > { %v8405_v24 = vpop.permute.xlu0 %8404  ;;  %v4079_v0 = vsel %vm3934_vm11, %v4043_v21, %v8401_v50  ;;  %v3970_v13 = vsel %vm3934_vm11, %v3933_v62, %v8402_v31  ;;  %v3098_v31 = vld [vmem:[#allocation2 + $0x126] sm:$0xff]  ;;  %v7311_v50 = vld [vmem:[%s13034_s5 + $0x230] sm:$0xff] }
 0x469   : > { %v4802_v18 = vmax.f32 %v4766_v47, 0.0  ;;  %v8407_v32 = vunpack.i.h.bf16 %v8405_v24  ;;  %v8406_v54 = vunpack.i.l.bf16 %v8405_v24  ;;  %v4984_v24 = vld [vmem:[#allocation2 + $0x9] sm:$0xff] }
 0x46a   : > { %v11994_v37 = vpop.f32.mrb[58].mxu0  ;;  %v4315_v23 = vpop.f32.mrb[10].mxu1  ;;  %7787 = vmatpush1.bf16.msra.mxu0 %v7786_v11  ;;  %v3100_v11 = vld [vmem:[#allocation2 + $0x136] sm:$0xff] }
 0x46b   : > { %v4838_v10 = vmul.f32 %v4802_v18, %v11002_v22  ;;  %v4115_v57 = vsel %vm3971_vm12, %v4079_v0, %v8406_v54  ;;  %v12006_v52 = vpop.f32.mrb[59].mxu0  ;;  %v4007_v49 = vsel %vm3971_vm12, %v3970_v13, %v8407_v32  ;;  %v4561_v56 = vadd.f32 %v11595_v63, %v4315_v23  ;;  %v4317_v58 = vpop.f32.mrb[11].mxu1  ;;  %7788 = vmatprep.subr.bf16.mxu0 %v13311_v29  ;;  %v5094_v18 = vld [vmem:[#allocation2 + $0x1c] sm:$0xff]  ;;  %v3099_v0 = vld [vmem:[#allocation2 + $0x12e] sm:$0xff] }
 0x46c   : > { %4463 = vmatprep.mubr.f32.mxu1 %v4115_v57  ;;  %v5095_v36 = vld [vmem:[#allocation2 + $0x24] sm:$0xff]  ;;  %v7789_v63 = vpack.c.bf16 %v7306_v42, %v7305_v26  ;;  %v7798_v32 = vpack.c.bf16 %v7312_v8, %v7311_v50  ;;  %v7307_v13 = vld [vmem:[%s13034_s5 + $0x210] sm:$0xff]  ;;  %v7308_v26 = vld [vmem:[%s13034_s5 + $0x218] sm:$0xff]  ;;  %v8423_v23 = vpack.i.bf16 %v4984_v24, %v5094_v18 }
 0x46d   : > { %4874 = vst.msk [vmem:[#allocation2 + $0x33] sm:$0xff] %vm393_vm8, %v4838_v10  ;;  %4464 = vmatmul.mubr.f32.gmra.mrb[70].mxu1 %v4007_v49  ;;  %v5131_v9 = vld [vmem:[#allocation2 + $0x25] sm:$0xff]  ;;  %v4725_v47 = vmul.f32 %v11840_v17, %v4561_v56  ;;  %v8413_v21 = vpack.i.bf16 %v5019_v30, %v5095_v36  ;;  %v7792_v58 = vpack.c.bf16 %v7308_v26, %v7307_v13  ;;  %v5022_v50 = vld [vmem:[#allocation2 + $0x1a] sm:$0xff]  ;;  %v4985_v24 = vld [vmem:[#allocation2 + $0x11] sm:$0xff] }
 0x46e   : > { %7603 = vmatprep.mubr.msk.f32.mxu1 %vm393_vm8, %v3098_v31  ;;  %v8418_v62 = vpack.i.bf16 %v12017_v39, %v5131_v9  ;;  %7790 = vmatpush1.bf16.msra.mxu0 %v7789_v63  ;;  %v3101_v57 = vld [vmem:[#allocation2 + $0x13e] sm:$0xff]  ;;  %v5020_v49 = vld [vmem:[#allocation2 + $0xa] sm:$0xff] }
 0x46f   : > { %v4767_v54 = vadd.f32 %v11846_v5, %v4725_v47  ;;  %8414 = vrot.lane.b32.xlu0 %v8413_v21, %s9029_s28  ;;  %7791 = vmatprep.subr.bf16.mxu0 %v13311_v29  ;;  %v5167_v63 = vld [vmem:[#allocation2 + $0x26] sm:$0xff] }
 0x470   : > { %8419 = vrot.lane.b32.xlu1 %v8418_v62, %s9030_s30 }
 0x471   : > { %7604 = vmatmul.mubr.msk.f32.vlgmr.msra.gmra.mrb[72].mxu1 %vm393_vm8, %v3099_v0  ;;  %v4803_v42 = vmax.f32 %v4767_v54, 0.0 }
 0x472   : > { %7797 = vmatpush3.bf16.msra.mxu1 %v11742_v3  ;;  %v4320_v10 = vpop.f32.mrb[12].mxu1  ;;  %7606 = vmatprep.mubr.msk.f32.mxu1 %vm393_vm8, %v3100_v11  ;;  %v8438_v11 = vpack.i.bf16 %v4985_v24, %v5095_v36 }
 0x473   : > { %v4566_v30 = vadd.f32 %v11616_v16, %v4320_v10  ;;  %v4322_v56 = vpop.f32.mrb[13].mxu1  ;;  %7799 = vmatprep.subr.bf16.mxu1 %v7798_v32  ;;  %v4839_v31 = vmul.f32 %v4803_v42, %v11004_v43  ;;  %8424 = vrot.lane.b32.xlu0 %v8423_v23, %s9025_s27  ;;  %v5023_v10 = vld [vmem:[#allocation2 + $0x22] sm:$0xff] }
 0x474   : > { %v5132_v8 = vld [vmem:[#allocation2 + $0x2d] sm:$0xff]  ;;  %7793 = vmatpush1.bf16.msra.mxu0 %v7792_v58 }
 0x475   : > { %v5096_v3 = vld [vmem:[#allocation2 + $0x2c] sm:$0xff]  ;;  %v4726_v9 = vmul.f32 %v11840_v17, %v4566_v30  ;;  %7607 = vmatmul.mubr.msk.f32.gmra.mrb[74].mxu1 %vm393_vm8, %v3101_v57  ;;  %v8433_v47 = vpack.i.bf16 %v5022_v50, %v5132_v8  ;;  %4875 = vst.msk [vmem:[#allocation2 + $0x3b] sm:$0xff] %vm393_vm8, %v4839_v31 }
 0x476   : > { %v8428_v21 = vpack.i.bf16 %v5020_v49, %v5096_v3  ;;  %7801 = vmatpush3.bf16.msra.mxu1 %v7798_v32  ;;  %7617 = vmatprep.mubr.msk.f32.mxu1 %vm393_vm8, %v5167_v63  ;;  %v5168_v62 = vld [vmem:[#allocation2 + $0x2e] sm:$0xff] }
 0x477   : > { %v4768_v16 = vadd.f32 %v11846_v5, %v4726_v9  ;;  %8434 = vrot.lane.b32.xlu0 %v8433_v47, %s9030_s30  ;;  %7802 = vmatprep.subr.bf16.mxu1 %v13311_v29 }
 0x478   : > { %8429 = vrot.lane.b32.xlu1 %v8428_v21, %s9029_s28  ;;  %v5024_v21 = vld [vmem:[#allocation2 + $0x2a] sm:$0xff] }
 0x479   : > { %v4804_v18 = vmax.f32 %v4768_v16, 0.0  ;;  %7618 = vmatmul.mubr.msk.f32.vlgmr.msra.gmra.mrb[76].mxu1 %vm393_vm8, %v5168_v62 }
 0x47a   : > { %v12048_v54 = vpop.f32.mrb[60].mxu0  ;;  %v4325_v0 = vpop.f32.mrb[14].mxu1 }
 0x47b   : > { %v4840_v32 = vmul.f32 %v4804_v18, %v11018_v53  ;;  %v12051_v13 = vpop.f32.mrb[61].mxu0  ;;  %v4571_v26 = vadd.f32 %v11612_v45, %v4325_v0  ;;  %v4327_v42 = vpop.f32.mrb[15].mxu1  ;;  %v4986_v45 = vld [vmem:[#allocation2 + $0x19] sm:$0xff] }
 0x47c   : > { %8439 = vrot.lane.b32.xlu1 %v8438_v11, %s9025_s27  ;;  %v5169_v23 = vld [vmem:[#allocation2 + $0x36] sm:$0xff]  ;;  %v8453_v9 = vpack.i.bf16 %v4986_v45, %v5096_v3 }
 0x47d   : > { %4876 = vst.msk [vmem:[#allocation2 + $0x43] sm:$0xff] %vm393_vm8, %v4840_v32  ;;  %v5097_v57 = vld [vmem:[#allocation2 + $0x34] sm:$0xff]  ;;  %v4727_v36 = vmul.f32 %v11840_v17, %v4571_v26  ;;  %7620 = vmatprep.mubr.msk.f32.mxu1 %vm393_vm8, %v5169_v23 }
 0x47e   : > { %v5133_v49 = vld [vmem:[#allocation2 + $0x35] sm:$0xff]  ;;  %v8443_v30 = vpack.i.bf16 %v12017_v39, %v5097_v57 }
 0x47f   : > { %v8448_v56 = vpack.i.bf16 %v5023_v10, %v5133_v49  ;;  %v4769_v58 = vadd.f32 %v11846_v5, %v4727_v36 }
 0x480   : > { %8444 = vrot.lane.b32.xlu0 %v8443_v30, %s9029_s28 }
 0x481   : > { %8449 = vrot.lane.b32.xlu1 %v8448_v56, %s9030_s30  ;;  %v4805_v31 = vmax.f32 %v4769_v58, 0.0  ;;  %v5025_v56 = vld [vmem:[#allocation2 + $0x32] sm:$0xff] }
 0x482   : > { %v4330_v8 = vpop.f32.mrb[16].mxu1 }
 0x483   : > { %v4576_v63 = vadd.f32 %v11651_v4, %v4330_v8  ;;  %v4332_v47 = vpop.f32.mrb[17].mxu1  ;;  %v4841_v16 = vmul.f32 %v4805_v31, %v11020_v20  ;;  %v4987_v4 = vld [vmem:[#allocation2 + $0x21] sm:$0xff] }
 0x484   : > { %8454 = vrot.lane.b32.xlu0 %v8453_v9, %s9025_s27  ;;  %v5170_v39 = vld [vmem:[#allocation2 + $0x3e] sm:$0xff]  ;;  %v8468_v26 = vpack.i.bf16 %v4987_v4, %v5097_v57  ;;  %v4988_v47 = vld [vmem:[#allocation2 + $0x29] sm:$0xff] }
 0x485   : > { %v5134_v62 = vld [vmem:[#allocation2 + $0x3d] sm:$0xff]  ;;  %v4728_v18 = vmul.f32 %v11840_v17, %v4576_v63  ;;  %7621 = vmatmul.mubr.msk.f32.gmra.mrb[78].mxu1 %vm393_vm8, %v5170_v39  ;;  %4877 = vst.msk [vmem:[#allocation2 + $0x4b] sm:$0xff] %vm393_vm8, %v4841_v16 }
 0x486   : > { %v5098_v24 = vld [vmem:[#allocation2 + $0x3c] sm:$0xff]  ;;  %v8463_v11 = vpack.i.bf16 %v5024_v21, %v5134_v62 }
 0x487   : > { %v8458_v32 = vpack.i.bf16 %v5022_v50, %v5098_v24  ;;  %v4770_v3 = vadd.f32 %v11846_v5, %v4728_v18  ;;  %v8483_v39 = vpack.i.bf16 %v4988_v47, %v5098_v24 }
 0x488   : > { %8464 = vrot.lane.b32.xlu0 %v8463_v11, %s9030_s30 }
 0x489   : > { %8459 = vrot.lane.b32.xlu1 %v8458_v32, %s9029_s28  ;;  %v4806_v0 = vmax.f32 %v4770_v3, 0.0  ;;  %v5026_v32 = vld [vmem:[#allocation2 + $0x3a] sm:$0xff] }
 0x48a   : > { %v4335_v42 = vpop.f32.mrb[18].mxu1  ;;  %v12071_v23 = vpop.f32.mrb[62].mxu0 }
 0x48b   : > { %v4842_v49 = vmul.f32 %v4806_v0, %v11039_v27  ;;  %v4581_v36 = vadd.f32 %v11645_v6, %v4335_v42  ;;  %v4337_v30 = vpop.f32.mrb[19].mxu1  ;;  %v12075_v50 = vpop.f32.mrb[63].mxu0 }
 0x48c   : > { %v5171_v45 = vld [vmem:[#allocation2 + $0x46] sm:$0xff] }
 0x48d   : > { %8469 = vrot.lane.b32.xlu1 %v8468_v26, %s9025_s27  ;;  %4878 = vst.msk [vmem:[#allocation2 + $0x53] sm:$0xff] %vm393_vm8, %v4842_v49  ;;  %v4729_v58 = vmul.f32 %v11840_v17, %v4581_v36  ;;  %v5099_v31 = vld [vmem:[#allocation2 + $0x44] sm:$0xff]  ;;  %7623 = vmatprep.mubr.msk.f32.mxu1 %vm393_vm8, %v5171_v45 }
 0x48e   : > { %v5135_v57 = vld [vmem:[#allocation2 + $0x45] sm:$0xff]  ;;  %v8473_v8 = vpack.i.bf16 %v5023_v10, %v5099_v31 }
 0x48f   : > { %v8478_v9 = vpack.i.bf16 %v5025_v56, %v5135_v57  ;;  %v4771_v63 = vadd.f32 %v11846_v5, %v4729_v58 }
 0x490   : > { %8474 = vrot.lane.b32.xlu0 %v8473_v8, %s9029_s28 }
 0x491   : > { %8479 = vrot.lane.b32.xlu1 %v8478_v9, %s9030_s30  ;;  %v4807_v6 = vmax.f32 %v4771_v63, 0.0 }
 0x492   : > { %v4340_v16 = vpop.f32.mrb[20].mxu1 }
 0x493   : > { %v4843_v62 = vmul.f32 %v4807_v6, %v11041_v46  ;;  %v4586_v18 = vadd.f32 %v11695_v35, %v4340_v16  ;;  %v4342_v11 = vpop.f32.mrb[21].mxu1  ;;  %v4989_v35 = vld [vmem:[#allocation2 + $0x31] sm:$0xff] }
 0x494   : > { %8484 = vrot.lane.b32.xlu0 %v8483_v39, %s9025_s27  ;;  %v5172_v10 = vld [vmem:[#allocation2 + $0x4e] sm:$0xff]  ;;  %v8498_v36 = vpack.i.bf16 %v4989_v35, %v5099_v31 }
 0x495   : > { %v5136_v3 = vld [vmem:[#allocation2 + $0x4d] sm:$0xff]  ;;  %4879 = vst.msk [vmem:[#allocation2 + $0x5b] sm:$0xff] %vm393_vm8, %v4843_v62  ;;  %v4730_v0 = vmul.f32 %v11840_v17, %v4586_v18  ;;  %7624 = vmatmul.mubr.msk.f32.gmra.mrb[80].mxu1 %vm393_vm8, %v5172_v10 }
 0x496   : > { %v5100_v4 = vld [vmem:[#allocation2 + $0x4c] sm:$0xff]  ;;  %v8493_v26 = vpack.i.bf16 %v5026_v32, %v5136_v3 }
 0x497   : > { %v8488_v42 = vpack.i.bf16 %v5024_v21, %v5100_v4  ;;  %v4772_v24 = vadd.f32 %v11846_v5, %v4730_v0  ;;  %v5027_v21 = vld [vmem:[#allocation2 + $0x42] sm:$0xff] }
 0x498   : > { %8494 = vrot.lane.b32.xlu0 %v8493_v26, %s9030_s30 }
 0x499   : > { %8489 = vrot.lane.b32.xlu1 %v8488_v42, %s9029_s28  ;;  %v4808_v49 = vmax.f32 %v4772_v24, 0.0  ;;  %v5028_v42 = vld [vmem:[#allocation2 + $0x4a] sm:$0xff] }
 0x49a   : > { %v4345_v30 = vpop.f32.mrb[22].mxu1  ;;  %v12093_v58 = vpop.f32.mrb[64].mxu0 }
 0x49b   : > { %v4844_v45 = vmul.f32 %v4808_v49, %v11050_v40  ;;  %v4591_v57 = vadd.f32 %v11691_v25, %v4345_v30  ;;  %v4347_v8 = vpop.f32.mrb[23].mxu1  ;;  %v12097_v9 = vpop.f32.mrb[65].mxu0  ;;  %v4990_v25 = vld [vmem:[#allocation2 + $0x39] sm:$0xff] }
 0x49c   : > { %v5173_v63 = vld [vmem:[#allocation2 + $0x56] sm:$0xff]  ;;  %v8513_v11 = vpack.i.bf16 %v4990_v25, %v5100_v4 }
 0x49d   : > { %8499 = vrot.lane.b32.xlu1 %v8498_v36, %s9025_s27  ;;  %v5101_v6 = vld [vmem:[#allocation2 + $0x54] sm:$0xff]  ;;  %4880 = vst.msk [vmem:[#allocation2 + $0x63] sm:$0xff] %vm393_vm8, %v4844_v45  ;;  %v4731_v31 = vmul.f32 %v11840_v17, %v4591_v57  ;;  %7626 = vmatprep.mubr.msk.f32.mxu1 %vm393_vm8, %v5173_v63 }
 0x49e   : > { %v5137_v47 = vld [vmem:[#allocation2 + $0x55] sm:$0xff]  ;;  %v8503_v16 = vpack.i.bf16 %v5025_v56, %v5101_v6 }
 0x49f   : > { %v8508_v39 = vpack.i.bf16 %v5027_v21, %v5137_v47  ;;  %v4773_v62 = vadd.f32 %v11846_v5, %v4731_v31 }
 0x4a0   : > { %8504 = vrot.lane.b32.xlu0 %v8503_v16, %s9029_s28 }
 0x4a1   : > { %8509 = vrot.lane.b32.xlu1 %v8508_v39, %s9030_s30  ;;  %v4809_v18 = vmax.f32 %v4773_v62, 0.0 }
 0x4a2   : > { %v4350_v10 = vpop.f32.mrb[24].mxu1 }
 0x4a3   : > { %v4845_v3 = vmul.f32 %v4809_v18, %v11052_v2  ;;  %v4596_v0 = vadd.f32 %v11744_v28, %v4350_v10  ;;  %v4352_v26 = vpop.f32.mrb[25].mxu1  ;;  %v4991_v28 = vld [vmem:[#allocation2 + $0x41] sm:$0xff] }
 0x4a4   : > { %8514 = vrot.lane.b32.xlu0 %v8513_v11, %s9025_s27  ;;  %v5174_v56 = vld [vmem:[#allocation2 + $0x5e] sm:$0xff]  ;;  %v8528_v57 = vpack.i.bf16 %v4991_v28, %v5101_v6 }
 0x4a5   : > { %v5138_v24 = vld [vmem:[#allocation2 + $0x5d] sm:$0xff]  ;;  %4881 = vst.msk [vmem:[#allocation2 + $0x6b] sm:$0xff] %vm393_vm8, %v4845_v3  ;;  %v4732_v49 = vmul.f32 %v11840_v17, %v4596_v0  ;;  %7627 = vmatmul.mubr.msk.f32.gmra.mrb[82].mxu1 %vm393_vm8, %v5174_v56 }
 0x4a6   : > { %v5102_v35 = vld [vmem:[#allocation2 + $0x5c] sm:$0xff]  ;;  %v8523_v36 = vpack.i.bf16 %v5028_v42, %v5138_v24 }
 0x4a7   : > { %v8518_v4 = vpack.i.bf16 %v5026_v32, %v5102_v35  ;;  %v4774_v30 = vadd.f32 %v11846_v5, %v4732_v49  ;;  %v5029_v32 = vld [vmem:[#allocation2 + $0x52] sm:$0xff]  ;;  %v5030_v24 = vld [vmem:[#allocation2 + $0x5a] sm:$0xff] }
 0x4a8   : > { %8524 = vrot.lane.b32.xlu0 %v8523_v36, %s9030_s30 }
 0x4a9   : > { %8519 = vrot.lane.b32.xlu1 %v8518_v4, %s9029_s28  ;;  %v4810_v45 = vmax.f32 %v4774_v30, 0.0 }
 0x4aa   : > { %v4355_v8 = vpop.f32.mrb[26].mxu1  ;;  %v12115_v63 = vpop.f32.mrb[66].mxu0 }
 0x4ab   : > { %v4846_v47 = vmul.f32 %v4810_v45, %v11076_v38  ;;  %v4601_v31 = vadd.f32 %v11738_v33, %v4355_v8  ;;  %v4357_v16 = vpop.f32.mrb[27].mxu1  ;;  %v12119_v39 = vpop.f32.mrb[67].mxu0  ;;  %v4992_v33 = vld [vmem:[#allocation2 + $0x49] sm:$0xff]  ;;  %v4993_v8 = vld [vmem:[#allocation2 + $0x51] sm:$0xff] }
 0x4ac   : > { %v5175_v62 = vld [vmem:[#allocation2 + $0x66] sm:$0xff]  ;;  %v8543_v26 = vpack.i.bf16 %v4992_v33, %v5102_v35 }
 0x4ad   : > { %8529 = vrot.lane.b32.xlu1 %v8528_v57, %s9025_s27  ;;  %v5103_v25 = vld [vmem:[#allocation2 + $0x64] sm:$0xff]  ;;  %4882 = vst.msk [vmem:[#allocation2 + $0x73] sm:$0xff] %vm393_vm8, %v4846_v47  ;;  %v4733_v6 = vmul.f32 %v11840_v17, %v4601_v31  ;;  %7629 = vmatprep.mubr.msk.f32.mxu1 %vm393_vm8, %v5175_v62 }
 0x4ae   : > { %v5139_v18 = vld [vmem:[#allocation2 + $0x65] sm:$0xff]  ;;  %v8533_v11 = vpack.i.bf16 %v5027_v21, %v5103_v25  ;;  %v8558_v47 = vpack.i.bf16 %v4993_v8, %v5103_v25 }
 0x4af   : > { %v8538_v10 = vpack.i.bf16 %v5029_v32, %v5139_v18  ;;  %v4775_v3 = vadd.f32 %v11846_v5, %v4733_v6 }
 0x4b0   : > { %8534 = vrot.lane.b32.xlu0 %v8533_v11, %s9029_s28 }
 0x4b1   : > { %8539 = vrot.lane.b32.xlu1 %v8538_v10, %s9030_s30  ;;  %v4811_v0 = vmax.f32 %v4775_v3, 0.0 }
 0x4b3   : > { %v4847_v56 = vmul.f32 %v4811_v0, %v11073_v48 }
 0x4b4   : > { %8544 = vrot.lane.b32.xlu0 %v8543_v26, %s9025_s27  ;;  %v5176_v49 = vld [vmem:[#allocation2 + $0x6e] sm:$0xff] }
 0x4b5   : > { %v5140_v36 = vld [vmem:[#allocation2 + $0x6d] sm:$0xff]  ;;  %4883 = vst.msk [vmem:[#allocation2 + $0x7b] sm:$0xff] %vm393_vm8, %v4847_v56  ;;  %v4360_v21 = vpop.f32.mrb[28].mxu1  ;;  %7630 = vmatmul.mubr.msk.f32.gmra.mrb[84].mxu1 %vm393_vm8, %v5176_v49 }
 0x4b6   : > { %v5104_v4 = vld [vmem:[#allocation2 + $0x6c] sm:$0xff]  ;;  %v8553_v30 = vpack.i.bf16 %v5030_v24, %v5140_v36  ;;  %v4606_v45 = vadd.f32 %v11765_v55, %v4360_v21  ;;  %v4362_v57 = vpop.f32.mrb[29].mxu1 }
 0x4b7   : > { %v8548_v28 = vpack.i.bf16 %v5028_v42, %v5104_v4  ;;  %v5031_v42 = vld [vmem:[#allocation2 + $0x62] sm:$0xff] }
 0x4b8   : > { %8554 = vrot.lane.b32.xlu0 %v8553_v30, %s9030_s30  ;;  %v4734_v35 = vmul.f32 %v11840_v17, %v4606_v45 }
 0x4b9   : > { %8549 = vrot.lane.b32.xlu1 %v8548_v28, %s9029_s28 }
 0x4ba   : > { %v4776_v31 = vadd.f32 %v11846_v5, %v4734_v35  ;;  %v4365_v16 = vpop.f32.mrb[30].mxu1  ;;  %v5032_v35 = vld [vmem:[#allocation2 + $0x6a] sm:$0xff] }
 0x4bb   : > { %v4611_v62 = vadd.f32 %v11761_v12, %v4365_v16  ;;  %v4367_v18 = vpop.f32.mrb[31].mxu1  ;;  %v4994_v12 = vld [vmem:[#allocation2 + $0x59] sm:$0xff] }
 0x4bc   : > { %v4812_v6 = vmax.f32 %v4776_v31, 0.0  ;;  %v5177_v55 = vld [vmem:[#allocation2 + $0x76] sm:$0xff]  ;;  %v8573_v36 = vpack.i.bf16 %v4994_v12, %v5104_v4 }
 0x4bd   : > { %8559 = vrot.lane.b32.xlu1 %v8558_v47, %s9025_s27  ;;  %v5105_v11 = vld [vmem:[#allocation2 + $0x74] sm:$0xff]  ;;  %v4735_v3 = vmul.f32 %v11840_v17, %v4611_v62  ;;  %7632 = vmatprep.mubr.msk.f32.mxu1 %vm393_vm8, %v5177_v55 }
 0x4be   : > { %v5141_v10 = vld [vmem:[#allocation2 + $0x75] sm:$0xff]  ;;  %v8563_v33 = vpack.i.bf16 %v5029_v32, %v5105_v11  ;;  %v4848_v25 = vmul.f32 %v4812_v6, %v11104_v1 }
 0x4bf   : > { %v8568_v0 = vpack.i.bf16 %v5031_v42, %v5141_v10  ;;  %v4777_v26 = vadd.f32 %v11846_v5, %v4735_v3 }
 0x4c0   : > { %8564 = vrot.lane.b32.xlu0 %v8563_v33, %s9029_s28  ;;  %4884 = vst.msk [vmem:[#allocation2 + $0x83] sm:$0xff] %vm393_vm8, %v4848_v25 }
 0x4c1   : > { %8569 = vrot.lane.b32.xlu1 %v8568_v0, %s9030_s30  ;;  %v4813_v56 = vmax.f32 %v4777_v26, 0.0  ;;  %v4370_v49 = vpop.f32.mrb[32].mxu1 }
 0x4c2   : > { %v4616_v21 = vadd.f32 %v11785_v15, %v4370_v49  ;;  %v4372_v30 = vpop.f32.mrb[33].mxu1 }
 0x4c3   : > { %v4849_v32 = vmul.f32 %v4813_v56, %v11102_v59  ;;  %v12175_v30 = vld [vmem:[%s13036_s7] ss:$0 sm:$0xff] }
 0x4c4   : > { %8574 = vrot.lane.b32.xlu0 %v8573_v36, %s9025_s27  ;;  %v4736_v28 = vmul.f32 %v11840_v17, %v4616_v21 }
 0x4c5   : > { %4885 = vst.msk [vmem:[#allocation2 + $0x8b] sm:$0xff] %vm393_vm8, %v4849_v32 }
 0x4c6   : > { %v4778_v45 = vadd.f32 %v11846_v5, %v4736_v28  ;;  %v4375_v57 = vpop.f32.mrb[34].mxu1 }
 0x4c7   : > { %v4621_v8 = vadd.f32 %v11783_v61, %v4375_v57  ;;  %v4377_v47 = vpop.f32.mrb[35].mxu1  ;;  %v5178_v31 = vld [vmem:[#allocation2 + $0x7e] sm:$0xff]  ;;  %v13313_v57 = vld [vmem:[#allocation34_spill] sm:$0xff] }
 0x4c8   : > { %v5142_v4 = vld [vmem:[#allocation2 + $0x7d] sm:$0xff]  ;;  %v4814_v15 = vmax.f32 %v4778_v45, 0.0  ;;  %7633 = vmatmul.mubr.msk.f32.gmra.mrb[86].mxu1 %vm393_vm8, %v5178_v31 }
 0x4c9   : > { %v5106_v16 = vld [vmem:[#allocation2 + $0x7c] sm:$0xff]  ;;  %v8583_v62 = vpack.i.bf16 %v5032_v35, %v5142_v4  ;;  %v4737_v6 = vmul.f32 %v11840_v17, %v4621_v8 }
 0x4ca   : > { %v8578_v18 = vpack.i.bf16 %v5030_v24, %v5106_v16  ;;  %v4850_v55 = vmul.f32 %v4814_v15, %v11130_v51  ;;  %v4995_v61 = vld [vmem:[#allocation2 + $0x61] sm:$0xff] }
 0x4cb   : > { %8584 = vrot.lane.b32.xlu0 %v8583_v62, %s9030_s30  ;;  %v4779_v10 = vadd.f32 %v11846_v5, %v4737_v6  ;;  %v8588_v33 = vpack.i.bf16 %v4995_v61, %v5105_v11  ;;  %v5033_v5 = vld [vmem:[#allocation2 + $0x72] sm:$0xff]  ;;  %v12168_v11 = vld [vmem:[%s13035_s6] ss:$0 sm:$0xff] }
 0x4cc   : > { %8579 = vrot.lane.b32.xlu1 %v8578_v18, %s9029_s28  ;;  %4886 = vst.msk [vmem:[#allocation2 + $0x93] sm:$0xff] %vm393_vm8, %v4850_v55  ;;  %v5179_v3 = vld [vmem:[#allocation2 + $0x86] sm:$0xff]  ;;  %v5034_v45 = vld [vmem:[#allocation2 + $0x7a] sm:$0xff] }
 0x4cd   : > { %v5107_v0 = vld [vmem:[#allocation2 + $0x84] sm:$0xff]  ;;  %v4815_v25 = vmax.f32 %v4779_v10, 0.0  ;;  %v4380_v26 = vpop.f32.mrb[36].mxu1  ;;  %7635 = vmatprep.mubr.msk.f32.mxu1 %vm393_vm8, %v5179_v3  ;;  %v4997_v3 = vld [vmem:[#allocation2 + $0x71] sm:$0xff] }
 0x4ce   : > { %v8593_v24 = vpack.i.bf16 %v5031_v42, %v5107_v0  ;;  %v5143_v17 = vld [vmem:[#allocation2 + $0x85] sm:$0xff]  ;;  %v4626_v12 = vadd.f32 %v11888_v14, %v4380_v26  ;;  %v4382_v56 = vpop.f32.mrb[37].mxu1 }
 0x4cf   : > { %v4851_v49 = vmul.f32 %v4815_v25, %v11128_v7  ;;  %v8598_v21 = vpack.i.bf16 %v5033_v5, %v5143_v17  ;;  %v4996_v42 = vld [vmem:[#allocation2 + $0x69] sm:$0xff]  ;;  %v8618_v25 = vpack.i.bf16 %v4997_v3, %v5107_v0  ;;  %v4947_v3 = vld [vmem:[#allocation2] sm:$0xff] }
 0x4d0   : > { %8589 = vrot.lane.b32.xlu1 %v8588_v33, %s9025_s27  ;;  %8594 = vrot.lane.b32.xlu0 %v8593_v24, %s9029_s28  ;;  %v4738_v36 = vmul.f32 %v12168_v11, %v4626_v12  ;;  %v8603_v14 = vpack.i.bf16 %v4996_v42, %v5106_v16  ;;  %v13314_v55 = vld [vmem:[#allocation6_spill] sm:$0xff]  ;;  %v5035_v42 = vld [vmem:[#allocation2 + $0x82] sm:$0xff] }
 0x4d1   : > { %4887 = vst.msk [vmem:[#allocation2 + $0x9b] sm:$0xff] %vm393_vm8, %v4851_v49  ;;  %v8410_v0 = vpop.permute.xlu1 %8409 }
 0x4d2   : > { %v4780_v32 = vadd.f32 %v12175_v30, %v4738_v36  ;;  %v4385_v28 = vpop.f32.mrb[38].mxu1  ;;  %v13315_v36 = vld [vmem:[#allocation83_spill] sm:$0xff] }
 0x4d3   : > { %v4631_v8 = vadd.f32 %v13313_v57, %v4385_v28  ;;  %v4387_v47 = vpop.f32.mrb[39].mxu1  ;;  %v5180_v31 = vld [vmem:[#allocation2 + $0x8e] sm:$0xff]  ;;  %v4998_v28 = vld [vmem:[#allocation2 + $0x79] sm:$0xff] }
 0x4d4   : > { %8599 = vrot.lane.b32.xlu1 %v8598_v21, %s9030_s30  ;;  %8604 = vrot.lane.b32.xlu0 %v8603_v14, %s9025_s27  ;;  %v5108_v4 = vld [vmem:[#allocation2 + $0x8c] sm:$0xff]  ;;  %v4816_v16 = vmax.f32 %v4780_v32, 0.0  ;;  %v8412_v47 = vunpack.i.h.bf16 %v8410_v0 }
 0x4d5   : > { %v5144_v15 = vld [vmem:[#allocation2 + $0x8d] sm:$0xff]  ;;  %7636 = vmatmul.mubr.msk.f32.gmra.mrb[88].mxu1 %vm393_vm8, %v5180_v31  ;;  %v8608_v62 = vpack.i.bf16 %v5032_v35, %v5108_v4  ;;  %v4739_v6 = vmul.f32 %v12168_v11, %v4631_v8  ;;  %v8633_v57 = vpack.i.bf16 %v4998_v28, %v5108_v4 }
 0x4d6   : > { %v8613_v18 = vpack.i.bf16 %v5034_v45, %v5144_v15  ;;  %v4852_v10 = vmul.f32 %v4816_v16, %v13314_v55 }
 0x4d7   : > { %v4781_v61 = vadd.f32 %v12175_v30, %v4739_v6  ;;  %v8411_v6 = vunpack.i.l.bf16 %v8410_v0  ;;  %v5999_v0 = vsel %vm393_vm8, %v4947_v3, %v8412_v47  ;;  %v13317_v3 = vld [vmem:[#allocation109_spill] sm:$0xff] }
 0x4d8   : > { %8609 = vrot.lane.b32.xlu1 %v8608_v62, %s9029_s28  ;;  %8614 = vrot.lane.b32.xlu0 %v8613_v18, %s9030_s30  ;;  %4888 = vst.msk [vmem:[#allocation2 + $0xa3] sm:$0xff] %vm393_vm8, %v4852_v10  ;;  %v5181_v33 = vld [vmem:[#allocation2 + $0x96] sm:$0xff] }
 0x4d9   : > { %v12188_v26 = vld [vmem:[#allocation2 + $0x94] sm:$0xff]  ;;  %v4817_v24 = vmax.f32 %v4781_v61, 0.0  ;;  %v4390_v35 = vpop.f32.mrb[40].mxu1  ;;  %7638 = vmatprep.mubr.msk.f32.mxu1 %vm393_vm8, %v5181_v33 }
 0x4da   : > { %v8623_v17 = vpack.i.bf16 %v5033_v5, %v12188_v26  ;;  %v5145_v12 = vld [vmem:[#allocation2 + $0x95] sm:$0xff]  ;;  %v4636_v56 = vadd.f32 %v11947_v34, %v4390_v35  ;;  %v4392_v49 = vpop.f32.mrb[41].mxu1  ;;  %v12200_v34 = vld [vmem:[#allocation2 + $0x8a] sm:$0xff] }
 0x4db   : > { %v4853_v21 = vmul.f32 %v4817_v24, %v13315_v36  ;;  %v8628_v32 = vpack.i.bf16 %v5035_v42, %v5145_v12 }
 0x4dc   : > { %8619 = vrot.lane.b32.xlu1 %v8618_v25, %s9025_s27  ;;  %8624 = vrot.lane.b32.xlu0 %v8623_v17, %s9029_s28  ;;  %v4740_v14 = vmul.f32 %v12168_v11, %v4636_v56  ;;  %v13316_v25 = vld [vmem:[#allocation31_spill] sm:$0xff] }
 0x4dd   : > { %4889 = vst.msk [vmem:[#allocation2 + $0xab] sm:$0xff] %vm393_vm8, %v4853_v21  ;;  %v4999_v21 = vld [vmem:[#allocation2 + $0x81] sm:$0xff] }
 0x4de   : > { %v4782_v5 = vadd.f32 %v12175_v30, %v4740_v14  ;;  %v4395_v8 = vpop.f32.mrb[42].mxu1  ;;  %v8648_v28 = vpack.i.bf16 %v4999_v21, %v12188_v26  ;;  %v5058_v21 = vld [vmem:[#allocation2 + $0x1b] sm:$0xff] }
 0x4df   : > { %v4641_v31 = vadd.f32 %v11943_v60, %v4395_v8  ;;  %v4397_v15 = vpop.f32.mrb[43].mxu1  ;;  %v5182_v16 = vld [vmem:[#allocation2 + $0x9e] sm:$0xff] }
 0x4e0   : > { %8629 = vrot.lane.b32.xlu1 %v8628_v32, %s9030_s30  ;;  %8634 = vrot.lane.b32.xlu0 %v8633_v57, %s9025_s27  ;;  %v12204_v62 = vld [vmem:[#allocation2 + $0x9c] sm:$0xff]  ;;  %v4818_v10 = vmax.f32 %v4782_v5, 0.0 }
 0x4e1   : > { %v5146_v18 = vld [vmem:[#allocation2 + $0x9d] sm:$0xff]  ;;  %7639 = vmatmul.mubr.msk.f32.gmra.mrb[90].mxu1 %vm393_vm8, %v5182_v16  ;;  %v8638_v4 = vpack.i.bf16 %v5034_v45, %v12204_v62  ;;  %v4741_v33 = vmul.f32 %v12168_v11, %v4641_v31  ;;  %v8415_v24 = vpop.permute.xlu0 %8414  ;;  %v5057_v45 = vld [vmem:[#allocation2 + $0x13] sm:$0xff] }
 0x4e2   : > { %v8643_v61 = vpack.i.bf16 %v12200_v34, %v5146_v18  ;;  %v4854_v60 = vmul.f32 %v4818_v10, %v13316_v25  ;;  %v8420_v35 = vpop.permute.xlu1 %8419  ;;  %v8417_v12 = vunpack.i.h.bf16 %v8415_v24  ;;  %v8416_v56 = vunpack.i.l.bf16 %v8415_v24 }
 0x4e3   : > { %v4783_v17 = vadd.f32 %v12175_v30, %v4741_v33  ;;  %v8422_v49 = vunpack.i.h.bf16 %v8420_v35  ;;  %v8421_v14 = vunpack.i.l.bf16 %v8420_v35  ;;  %v6107_v5 = vsel %vm393_vm8, %v5057_v45, %v8411_v6 }
 0x4e4   : > { %8639 = vrot.lane.b32.xlu1 %v8638_v4, %s9029_s28  ;;  %8644 = vrot.lane.b32.xlu0 %v8643_v61, %s9030_s30  ;;  %4890 = vst.msk [vmem:[#allocation2 + $0xb3] sm:$0xff] %vm393_vm8, %v4854_v60  ;;  %v5183_v32 = vld [vmem:[#allocation2 + $0xa6] sm:$0xff]  ;;  %v6143_v16 = vsel %vm3934_vm11, %v6107_v5, %v8416_v56  ;;  %v6035_v47 = vsel %vm3934_vm11, %v5999_v0, %v8417_v12  ;;  %v12238_v5 = vld [vmem:[#allocation2 + $0x9a] sm:$0xff] }
 0x4e5   : > { %v12217_v57 = vld [vmem:[#allocation2 + $0xa4] sm:$0xff]  ;;  %v4819_v8 = vmax.f32 %v4783_v17, 0.0  ;;  %v4400_v31 = vpop.f32.mrb[44].mxu1  ;;  %7641 = vmatprep.mubr.msk.f32.mxu1 %vm393_vm8, %v5183_v32  ;;  %v8425_v61 = vpop.permute.xlu0 %8424  ;;  %v6179_v26 = vsel %vm3971_vm12, %v6143_v16, %v8421_v14  ;;  %v6071_v6 = vsel %vm3971_vm12, %v6035_v47, %v8422_v49 }
 0x4e6   : > { %v8653_v15 = vpack.i.bf16 %v5035_v42, %v12217_v57  ;;  %v5147_v18 = vld [vmem:[#allocation2 + $0xa5] sm:$0xff]  ;;  %v4646_v10 = vadd.f32 %v12006_v52, %v4400_v31  ;;  %v4402_v4 = vpop.f32.mrb[45].mxu1  ;;  %v8427_v60 = vunpack.i.h.bf16 %v8425_v61  ;;  %v8426_v24 = vunpack.i.l.bf16 %v8425_v61  ;;  %6387 = vmatprep.mubr.f32.mxu0 %v6179_v26  ;;  %v12230_v42 = vld [vmem:[#allocation2 + $0x92] sm:$0xff] }
 0x4e7   : > { %v4855_v33 = vmul.f32 %v4819_v8, %v13317_v3  ;;  %6388 = vmatmul.mubr.f32.vlgmr.msra.gmra.mrb[68].mxu0 %v6071_v6  ;;  %v8658_v52 = vpack.i.bf16 %v12230_v42, %v5147_v18  ;;  %v5000_v17 = vld [vmem:[#allocation2 + $0x89] sm:$0xff] }
 0x4e8   : > { %8649 = vrot.lane.b32.xlu1 %v8648_v28, %s9025_s27  ;;  %8654 = vrot.lane.b32.xlu0 %v8653_v15, %s9029_s28  ;;  %v4742_v35 = vmul.f32 %v12168_v11, %v4646_v10  ;;  %v4948_v12 = vld [vmem:[#allocation2 + $0x8] sm:$0xff]  ;;  %v8663_v49 = vpack.i.bf16 %v5000_v17, %v12204_v62  ;;  %v6108_v8 = vsel %vm393_vm8, %v5058_v21, %v8426_v24  ;;  %v13318_v17 = vld [vmem:[#allocation56_spill] sm:$0xff]  ;;  %v5001_v21 = vld [vmem:[#allocation2 + $0x91] sm:$0xff] }
 0x4e9   : > { %4891 = vst.msk [vmem:[#allocation2 + $0xbb] sm:$0xff] %vm393_vm8, %v4855_v33  ;;  %v8435_v14 = vpop.permute.xlu0 %8434  ;;  %v6000_v4 = vsel %vm393_vm8, %v4948_v12, %v8427_v60 }
 0x4ea   : > { %v8430_v56 = vpop.permute.xlu1 %8429  ;;  %v4784_v45 = vadd.f32 %v12175_v30, %v4742_v35  ;;  %v4405_v0 = vpop.f32.mrb[46].mxu1  ;;  %v8437_v15 = vunpack.i.h.bf16 %v8435_v14  ;;  %v8436_v16 = vunpack.i.l.bf16 %v8435_v14 }
 0x4eb   : > { %v8432_v32 = vunpack.i.h.bf16 %v8430_v56  ;;  %v8431_v28 = vunpack.i.l.bf16 %v8430_v56  ;;  %v4651_v31 = vadd.f32 %v11994_v37, %v4405_v0  ;;  %v4407_v47 = vpop.f32.mrb[47].mxu1  ;;  %v5184_v62 = vld [vmem:[#allocation2 + $0xae] sm:$0xff]  ;;  %v8678_v0 = vpack.i.bf16 %v5001_v21, %v12217_v57 }
 0x4ec   : > { %8659 = vrot.lane.b32.xlu1 %v8658_v52, %s9030_s30  ;;  %8664 = vrot.lane.b32.xlu0 %v8663_v49, %s9025_s27  ;;  %v12243_v18 = vld [vmem:[#allocation2 + $0xac] sm:$0xff]  ;;  %v4820_v61 = vmax.f32 %v4784_v45, 0.0 }
 0x4ed   : > { %v5148_v10 = vld [vmem:[#allocation2 + $0xad] sm:$0xff]  ;;  %7642 = vmatmul.mubr.msk.f32.gmra.mrb[92].mxu1 %vm393_vm8, %v5184_v62  ;;  %v8668_v26 = vpack.i.bf16 %v12200_v34, %v12243_v18  ;;  %v6144_v37 = vsel %vm3934_vm11, %v6108_v8, %v8431_v28  ;;  %v4743_v33 = vmul.f32 %v12168_v11, %v4651_v31  ;;  %v6036_v52 = vsel %vm3934_vm11, %v6000_v4, %v8432_v32 }
 0x4ee   : > { %v8673_v6 = vpack.i.bf16 %v12238_v5, %v5148_v10  ;;  %v8440_v24 = vpop.permute.xlu1 %8439  ;;  %v6180_v35 = vsel %vm3971_vm12, %v6144_v37, %v8436_v16  ;;  %v4856_v56 = vmul.f32 %v4820_v61, %v13318_v17  ;;  %v6072_v12 = vsel %vm3971_vm12, %v6036_v52, %v8437_v15  ;;  %v5059_v15 = vld [vmem:[#allocation2 + $0x23] sm:$0xff]  ;;  %v4949_v57 = vld [vmem:[#allocation2 + $0x10] sm:$0xff] }
 0x4ef   : > { %v8441_v60 = vunpack.i.l.bf16 %v8440_v24  ;;  %6392 = vmatprep.mubr.f32.mxu0 %v6180_v35  ;;  %v4785_v34 = vadd.f32 %v12175_v30, %v4743_v33  ;;  %v8442_v49 = vunpack.i.h.bf16 %v8440_v24  ;;  %v13319_v4 = vld [vmem:[#allocation82_spill] sm:$0xff]  ;;  %v12271_v33 = vld [vmem:[#allocation2 + $0xa2] sm:$0xff] }
 0x4f0   : > { %8669 = vrot.lane.b32.xlu1 %v8668_v26, %s9029_s28  ;;  %8674 = vrot.lane.b32.xlu0 %v8673_v6, %s9030_s30  ;;  %4892 = vst.msk [vmem:[#allocation2 + $0xc3] sm:$0xff] %vm393_vm8, %v4856_v56  ;;  %v5185_v45 = vld [vmem:[#allocation2 + $0xb6] sm:$0xff] }
 0x4f1   : > { %6393 = vmatmul.mubr.f32.gmra.mrb[70].mxu0 %v6072_v12  ;;  %v12261_v14 = vld [vmem:[#allocation2 + $0xb4] sm:$0xff]  ;;  %v4821_v32 = vmax.f32 %v4785_v34, 0.0  ;;  %v4410_v28 = vpop.f32.mrb[48].mxu1  ;;  %7644 = vmatprep.mubr.msk.f32.mxu1 %vm393_vm8, %v5185_v45  ;;  %v6109_v10 = vsel %vm393_vm8, %v5059_v15, %v8441_v60 }
 0x4f2   : > { %v8683_v8 = vpack.i.bf16 %v12230_v42, %v12261_v14  ;;  %v5149_v31 = vld [vmem:[#allocation2 + $0xb5] sm:$0xff]  ;;  %v4656_v16 = vadd.f32 %v12051_v13, %v4410_v28  ;;  %v4412_v47 = vpop.f32.mrb[49].mxu1  ;;  %v8445_v62 = vpop.permute.xlu0 %8444  ;;  %v6001_v42 = vsel %vm393_vm8, %v4949_v57, %v8442_v49  ;;  %v12284_v28 = vld [vmem:[#allocation2 + $0xaa] sm:$0xff] }
 0x4f3   : > { %v4857_v61 = vmul.f32 %v4821_v32, %v13319_v4  ;;  %v8447_v26 = vunpack.i.h.bf16 %v8445_v62  ;;  %v8446_v6 = vunpack.i.l.bf16 %v8445_v62  ;;  %v8450_v37 = vpop.permute.xlu1 %8449  ;;  %v8688_v52 = vpack.i.bf16 %v12271_v33, %v5149_v31  ;;  %v5002_v56 = vld [vmem:[#allocation2 + $0x99] sm:$0xff] }
 0x4f4   : > { %8679 = vrot.lane.b32.xlu1 %v8678_v0, %s9025_s27  ;;  %8684 = vrot.lane.b32.xlu0 %v8683_v8, %s9029_s28  ;;  %v4744_v13 = vmul.f32 %v12168_v11, %v4656_v16  ;;  %v8452_v24 = vunpack.i.h.bf16 %v8450_v37  ;;  %v8451_v35 = vunpack.i.l.bf16 %v8450_v37  ;;  %v8693_v60 = vpack.i.bf16 %v5002_v56, %v12243_v18  ;;  %v13320_v37 = vld [vmem:[#allocation108_spill] sm:$0xff] }
 0x4f5   : > { %4893 = vst.msk [vmem:[#allocation2 + $0xcb] sm:$0xff] %vm393_vm8, %v4857_v61  ;;  %v6145_v12 = vsel %vm3934_vm11, %v6109_v10, %v8446_v6  ;;  %v6037_v34 = vsel %vm3934_vm11, %v6001_v42, %v8447_v26  ;;  %v5060_v6 = vld [vmem:[#allocation2 + $0x2b] sm:$0xff]  ;;  %v4950_v56 = vld [vmem:[#allocation2 + $0x18] sm:$0xff] }
 0x4f6   : > { %v4786_v21 = vadd.f32 %v12175_v30, %v4744_v13  ;;  %v4415_v45 = vpop.f32.mrb[50].mxu1  ;;  %v8455_v0 = vpop.permute.xlu0 %8454  ;;  %v6181_v49 = vsel %vm3971_vm12, %v6145_v12, %v8451_v35  ;;  %v6073_v32 = vsel %vm3971_vm12, %v6037_v34, %v8452_v24  ;;  %v5003_v34 = vld [vmem:[#allocation2 + $0xa1] sm:$0xff] }
 0x4f7   : > { %v4661_v8 = vadd.f32 %v12048_v54, %v4415_v45  ;;  %v8457_v31 = vunpack.i.h.bf16 %v8455_v0  ;;  %v8456_v18 = vunpack.i.l.bf16 %v8455_v0  ;;  %v4417_v15 = vpop.f32.mrb[51].mxu1  ;;  %6397 = vmatprep.mubr.f32.mxu0 %v6181_v49  ;;  %v5186_v16 = vld [vmem:[#allocation2 + $0xbe] sm:$0xff]  ;;  %v8708_v0 = vpack.i.bf16 %v5003_v34, %v12261_v14 }
 0x4f8   : > { %8689 = vrot.lane.b32.xlu1 %v8688_v52, %s9030_s30  ;;  %8694 = vrot.lane.b32.xlu0 %v8693_v60, %s9025_s27  ;;  %v12288_v47 = vld [vmem:[#allocation2 + $0xbc] sm:$0xff]  ;;  %v4822_v10 = vmax.f32 %v4786_v21, 0.0 }
 0x4f9   : > { %v5150_v62 = vld [vmem:[#allocation2 + $0xbd] sm:$0xff]  ;;  %6398 = vmatmul.mubr.f32.gmra.mrb[72].mxu0 %v6073_v32  ;;  %7645 = vmatmul.mubr.msk.f32.gmra.mrb[94].mxu1 %vm393_vm8, %v5186_v16  ;;  %v8698_v57 = vpack.i.bf16 %v12238_v5, %v12288_v47  ;;  %v4745_v54 = vmul.f32 %v12168_v11, %v4661_v8  ;;  %v6110_v52 = vsel %vm393_vm8, %v5060_v6, %v8456_v18 }
 0x4fa   : > { %v8703_v61 = vpack.i.bf16 %v12284_v28, %v5150_v62  ;;  %v4858_v42 = vmul.f32 %v4822_v10, %v13320_v37  ;;  %v8465_v13 = vpop.permute.xlu0 %8464  ;;  %v6002_v21 = vsel %vm393_vm8, %v4950_v56, %v8457_v31 }
 0x4fb   : > { %v8460_v26 = vpop.permute.xlu1 %8459  ;;  %v4787_v60 = vadd.f32 %v12175_v30, %v4745_v54  ;;  %v8467_v12 = vunpack.i.h.bf16 %v8465_v13  ;;  %v8466_v5 = vunpack.i.l.bf16 %v8465_v13 }
 0x4fc   : > { %8699 = vrot.lane.b32.xlu1 %v8698_v57, %s9029_s28  ;;  %v8462_v24 = vunpack.i.h.bf16 %v8460_v26  ;;  %v8461_v35 = vunpack.i.l.bf16 %v8460_v26  ;;  %8704 = vrot.lane.b32.xlu0 %v8703_v61, %s9030_s30  ;;  %4894 = vst.msk [vmem:[#allocation2 + $0xd3] sm:$0xff] %vm393_vm8, %v4858_v42  ;;  %v5187_v45 = vld [vmem:[#allocation2 + $0xc6] sm:$0xff]  ;;  %v13321_v26 = vld [vmem:[#allocation7_spill] sm:$0xff] }
 0x4fd   : > { %v12303_v49 = vld [vmem:[#allocation2 + $0xc4] sm:$0xff]  ;;  %v4823_v18 = vmax.f32 %v4787_v60, 0.0  ;;  %v4420_v15 = vpop.f32.mrb[52].mxu1  ;;  %7647 = vmatprep.mubr.msk.f32.mxu1 %vm393_vm8, %v5187_v45  ;;  %v12316_v42 = vld [vmem:[#allocation2 + $0xb2] sm:$0xff] }
 0x4fe   : > { %v6146_v32 = vsel %vm3934_vm11, %v6110_v52, %v8461_v35  ;;  %v6038_v8 = vsel %vm3934_vm11, %v6002_v21, %v8462_v24  ;;  %v8713_v62 = vpack.i.bf16 %v12271_v33, %v12303_v49  ;;  %v5151_v57 = vld [vmem:[#allocation2 + $0xc5] sm:$0xff]  ;;  %v4666_v14 = vadd.f32 %v12075_v50, %v4420_v15  ;;  %v4422_v61 = vpop.f32.mrb[53].mxu1  ;;  %v5061_v52 = vld [vmem:[#allocation2 + $0x33] sm:$0xff] }
 0x4ff   : > { %v8470_v16 = vpop.permute.xlu1 %8469  ;;  %v6182_v31 = vsel %vm3971_vm12, %v6146_v32, %v8466_v5  ;;  %v6074_v10 = vsel %vm3971_vm12, %v6038_v8, %v8467_v12  ;;  %v4859_v6 = vmul.f32 %v4823_v18, %v13321_v26  ;;  %v8718_v24 = vpack.i.bf16 %v12316_v42, %v5151_v57  ;;  %v5004_v35 = vld [vmem:[#allocation2 + $0xa9] sm:$0xff]  ;;  %v12324_v5 = vld [vmem:[#allocation2 + $0xba] sm:$0xff] }
 0x500   : > { %8709 = vrot.lane.b32.xlu1 %v8708_v0, %s9025_s27  ;;  %v8471_v54 = vunpack.i.l.bf16 %v8470_v16  ;;  %6402 = vmatprep.mubr.f32.mxu0 %v6182_v31  ;;  %v4746_v33 = vmul.f32 %v12168_v11, %v4666_v14  ;;  %v8472_v13 = vunpack.i.h.bf16 %v8470_v16  ;;  %v8723_v50 = vpack.i.bf16 %v5004_v35, %v12288_v47  ;;  %v4951_v21 = vld [vmem:[#allocation2 + $0x20] sm:$0xff] }
 0x501   : > { %8714 = vrot.lane.b32.xlu0 %v8713_v62, %s9029_s28  ;;  %6403 = vmatmul.mubr.f32.gmra.mrb[74].mxu0 %v6074_v10  ;;  %4895 = vst.msk [vmem:[#allocation2 + $0xdb] sm:$0xff] %vm393_vm8, %v4859_v6 }
 0x502   : > { %v4788_v56 = vadd.f32 %v12175_v30, %v4746_v33  ;;  %v8475_v60 = vpop.permute.xlu0 %8474  ;;  %v6111_v34 = vsel %vm393_vm8, %v5061_v52, %v8471_v54  ;;  %v6003_v57 = vsel %vm393_vm8, %v4951_v21, %v8472_v13  ;;  %v13322_v33 = vld [vmem:[#allocation8_spill] sm:$0xff] }
 0x503   : > { %v8480_v12 = vpop.permute.xlu1 %8479  ;;  %v8477_v45 = vunpack.i.h.bf16 %v8475_v60  ;;  %v8476_v0 = vunpack.i.l.bf16 %v8475_v60  ;;  %v5188_v18 = vld [vmem:[#allocation2 + $0xce] sm:$0xff] }
 0x504   : > { %8719 = vrot.lane.b32.xlu1 %v8718_v24, %s9030_s30  ;;  %v8482_v32 = vunpack.i.h.bf16 %v8480_v12  ;;  %v8481_v8 = vunpack.i.l.bf16 %v8480_v12  ;;  %v12328_v47 = vld [vmem:[#allocation2 + $0xcc] sm:$0xff]  ;;  %v4824_v16 = vmax.f32 %v4788_v56, 0.0  ;;  %7648 = vmatmul.mubr.msk.f32.gmra.mrb[96].mxu1 %vm393_vm8, %v5188_v18 }
 0x505   : > { %8724 = vrot.lane.b32.xlu0 %v8723_v50, %s9025_s27  ;;  %v5152_v15 = vld [vmem:[#allocation2 + $0xcd] sm:$0xff]  ;;  %v8728_v31 = vpack.i.bf16 %v12284_v28, %v12328_v47  ;;  %v6147_v54 = vsel %vm3934_vm11, %v6111_v34, %v8476_v0  ;;  %v6039_v6 = vsel %vm3934_vm11, %v6003_v57, %v8477_v45 }
 0x506   : > { %v4425_v62 = vpop.f32.mrb[54].mxu1  ;;  %v8733_v10 = vpack.i.bf16 %v12324_v5, %v5152_v15  ;;  %v4860_v24 = vmul.f32 %v4824_v16, %v13322_v33  ;;  %v8485_v35 = vpop.permute.xlu0 %8484  ;;  %v6183_v50 = vsel %vm3971_vm12, %v6147_v54, %v8481_v8  ;;  %v6075_v28 = vsel %vm3971_vm12, %v6039_v6, %v8482_v32  ;;  %v5062_v8 = vld [vmem:[#allocation2 + $0x3b] sm:$0xff] }
 0x507   : > { %v4671_v14 = vadd.f32 %v12071_v23, %v4425_v62  ;;  %v4427_v61 = vpop.f32.mrb[55].mxu1  ;;  %v8487_v56 = vunpack.i.h.bf16 %v8485_v35  ;;  %v8486_v13 = vunpack.i.l.bf16 %v8485_v35  ;;  %6407 = vmatprep.mubr.f32.mxu0 %v6183_v50  ;;  %v5005_v23 = vld [vmem:[#allocation2 + $0xb1] sm:$0xff] }
 0x508   : > { %8729 = vrot.lane.b32.xlu1 %v8728_v31, %s9029_s28  ;;  %4896 = vst.msk [vmem:[#allocation2 + $0xe3] sm:$0xff] %vm393_vm8, %v4860_v24  ;;  %6408 = vmatmul.mubr.f32.gmra.mrb[76].mxu0 %v6075_v28  ;;  %v5189_v60 = vld [vmem:[#allocation2 + $0xd6] sm:$0xff]  ;;  %v8738_v12 = vpack.i.bf16 %v5005_v23, %v12303_v49  ;;  %v4952_v49 = vld [vmem:[#allocation2 + $0x28] sm:$0xff] }
 0x509   : > { %v4747_v52 = vmul.f32 %v12168_v11, %v4671_v14  ;;  %8734 = vrot.lane.b32.xlu0 %v8733_v10, %s9030_s30  ;;  %v12346_v34 = vld [vmem:[#allocation2 + $0xd4] sm:$0xff]  ;;  %7650 = vmatprep.mubr.msk.f32.mxu1 %vm393_vm8, %v5189_v60  ;;  %v6112_v62 = vsel %vm393_vm8, %v5062_v8, %v8486_v13  ;;  %v12355_v14 = vld [vmem:[#allocation2 + $0xc2] sm:$0xff] }
 0x50a   : > { %v8743_v0 = vpack.i.bf16 %v12316_v42, %v12346_v34  ;;  %v5153_v32 = vld [vmem:[#allocation2 + $0xd5] sm:$0xff]  ;;  %v8495_v18 = vpop.permute.xlu0 %8494  ;;  %v6004_v42 = vsel %vm393_vm8, %v4952_v49, %v8487_v56  ;;  %v12367_v56 = vld [vmem:[#allocation2 + $0xca] sm:$0xff] }
 0x50b   : > { %v4789_v21 = vadd.f32 %v12175_v30, %v4747_v52  ;;  %v8490_v45 = vpop.permute.xlu1 %8489  ;;  %v8497_v10 = vunpack.i.h.bf16 %v8495_v18  ;;  %v8496_v57 = vunpack.i.l.bf16 %v8495_v18  ;;  %v5006_v61 = vld [vmem:[#allocation2 + $0xb9] sm:$0xff]  ;;  %v8748_v6 = vpack.i.bf16 %v12355_v14, %v5153_v32 }
 0x50c   : > { %8739 = vrot.lane.b32.xlu1 %v8738_v12, %s9025_s27  ;;  %v8492_v15 = vunpack.i.h.bf16 %v8490_v45  ;;  %v8491_v16 = vunpack.i.l.bf16 %v8490_v45  ;;  %v8753_v24 = vpack.i.bf16 %v5006_v61, %v12328_v47  ;;  %v13323_v28 = vld [vmem:[#allocation32_spill] sm:$0xff] }
 0x50d   : > { %v4825_v31 = vmax.f32 %v4789_v21, 0.0  ;;  %8744 = vrot.lane.b32.xlu0 %v8743_v0, %s9029_s28  ;;  %v4430_v54 = vpop.f32.mrb[56].mxu1 }
 0x50e   : > { %v6148_v35 = vsel %vm3934_vm11, %v6112_v62, %v8491_v16  ;;  %v6040_v50 = vsel %vm3934_vm11, %v6004_v42, %v8492_v15  ;;  %v4676_v13 = vadd.f32 %v12097_v9, %v4430_v54  ;;  %v4432_v23 = vpop.f32.mrb[57].mxu1  ;;  %v5063_v42 = vld [vmem:[#allocation2 + $0x43] sm:$0xff]  ;;  %v4953_v54 = vld [vmem:[#allocation2 + $0x30] sm:$0xff] }
 0x50f   : > { %v4861_v52 = vmul.f32 %v4825_v31, %v13323_v28  ;;  %v8500_v60 = vpop.permute.xlu1 %8499  ;;  %v6184_v12 = vsel %vm3971_vm12, %v6148_v35, %v8496_v57  ;;  %v6076_v21 = vsel %vm3971_vm12, %v6040_v50, %v8497_v10  ;;  %v5190_v9 = vld [vmem:[#allocation2 + $0xde] sm:$0xff] }
 0x510   : > { %8749 = vrot.lane.b32.xlu1 %v8748_v6, %s9030_s30  ;;  %6412 = vmatprep.mubr.f32.mxu0 %v6184_v12  ;;  %v4748_v47 = vmul.f32 %v12168_v11, %v4676_v13  ;;  %v8502_v45 = vunpack.i.h.bf16 %v8500_v60  ;;  %v8501_v0 = vunpack.i.l.bf16 %v8500_v60  ;;  %v12372_v32 = vld [vmem:[#allocation2 + $0xdc] sm:$0xff] }
 0x511   : > { %4897 = vst.msk [vmem:[#allocation2 + $0xeb] sm:$0xff] %vm393_vm8, %v4861_v52  ;;  %8754 = vrot.lane.b32.xlu0 %v8753_v24, %s9025_s27  ;;  %6413 = vmatmul.mubr.f32.gmra.mrb[78].mxu0 %v6076_v21  ;;  %v5154_v8 = vld [vmem:[#allocation2 + $0xdd] sm:$0xff]  ;;  %v8758_v18 = vpack.i.bf16 %v12324_v5, %v12372_v32 }
 0x512   : > { %7651 = vmatmul.mubr.msk.f32.gmra.mrb[98].mxu1 %vm393_vm8, %v5190_v9  ;;  %v8763_v15 = vpack.i.bf16 %v12367_v56, %v5154_v8  ;;  %v4790_v16 = vadd.f32 %v12175_v30, %v4748_v47  ;;  %v8505_v62 = vpop.permute.xlu0 %8504  ;;  %v5007_v24 = vld [vmem:[#allocation2 + $0xc1] sm:$0xff]  ;;  %v6113_v5 = vsel %vm393_vm8, %v5063_v42, %v8501_v0  ;;  %v6005_v35 = vsel %vm393_vm8, %v4953_v54, %v8502_v45  ;;  %v12389_v8 = vld [vmem:[#allocation2 + $0xd2] sm:$0xff] }
 0x513   : > { %v8510_v49 = vpop.permute.xlu1 %8509  ;;  %v8507_v31 = vunpack.i.h.bf16 %v8505_v62  ;;  %v8506_v10 = vunpack.i.l.bf16 %v8505_v62  ;;  %v8768_v50 = vpack.i.bf16 %v5007_v24, %v12346_v34  ;;  %v13324_v23 = vld [vmem:[#allocation33_spill] sm:$0xff] }
 0x514   : > { %8759 = vrot.lane.b32.xlu1 %v8758_v18, %s9029_s28  ;;  %v8512_v57 = vunpack.i.h.bf16 %v8510_v49  ;;  %v8511_v61 = vunpack.i.l.bf16 %v8510_v49  ;;  %v4826_v6 = vmax.f32 %v4790_v16, 0.0  ;;  %v5008_v24 = vld [vmem:[#allocation2 + $0xc9] sm:$0xff] }
 0x515   : > { %8764 = vrot.lane.b32.xlu0 %v8763_v15, %s9030_s30  ;;  %v6149_v52 = vsel %vm3934_vm11, %v6113_v5, %v8506_v10  ;;  %v6041_v13 = vsel %vm3934_vm11, %v6005_v35, %v8507_v31  ;;  %v4954_v5 = vld [vmem:[#allocation2 + $0x38] sm:$0xff] }
 0x516   : > { %v4862_v60 = vmul.f32 %v4826_v6, %v13324_v23  ;;  %v4435_v12 = vpop.f32.mrb[58].mxu1  ;;  %v8515_v21 = vpop.permute.xlu0 %8514  ;;  %v6185_v47 = vsel %vm3971_vm12, %v6149_v52, %v8511_v61  ;;  %v6077_v9 = vsel %vm3971_vm12, %v6041_v13, %v8512_v57 }
 0x517   : > { %v4681_v0 = vadd.f32 %v12093_v58, %v4435_v12  ;;  %v4437_v18 = vpop.f32.mrb[59].mxu1  ;;  %6417 = vmatprep.mubr.f32.mxu0 %v6185_v47  ;;  %v8517_v16 = vunpack.i.h.bf16 %v8515_v21  ;;  %v8516_v31 = vunpack.i.l.bf16 %v8515_v21 }
 0x518   : > { %8769 = vrot.lane.b32.xlu1 %v8768_v50, %s9025_s27  ;;  %v5191_v34 = vld [vmem:[#allocation2 + $0xe6] sm:$0xff]  ;;  %4898 = vst.msk [vmem:[#allocation2 + $0xf3] sm:$0xff] %vm393_vm8, %v4862_v60  ;;  %6418 = vmatmul.mubr.f32.gmra.mrb[80].mxu0 %v6077_v9 }
 0x519   : > { %v12393_v45 = vld [vmem:[#allocation2 + $0xe4] sm:$0xff]  ;;  %7653 = vmatprep.mubr.msk.f32.mxu1 %vm393_vm8, %v5191_v34  ;;  %v4749_v58 = vmul.f32 %v12168_v11, %v4681_v0  ;;  %v6006_v52 = vsel %vm393_vm8, %v4954_v5, %v8517_v16 }
 0x51a   : > { %v5155_v15 = vld [vmem:[#allocation2 + $0xe5] sm:$0xff]  ;;  %v8773_v62 = vpack.i.bf16 %v12355_v14, %v12393_v45  ;;  %v8525_v10 = vpop.permute.xlu0 %8524  ;;  %v8783_v14 = vpack.i.bf16 %v5008_v24, %v12372_v32  ;;  %v12412_v32 = vld [vmem:[#allocation2 + $0xda] sm:$0xff] }
 0x51b   : > { %v8778_v49 = vpack.i.bf16 %v12389_v8, %v5155_v15  ;;  %v8520_v57 = vpop.permute.xlu1 %8519  ;;  %v4791_v61 = vadd.f32 %v12175_v30, %v4749_v58  ;;  %v8527_v42 = vunpack.i.h.bf16 %v8525_v10  ;;  %v8526_v54 = vunpack.i.l.bf16 %v8525_v10  ;;  %v5064_v50 = vld [vmem:[#allocation2 + $0x4b] sm:$0xff] }
 0x51c   : > { %8774 = vrot.lane.b32.xlu0 %v8773_v62, %s9029_s28  ;;  %v8522_v6 = vunpack.i.h.bf16 %v8520_v57  ;;  %v8521_v35 = vunpack.i.l.bf16 %v8520_v57  ;;  %v6114_v12 = vsel %vm393_vm8, %v5064_v50, %v8516_v31  ;;  %v13325_v15 = vld [vmem:[#allocation58_spill] sm:$0xff] }
 0x51d   : > { %8779 = vrot.lane.b32.xlu1 %v8778_v49, %s9030_s30  ;;  %v4827_v13 = vmax.f32 %v4791_v61, 0.0  ;;  %v4440_v60 = vpop.f32.mrb[60].mxu1 }
 0x51e   : > { %v6042_v21 = vsel %vm3934_vm11, %v6006_v52, %v8522_v6  ;;  %v4686_v47 = vadd.f32 %v12119_v39, %v4440_v60  ;;  %v4442_v9 = vpop.f32.mrb[61].mxu1  ;;  %v6150_v18 = vsel %vm3934_vm11, %v6114_v12, %v8521_v35  ;;  %v5009_v52 = vld [vmem:[#allocation2 + $0xd1] sm:$0xff]  ;;  %v4955_v60 = vld [vmem:[#allocation2 + $0x40] sm:$0xff] }
 0x51f   : > { %v8530_v0 = vpop.permute.xlu1 %8529  ;;  %v6078_v34 = vsel %vm3971_vm12, %v6042_v21, %v8527_v42  ;;  %v4863_v16 = vmul.f32 %v4827_v13, %v13325_v15  ;;  %v6186_v49 = vsel %vm3971_vm12, %v6150_v18, %v8526_v54  ;;  %v5192_v58 = vld [vmem:[#allocation2 + $0xee] sm:$0xff] }
 0x520   : > { %8784 = vrot.lane.b32.xlu0 %v8783_v14, %s9025_s27  ;;  %v8532_v62 = vunpack.i.h.bf16 %v8530_v0  ;;  %v5156_v31 = vld [vmem:[#allocation2 + $0xed] sm:$0xff]  ;;  %v4750_v39 = vmul.f32 %v12168_v11, %v4686_v47  ;;  %v8531_v57 = vunpack.i.l.bf16 %v8530_v0  ;;  %6422 = vmatprep.mubr.f32.mxu0 %v6186_v49 }
 0x521   : > { %v12416_v10 = vld [vmem:[#allocation2 + $0xec] sm:$0xff]  ;;  %7654 = vmatmul.mubr.msk.f32.gmra.mrb[100].mxu1 %vm393_vm8, %v5192_v58  ;;  %v8793_v61 = vpack.i.bf16 %v12412_v32, %v5156_v31  ;;  %4899 = vst.msk [vmem:[#allocation2 + $0xfb] sm:$0xff] %vm393_vm8, %v4863_v16  ;;  %6423 = vmatmul.mubr.f32.gmra.mrb[82].mxu0 %v6078_v34 }
 0x522   : > { %v8788_v42 = vpack.i.bf16 %v12367_v56, %v12416_v10  ;;  %v4792_v54 = vadd.f32 %v12175_v30, %v4750_v39  ;;  %v8535_v6 = vpop.permute.xlu0 %8534  ;;  %v5065_v13 = vld [vmem:[#allocation2 + $0x53] sm:$0xff]  ;;  %v8798_v56 = vpack.i.bf16 %v5009_v52, %v12393_v45  ;;  %v6007_v47 = vsel %vm393_vm8, %v4955_v60, %v8532_v62  ;;  %v12436_v45 = vld [vmem:[#allocation2 + $0xe2] sm:$0xff] }
 0x523   : > { %v8540_v24 = vpop.permute.xlu1 %8539  ;;  %v8537_v5 = vunpack.i.h.bf16 %v8535_v6  ;;  %v8536_v35 = vunpack.i.l.bf16 %v8535_v6  ;;  %v6115_v21 = vsel %vm393_vm8, %v5065_v13, %v8531_v57  ;;  %v13326_v18 = vld [vmem:[#allocation59_spill] sm:$0xff] }
 0x524   : > { %8794 = vrot.lane.b32.xlu0 %v8793_v61, %s9030_s30  ;;  %8789 = vrot.lane.b32.xlu1 %v8788_v42, %s9029_s28  ;;  %v8542_v14 = vunpack.i.h.bf16 %v8540_v24  ;;  %v8541_v50 = vunpack.i.l.bf16 %v8540_v24  ;;  %v4828_v12 = vmax.f32 %v4792_v54, 0.0 }
 0x525   : > { %v6151_v9 = vsel %vm3934_vm11, %v6115_v21, %v8536_v35  ;;  %v6043_v0 = vsel %vm3934_vm11, %v6007_v47, %v8537_v5  ;;  %v5010_v47 = vld [vmem:[#allocation2 + $0xd9] sm:$0xff] }
 0x526   : > { %v4864_v34 = vmul.f32 %v4828_v12, %v13326_v18  ;;  %v8545_v16 = vpop.permute.xlu0 %8544  ;;  %v6187_v49 = vsel %vm3971_vm12, %v6151_v9, %v8541_v50  ;;  %v6079_v58 = vsel %vm3971_vm12, %v6043_v0, %v8542_v14  ;;  %v4445_v31 = vpop.f32.mrb[62].mxu1  ;;  %v5066_v12 = vld [vmem:[#allocation2 + $0x5b] sm:$0xff]  ;;  %v8813_v0 = vpack.i.bf16 %v5010_v47, %v12416_v10  ;;  %v4957_v47 = vld [vmem:[#allocation2 + $0x50] sm:$0xff] }
 0x527   : > { %6427 = vmatprep.mubr.f32.mxu0 %v6187_v49  ;;  %v4691_v62 = vadd.f32 %v12115_v63, %v4445_v31  ;;  %v4447_v39 = vpop.f32.mrb[63].mxu1  ;;  %v8547_v57 = vunpack.i.h.bf16 %v8545_v16  ;;  %v8546_v61 = vunpack.i.l.bf16 %v8545_v16 }
 0x528   : > { %8799 = vrot.lane.b32.xlu1 %v8798_v56, %s9025_s27  ;;  %4900 = vst.msk [vmem:[#allocation2 + $0x103] sm:$0xff] %vm393_vm8, %v4864_v34  ;;  %6428 = vmatmul.mubr.f32.gmra.mrb[84].mxu0 %v6079_v58  ;;  %v5193_v42 = vld [vmem:[#allocation2 + $0xf6] sm:$0xff]  ;;  %v4956_v56 = vld [vmem:[#allocation2 + $0x48] sm:$0xff] }
 0x529   : > { %v5121_v54 = vld [vmem:[#allocation2 + $0xf4] sm:$0xff]  ;;  %7656 = vmatprep.mubr.msk.f32.mxu1 %vm393_vm8, %v5193_v42  ;;  %v4751_v35 = vmul.f32 %v12168_v11, %v4691_v62  ;;  %v6008_v9 = vsel %vm393_vm8, %v4956_v56, %v8547_v57  ;;  %v12456_v39 = vld [vmem:[#allocation2 + $0xea] sm:$0xff]  ;;  %v5011_v56 = vld [vmem:[#allocation2 + $0xe1] sm:$0xff] }
 0x52a   : > { %v5157_v6 = vld [vmem:[#allocation2 + $0xf5] sm:$0xff]  ;;  %v8803_v24 = vpack.i.bf16 %v12389_v8, %v5121_v54  ;;  %v8555_v14 = vpop.permute.xlu0 %8554  ;;  %v6116_v8 = vsel %vm393_vm8, %v5066_v12, %v8546_v61 }
 0x52b   : > { %v8808_v5 = vpack.i.bf16 %v12436_v45, %v5157_v6  ;;  %v8550_v50 = vpop.permute.xlu1 %8549  ;;  %v8557_v63 = vunpack.i.h.bf16 %v8555_v14  ;;  %v8556_v52 = vunpack.i.l.bf16 %v8555_v14  ;;  %v4793_v21 = vadd.f32 %v12175_v30, %v4751_v35  ;;  %v13327_v6 = vld [vmem:[#allocation84_spill] sm:$0xff] }
 0x52c   : > { %8804 = vrot.lane.b32.xlu0 %v8803_v24, %s9029_s28  ;;  %v8552_v13 = vunpack.i.h.bf16 %v8550_v50  ;;  %v8551_v60 = vunpack.i.l.bf16 %v8550_v50  ;;  %v5086_v33 = vld [vmem:[#allocation2 + $0xfb] sm:$0xff] }
 0x52d   : > { %8809 = vrot.lane.b32.xlu1 %v8808_v5, %s9030_s30  ;;  %v12449_v11 = vpop.f32.mrb[64].mxu1  ;;  %v4829_v49 = vmax.f32 %v4793_v21, 0.0  ;;  %v5067_v21 = vld [vmem:[#allocation2 + $0x63] sm:$0xff] }
 0x52e   : > { %v6152_v34 = vsel %vm3934_vm11, %v6116_v8, %v8551_v60  ;;  %v6044_v16 = vsel %vm3934_vm11, %v6008_v9, %v8552_v13  ;;  %v4452_v58 = vpop.f32.mrb[65].mxu1  ;;  %v8828_v8 = vpack.i.bf16 %v5011_v56, %v5121_v54  ;;  %v12473_v54 = vld [vmem:[#allocation2 + $0xf2] sm:$0xff] }
 0x52f   : > { %v8560_v31 = vpop.permute.xlu1 %8559  ;;  %v6188_v62 = vsel %vm3971_vm12, %v6152_v34, %v8556_v52  ;;  %v6080_v30 = vsel %vm3971_vm12, %v6044_v16, %v8557_v63  ;;  %v5194_v61 = vld [vmem:[#allocation2 + $0xfe] sm:$0xff]  ;;  %v4865_v24 = vmul.f32 %v4829_v49, %v13327_v6 }
 0x530   : > { %8814 = vrot.lane.b32.xlu0 %v8813_v0, %s9025_s27  ;;  %v8562_v57 = vunpack.i.h.bf16 %v8560_v31  ;;  %6432 = vmatprep.mubr.f32.mxu0 %v6188_v62  ;;  %v5158_v42 = vld [vmem:[#allocation2 + $0xfd] sm:$0xff]  ;;  %v8561_v5 = vunpack.i.l.bf16 %v8560_v31 }
 0x531   : > { %v5122_v10 = vld [vmem:[#allocation2 + $0xfc] sm:$0xff]  ;;  %6433 = vmatmul.mubr.f32.gmra.mrb[86].mxu0 %v6080_v30  ;;  %7657 = vmatmul.mubr.msk.f32.gmra.mrb[102].mxu1 %vm393_vm8, %v5194_v61  ;;  %v8823_v35 = vpack.i.bf16 %v12456_v39, %v5158_v42  ;;  %4901 = vst.msk [vmem:[#allocation2 + $0x10b] sm:$0xff] %vm393_vm8, %v4865_v24 }
 0x532   : > { %v8818_v14 = vpack.i.bf16 %v12412_v32, %v5122_v10  ;;  %v8565_v50 = vpop.permute.xlu0 %8564  ;;  %v6117_v9 = vsel %vm393_vm8, %v5067_v21, %v8561_v5  ;;  %v6009_v32 = vsel %vm393_vm8, %v4957_v47, %v8562_v57 }
 0x533   : > { %v8570_v63 = vpop.permute.xlu1 %8569  ;;  %v8567_v52 = vunpack.i.h.bf16 %v8565_v50  ;;  %v8566_v13 = vunpack.i.l.bf16 %v8565_v50 }
 0x534   : > { %8819 = vrot.lane.b32.xlu1 %v8818_v14, %s9029_s28  ;;  %8824 = vrot.lane.b32.xlu0 %v8823_v35, %s9030_s30  ;;  %v8572_v60 = vunpack.i.h.bf16 %v8570_v63  ;;  %v8571_v12 = vunpack.i.l.bf16 %v8570_v63  ;;  %v4455_v0 = vpop.f32.mrb[66].mxu1  ;;  %v5012_v63 = vld [vmem:[#allocation2 + $0xe9] sm:$0xff] }
 0x535   : > { %v6153_v34 = vsel %vm3934_vm11, %v6117_v9, %v8566_v13  ;;  %v6045_v16 = vsel %vm3934_vm11, %v6009_v32, %v8567_v52  ;;  %v4457_v49 = vpop.f32.mrb[67].mxu1  ;;  %v4958_v9 = vld [vmem:[#allocation2 + $0x58] sm:$0xff] }
 0x536   : > { %v6189_v58 = vsel %vm3971_vm12, %v6153_v34, %v8571_v12  ;;  %v6081_v31 = vsel %vm3971_vm12, %v6045_v16, %v8572_v60  ;;  %v8575_v62 = vpop.permute.xlu0 %8574  ;;  %v8843_v60 = vpack.i.bf16 %v5012_v63, %v5122_v10 }
 0x537   : > { %6437 = vmatprep.mubr.f32.mxu0 %v6189_v58  ;;  %v8577_v35 = vunpack.i.h.bf16 %v8575_v62  ;;  %v8576_v14 = vunpack.i.l.bf16 %v8575_v62 }
 0x538   : > { %8829 = vrot.lane.b32.xlu1 %v8828_v8, %s9025_s27  ;;  %6438 = vmatmul.mubr.f32.gmra.mrb[88].mxu0 %v6081_v31  ;;  %v5195_v30 = vld [vmem:[#allocation2 + $0x106] sm:$0xff] }
 0x539   : > { %v12475_v61 = vld [vmem:[#allocation2 + $0x104] sm:$0xff]  ;;  %7659 = vmatprep.mubr.msk.f32.mxu1 %vm393_vm8, %v5195_v30  ;;  %v12478_v42 = vpop.f32.mrb[68].mxu1  ;;  %v6010_v32 = vsel %vm393_vm8, %v4958_v9, %v8577_v35  ;;  %v5069_v35 = vld [vmem:[#allocation2 + $0x73] sm:$0xff] }
 0x53a   : > { %v5159_v57 = vld [vmem:[#allocation2 + $0x105] sm:$0xff]  ;;  %v8833_v24 = vpack.i.bf16 %v12436_v45, %v12475_v61  ;;  %v4462_v50 = vpop.f32.mrb[69].mxu1 }
 0x53b   : > { %v8838_v5 = vpack.i.bf16 %v12473_v54, %v5159_v57  ;;  %v5068_v8 = vld [vmem:[#allocation2 + $0x6b] sm:$0xff]  ;;  %v4959_v50 = vld [vmem:[#allocation2 + $0x60] sm:$0xff] }
 0x53c   : > { %8834 = vrot.lane.b32.xlu0 %v8833_v24, %s9029_s28  ;;  %v6118_v45 = vsel %vm393_vm8, %v5068_v8, %v8576_v14 }
 0x53d   : > { %8839 = vrot.lane.b32.xlu1 %v8838_v5, %s9030_s30  ;;  %v8585_v52 = vpop.permute.xlu0 %8584 }
 0x53e   : > { %v8580_v13 = vpop.permute.xlu1 %8579  ;;  %v8587_v12 = vunpack.i.h.bf16 %v8585_v52  ;;  %v8586_v56 = vunpack.i.l.bf16 %v8585_v52 }
 0x53f   : > { %v8582_v21 = vunpack.i.h.bf16 %v8580_v13  ;;  %v8581_v47 = vunpack.i.l.bf16 %v8580_v13 }
 0x540   : > { %8844 = vrot.lane.b32.xlu0 %v8843_v60, %s9025_s27  ;;  %v4465_v58 = vpop.f32.mrb[70].mxu1 }
 0x541   : > { %v6154_v34 = vsel %vm3934_vm11, %v6118_v45, %v8581_v47  ;;  %v6046_v16 = vsel %vm3934_vm11, %v6010_v32, %v8582_v21  ;;  %v4467_v24 = vpop.f32.mrb[71].mxu1 }
 0x542   : > { %v8590_v49 = vpop.permute.xlu1 %8589  ;;  %v6190_v10 = vsel %vm3971_vm12, %v6154_v34, %v8586_v56  ;;  %v6082_v31 = vsel %vm3971_vm12, %v6046_v16, %v8587_v12  ;;  %v8595_v57 = vpop.permute.xlu0 %8594 }
 0x543   : > { %v8592_v62 = vunpack.i.h.bf16 %v8590_v49  ;;  %v8591_v30 = vunpack.i.l.bf16 %v8590_v49  ;;  %6442 = vmatprep.mubr.f32.mxu0 %v6190_v10  ;;  %v8597_v5 = vunpack.i.h.bf16 %v8595_v57  ;;  %v8596_v14 = vunpack.i.l.bf16 %v8595_v57  ;;  %v8952_v49 = vld [vmem:[%s13035_s6] ss:$0 sm:$0xff] }
 0x544   : > { %6443 = vmatmul.mubr.f32.gmra.mrb[90].mxu0 %v6082_v31  ;;  %v7605_v60 = vpop.f32.mrb[72].mxu1 }
 0x545   : > { %v6119_v63 = vsel %vm393_vm8, %v5069_v35, %v8591_v30  ;;  %v6011_v52 = vsel %vm393_vm8, %v4959_v50, %v8592_v62  ;;  %v4701_v47 = vadd.f32 %v7605_v60, %v4455_v0  ;;  %v4695_v8 = vpop.f32.mrb[73].mxu1  ;;  %v5070_v0 = vld [vmem:[#allocation2 + $0x7b] sm:$0xff]  ;;  %v4960_v30 = vld [vmem:[#allocation2 + $0x68] sm:$0xff] }
 0x546   : > { %v8600_v13 = vpop.permute.xlu1 %8599  ;;  %v8605_v12 = vpop.permute.xlu0 %8604  ;;  %v6155_v9 = vsel %vm3934_vm11, %v6119_v63, %v8596_v14  ;;  %v4696_v34 = vadd.f32 %v4695_v8, %v12449_v11  ;;  %v6047_v16 = vsel %vm3934_vm11, %v6011_v52, %v8597_v5  ;;  %v8953_v5 = vld [vmem:[%s13036_s7] ss:$0 sm:$0xff] }
 0x547   : > { %v8602_v21 = vunpack.i.h.bf16 %v8600_v13  ;;  %v8601_v56 = vunpack.i.l.bf16 %v8600_v13  ;;  %v8607_v45 = vunpack.i.h.bf16 %v8605_v12  ;;  %v8606_v32 = vunpack.i.l.bf16 %v8605_v12 }
 0x548   : > { %v4753_v10 = vmul.f32 %v8952_v49, %v4701_v47  ;;  %v4752_v57 = vmul.f32 %v8952_v49, %v4696_v34  ;;  %v7608_v14 = vpop.f32.mrb[74].mxu1 }
 0x549   : > { %v6191_v31 = vsel %vm3971_vm12, %v6155_v9, %v8601_v56  ;;  %v6083_v62 = vsel %vm3971_vm12, %v6047_v16, %v8602_v21  ;;  %v6120_v35 = vsel %vm393_vm8, %v5070_v0, %v8606_v32  ;;  %v6012_v11 = vsel %vm393_vm8, %v4960_v30, %v8607_v45  ;;  %v4705_v21 = vpop.f32.mrb[75].mxu1  ;;  %v13328_v30 = vld [vmem:[#allocation110_spill] sm:$0xff] }
 0x54a   : > { %v8610_v24 = vpop.permute.xlu1 %8609  ;;  %6447 = vmatprep.mubr.f32.mxu0 %v6191_v31  ;;  %v4795_v50 = vadd.f32 %v8953_v5, %v4753_v10  ;;  %v4711_v13 = vadd.f32 %v7608_v14, %v4465_v58  ;;  %v8615_v60 = vpop.permute.xlu0 %8614  ;;  %v4794_v56 = vadd.f32 %v8953_v5, %v4752_v57  ;;  %v4706_v8 = vadd.f32 %v4705_v21, %v12478_v42  ;;  %v4961_v21 = vld [vmem:[#allocation2 + $0x70] sm:$0xff] }
 0x54b   : > { %v8612_v63 = vunpack.i.h.bf16 %v8610_v24  ;;  %v8611_v52 = vunpack.i.l.bf16 %v8610_v24  ;;  %6448 = vmatmul.mubr.f32.gmra.mrb[92].mxu0 %v6083_v62  ;;  %v8617_v47 = vunpack.i.h.bf16 %v8615_v60  ;;  %v8616_v12 = vunpack.i.l.bf16 %v8615_v60  ;;  %v5071_v60 = vld [vmem:[#allocation2 + $0x83] sm:$0xff] }
 0x54c   : > { %v4831_v9 = vmax.f32 %v4795_v50, 0.0  ;;  %v4755_v32 = vmul.f32 %v8952_v49, %v4711_v13  ;;  %v4830_v16 = vmax.f32 %v4794_v56, 0.0  ;;  %v4754_v31 = vmul.f32 %v8952_v49, %v4706_v8  ;;  %v12510_v0 = vpop.f32.mrb[76].mxu1 }
 0x54d   : > { %v6156_v45 = vsel %vm3934_vm11, %v6120_v35, %v8611_v52  ;;  %v6048_v34 = vsel %vm3934_vm11, %v6012_v11, %v8612_v63  ;;  %v12515_v13 = vpop.f32.mrb[77].mxu1  ;;  %v13329_v35 = vld [vmem:[#allocation85_spill] sm:$0xff] }
 0x54e   : > { %v8620_v10 = vpop.permute.xlu1 %8619  ;;  %v6192_v58 = vsel %vm3971_vm12, %v6156_v45, %v8616_v12  ;;  %v6084_v62 = vsel %vm3971_vm12, %v6048_v34, %v8617_v47  ;;  %v4867_v57 = vmul.f32 %v4831_v9, %v13328_v30  ;;  %v4797_v24 = vadd.f32 %v8953_v5, %v4755_v32  ;;  %v8625_v50 = vpop.permute.xlu0 %8624  ;;  %v13330_v32 = vld [vmem:[#allocation10_spill] sm:$0xff] }
 0x54f   : > { %v8622_v14 = vunpack.i.h.bf16 %v8620_v10  ;;  %v8621_v42 = vunpack.i.l.bf16 %v8620_v10  ;;  %6452 = vmatprep.mubr.f32.mxu0 %v6192_v58  ;;  %v4866_v11 = vmul.f32 %v4830_v16, %v13329_v35  ;;  %v4796_v63 = vadd.f32 %v8953_v5, %v4754_v31  ;;  %v13331_v10 = vld [vmem:[#allocation9_spill] sm:$0xff] }
 0x550   : > { %v8627_v49 = vunpack.i.h.bf16 %v8625_v50  ;;  %v8626_v52 = vunpack.i.l.bf16 %v8625_v50  ;;  %6453 = vmatmul.mubr.f32.gmra.mrb[94].mxu0 %v6084_v62  ;;  %4903 = vst.msk [vmem:[#allocation2 + $0x11b] sm:$0xff] %vm393_vm8, %v4867_v57  ;;  %v4833_v56 = vmax.f32 %v4797_v24, 0.0 }
 0x551   : > { %v6121_v47 = vsel %vm393_vm8, %v5071_v60, %v8621_v42  ;;  %v6013_v12 = vsel %vm393_vm8, %v4961_v21, %v8622_v14  ;;  %4902 = vst.msk [vmem:[#allocation2 + $0x113] sm:$0xff] %vm393_vm8, %v4866_v11  ;;  %v4832_v8 = vmax.f32 %v4796_v63, 0.0  ;;  %v4962_v21 = vld [vmem:[#allocation2 + $0x78] sm:$0xff] }
 0x552   : > { %v8630_v9 = vpop.permute.xlu1 %8629  ;;  %v4869_v45 = vmul.f32 %v4833_v56, %v13330_v32  ;;  %v8635_v16 = vpop.permute.xlu0 %8634  ;;  %v6157_v31 = vsel %vm3934_vm11, %v6121_v47, %v8626_v52  ;;  %v6049_v24 = vsel %vm3934_vm11, %v6013_v12, %v8627_v49  ;;  %v5072_v52 = vld [vmem:[#allocation2 + $0x8b] sm:$0xff] }
 0x553   : > { %v8632_v34 = vunpack.i.h.bf16 %v8630_v9  ;;  %v8631_v5 = vunpack.i.l.bf16 %v8630_v9  ;;  %v4868_v58 = vmul.f32 %v4832_v8, %v13331_v10  ;;  %v8637_v62 = vunpack.i.h.bf16 %v8635_v16  ;;  %v12532_v8 = vld [vmem:[#allocation2 + $0xfa] sm:$0xff] }
 0x554   : > { %v8636_v57 = vunpack.i.l.bf16 %v8635_v16  ;;  %4905 = vst.msk [vmem:[#allocation2 + $0x12b] sm:$0xff] %vm393_vm8, %v4869_v45 }
 0x555   : > { %v6193_v14 = vsel %vm3971_vm12, %v6157_v31, %v8631_v5  ;;  %v6085_v42 = vsel %vm3971_vm12, %v6049_v24, %v8632_v34  ;;  %4904 = vst.msk [vmem:[#allocation2 + $0x123] sm:$0xff] %vm393_vm8, %v4868_v58  ;;  %v6014_v12 = vsel %vm393_vm8, %v4962_v21, %v8637_v62 }
 0x556   : > { %v8640_v50 = vpop.permute.xlu1 %8639  ;;  %6457 = vmatprep.mubr.f32.mxu0 %v6193_v14  ;;  %v8645_v60 = vpop.permute.xlu0 %8644  ;;  %v6122_v49 = vsel %vm393_vm8, %v5072_v52, %v8636_v57 }
 0x557   : > { %v8642_v11 = vunpack.i.h.bf16 %v8640_v50  ;;  %v8641_v63 = vunpack.i.l.bf16 %v8640_v50  ;;  %6458 = vmatmul.mubr.f32.gmra.mrb[96].mxu0 %v6085_v42  ;;  %v8647_v56 = vunpack.i.h.bf16 %v8645_v60  ;;  %v8646_v47 = vunpack.i.l.bf16 %v8645_v60 }
 0x558   : > { %v5196_v9 = vld [vmem:[#allocation2 + $0x10e] sm:$0xff]  ;;  %v5197_v34 = vld [vmem:[#allocation2 + $0x116] sm:$0xff]  ;;  %v12538_v24 = vpop.f32.mrb[78].mxu1 }
 0x559   : > { %v6158_v45 = vsel %vm3934_vm11, %v6122_v49, %v8641_v63  ;;  %v6050_v5 = vsel %vm3934_vm11, %v6014_v12, %v8642_v11  ;;  %v5160_v16 = vld [vmem:[#allocation2 + $0x10d] sm:$0xff]  ;;  %7660 = vmatmul.mubr.msk.f32.gmra.mrb[104].mxu1 %vm393_vm8, %v5196_v9  ;;  %v12543_v11 = vpop.f32.mrb[79].mxu1  ;;  %v4963_v49 = vld [vmem:[#allocation2 + $0x80] sm:$0xff] }
 0x55a   : > { %v8650_v31 = vpop.permute.xlu1 %8649  ;;  %v6194_v58 = vsel %vm3971_vm12, %v6158_v45, %v8646_v47  ;;  %v6086_v57 = vsel %vm3971_vm12, %v6050_v5, %v8647_v56  ;;  %v8853_v62 = vpack.i.bf16 %v12532_v8, %v5160_v16  ;;  %v5124_v14 = vld [vmem:[#allocation2 + $0x10c] sm:$0xff]  ;;  %v8655_v60 = vpop.permute.xlu0 %8654  ;;  %7662 = vmatprep.mubr.msk.f32.mxu1 %vm393_vm8, %v5197_v34  ;;  %v12546_v52 = vld [vmem:[#allocation2 + $0x114] sm:$0xff] }
 0x55b   : > { %v8652_v42 = vunpack.i.h.bf16 %v8650_v31  ;;  %v8651_v50 = vunpack.i.l.bf16 %v8650_v31  ;;  %6462 = vmatprep.mubr.f32.mxu0 %v6194_v58  ;;  %v8848_v63 = vpack.i.bf16 %v12456_v39, %v5124_v14  ;;  %v8657_v21 = vunpack.i.h.bf16 %v8655_v60  ;;  %v5073_v56 = vld [vmem:[#allocation2 + $0x93] sm:$0xff] }
 0x55c   : > { %v8656_v47 = vunpack.i.l.bf16 %v8655_v60  ;;  %6463 = vmatmul.mubr.f32.gmra.mrb[98].mxu0 %v6086_v57  ;;  %8854 = vrot.lane.b32.xlu0 %v8853_v62, %s9030_s30  ;;  %v5198_v12 = vld [vmem:[#allocation2 + $0x11e] sm:$0xff]  ;;  %v5199_v9 = vld [vmem:[#allocation2 + $0x126] sm:$0xff]  ;;  %v8863_v39 = vpack.i.bf16 %v12473_v54, %v12546_v52  ;;  %v5013_v16 = vld [vmem:[#allocation2 + $0xf1] sm:$0xff] }
 0x55d   : > { %8849 = vrot.lane.b32.xlu1 %v8848_v63, %s9029_s28  ;;  %v6123_v45 = vsel %vm393_vm8, %v5073_v56, %v8651_v50  ;;  %v6015_v34 = vsel %vm393_vm8, %v4963_v49, %v8652_v42  ;;  %7663 = vmatmul.mubr.msk.f32.gmra.mrb[106].mxu1 %vm393_vm8, %v5198_v12  ;;  %v8858_v62 = vpack.i.bf16 %v5013_v16, %v12475_v61  ;;  %v5161_v56 = vld [vmem:[#allocation2 + $0x115] sm:$0xff]  ;;  %v5051_v16 = vld [vmem:[#allocation2 + $0x102] sm:$0xff] }
 0x55e   : > { %v8660_v5 = vpop.permute.xlu1 %8659  ;;  %v8665_v57 = vpop.permute.xlu0 %8664  ;;  %7665 = vmatprep.mubr.msk.f32.mxu1 %vm393_vm8, %v5199_v9  ;;  %v6159_v42 = vsel %vm3934_vm11, %v6123_v45, %v8656_v47  ;;  %v6051_v50 = vsel %vm3934_vm11, %v6015_v34, %v8657_v21  ;;  %v5200_v49 = vld [vmem:[#allocation2 + $0x12e] sm:$0xff]  ;;  %v8868_v21 = vpack.i.bf16 %v5051_v16, %v5161_v56  ;;  %v5074_v45 = vld [vmem:[#allocation2 + $0x9b] sm:$0xff] }
 0x55f   : > { %v8662_v31 = vunpack.i.h.bf16 %v8660_v5  ;;  %v8661_v58 = vunpack.i.l.bf16 %v8660_v5  ;;  %v8667_v60 = vunpack.i.h.bf16 %v8665_v57  ;;  %v8666_v63 = vunpack.i.l.bf16 %v8665_v57  ;;  %v5014_v5 = vld [vmem:[#allocation2 + $0xf9] sm:$0xff]  ;;  %v4964_v34 = vld [vmem:[#allocation2 + $0x88] sm:$0xff] }
 0x560   : > { %8864 = vrot.lane.b32.xlu0 %v8863_v39, %s9029_s28  ;;  %v8873_v61 = vpack.i.bf16 %v5014_v5, %v5124_v14 }
 0x561   : > { %8859 = vrot.lane.b32.xlu1 %v8858_v62, %s9025_s27  ;;  %v6195_v54 = vsel %vm3971_vm12, %v6159_v42, %v8661_v58  ;;  %v6087_v12 = vsel %vm3971_vm12, %v6051_v50, %v8662_v31  ;;  %7666 = vmatmul.mubr.msk.f32.gmra.mrb[108].mxu1 %vm393_vm8, %v5200_v49  ;;  %v5162_v62 = vld [vmem:[#allocation2 + $0x11d] sm:$0xff]  ;;  %v6124_v31 = vsel %vm393_vm8, %v5074_v45, %v8666_v63  ;;  %v12570_v49 = vld [vmem:[#allocation2 + $0x10a] sm:$0xff] }
 0x562   : > { %v8670_v9 = vpop.permute.xlu1 %8669  ;;  %6467 = vmatprep.mubr.f32.mxu0 %v6195_v54  ;;  %v8675_v47 = vpop.permute.xlu0 %8674  ;;  %v6016_v42 = vsel %vm393_vm8, %v4964_v34, %v8667_v60  ;;  %v5126_v50 = vld [vmem:[#allocation2 + $0x11c] sm:$0xff]  ;;  %v4965_v34 = vld [vmem:[#allocation2 + $0x90] sm:$0xff] }
 0x563   : > { %v8672_v39 = vunpack.i.h.bf16 %v8670_v9  ;;  %v8671_v57 = vunpack.i.l.bf16 %v8670_v9  ;;  %6468 = vmatmul.mubr.f32.gmra.mrb[100].mxu0 %v6087_v12  ;;  %v8677_v32 = vunpack.i.h.bf16 %v8675_v47  ;;  %v8676_v58 = vunpack.i.l.bf16 %v8675_v47 }
 0x564   : > { %8874 = vrot.lane.b32.xlu0 %v8873_v61, %s9025_s27  ;;  %v8883_v9 = vpack.i.bf16 %v12570_v49, %v5162_v62  ;;  %v8878_v60 = vpack.i.bf16 %v12532_v8, %v5126_v50 }
 0x565   : > { %8869 = vrot.lane.b32.xlu1 %v8868_v21, %s9030_s30  ;;  %v6160_v14 = vsel %vm3934_vm11, %v6124_v31, %v8671_v57  ;;  %v6052_v54 = vsel %vm3934_vm11, %v6016_v42, %v8672_v39  ;;  %v12576_v21 = vld [vmem:[#allocation2 + $0x124] sm:$0xff] }
 0x566   : > { %v8680_v56 = vpop.permute.xlu1 %8679  ;;  %v6196_v12 = vsel %vm3971_vm12, %v6160_v14, %v8676_v58  ;;  %v6088_v5 = vsel %vm3971_vm12, %v6052_v54, %v8677_v32  ;;  %v8685_v47 = vpop.permute.xlu0 %8684  ;;  %v5075_v39 = vld [vmem:[#allocation2 + $0xa3] sm:$0xff]  ;;  %v8893_v8 = vpack.i.bf16 %v5051_v16, %v12576_v21 }
 0x567   : > { %v8682_v61 = vunpack.i.h.bf16 %v8680_v56  ;;  %v8681_v63 = vunpack.i.l.bf16 %v8680_v56  ;;  %6472 = vmatprep.mubr.f32.mxu0 %v6196_v12  ;;  %v8687_v57 = vunpack.i.h.bf16 %v8685_v47  ;;  %v8686_v45 = vunpack.i.l.bf16 %v8685_v47  ;;  %v5015_v42 = vld [vmem:[#allocation2 + $0x101] sm:$0xff] }
 0x568   : > { %6473 = vmatmul.mubr.f32.gmra.mrb[102].mxu0 %v6088_v5  ;;  %8884 = vrot.lane.b32.xlu0 %v8883_v9, %s9030_s30  ;;  %v12582_v31 = vpop.f32.mrb[80].mxu1  ;;  %v8888_v5 = vpack.i.bf16 %v5015_v42, %v12546_v52  ;;  %v5053_v52 = vld [vmem:[#allocation2 + $0x112] sm:$0xff] }
 0x569   : > { %8879 = vrot.lane.b32.xlu1 %v8878_v60, %s9029_s28  ;;  %v6125_v32 = vsel %vm393_vm8, %v5075_v39, %v8681_v63  ;;  %v6017_v62 = vsel %vm393_vm8, %v4965_v34, %v8682_v61  ;;  %v12585_v12 = vpop.f32.mrb[81].mxu1  ;;  %v5163_v60 = vld [vmem:[#allocation2 + $0x125] sm:$0xff] }
 0x56a   : > { %v8690_v58 = vpop.permute.xlu1 %8689  ;;  %v8695_v56 = vpop.permute.xlu0 %8694  ;;  %v6161_v63 = vsel %vm3934_vm11, %v6125_v32, %v8686_v45  ;;  %v6053_v61 = vsel %vm3934_vm11, %v6017_v62, %v8687_v57  ;;  %v5016_v34 = vld [vmem:[#allocation2 + $0x109] sm:$0xff]  ;;  %v4966_v32 = vld [vmem:[#allocation2 + $0x98] sm:$0xff] }
 0x56b   : > { %v8692_v14 = vunpack.i.h.bf16 %v8690_v58  ;;  %v8691_v54 = vunpack.i.l.bf16 %v8690_v58  ;;  %v8697_v9 = vunpack.i.h.bf16 %v8695_v56  ;;  %v8696_v47 = vunpack.i.l.bf16 %v8695_v56  ;;  %v5076_v45 = vld [vmem:[#allocation2 + $0xab] sm:$0xff] }
 0x56c   : > { %8894 = vrot.lane.b32.xlu0 %v8893_v8, %s9029_s28  ;;  %v8903_v10 = vpack.i.bf16 %v5016_v34, %v5126_v50  ;;  %v8898_v8 = vpack.i.bf16 %v5053_v52, %v5163_v60  ;;  %v5164_v57 = vld [vmem:[#allocation2 + $0x12d] sm:$0xff] }
 0x56d   : > { %8889 = vrot.lane.b32.xlu1 %v8888_v5, %s9025_s27  ;;  %v6197_v16 = vsel %vm3971_vm12, %v6161_v63, %v8691_v54  ;;  %v6089_v39 = vsel %vm3971_vm12, %v6053_v61, %v8692_v14  ;;  %v6126_v54 = vsel %vm393_vm8, %v5076_v45, %v8696_v47  ;;  %v6018_v14 = vsel %vm393_vm8, %v4966_v32, %v8697_v9  ;;  %v5128_v5 = vld [vmem:[#allocation2 + $0x12c] sm:$0xff]  ;;  %v12600_v61 = vld [vmem:[#allocation2 + $0x11a] sm:$0xff] }
 0x56e   : > { %v8700_v58 = vpop.permute.xlu1 %8699  ;;  %6477 = vmatprep.mubr.f32.mxu0 %v6197_v16  ;;  %v8705_v30 = vpop.permute.xlu0 %8704  ;;  %v8908_v9 = vpack.i.bf16 %v12570_v49, %v5128_v5  ;;  %v4967_v45 = vld [vmem:[#allocation2 + $0xa0] sm:$0xff] }
 0x56f   : > { %v8702_v42 = vunpack.i.h.bf16 %v8700_v58  ;;  %v8701_v56 = vunpack.i.l.bf16 %v8700_v58  ;;  %6478 = vmatmul.mubr.f32.gmra.mrb[104].mxu0 %v6089_v39  ;;  %v8707_v62 = vunpack.i.h.bf16 %v8705_v30  ;;  %v8706_v35 = vunpack.i.l.bf16 %v8705_v30  ;;  %v5129_v58 = vld [vmem:[#allocation2 + $0x134] sm:$0xff] }
 0x570   : > { %8904 = vrot.lane.b32.xlu0 %v8903_v10, %s9025_s27  ;;  %v8913_v10 = vpack.i.bf16 %v12600_v61, %v5164_v57 }
 0x571   : > { %8899 = vrot.lane.b32.xlu1 %v8898_v8, %s9030_s30  ;;  %v6162_v50 = vsel %vm3934_vm11, %v6126_v54, %v8701_v56  ;;  %v6054_v63 = vsel %vm3934_vm11, %v6018_v14, %v8702_v42  ;;  %v5077_v42 = vld [vmem:[#allocation2 + $0xb3] sm:$0xff] }
 0x572   : > { %v8710_v60 = vpop.permute.xlu1 %8709  ;;  %v6198_v16 = vsel %vm3971_vm12, %v6162_v50, %v8706_v35  ;;  %v6090_v30 = vsel %vm3971_vm12, %v6054_v63, %v8707_v62  ;;  %v8923_v62 = vpack.i.bf16 %v5053_v52, %v5129_v58  ;;  %v5017_v54 = vld [vmem:[#allocation2 + $0x111] sm:$0xff] }
 0x573   : > { %v8712_v39 = vunpack.i.h.bf16 %v8710_v60  ;;  %v8711_v47 = vunpack.i.l.bf16 %v8710_v60  ;;  %v8715_v34 = vpop.permute.xlu0 %8714  ;;  %6482 = vmatprep.mubr.f32.mxu0 %v6198_v16  ;;  %v8918_v63 = vpack.i.bf16 %v5017_v54, %v12576_v21  ;;  %v5165_v60 = vld [vmem:[#allocation2 + $0x135] sm:$0xff] }
 0x574   : > { %v8717_v8 = vunpack.i.h.bf16 %v8715_v34  ;;  %v8716_v56 = vunpack.i.l.bf16 %v8715_v34  ;;  %6483 = vmatmul.mubr.f32.gmra.mrb[106].mxu0 %v6090_v30  ;;  %8914 = vrot.lane.b32.xlu0 %v8913_v10, %s9030_s30 }
 0x575   : > { %8909 = vrot.lane.b32.xlu1 %v8908_v9, %s9029_s28  ;;  %v6127_v35 = vsel %vm393_vm8, %v5077_v42, %v8711_v47  ;;  %v6019_v32 = vsel %vm393_vm8, %v4967_v45, %v8712_v39  ;;  %v5055_v47 = vld [vmem:[#allocation2 + $0x122] sm:$0xff]  ;;  %v5201_v9 = vld [vmem:[#allocation2 + $0x136] sm:$0xff] }
 0x576   : > { %v8720_v57 = vpop.permute.xlu1 %8719  ;;  %v6163_v10 = vsel %vm3934_vm11, %v6127_v35, %v8716_v56  ;;  %v6055_v34 = vsel %vm3934_vm11, %v6019_v32, %v8717_v8  ;;  %v5202_v39 = vld [vmem:[#allocation2 + $0x13e] sm:$0xff]  ;;  %7668 = vmatprep.mubr.msk.f32.mxu1 %vm393_vm8, %v5201_v9  ;;  %v4968_v56 = vld [vmem:[#allocation2 + $0xa8] sm:$0xff]  ;;  %v8928_v54 = vpack.i.bf16 %v5055_v47, %v5165_v60 }
 0x577   : > { %v8722_v14 = vunpack.i.h.bf16 %v8720_v57  ;;  %v8721_v50 = vunpack.i.l.bf16 %v8720_v57  ;;  %v8725_v49 = vpop.permute.xlu0 %8724  ;;  %v5018_v42 = vld [vmem:[#allocation2 + $0x119] sm:$0xff]  ;;  %7669 = vmatmul.mubr.msk.f32.gmra.mrb[110].mxu1 %vm393_vm8, %v5202_v39 }
 0x578   : > { %v8727_v16 = vunpack.i.h.bf16 %v8725_v49  ;;  %v8726_v30 = vunpack.i.l.bf16 %v8725_v49  ;;  %8924 = vrot.lane.b32.xlu0 %v8923_v62, %s9029_s28  ;;  %v12618_v45 = vpop.f32.mrb[82].mxu1  ;;  %v8933_v57 = vpack.i.bf16 %v5018_v42, %v5128_v5  ;;  %v5166_v49 = vld [vmem:[#allocation2 + $0x13d] sm:$0xff] }
 0x579   : > { %8919 = vrot.lane.b32.xlu1 %v8918_v63, %s9025_s27  ;;  %v6199_v52 = vsel %vm3971_vm12, %v6163_v10, %v8721_v50  ;;  %v6091_v58 = vsel %vm3971_vm12, %v6055_v34, %v8722_v14  ;;  %v12621_v62 = vpop.f32.mrb[83].mxu1  ;;  %v5078_v50 = vld [vmem:[#allocation2 + $0xbb] sm:$0xff]  ;;  %v5056_v14 = vld [vmem:[#allocation2 + $0x12a] sm:$0xff] }
 0x57a   : > { %v8730_v21 = vpop.permute.xlu1 %8729  ;;  %6487 = vmatprep.mubr.f32.mxu0 %v6199_v52  ;;  %v6128_v34 = vsel %vm393_vm8, %v5078_v50, %v8726_v30  ;;  %v6020_v5 = vsel %vm393_vm8, %v4968_v56, %v8727_v16  ;;  %v5130_v9 = vld [vmem:[#allocation2 + $0x13c] sm:$0xff]  ;;  %v8943_v42 = vpack.i.bf16 %v5056_v14, %v5166_v49 }
 0x57b   : > { %v8732_v8 = vunpack.i.h.bf16 %v8730_v21  ;;  %v8731_v35 = vunpack.i.l.bf16 %v8730_v21  ;;  %v8735_v32 = vpop.permute.xlu0 %8734  ;;  %6488 = vmatmul.mubr.f32.gmra.mrb[108].mxu0 %v6091_v58  ;;  %v8938_v30 = vpack.i.bf16 %v12600_v61, %v5130_v9 }
 0x57c   : > { %v8737_v63 = vunpack.i.h.bf16 %v8735_v32  ;;  %v8736_v10 = vunpack.i.l.bf16 %v8735_v32  ;;  %8934 = vrot.lane.b32.xlu0 %v8933_v57, %s9025_s27 }
 0x57d   : > { %8929 = vrot.lane.b32.xlu1 %v8928_v54, %s9030_s30  ;;  %v6164_v39 = vsel %vm3934_vm11, %v6128_v34, %v8731_v35  ;;  %v6056_v52 = vsel %vm3934_vm11, %v6020_v5, %v8732_v8  ;;  %v5079_v35 = vld [vmem:[#allocation2 + $0xc3] sm:$0xff]  ;;  %v4969_v54 = vld [vmem:[#allocation2 + $0xb0] sm:$0xff] }
 0x57e   : > { %v8740_v58 = vpop.permute.xlu1 %8739  ;;  %v6200_v60 = vsel %vm3971_vm12, %v6164_v39, %v8736_v10  ;;  %v6092_v47 = vsel %vm3971_vm12, %v6056_v52, %v8737_v63 }
 0x57f   : > { %v8742_v21 = vunpack.i.h.bf16 %v8740_v58  ;;  %v8741_v32 = vunpack.i.l.bf16 %v8740_v58  ;;  %v8745_v57 = vpop.permute.xlu0 %8744  ;;  %6492 = vmatprep.mubr.f32.mxu0 %v6200_v60 }
 0x580   : > { %v8747_v16 = vunpack.i.h.bf16 %v8745_v57  ;;  %v8746_v56 = vunpack.i.l.bf16 %v8745_v57  ;;  %6493 = vmatmul.mubr.f32.gmra.mrb[110].mxu0 %v6092_v47  ;;  %8944 = vrot.lane.b32.xlu0 %v8943_v42, %s9030_s30  ;;  %s8958_s30 = sshll.u32 %s9032_s17, 4  ;;  %s8959_s30 = int_to_ptr.vmem [resolvable:$false] %s8958_s30 }
 0x581   : > { %8939 = vrot.lane.b32.xlu1 %v8938_v30, %s9029_s28  ;;  %v6129_v8 = vsel %vm393_vm8, %v5079_v35, %v8741_v32  ;;  %v6021_v50 = vsel %vm393_vm8, %v4969_v54, %v8742_v21  ;;  %v5080_v21 = vld [vmem:[#allocation2 + $0xcb] sm:$0xff]  ;;  %v4970_v32 = vld [vmem:[#allocation2 + $0xb8] sm:$0xff]  ;;  %s350_s28 = sand.u32 1, %s9008_s14   ;;  %s8960_s12 = scalar_lea.vmem %s8959_s30, 32 }
 0x582   : > { %v8750_v14 = vpop.permute.xlu1 %8749  ;;  %v6165_v61 = vsel %vm3934_vm11, %v6129_v8, %v8746_v56  ;;  %v6057_v9 = vsel %vm3934_vm11, %v6021_v50, %v8747_v16  ;;  %s351_s21 = scalar_lea.vmem [#allocation3], %s350_s28  ;;  %s7128_s11 = scalar_lea.sflag [#allocation4], %s350_s28 }
 0x583   : > { %v8752_v49 = vunpack.i.h.bf16 %v8750_v14  ;;  %v8751_v63 = vunpack.i.l.bf16 %v8750_v14  ;;  %v8755_v10 = vpop.permute.xlu0 %8754  ;;  %s7140_s25 = sshll.u32 %s351_s21, 4  ;;  %s12989_s25 = int_to_ptr.vmem [resolvable:$true] %s7140_s25 }
 0x584   : > { %v8757_v34 = vunpack.i.h.bf16 %v8755_v10  ;;  %v8756_v5 = vunpack.i.l.bf16 %v8755_v10  ;;  %s8954_s27 = scalar_lea.vmem %s12989_s25, 16  ;;  %p8961_p0 = scmp.lt.s32.totalorder %s12989_s25, %s8959_s30 }
 0x585   : > { %v6201_v39 = vsel %vm3971_vm12, %v6165_v61, %v8751_v63  ;;  %v6093_v52 = vsel %vm3971_vm12, %v6057_v9, %v8752_v49  ;;  %p8955_p11 = scmp.ne.s32.totalorder %s12989_s25, %s8954_s27  ;;  %p8962_p1 = scmp.lt.s32.totalorder %s8960_s12, %s8954_s27 }
 0x586   : > { %v8760_v58 = vpop.permute.xlu1 %8759  ;;  %6497 = vmatprep.mubr.f32.mxu0 %v6201_v39  ;;  %v6130_v35 = vsel %vm393_vm8, %v5080_v21, %v8756_v5  ;;  %v6022_v56 = vsel %vm393_vm8, %v4970_v32, %v8757_v34 }
 0x587   : > { %v8762_v60 = vunpack.i.h.bf16 %v8760_v58  ;;  %v8761_v47 = vunpack.i.l.bf16 %v8760_v58  ;;  %v8765_v42 = vpop.permute.xlu0 %8764  ;;  %6498 = vmatmul.mubr.f32.gmra.mrb[112].mxu0 %v6093_v52  ;;  %v5081_v52 = vld [vmem:[#allocation2 + $0xd3] sm:$0xff]  ;;  %v4971_v58 = vld [vmem:[#allocation2 + $0xc0] sm:$0xff]  ;;  %p8956_p12 = pnand %p8955_p11, %p9126_p5  ;;  %p8963_p2 = por %p8962_p1, %p8961_p0 }
 0x588   : > { %v8767_v57 = vunpack.i.h.bf16 %v8765_v42  ;;  %v8766_v30 = vunpack.i.l.bf16 %v8765_v42  ;;  %v12645_v14 = vpop.f32.mrb[84].mxu1 }
 0x589   : > { %v6166_v16 = vsel %vm3934_vm11, %v6130_v35, %v8761_v47  ;;  %v6058_v54 = vsel %vm3934_vm11, %v6022_v56, %v8762_v60  ;;  %v12648_v61 = vpop.f32.mrb[85].mxu1  ;;  %p8957_p13 = pneg %p8956_p12 }
 0x58a   : > { %v8770_v8 = vpop.permute.xlu1 %8769  ;;  %v6202_v50 = vsel %vm3971_vm12, %v6166_v16, %v8766_v30  ;;  %v6094_v49 = vsel %vm3971_vm12, %v6058_v54, %v8767_v57 }
 0x58b   : > { %v8772_v63 = vunpack.i.h.bf16 %v8770_v8  ;;  %v8771_v10 = vunpack.i.l.bf16 %v8770_v8  ;;  %6502 = vmatprep.mubr.f32.mxu0 %v6202_v50  ;;  %p8964_p3 = pnand %p8963_p2, %p8957_p13 }
 0x58c   : > { %6503 = vmatmul.mubr.f32.gmra.mrb[114].mxu0 %v6094_v49 }
 0x58d   : > { %v6131_v42 = vsel %vm393_vm8, %v5081_v52, %v8771_v10  ;;  %v6023_v21 = vsel %vm393_vm8, %v4971_v58, %v8772_v63  ;;  %v5082_v63 = vld [vmem:[#allocation2 + $0xdb] sm:$0xff]  ;;  %v4972_v52 = vld [vmem:[#allocation2 + $0xc8] sm:$0xff] }
 0x58e   : > { %v8775_v5 = vpop.permute.xlu0 %8774 }
 0x58f   : > { %v8777_v9 = vunpack.i.h.bf16 %v8775_v5  ;;  %v8776_v34 = vunpack.i.l.bf16 %v8775_v5  ;;  %v8780_v39 = vpop.permute.xlu1 %8779 }
 0x590   : > { %v8782_v60 = vunpack.i.h.bf16 %v8780_v39  ;;  %v8781_v47 = vunpack.i.l.bf16 %v8780_v39 }
 0x591   : > { %v6167_v32 = vsel %vm3934_vm11, %v6131_v42, %v8776_v34  ;;  %v6059_v57 = vsel %vm3934_vm11, %v6023_v21, %v8777_v9 }
 0x592   : > { %v8785_v30 = vpop.permute.xlu0 %8784  ;;  %v6203_v35 = vsel %vm3971_vm12, %v6167_v32, %v8781_v47  ;;  %v6095_v56 = vsel %vm3971_vm12, %v6059_v57, %v8782_v60 }
 0x593   : > { %6507 = vmatprep.mubr.f32.mxu0 %v6203_v35  ;;  %v8787_v16 = vunpack.i.h.bf16 %v8785_v30  ;;  %v8786_v54 = vunpack.i.l.bf16 %v8785_v30 }
 0x594   : > { %6508 = vmatmul.mubr.f32.gmra.mrb[116].mxu0 %v6095_v56 }
 0x595   : > { %v6132_v34 = vsel %vm393_vm8, %v5082_v63, %v8786_v54  ;;  %v6024_v9 = vsel %vm393_vm8, %v4972_v52, %v8787_v16  ;;  %v4973_v63 = vld [vmem:[#allocation2 + $0xd0] sm:$0xff] }
 0x596   : > { %v8795_v8 = vpop.permute.xlu0 %8794  ;;  %v8790_v50 = vpop.permute.xlu1 %8789 }
 0x597   : > { %v8797_v49 = vunpack.i.h.bf16 %v8795_v8  ;;  %v8796_v5 = vunpack.i.l.bf16 %v8795_v8  ;;  %v8792_v10 = vunpack.i.h.bf16 %v8790_v50  ;;  %v8791_v39 = vunpack.i.l.bf16 %v8790_v50 }
 0x599   : > { %v6168_v58 = vsel %vm3934_vm11, %v6132_v34, %v8791_v39  ;;  %v6060_v60 = vsel %vm3934_vm11, %v6024_v9, %v8792_v10  ;;  %v5083_v10 = vld [vmem:[#allocation2 + $0xe3] sm:$0xff] }
 0x59a   : > { %v8800_v47 = vpop.permute.xlu1 %8799  ;;  %v6204_v42 = vsel %vm3971_vm12, %v6168_v58, %v8796_v5  ;;  %v6096_v21 = vsel %vm3971_vm12, %v6060_v60, %v8797_v49 }
 0x59b   : > { %6512 = vmatprep.mubr.f32.mxu0 %v6204_v42  ;;  %v8802_v32 = vunpack.i.h.bf16 %v8800_v47  ;;  %v8801_v57 = vunpack.i.l.bf16 %v8800_v47  ;;  %v12662_v30 = vpop.f32.mrb[86].mxu1 }
 0x59c   : > { %6513 = vmatmul.mubr.f32.gmra.mrb[118].mxu0 %v6096_v21  ;;  %v12664_v39 = vpop.f32.mrb[87].mxu1 }
 0x59d   : > { %v6133_v5 = vsel %vm393_vm8, %v5083_v10, %v8801_v57  ;;  %v6025_v49 = vsel %vm393_vm8, %v4973_v63, %v8802_v32  ;;  %v5084_v57 = vld [vmem:[#allocation2 + $0xeb] sm:$0xff]  ;;  %v4974_v10 = vld [vmem:[#allocation2 + $0xd8] sm:$0xff] }
 0x59e   : > { %v8805_v35 = vpop.permute.xlu0 %8804 }
 0x59f   : > { %v8810_v56 = vpop.permute.xlu1 %8809  ;;  %v8807_v54 = vunpack.i.h.bf16 %v8805_v35  ;;  %v8806_v8 = vunpack.i.l.bf16 %v8805_v35 }
 0x5a0   : > { %v8812_v16 = vunpack.i.h.bf16 %v8810_v56  ;;  %v8811_v50 = vunpack.i.l.bf16 %v8810_v56 }
 0x5a1   : > { %v6169_v52 = vsel %vm3934_vm11, %v6133_v5, %v8806_v8  ;;  %v6061_v34 = vsel %vm3934_vm11, %v6025_v49, %v8807_v54 }
 0x5a2   : > { %v8815_v9 = vpop.permute.xlu0 %8814  ;;  %v6205_v58 = vsel %vm3971_vm12, %v6169_v52, %v8811_v50  ;;  %v6097_v60 = vsel %vm3971_vm12, %v6061_v34, %v8812_v16 }
 0x5a3   : > { %v8817_v47 = vunpack.i.h.bf16 %v8815_v9  ;;  %v8816_v42 = vunpack.i.l.bf16 %v8815_v9  ;;  %6517 = vmatprep.mubr.f32.mxu0 %v6205_v58 }
 0x5a4   : > { %6518 = vmatmul.mubr.f32.gmra.mrb[120].mxu0 %v6097_v60 }
 0x5a5   : > { %v6134_v8 = vsel %vm393_vm8, %v5084_v57, %v8816_v42  ;;  %v6026_v54 = vsel %vm393_vm8, %v4974_v10, %v8817_v47  ;;  %v4975_v10 = vld [vmem:[#allocation2 + $0xe0] sm:$0xff] }
 0x5a6   : > { %v8820_v21 = vpop.permute.xlu1 %8819  ;;  %v8825_v35 = vpop.permute.xlu0 %8824 }
 0x5a7   : > { %v8822_v56 = vunpack.i.h.bf16 %v8820_v21  ;;  %v8821_v6 = vunpack.i.l.bf16 %v8820_v21  ;;  %v8827_v32 = vunpack.i.h.bf16 %v8825_v35  ;;  %v8826_v63 = vunpack.i.l.bf16 %v8825_v35 }
 0x5a8   : > { %v12676_v5 = vpop.f32.mrb[88].mxu1 }
 0x5a9   : > { %v6170_v50 = vsel %vm3934_vm11, %v6134_v8, %v8821_v6  ;;  %v6062_v16 = vsel %vm3934_vm11, %v6026_v54, %v8822_v56  ;;  %v12680_v9 = vpop.f32.mrb[89].mxu1  ;;  %v5085_v56 = vld [vmem:[#allocation2 + $0xf3] sm:$0xff] }
 0x5aa   : > { %v8830_v49 = vpop.permute.xlu1 %8829  ;;  %v6206_v52 = vsel %vm3971_vm12, %v6170_v50, %v8826_v63  ;;  %v6098_v34 = vsel %vm3971_vm12, %v6062_v16, %v8827_v32 }
 0x5ab   : > { %6522 = vmatprep.mubr.f32.mxu0 %v6206_v52  ;;  %v8832_v58 = vunpack.i.h.bf16 %v8830_v49  ;;  %v8831_v60 = vunpack.i.l.bf16 %v8830_v49 }
 0x5ac   : > { %6523 = vmatmul.mubr.f32.gmra.mrb[122].mxu0 %v6098_v34  ;;  %v12695_v34 = vld [vmem:[%s13035_s6 + $0x1] ss:$0 sm:$0xff] }
 0x5ad   : > { %v6135_v8 = vsel %vm393_vm8, %v5085_v56, %v8831_v60  ;;  %v6027_v63 = vsel %vm393_vm8, %v4975_v10, %v8832_v58 }
 0x5ae   : > { %v8835_v42 = vpop.permute.xlu0 %8834 }
 0x5af   : > { %v8840_v21 = vpop.permute.xlu1 %8839  ;;  %v8837_v47 = vunpack.i.h.bf16 %v8835_v42  ;;  %v8836_v35 = vunpack.i.l.bf16 %v8835_v42 }
 0x5b0   : > { %v8842_v6 = vunpack.i.h.bf16 %v8840_v21  ;;  %v8841_v57 = vunpack.i.l.bf16 %v8840_v21  ;;  %v12701_v21 = vld [vmem:[%s13036_s7 + $0x1] ss:$0 sm:$0xff] }
 0x5b1   : > { %v6171_v32 = vsel %vm3934_vm11, %v6135_v8, %v8836_v35  ;;  %v6063_v54 = vsel %vm3934_vm11, %v6027_v63, %v8837_v47 }
 0x5b2   : > { %v6207_v50 = vsel %vm3971_vm12, %v6171_v32, %v8841_v57  ;;  %v6099_v16 = vsel %vm3971_vm12, %v6063_v54, %v8842_v6  ;;  %v8845_v54 = vpop.permute.xlu0 %8844 }
 0x5b3   : > { %6527 = vmatprep.mubr.f32.mxu0 %v6207_v50  ;;  %v13332_v50 = vld [vmem:[#allocation57_spill] sm:$0xff]  ;;  %v8847_v15 = vunpack.i.h.bf16 %v8845_v54 }
 0x5b4   : > { %6528 = vmatmul.mubr.f32.gmra.mrb[124].mxu0 %v6099_v16  ;;  %v12688_v49 = vpop.f32.mrb[90].mxu1 }
 0x5b5   : > { %v12690_v52 = vpop.f32.mrb[91].mxu1 }
 0x5ba   : > { %v6389_v58 = vpop.f32.mrb[68].mxu0 }
 0x5bb   : > { %v6635_v60 = vadd.f32 %v12515_v13, %v6389_v58  ;;  %v6391_v42 = vpop.f32.mrb[69].mxu0 }
 0x5bd   : > { %v6819_v47 = vmul.f32 %v12695_v34, %v6635_v60 }
 0x5bf   : > { %v6861_v57 = vadd.f32 %v12701_v21, %v6819_v47  ;;  %v8846_v47 = vunpack.i.l.bf16 %v8845_v54  ;;  %v4976_v54 = vld [vmem:[#allocation2 + $0xe8] sm:$0xff] }
 0x5c0   : > { %v12704_v35 = vpop.f32.mrb[92].mxu1 }
 0x5c1   : > { %v12706_v6 = vpop.f32.mrb[93].mxu1  ;;  %v6897_v63 = vmax.f32 %v6861_v57, 0.0 }
 0x5c3   : > { %v6933_v16 = vmul.f32 %v6897_v63, %v13332_v50 }
 0x5c4   : > { %v6394_v56 = vpop.f32.mrb[70].mxu0 }
 0x5c5   : > { %v6640_v10 = vadd.f32 %v12510_v0, %v6394_v56  ;;  %v6396_v8 = vpop.f32.mrb[71].mxu0  ;;  %v6969_v57 = vsel %vm393_vm8, %v6933_v16, 0.0 }
 0x5c7   : > { %v6820_v13 = vmul.f32 %v12695_v34, %v6640_v10 }
 0x5c9   : > { %v6862_v32 = vadd.f32 %v12701_v21, %v6820_v13 }
 0x5cb   : > { %v6898_v58 = vmax.f32 %v6862_v32, 0.0 }
 0x5cc   : > { %v6399_v42 = vpop.f32.mrb[72].mxu0  ;;  %v12714_v18 = vpop.f32.mrb[94].mxu1 }
 0x5cd   : > { %v6934_v60 = vmul.f32 %v6898_v58, %v10964_v44  ;;  %v6645_v23 = vadd.f32 %v12543_v11, %v6399_v42  ;;  %v6401_v0 = vpop.f32.mrb[73].mxu0  ;;  %v12717_v56 = vpop.f32.mrb[95].mxu1  ;;  %v6136_v42 = vsel %vm393_vm8, %v5086_v33, %v8846_v47  ;;  %v4977_v47 = vld [vmem:[#allocation2 + $0xf0] sm:$0xff] }
 0x5ce   : > { %v8855_v8 = vpop.permute.xlu0 %8854  ;;  %v6028_v0 = vsel %vm393_vm8, %v4976_v54, %v8847_v15 }
 0x5cf   : > { %v6970_v10 = vsel %vm393_vm8, %v6934_v60, 0.0  ;;  %v8850_v13 = vpop.permute.xlu1 %8849  ;;  %v6821_v32 = vmul.f32 %v12695_v34, %v6645_v23  ;;  %v8857_v44 = vunpack.i.h.bf16 %v8855_v8  ;;  %v8856_v50 = vunpack.i.l.bf16 %v8855_v8 }
 0x5d0   : > { %v6971_v63 = vadd.f32 %v6970_v10, %v6969_v57  ;;  %v8852_v58 = vunpack.i.h.bf16 %v8850_v13  ;;  %v8851_v28 = vunpack.i.l.bf16 %v8850_v13 }
 0x5d1   : > { %v6863_v11 = vadd.f32 %v12701_v21, %v6821_v32 }
 0x5d2   : > { %v8865_v16 = vpop.permute.xlu0 %8864  ;;  %v6172_v60 = vsel %vm3934_vm11, %v6136_v42, %v8851_v28  ;;  %v6064_v57 = vsel %vm3934_vm11, %v6028_v0, %v8852_v58  ;;  %v5087_v28 = vld [vmem:[#allocation2 + $0x103] sm:$0xff] }
 0x5d3   : > { %v8860_v26 = vpop.permute.xlu1 %8859  ;;  %v6899_v10 = vmax.f32 %v6863_v11, 0.0  ;;  %v8867_v23 = vunpack.i.h.bf16 %v8865_v16  ;;  %v6208_v13 = vsel %vm3971_vm12, %v6172_v60, %v8856_v50  ;;  %v6100_v17 = vsel %vm3971_vm12, %v6064_v57, %v8857_v44 }
 0x5d4   : > { %v8862_v37 = vunpack.i.h.bf16 %v8860_v26  ;;  %v6404_v8 = vpop.f32.mrb[74].mxu0  ;;  %v8861_v4 = vunpack.i.l.bf16 %v8860_v26  ;;  %v8866_v54 = vunpack.i.l.bf16 %v8865_v16  ;;  %6532 = vmatprep.mubr.f32.mxu0 %v6208_v13 }
 0x5d5   : > { %v6650_v32 = vadd.f32 %v12538_v24, %v6404_v8  ;;  %v6406_v33 = vpop.f32.mrb[75].mxu0  ;;  %v6935_v15 = vmul.f32 %v6899_v10, %v10983_v19  ;;  %6533 = vmatmul.mubr.f32.gmra.mrb[126].mxu0 %v6100_v17 }
 0x5d6   : > { %v6029_v58 = vsel %vm393_vm8, %v4977_v47, %v8862_v37  ;;  %v8875_v42 = vpop.permute.xlu0 %8874  ;;  %v6137_v50 = vsel %vm393_vm8, %v5087_v28, %v8861_v4 }
 0x5d7   : > { %v6822_v11 = vmul.f32 %v12695_v34, %v6650_v32  ;;  %v8870_v26 = vpop.permute.xlu1 %8869  ;;  %v6972_v44 = vsel %vm393_vm8, %v6935_v15, 0.0  ;;  %v8877_v0 = vunpack.i.h.bf16 %v8875_v42  ;;  %v6065_v60 = vsel %vm3934_vm11, %v6029_v58, %v8867_v23  ;;  %v12737_v8 = vpop.f32.mrb[96].mxu1  ;;  %v5088_v58 = vld [vmem:[#allocation2 + $0x10b] sm:$0xff] }
 0x5d8   : > { %v8872_v24 = vunpack.i.h.bf16 %v8870_v26  ;;  %v6973_v57 = vadd.f32 %v6972_v44, %v6971_v63  ;;  %v8876_v16 = vunpack.i.l.bf16 %v8875_v42  ;;  %v8871_v10 = vunpack.i.l.bf16 %v8870_v26  ;;  %v12739_v17 = vpop.f32.mrb[97].mxu1 }
 0x5d9   : > { %v6864_v19 = vadd.f32 %v12701_v21, %v6822_v11  ;;  %v6173_v37 = vsel %vm3934_vm11, %v6137_v50, %v8866_v54  ;;  %v4978_v11 = vld [vmem:[#allocation2 + $0xf8] sm:$0xff] }
 0x5da   : > { %v6101_v13 = vsel %vm3971_vm12, %v6065_v60, %v8872_v24  ;;  %v8885_v32 = vpop.permute.xlu0 %8884  ;;  %v6209_v47 = vsel %vm3971_vm12, %v6173_v37, %v8871_v10  ;;  %v6138_v54 = vsel %vm393_vm8, %v5088_v58, %v8876_v16  ;;  %v6030_v50 = vsel %vm393_vm8, %v4978_v11, %v8877_v0  ;;  %v4979_v58 = vld [vmem:[#allocation2 + $0x100] sm:$0xff] }
 0x5db   : > { %v6900_v4 = vmax.f32 %v6864_v19, 0.0  ;;  %v8880_v33 = vpop.permute.xlu1 %8879  ;;  %v8887_v15 = vunpack.i.h.bf16 %v8885_v32  ;;  %v8886_v23 = vunpack.i.l.bf16 %v8885_v32  ;;  %6537 = vmatprep.mubr.f32.mxu0 %v6209_v47  ;;  %v6409_v26 = vpop.f32.mrb[76].mxu0 }
 0x5dc   : > { %v8882_v63 = vunpack.i.h.bf16 %v8880_v33  ;;  %v8881_v28 = vunpack.i.l.bf16 %v8880_v33  ;;  %6538 = vmatmul.mubr.f32.gmra.mrb[128].mxu0 %v6101_v13  ;;  %v6655_v44 = vadd.f32 %v12585_v12, %v6409_v26  ;;  %v6411_v24 = vpop.f32.mrb[77].mxu0 }
 0x5dd   : > { %v6936_v42 = vmul.f32 %v6900_v4, %v10985_v41 }
 0x5de   : > { %v6174_v60 = vsel %vm3934_vm11, %v6138_v54, %v8881_v28  ;;  %v6066_v19 = vsel %vm3934_vm11, %v6030_v50, %v8882_v63  ;;  %v8895_v37 = vpop.permute.xlu0 %8894  ;;  %v6823_v16 = vmul.f32 %v12695_v34, %v6655_v44  ;;  %v5089_v63 = vld [vmem:[#allocation2 + $0x113] sm:$0xff] }
 0x5df   : > { %v6974_v10 = vsel %vm393_vm8, %v6936_v42, 0.0  ;;  %v8890_v32 = vpop.permute.xlu1 %8889  ;;  %v6210_v33 = vsel %vm3971_vm12, %v6174_v60, %v8886_v23  ;;  %v6102_v41 = vsel %vm3971_vm12, %v6066_v19, %v8887_v15  ;;  %v8897_v0 = vunpack.i.h.bf16 %v8895_v37 }
 0x5e0   : > { %v6975_v13 = vadd.f32 %v6974_v10, %v6973_v57  ;;  %6542 = vmatprep.mubr.f32.mxu0 %v6210_v33  ;;  %v8892_v4 = vunpack.i.h.bf16 %v8890_v32  ;;  %v8891_v12 = vunpack.i.l.bf16 %v8890_v32  ;;  %v6865_v47 = vadd.f32 %v12701_v21, %v6823_v16 }
 0x5e1   : > { %6543 = vmatmul.mubr.f32.gmra.mrb[130].mxu0 %v6102_v41  ;;  %v8896_v28 = vunpack.i.l.bf16 %v8895_v37 }
 0x5e2   : > { %v8905_v11 = vpop.permute.xlu0 %8904  ;;  %v6139_v26 = vsel %vm393_vm8, %v5089_v63, %v8891_v12  ;;  %v6031_v23 = vsel %vm393_vm8, %v4979_v58, %v8892_v4  ;;  %v6901_v15 = vmax.f32 %v6865_v47, 0.0  ;;  %v4980_v63 = vld [vmem:[#allocation2 + $0x108] sm:$0xff] }
 0x5e3   : > { %v8900_v42 = vpop.permute.xlu1 %8899  ;;  %v8907_v57 = vunpack.i.h.bf16 %v8905_v11  ;;  %v6067_v10 = vsel %vm3934_vm11, %v6031_v23, %v8897_v0  ;;  %v8906_v32 = vunpack.i.l.bf16 %v8905_v11  ;;  %v6175_v41 = vsel %vm3934_vm11, %v6139_v26, %v8896_v28 }
 0x5e4   : > { %v8902_v54 = vunpack.i.h.bf16 %v8900_v42  ;;  %v6414_v50 = vpop.f32.mrb[78].mxu0  ;;  %v8901_v44 = vunpack.i.l.bf16 %v8900_v42  ;;  %v6937_v37 = vmul.f32 %v6901_v15, %v11002_v22  ;;  %v5090_v15 = vld [vmem:[#allocation2 + $0x11b] sm:$0xff] }
 0x5e5   : > { %v6660_v24 = vadd.f32 %v12582_v31, %v6414_v50  ;;  %v12758_v60 = vpop.f32.mrb[98].mxu1  ;;  %v6416_v19 = vpop.f32.mrb[79].mxu0  ;;  %v6032_v22 = vsel %vm393_vm8, %v4980_v63, %v8907_v57 }
 0x5e6   : > { %v12762_v33 = vpop.f32.mrb[99].mxu1  ;;  %v6103_v16 = vsel %vm3971_vm12, %v6067_v10, %v8902_v54  ;;  %v8915_v12 = vpop.permute.xlu0 %8914  ;;  %v6211_v31 = vsel %vm3971_vm12, %v6175_v41, %v8901_v44  ;;  %v6976_v58 = vsel %vm393_vm8, %v6937_v37, 0.0  ;;  %v6140_v54 = vsel %vm393_vm8, %v5090_v15, %v8906_v32 }
 0x5e7   : > { %v6824_v4 = vmul.f32 %v12695_v34, %v6660_v24  ;;  %v8910_v47 = vpop.permute.xlu1 %8909  ;;  %v8917_v42 = vunpack.i.h.bf16 %v8915_v12  ;;  %6547 = vmatprep.mubr.f32.mxu0 %v6211_v31  ;;  %v6977_v11 = vadd.f32 %v6976_v58, %v6975_v13  ;;  %v8916_v28 = vunpack.i.l.bf16 %v8915_v12  ;;  %v5091_v58 = vld [vmem:[#allocation2 + $0x123] sm:$0xff] }
 0x5e8   : > { %v8912_v0 = vunpack.i.h.bf16 %v8910_v47  ;;  %v8911_v26 = vunpack.i.l.bf16 %v8910_v47  ;;  %6548 = vmatmul.mubr.f32.gmra.mrb[132].mxu0 %v6103_v16  ;;  %v4981_v47 = vld [vmem:[#allocation2 + $0x110] sm:$0xff] }
 0x5e9   : > { %v6866_v23 = vadd.f32 %v12701_v21, %v6824_v4 }
 0x5ea   : > { %v6068_v50 = vsel %vm3934_vm11, %v6032_v22, %v8912_v0  ;;  %v8925_v24 = vpop.permute.xlu0 %8924  ;;  %v6176_v10 = vsel %vm3934_vm11, %v6140_v54, %v8911_v26 }
 0x5eb   : > { %v6902_v44 = vmax.f32 %v6866_v23, 0.0  ;;  %v8920_v19 = vpop.permute.xlu1 %8919  ;;  %v8927_v37 = vunpack.i.h.bf16 %v8925_v24  ;;  %v6104_v13 = vsel %vm3971_vm12, %v6068_v50, %v8917_v42  ;;  %v6419_v57 = vpop.f32.mrb[80].mxu0  ;;  %v6212_v16 = vsel %vm3971_vm12, %v6176_v10, %v8916_v28 }
 0x5ec   : > { %v8922_v41 = vunpack.i.h.bf16 %v8920_v19  ;;  %v8921_v31 = vunpack.i.l.bf16 %v8920_v19  ;;  %v6665_v12 = vadd.f32 %v12621_v62, %v6419_v57  ;;  %v6421_v32 = vpop.f32.mrb[81].mxu0  ;;  %v8926_v63 = vunpack.i.l.bf16 %v8925_v24  ;;  %6552 = vmatprep.mubr.f32.mxu0 %v6212_v16 }
 0x5ed   : > { %v6938_v4 = vmul.f32 %v6902_v44, %v11004_v43  ;;  %6553 = vmatmul.mubr.f32.gmra.mrb[134].mxu0 %v6104_v13  ;;  %v5092_v32 = vld [vmem:[#allocation2 + $0x12b] sm:$0xff] }
 0x5ee   : > { %v6033_v0 = vsel %vm393_vm8, %v4981_v47, %v8922_v41  ;;  %v6825_v23 = vmul.f32 %v12695_v34, %v6665_v12  ;;  %v8935_v42 = vpop.permute.xlu0 %8934  ;;  %v6141_v43 = vsel %vm393_vm8, %v5091_v58, %v8921_v31  ;;  %v4982_v47 = vld [vmem:[#allocation2 + $0x118] sm:$0xff] }
 0x5ef   : > { %v6978_v22 = vsel %vm393_vm8, %v6938_v4, 0.0  ;;  %v8930_v26 = vpop.permute.xlu1 %8929  ;;  %v6069_v62 = vsel %vm3934_vm11, %v6033_v0, %v8927_v37  ;;  %v8937_v50 = vunpack.i.h.bf16 %v8935_v42  ;;  %v8936_v44 = vunpack.i.l.bf16 %v8935_v42 }
 0x5f0   : > { %v6979_v15 = vadd.f32 %v6978_v22, %v6977_v11  ;;  %v8932_v28 = vunpack.i.h.bf16 %v8930_v26  ;;  %v6867_v54 = vadd.f32 %v12701_v21, %v6825_v23  ;;  %v8931_v24 = vunpack.i.l.bf16 %v8930_v26 }
 0x5f1   : > { %v6177_v19 = vsel %vm3934_vm11, %v6141_v43, %v8926_v63  ;;  %v6142_v22 = vsel %vm393_vm8, %v5092_v32, %v8936_v44  ;;  %v6034_v23 = vsel %vm393_vm8, %v4982_v47, %v8937_v50 }
 0x5f2   : > { %v6105_v10 = vsel %vm3971_vm12, %v6069_v62, %v8932_v28  ;;  %v6903_v41 = vmax.f32 %v6867_v54, 0.0  ;;  %v8945_v13 = vpop.permute.xlu0 %8944  ;;  %v6213_v4 = vsel %vm3971_vm12, %v6177_v19, %v8931_v24 }
 0x5f3   : > { %v8940_v57 = vpop.permute.xlu1 %8939  ;;  %v8947_v16 = vunpack.i.h.bf16 %v8945_v13  ;;  %v8946_v31 = vunpack.i.l.bf16 %v8945_v13  ;;  %6557 = vmatprep.mubr.f32.mxu0 %v6213_v4 }
 0x5f4   : > { %v8942_v11 = vunpack.i.h.bf16 %v8940_v57  ;;  %v8941_v12 = vunpack.i.l.bf16 %v8940_v57  ;;  %v12787_v37 = vpop.f32.mrb[100].mxu1  ;;  %v6939_v58 = vmul.f32 %v6903_v41, %v11018_v53  ;;  %6558 = vmatmul.mubr.f32.gmra.mrb[136].mxu0 %v6105_v10  ;;  %v6424_v63 = vpop.f32.mrb[82].mxu0 }
 0x5f5   : > { %v12790_v0 = vpop.f32.mrb[101].mxu1  ;;  %v6670_v42 = vadd.f32 %v12618_v45, %v6424_v63  ;;  %v6426_v26 = vpop.f32.mrb[83].mxu0 }
 0x5f6   : > { %v6178_v43 = vsel %vm3934_vm11, %v6142_v22, %v8941_v12  ;;  %v6070_v28 = vsel %vm3934_vm11, %v6034_v23, %v8942_v11  ;;  %v6980_v62 = vsel %vm393_vm8, %v6939_v58, 0.0 }
 0x5f7   : > { %v6214_v54 = vsel %vm3971_vm12, %v6178_v43, %v8946_v31  ;;  %v6106_v53 = vsel %vm3971_vm12, %v6070_v28, %v8947_v16  ;;  %v6981_v24 = vadd.f32 %v6980_v62, %v6979_v15  ;;  %v6826_v19 = vmul.f32 %v12695_v34, %v6670_v42 }
 0x5f8   : > { %6562 = vmatprep.mubr.f32.mxu0 %v6214_v54 }
 0x5f9   : > { %6563 = vmatmul.mubr.f32.gmra.mrb[138].mxu0 %v6106_v53  ;;  %v6868_v50 = vadd.f32 %v12701_v21, %v6826_v19  ;;  %v7047_v19 = vld [vmem:[%s13037_s8] sm:$0xff] }
 0x5fb   : > { %v6904_v44 = vmax.f32 %v6868_v50, 0.0  ;;  %v6429_v45 = vpop.f32.mrb[84].mxu0  ;;  %v7048_v50 = vld [vmem:[%s13037_s8 + $0x8] sm:$0xff] }
 0x5fc   : > { %v6675_v10 = vadd.f32 %v12648_v61, %v6429_v45  ;;  %v6431_v41 = vpop.f32.mrb[85].mxu0 }
 0x5fd   : > { %v6940_v13 = vmul.f32 %v6904_v44, %v11020_v20 }
 0x5fe   : > { %v6827_v57 = vmul.f32 %v12695_v34, %v6675_v10 }
 0x5ff   : > { %v6982_v4 = vsel %vm393_vm8, %v6940_v13, 0.0 }
 0x600   : > { %v6983_v31 = vadd.f32 %v6982_v4, %v6981_v24  ;;  %v6869_v15 = vadd.f32 %v12701_v21, %v6827_v57 }
 0x602   : > { %v6905_v16 = vmax.f32 %v6869_v15, 0.0 }
 0x604   : > { %v6434_v11 = vpop.f32.mrb[86].mxu0  ;;  %v12807_v12 = vpop.f32.mrb[102].mxu1  ;;  %v6941_v32 = vmul.f32 %v6905_v16, %v11039_v27 }
 0x605   : > { %v6680_v47 = vadd.f32 %v12645_v14, %v6434_v11  ;;  %v6436_v58 = vpop.f32.mrb[87].mxu0  ;;  %v12811_v61 = vpop.f32.mrb[103].mxu1 }
 0x606   : > { %v6984_v20 = vsel %vm393_vm8, %v6941_v32, 0.0 }
 0x607   : > { %v6828_v63 = vmul.f32 %v12695_v34, %v6680_v47  ;;  %v6985_v22 = vadd.f32 %v6984_v20, %v6983_v31 }
 0x609   : > { %v6870_v23 = vadd.f32 %v12701_v21, %v6828_v63 }
 0x60b   : > { %v6906_v42 = vmax.f32 %v6870_v23, 0.0  ;;  %v6439_v26 = vpop.f32.mrb[88].mxu0 }
 0x60c   : > { %v6685_v28 = vadd.f32 %v12664_v39, %v6439_v26  ;;  %v6441_v62 = vpop.f32.mrb[89].mxu0  ;;  %v7803_v39 = vpack.c.bf16 %v7048_v50, %v7047_v19 }
 0x60d   : > { %v6942_v43 = vmul.f32 %v6906_v42, %v11041_v46 }
 0x60e   : > { %v6829_v14 = vmul.f32 %v12695_v34, %v6685_v28  ;;  %7804 = vmatpush3.bf16.msra.mxu1 %v7803_v39 }
 0x60f   : > { %v6986_v27 = vsel %vm393_vm8, %v6942_v43, 0.0  ;;  %7805 = vmatprep.subr.bf16.mxu1 %v13311_v29 }
 0x610   : > { %v6987_v54 = vadd.f32 %v6986_v27, %v6985_v22  ;;  %v6871_v53 = vadd.f32 %v12701_v21, %v6829_v14 }
 0x612   : > { %v6907_v24 = vmax.f32 %v6871_v53, 0.0 }
 0x614   : > { %v6943_v46 = vmul.f32 %v6907_v24, %v11050_v40 }
 0x616   : > { %v6988_v44 = vsel %vm393_vm8, %v6943_v46, 0.0 }
 0x617   : > { %v6444_v45 = vpop.f32.mrb[90].mxu0  ;;  %v6989_v10 = vadd.f32 %v6988_v44, %v6987_v54 }
 0x618   : > { %v6690_v41 = vadd.f32 %v12662_v30, %v6444_v45  ;;  %v6446_v13 = vpop.f32.mrb[91].mxu0 }
 0x61a   : > { %v6830_v57 = vmul.f32 %v12695_v34, %v6690_v41 }
 0x61c   : > { %v6872_v4 = vadd.f32 %v12701_v21, %v6830_v57 }
 0x61e   : > { %v6908_v31 = vmax.f32 %v6872_v4, 0.0  ;;  %v6449_v15 = vpop.f32.mrb[92].mxu0 }
 0x61f   : > { %v6695_v16 = vadd.f32 %v12680_v9, %v6449_v15  ;;  %v6451_v40 = vpop.f32.mrb[93].mxu0 }
 0x620   : > { %v6944_v11 = vmul.f32 %v6908_v31, %v11052_v2 }
 0x621   : > { %v6831_v32 = vmul.f32 %v12695_v34, %v6695_v16 }
 0x622   : > { %v6990_v47 = vsel %vm393_vm8, %v6944_v11, 0.0 }
 0x623   : > { %v6991_v58 = vadd.f32 %v6990_v47, %v6989_v10  ;;  %v6873_v30 = vadd.f32 %v12701_v21, %v6831_v32  ;;  %v6454_v20 = vpop.f32.mrb[94].mxu0 }
 0x624   : > { %v6700_v29 = vadd.f32 %v12676_v5, %v6454_v20  ;;  %v6456_v63 = vpop.f32.mrb[95].mxu0 }
 0x625   : > { %v6909_v22 = vmax.f32 %v6873_v30, 0.0 }
 0x626   : > { %v6832_v23 = vmul.f32 %v12695_v34, %v6700_v29 }
 0x627   : > { %v6945_v42 = vmul.f32 %v6909_v22, %v11076_v38 }
 0x628   : > { %v6874_v9 = vadd.f32 %v12701_v21, %v6832_v23 }
 0x629   : > { %v6992_v2 = vsel %vm393_vm8, %v6945_v42, 0.0 }
 0x62a   : > { %v6993_v26 = vadd.f32 %v6992_v2, %v6991_v58  ;;  %v6910_v43 = vmax.f32 %v6874_v9, 0.0  ;;  %v6459_v28 = vpop.f32.mrb[96].mxu0 }
 0x62b   : > { %v6705_v62 = vadd.f32 %v12690_v52, %v6459_v28  ;;  %v6461_v27 = vpop.f32.mrb[97].mxu0 }
 0x62c   : > { %v6946_v14 = vmul.f32 %v6910_v43, %v11073_v48  ;;  %v12846_v54 = vpop.f32.mrb[104].mxu1 }
 0x62d   : > { %v6833_v5 = vmul.f32 %v12695_v34, %v6705_v62  ;;  %v12849_v24 = vpop.f32.mrb[105].mxu1 }
 0x62e   : > { %v6994_v53 = vsel %vm393_vm8, %v6946_v14, 0.0 }
 0x62f   : > { %v6995_v38 = vadd.f32 %v6994_v53, %v6993_v26  ;;  %v6875_v19 = vadd.f32 %v12701_v21, %v6833_v5  ;;  %v6464_v50 = vpop.f32.mrb[98].mxu0 }
 0x630   : > { %v6710_v46 = vadd.f32 %v12688_v49, %v6464_v50  ;;  %v6466_v39 = vpop.f32.mrb[99].mxu0  ;;  %v12853_v52 = vpop.f32.mrb[106].mxu1 }
 0x631   : > { %v6911_v44 = vmax.f32 %v6875_v19, 0.0  ;;  %v12856_v45 = vpop.f32.mrb[107].mxu1 }
 0x632   : > { %v6834_v48 = vmul.f32 %v12695_v34, %v6710_v46 }
 0x633   : > { %v6947_v10 = vmul.f32 %v6911_v44, %v11104_v1 }
 0x634   : > { %v6876_v41 = vadd.f32 %v12701_v21, %v6834_v48  ;;  %v12861_v57 = vpop.f32.mrb[108].mxu1  ;;  %v7049_v48 = vld [vmem:[%s13037_s8 + $0x10] sm:$0xff] }
 0x635   : > { %v6996_v13 = vsel %vm393_vm8, %v6947_v10, 0.0  ;;  %v12863_v49 = vpop.f32.mrb[109].mxu1 }
 0x636   : > { %v6997_v4 = vadd.f32 %v6996_v13, %v6995_v38  ;;  %v6912_v31 = vmax.f32 %v6876_v41, 0.0  ;;  %v6469_v15 = vpop.f32.mrb[100].mxu0 }
 0x637   : > { %v6715_v16 = vadd.f32 %v12706_v6, %v6469_v15  ;;  %v6471_v40 = vpop.f32.mrb[101].mxu0 }
 0x638   : > { %v6948_v11 = vmul.f32 %v6912_v31, %v11102_v59 }
 0x639   : > { %v6835_v32 = vmul.f32 %v12695_v34, %v6715_v16 }
 0x63a   : > { %v6998_v1 = vsel %vm393_vm8, %v6948_v11, 0.0 }
 0x63b   : > { %v6999_v47 = vadd.f32 %v6998_v1, %v6997_v4  ;;  %v6877_v58 = vadd.f32 %v12701_v21, %v6835_v32  ;;  %v6474_v30 = vpop.f32.mrb[102].mxu0 }
 0x63c   : > { %v6720_v20 = vadd.f32 %v12704_v35, %v6474_v30  ;;  %v6476_v29 = vpop.f32.mrb[103].mxu0 }
 0x63d   : > { %v6913_v63 = vmax.f32 %v6877_v58, 0.0 }
 0x63e   : > { %v6836_v22 = vmul.f32 %v12695_v34, %v6720_v20 }
 0x63f   : > { %v6949_v23 = vmul.f32 %v6913_v63, %v11130_v51 }
 0x640   : > { %v6878_v6 = vadd.f32 %v12701_v21, %v6836_v22 }
 0x641   : > { %v7000_v59 = vsel %vm393_vm8, %v6949_v23, 0.0 }
 0x642   : > { %v7001_v42 = vadd.f32 %v7000_v59, %v6999_v47  ;;  %v6914_v9 = vmax.f32 %v6878_v6, 0.0  ;;  %v6479_v2 = vpop.f32.mrb[104].mxu0 }
 0x643   : > { %v6725_v26 = vadd.f32 %v12717_v56, %v6479_v2  ;;  %v6481_v43 = vpop.f32.mrb[105].mxu0 }
 0x644   : > { %v6950_v28 = vmul.f32 %v6914_v9, %v11128_v7 }
 0x645   : > { %v6837_v35 = vmul.f32 %v12695_v34, %v6725_v26 }
 0x646   : > { %v7002_v62 = vsel %vm393_vm8, %v6950_v28, 0.0 }
 0x647   : > { %v7003_v27 = vadd.f32 %v7002_v62, %v7001_v42  ;;  %v6879_v14 = vadd.f32 %v12701_v21, %v6837_v35  ;;  %v6484_v51 = vpop.f32.mrb[106].mxu0  ;;  %v13333_v62 = vld [vmem:[#allocation56_spill] sm:$0xff] }
 0x648   : > { %v6730_v5 = vadd.f32 %v12714_v18, %v6484_v51  ;;  %v6486_v53 = vpop.f32.mrb[107].mxu0  ;;  %v7050_v18 = vld [vmem:[%s13037_s8 + $0x18] sm:$0xff] }
 0x649   : > { %v6915_v38 = vmax.f32 %v6879_v14, 0.0  ;;  %v7806_v13 = vpack.c.bf16 %v7050_v18, %v7049_v48  ;;  %v13336_v18 = vld [vmem:[#allocation108_spill] sm:$0xff] }
 0x64a   : > { %v6838_v19 = vmul.f32 %v12695_v34, %v6730_v5  ;;  %v12891_v10 = vpop.f32.mrb[110].mxu1 }
 0x64b   : > { %v6951_v50 = vmul.f32 %v6915_v38, %v13314_v55  ;;  %v12894_v4 = vpop.f32.mrb[111].mxu1  ;;  %7807 = vmatpush3.bf16.msra.mxu1 %v7806_v13 }
 0x64c   : > { %v6880_v56 = vadd.f32 %v12701_v21, %v6838_v19  ;;  %v13334_v19 = vmov 0.0  }
 0x64d   : > { %v7004_v7 = vsel %vm393_vm8, %v6951_v50, 0.0  ;;  %7679 = vmatprep.mubr.msk.f32.mxu1 %vm9031_vm13, %v13334_v19 }
 0x64e   : > { %v7005_v46 = vadd.f32 %v7004_v7, %v7003_v27  ;;  %v6916_v39 = vmax.f32 %v6880_v56, 0.0  ;;  %v6489_v44 = vpop.f32.mrb[108].mxu0 }
 0x64f   : > { %v6735_v41 = vadd.f32 %v12739_v17, %v6489_v44  ;;  %v6491_v55 = vpop.f32.mrb[109].mxu0 }
 0x650   : > { %v6952_v31 = vmul.f32 %v6916_v39, %v13315_v36 }
 0x651   : > { %v6839_v15 = vmul.f32 %v12695_v34, %v6735_v41 }
 0x652   : > { %v7006_v16 = vsel %vm393_vm8, %v6952_v31, 0.0 }
 0x653   : > { %v7007_v40 = vadd.f32 %v7006_v16, %v7005_v46  ;;  %v6881_v11 = vadd.f32 %v12701_v21, %v6839_v15  ;;  %v6494_v32 = vpop.f32.mrb[110].mxu0 }
 0x654   : > { %v6740_v1 = vadd.f32 %v12737_v8, %v6494_v32  ;;  %v6496_v47 = vpop.f32.mrb[111].mxu0 }
 0x655   : > { %v6917_v58 = vmax.f32 %v6881_v11, 0.0  ;;  %v13337_v11 = vld [vmem:[#allocation7_spill] sm:$0xff] }
 0x656   : > { %v6840_v17 = vmul.f32 %v12695_v34, %v6740_v1 }
 0x657   : > { %v6953_v30 = vmul.f32 %v6917_v58, %v13316_v25 }
 0x658   : > { %v6882_v20 = vadd.f32 %v12701_v21, %v6840_v17 }
 0x659   : > { %v7008_v36 = vsel %vm393_vm8, %v6953_v30, 0.0 }
 0x65a   : > { %v7009_v29 = vadd.f32 %v7008_v36, %v7007_v40  ;;  %v6918_v63 = vmax.f32 %v6882_v20, 0.0  ;;  %v6499_v22 = vpop.f32.mrb[112].mxu0 }
 0x65b   : > { %v6745_v23 = vadd.f32 %v12762_v33, %v6499_v22  ;;  %v6501_v6 = vpop.f32.mrb[113].mxu0 }
 0x65c   : > { %v6954_v59 = vmul.f32 %v6918_v63, %v13317_v3 }
 0x65d   : > { %v6841_v8 = vmul.f32 %v12695_v34, %v6745_v23  ;;  %v13338_v23 = vld [vmem:[#allocation8_spill] sm:$0xff] }
 0x65e   : > { %v7010_v42 = vsel %vm393_vm8, %v6954_v59, 0.0 }
 0x65f   : > { %v7011_v9 = vadd.f32 %v7010_v42, %v7009_v29  ;;  %v6883_v2 = vadd.f32 %v12701_v21, %v6841_v8  ;;  %v6504_v25 = vpop.f32.mrb[114].mxu0 }
 0x660   : > { %v6750_v26 = vadd.f32 %v12758_v60, %v6504_v25  ;;  %v6506_v43 = vpop.f32.mrb[115].mxu0  ;;  %v13335_v60 = vld [vmem:[#allocation82_spill] sm:$0xff] }
 0x661   : > { %v6919_v28 = vmax.f32 %v6883_v2, 0.0  ;;  %v13339_v2 = vld [vmem:[#allocation32_spill] sm:$0xff] }
 0x662   : > { %v6842_v35 = vmul.f32 %v12695_v34, %v6750_v26 }
 0x663   : > { %v6955_v27 = vmul.f32 %v6919_v28, %v13333_v62 }
 0x664   : > { %v6884_v33 = vadd.f32 %v12701_v21, %v6842_v35 }
 0x665   : > { %v7012_v3 = vsel %vm393_vm8, %v6955_v27, 0.0 }
 0x666   : > { %v7013_v14 = vadd.f32 %v7012_v3, %v7011_v9  ;;  %v6920_v51 = vmax.f32 %v6884_v33, 0.0  ;;  %v13340_v3 = vld [vmem:[#allocation33_spill] sm:$0xff] }
 0x667   : > { %v6509_v5 = vpop.f32.mrb[116].mxu0 }
 0x668   : > { %v6755_v53 = vadd.f32 %v12790_v0, %v6509_v5  ;;  %v6511_v38 = vpop.f32.mrb[117].mxu0  ;;  %v6956_v50 = vmul.f32 %v6920_v51, %v13335_v60 }
 0x66a   : > { %v6843_v56 = vmul.f32 %v12695_v34, %v6755_v53  ;;  %v7014_v7 = vsel %vm393_vm8, %v6956_v50, 0.0 }
 0x66b   : > { %v7015_v46 = vadd.f32 %v7014_v7, %v7013_v14 }
 0x66c   : > { %v6885_v39 = vadd.f32 %v12701_v21, %v6843_v56 }
 0x66e   : > { %v6921_v44 = vmax.f32 %v6885_v39, 0.0  ;;  %v13341_v39 = vld [vmem:[#allocation58_spill] sm:$0xff] }
 0x66f   : > { %v6514_v48 = vpop.f32.mrb[118].mxu0 }
 0x670   : > { %v6957_v41 = vmul.f32 %v6921_v44, %v13336_v18  ;;  %v6760_v55 = vadd.f32 %v12787_v37, %v6514_v48  ;;  %v6516_v0 = vpop.f32.mrb[119].mxu0 }
 0x672   : > { %v7016_v13 = vsel %vm393_vm8, %v6957_v41, 0.0  ;;  %v6844_v31 = vmul.f32 %v12695_v34, %v6760_v55 }
 0x673   : > { %v7017_v15 = vadd.f32 %v7016_v13, %v7015_v46 }
 0x674   : > { %v6886_v16 = vadd.f32 %v12701_v21, %v6844_v31 }
 0x676   : > { %v6922_v40 = vmax.f32 %v6886_v16, 0.0  ;;  %v13342_v16 = vld [vmem:[#allocation59_spill] sm:$0xff] }
 0x677   : > { %v6519_v1 = vpop.f32.mrb[120].mxu0 }
 0x678   : > { %v6958_v32 = vmul.f32 %v6922_v40, %v13337_v11  ;;  %v6765_v47 = vadd.f32 %v12811_v61, %v6519_v1  ;;  %v6521_v58 = vpop.f32.mrb[121].mxu0 }
 0x679   : > { %v13343_v58 = vld [vmem:[#allocation84_spill] sm:$0xff] }
 0x67a   : > { %v7018_v17 = vsel %vm393_vm8, %v6958_v32, 0.0  ;;  %v6845_v37 = vmul.f32 %v12695_v34, %v6765_v47 }
 0x67b   : > { %v7019_v30 = vadd.f32 %v7018_v17, %v7017_v15 }
 0x67c   : > { %v6887_v20 = vadd.f32 %v12701_v21, %v6845_v37 }
 0x67e   : > { %v6923_v36 = vmax.f32 %v6887_v20, 0.0 }
 0x67f   : > { %v6524_v29 = vpop.f32.mrb[122].mxu0 }
 0x680   : > { %v6770_v63 = vadd.f32 %v12807_v12, %v6524_v29  ;;  %v6526_v22 = vpop.f32.mrb[123].mxu0  ;;  %v6959_v6 = vmul.f32 %v6923_v36, %v13338_v23 }
 0x682   : > { %v6846_v59 = vmul.f32 %v12695_v34, %v6770_v63  ;;  %v7020_v8 = vsel %vm393_vm8, %v6959_v6, 0.0 }
 0x683   : > { %v7021_v61 = vadd.f32 %v7020_v8, %v7019_v30 }
 0x684   : > { %v6888_v42 = vadd.f32 %v12701_v21, %v6846_v59  ;;  %v13344_v59 = vld [vmem:[#allocation85_spill] sm:$0xff] }
 0x686   : > { %v6924_v9 = vmax.f32 %v6888_v42, 0.0 }
 0x687   : > { %v6529_v26 = vpop.f32.mrb[124].mxu0 }
 0x688   : > { %v6960_v25 = vmul.f32 %v6924_v9, %v13339_v2  ;;  %v6775_v28 = vadd.f32 %v12849_v24, %v6529_v26  ;;  %v6531_v35 = vpop.f32.mrb[125].mxu0 }
 0x68a   : > { %v7022_v43 = vsel %vm393_vm8, %v6960_v25, 0.0  ;;  %v6847_v62 = vmul.f32 %v12695_v34, %v6775_v28  ;;  %v13345_v28 = vld [vmem:[#allocation110_spill] sm:$0xff] }
 0x68b   : > { %v7023_v12 = vadd.f32 %v7022_v43, %v7021_v61 }
 0x68c   : > { %v6889_v27 = vadd.f32 %v12701_v21, %v6847_v62 }
 0x68e   : > { %v6925_v33 = vmax.f32 %v6889_v27, 0.0 }
 0x690   : > { %v6961_v14 = vmul.f32 %v6925_v33, %v13340_v3 }
 0x692   : > { %v7024_v51 = vsel %vm393_vm8, %v6961_v14, 0.0 }
 0x693   : > { %v7025_v5 = vadd.f32 %v7024_v51, %v7023_v12 }
 0x6a8   : > { %v6534_v53 = vpop.f32.mrb[126].mxu0 }
 0x6a9   : > { %v6780_v38 = vadd.f32 %v12846_v54, %v6534_v53  ;;  %v6536_v19 = vpop.f32.mrb[127].mxu0  ;;  %v13346_v53 = vld [vmem:[#allocation9_spill] sm:$0xff] }
 0x6ab   : > { %v6848_v60 = vmul.f32 %v12695_v34, %v6780_v38 }
 0x6ad   : > { %v6890_v24 = vadd.f32 %v12701_v21, %v6848_v60 }
 0x6af   : > { %v6539_v50 = vpop.f32.mrb[128].mxu0  ;;  %v6926_v56 = vmax.f32 %v6890_v24, 0.0 }
 0x6b0   : > { %v6785_v7 = vadd.f32 %v12856_v45, %v6539_v50  ;;  %v6541_v46 = vpop.f32.mrb[129].mxu0  ;;  %v13347_v50 = vld [vmem:[#allocation10_spill] sm:$0xff] }
 0x6b1   : > { %v6962_v44 = vmul.f32 %v6926_v56, %v13341_v39 }
 0x6b2   : > { %v6849_v48 = vmul.f32 %v12695_v34, %v6785_v7 }
 0x6b3   : > { %v7026_v41 = vsel %vm393_vm8, %v6962_v44, 0.0 }
 0x6b4   : > { %v6544_v18 = vpop.f32.mrb[130].mxu0  ;;  %v6891_v55 = vadd.f32 %v12701_v21, %v6849_v48  ;;  %v7027_v13 = vadd.f32 %v7026_v41, %v7025_v5 }
 0x6b5   : > { %v6790_v54 = vadd.f32 %v12853_v52, %v6544_v18  ;;  %v6546_v0 = vpop.f32.mrb[131].mxu0 }
 0x6b6   : > { %v6927_v31 = vmax.f32 %v6891_v55, 0.0 }
 0x6b7   : > { %v6850_v15 = vmul.f32 %v12695_v34, %v6790_v54 }
 0x6b8   : > { %v6963_v40 = vmul.f32 %v6927_v31, %v13342_v16 }
 0x6b9   : > { %v6892_v45 = vadd.f32 %v12701_v21, %v6850_v15 }
 0x6ba   : > { %v7028_v11 = vsel %vm393_vm8, %v6963_v40, 0.0 }
 0x6bb   : > { %v6928_v32 = vmax.f32 %v6892_v45, 0.0  ;;  %v7029_v1 = vadd.f32 %v7028_v11, %v7027_v13  ;;  %v6549_v47 = vpop.f32.mrb[132].mxu0 }
 0x6bc   : > { %v6795_v30 = vadd.f32 %v12863_v49, %v6549_v47  ;;  %v6551_v37 = vpop.f32.mrb[133].mxu0 }
 0x6bd   : > { %v6964_v17 = vmul.f32 %v6928_v32, %v13343_v58 }
 0x6be   : > { %v6851_v20 = vmul.f32 %v12695_v34, %v6795_v30 }
 0x6bf   : > { %v7030_v52 = vsel %vm393_vm8, %v6964_v17, 0.0 }
 0x6c0   : > { %v7031_v36 = vadd.f32 %v7030_v52, %v7029_v1  ;;  %v6893_v29 = vadd.f32 %v12701_v21, %v6851_v20  ;;  %v6554_v63 = vpop.f32.mrb[134].mxu0 }
 0x6c1   : > { %v6800_v23 = vadd.f32 %v12861_v57, %v6554_v63  ;;  %v6556_v6 = vpop.f32.mrb[135].mxu0 }
 0x6c2   : > { %v6929_v22 = vmax.f32 %v6893_v29, 0.0 }
 0x6c3   : > { %v6852_v61 = vmul.f32 %v12695_v34, %v6800_v23 }
 0x6c4   : > { %v6965_v8 = vmul.f32 %v6929_v22, %v13344_v59 }
 0x6c5   : > { %v6894_v49 = vadd.f32 %v12701_v21, %v6852_v61 }
 0x6c6   : > { %v7032_v42 = vsel %vm393_vm8, %v6965_v8, 0.0 }
 0x6c7   : > { %v7033_v9 = vadd.f32 %v7032_v42, %v7031_v36  ;;  %v6559_v2 = vpop.f32.mrb[136].mxu0  ;;  %v6930_v25 = vmax.f32 %v6894_v49, 0.0 }
 0x6c8   : > { %v6805_v26 = vadd.f32 %v12894_v4, %v6559_v2  ;;  %v6561_v43 = vpop.f32.mrb[137].mxu0 }
 0x6c9   : > { %v6966_v35 = vmul.f32 %v6930_v25, %v13345_v28 }
 0x6ca   : > { %v6853_v12 = vmul.f32 %v12695_v34, %v6805_v26 }
 0x6cb   : > { %v7034_v62 = vsel %vm393_vm8, %v6966_v35, 0.0 }
 0x6cc   : > { %v6564_v57 = vpop.f32.mrb[138].mxu0  ;;  %v6895_v27 = vadd.f32 %v12701_v21, %v6853_v12  ;;  %v7035_v14 = vadd.f32 %v7034_v62, %v7033_v9 }
 0x6cd   : > { %v6810_v33 = vadd.f32 %v12891_v10, %v6564_v57  ;;  %v6566_v3 = vpop.f32.mrb[139].mxu0 }
 0x6ce   : > { %v6931_v51 = vmax.f32 %v6895_v27, 0.0 }
 0x6cf   : > { %v6854_v5 = vmul.f32 %v12695_v34, %v6810_v33 }
 0x6d0   : > { %v6967_v38 = vmul.f32 %v6931_v51, %v13346_v53 }
 0x6d1   : > { %v6896_v4 = vadd.f32 %v12701_v21, %v6854_v5  ;;  %v7051_v21 = vld [vmem:[%s13038_s9] sm:$0x1] }
 0x6d2   : > { %v7036_v19 = vsel %vm393_vm8, %v6967_v38, 0.0 }
 0x6d3   : > { %v6932_v60 = vmax.f32 %v6896_v4, 0.0  ;;  %v7037_v24 = vadd.f32 %v7036_v19, %v7035_v14 }
 0x6d5   : > { %v6968_v56 = vmul.f32 %v6932_v60, %v13347_v50 }
 0x6d7   : > { %v7038_v7 = vsel %vm393_vm8, %v6968_v56, 0.0 }
 0x6d8   : > { %v7039_v10 = vadd.f32 %v7038_v7, %v7037_v24 }
 0x6da   : > { %v7040_v46 = vrot.slane %v7039_v10, 4 }
 0x6dc   : > { %v7041_v39 = vadd.f32 %v7040_v46, %v7039_v10 }
 0x6de   : > { %v7042_v44 = vrot.slane %v7041_v39, 2 }
 0x6e0   : > { %v7043_v48 = vadd.f32 %v7042_v44, %v7041_v39 }
 0x6e2   : > { %v7044_v34 = vrot.slane %v7043_v48, 1 }
 0x6e4   : > { %v7045_v18 = vadd.f32 %v7044_v34, %v7043_v48 }
 0x6e6   : > { %v7046_v41 = vmul.f32 0.00390625, %v7045_v18 }
 0x6e8   : > { %7680 = vmatmul.mubr.msk.f32.vlgmr.msra.gmra.mrb[112].mxu1 %vm393_vm8, %v7046_v41 }
 0x7bb   : > { %v7121_v55 = vpop.f32.mrb[112].mxu1 }
 0x7bc   : > { %v7122_v54 = vadd.f32 %v7121_v55, %v7051_v21  ;;  %v7681_v0 = vpop.f32.mrb[113].mxu1 }
 0x7be   : > { %7126 = vst.msk [vmem:[%s351_s21] sm:$0x1] %vm7125_vm14, %v7122_v54 }
 0x7bf   : > { %8967 = shalt.err (!%p8964_p3)
}
 0x7c0   : > { %s8968_s28 = scalar_lea.hbm %s12987_s29, 16  ;;  %s8972_s26 = scalar_lea.hbm %s13039_s10, 32 }
 0x7c1   : > { %p8969_p4 = scmp.ne.s32.totalorder %s12987_s29, %s8968_s28  ;;  %p8973_p9 = scmp.lt.u32.totalorder %s12987_s29, %s13039_s10 }
 0x7c2   : > { %p8974_p10 = scmp.lt.u32.totalorder %s8972_s26, %s8968_s28  ;;  %p8976_p12 = scmp.lt.u32.totalorder %s8968_s28, %s12987_s29 }
 0x7c3   : > { %p8970_p7 = pnand %p8969_p4, %p9126_p5 }
 0x7c4   : > { %p8975_p11 = por %p8974_p10, %p8973_p9 }
 0x7c5   : > { %p8971_p8 = pneg %p8970_p7 }
 0x7c6   : > { %p8977_p13 = por %p8976_p12, %p8975_p11 }
 0x7c8   : > { %p8978_p0 = pnand %p8977_p13, %p8971_p8 }
 0x7ca   : > { %8981 = shalt.err (!%p8978_p0)
}
 0x7cb   : > { %7813 = dma.vmem_to_hbm [thread:$0]  (%p9126_p5), %s12989_s25, 16, %s12987_s29, %s7128_s11  }
 0x7cc PF: > { %p7819_p1 = scmp.ge.s32.totalorder %s9016_s16, 2  ;;  %s7152_s27 = sand.u32 1, %s9004_s13  }
 0x7cd   : > { %s7153_s30 = scalar_lea.sflag [#allocation4], %s7152_s27 }
 0x7ce   : > { %p7816_p2 = pnand %p7819_p1, %p9130_p6 }
 0x7d0   : > { %8999 = dma.done.wait (!%p7816_p2), %s7153_s30, 16  }
 0x7d1   : > { %9001 = vsyncadd (!%p7816_p2), %s7153_s30, 4294967280  ;;  %p20_p3 = scmp.ge.s32.totalorder %s9113_s19, 4   ;;  %s13348_s13 = smov %s9008_s14 }
 0x7d2   : > { %s13349_s14 = smov %s9012_s15  ;;  %s13350_s15 = smov %s9124_s22 }
 0x7d3   : > { %s13351_s16 = smov %s9113_s19  ;;  %22 = sbr.rel (!%p20_p3) target bundleno = 3 (0x3), region = 98 }
 0x7da   :  { %7157 = vsyncpa [#allocation4], 1 }
 0x7db   :  { %7159 = vsyncpa [#allocation4 + $0x1], 1 }

</bundles_post_ra>
